<compile_context>
chip_gen: v7x
topology: tpu7x:2x2x1
jax: 0.10.0
libtpu: 0.0.40
codegen_flags: <defaults>
</compile_context>

<pallas_src>
import jax
import jax.numpy as jnp
from jax.experimental import pallas as pl
from jax.experimental.pallas import tpu as pltpu

INPUT_DIM = 32
HIDDEN1 = 2048
HIDDEN2 = 1024
OUTPUT_DIM = 8
LANE = 128


def _round_up(x, m):
    return (x + m - 1) // m * m


def _silu(h):
    # SiLU(x) = x * sigmoid(x) = x * 0.5 * (tanh(x/2) + 1).
    # Single EUP transcendental (tanh) instead of exp + reciprocal; the extra
    # mul/adds ride the 4 VALU slots, which have plenty of slack here.
    return h * (0.5 * jnp.tanh(0.5 * h) + 0.5)


def _make_kernel(n_sub, sub_rows):
    """Kernel body: `n_sub` independent row sub-chunks, each running the full
    5-layer chain.  Independent chains in one basic block let the scheduler hide
    one chunk's SiLU/cast under the other's MXU time."""

    def kernel(x_ref, w1_ref, w2_ref, w3_ref, w4_ref, w5_ref, o_ref):
        for s in range(n_sub):          # static unroll -> one big basic block
            r0 = s * sub_rows           # static offset
            x = x_ref[pl.ds(r0, sub_rows), :]
            h = jnp.dot(x, w1_ref[...], preferred_element_type=jnp.float32)
            h = _silu(h).astype(jnp.bfloat16)
            # Dropout(0.1): identity in eval/inference mode.
            # TODO(synk): training-mode dropout (pltpu.prng_random_bits mask) not implemented.
            h = jnp.dot(h, w2_ref[...], preferred_element_type=jnp.float32)
            h = _silu(h).astype(jnp.bfloat16)
            h = jnp.dot(h, w3_ref[...], preferred_element_type=jnp.float32)
            h = _silu(h).astype(jnp.bfloat16)
            h = jnp.dot(h, w4_ref[...], preferred_element_type=jnp.float32)
            h = _silu(h).astype(jnp.bfloat16)
            # Dropout(0.1): identity in eval/inference mode.
            o_ref[pl.ds(r0, sub_rows), :] = jnp.dot(
                h, w5_ref[...], preferred_element_type=jnp.float32
            ).astype(o_ref.dtype)

    return kernel


def _tpu_budget():
    """(scoped-VMEM limit, default row tile), generation aware.
    v5e/v6e: 128 MiB physical -> ~96 MiB budget, tm=1024.
    v7x:      64 MiB physical -> 48 MiB budget,  tm=512."""
    try:
        cap = int(pltpu.get_tpu_info().vmem_capacity_bytes)
    except Exception:
        cap = 64 << 20  # conservative: assume the smallest current generation
    vmem_limit = min(cap * 3 // 4, 100 << 20)
    default_tm = 1024 if cap >= (96 << 20) else 512
    return vmem_limit, default_tm


def _choose_row_tile(n_rows, tm):
    """Largest multiple-of-16 tile <= tm covering n_rows, capped so the grid has
    at least 2 steps whenever n_rows allows it (keeps both v7x TensorCores fed)."""
    tm_eff = min(tm, _round_up(max(n_rows, 1), 16))
    if n_rows >= 32:
        half = _round_up(-(-n_rows // 2), 16)   # ceil(n/2) rounded up to 16
        tm_eff = min(tm_eff, half)
    return max(tm_eff, 16)


def samer_classifier_forward(x2d, params, *, tm=None):
    """x2d: (N, input_dim) float32. params: tuple of 5 (in, out) weight matrices
    (the transpose of PyTorch's nn.Linear (out, in) weights, so y = x @ W)."""
    N, D = x2d.shape
    w1, w2, w3, w4, w5 = params
    out_dim = w5.shape[1]

    vmem_limit, default_tm = _tpu_budget()
    if tm is None:
        tm = default_tm

    # bf16 weights/activations on the MXU, f32 accumulation preserves accuracy.
    x_bf = x2d.astype(jnp.bfloat16)
    w1, w2, w3, w4, w5 = (w.astype(jnp.bfloat16) for w in (w1, w2, w3, w4, w5))

    # Lane-dense output: zero-pad the last weight to a multiple of 128 columns so each
    # grid step stores full-lane (tm, 128) blocks instead of masked 8-lane stores.
    out_pad = _round_up(out_dim, LANE)
    if out_pad != out_dim:
        w5 = jnp.pad(w5, ((0, 0), (0, out_pad - out_dim)))

    # Row tile: big enough to fill the MXU and amortize the ~0.35 us per-step
    # overhead, small enough to leave >= 2 grid steps for v7x's two TensorCores.
    tm_eff = _choose_row_tile(N, tm)
    n_pad = _round_up(N, tm_eff)
    if n_pad != N:
        x_bf = jnp.pad(x_bf, ((0, n_pad - N), (0, 0)))  # SiLU(0)=0, pad rows stay zero

    # Sub-chunk the row tile into 2 independent chains when it is large enough
    # (multiple of 32 keeps bf16 sublane packing intact for each half).
    n_sub = 2 if (tm_eff >= 128 and tm_eff % 32 == 0) else 1
    kernel = _make_kernel(n_sub, tm_eff // n_sub)

    def weight_spec(w):
        # Whole weight resident in VMEM. Constant index_map + single buffering:
        # DMA'd once, never re-fetched, no wasted double-buffer copy.
        return pl.BlockSpec(w.shape, lambda i: (0, 0), pipeline_mode=pl.Buffered(1))

    flops = 2 * n_pad * (D * HIDDEN1 + HIDDEN1 * HIDDEN2
                         + 2 * HIDDEN2 * HIDDEN2 + HIDDEN2 * out_pad)
    transcendentals = n_pad * (HIDDEN1 + 3 * HIDDEN2)  # one tanh per SiLU element
    bytes_accessed = (sum(w.size for w in (w1, w2, w3, w4, w5)) * 2
                      + n_pad * D * 2 + n_pad * out_pad * 4)

    out_padded = pl.pallas_call(
        kernel,
        out_shape=jax.ShapeDtypeStruct((n_pad, out_pad), jnp.float32),
        grid_spec=pltpu.PrefetchScalarGridSpec(
            num_scalar_prefetch=0,
            grid=(n_pad // tm_eff,),
            in_specs=[
                pl.BlockSpec((tm_eff, D), lambda i: (i, 0)),
                weight_spec(w1), weight_spec(w2), weight_spec(w3),
                weight_spec(w4), weight_spec(w5),
            ],
            out_specs=pl.BlockSpec((tm_eff, out_pad), lambda i: (i, 0)),
        ),
        # NOTE: on v7x, verify in a profile that the single "parallel" axis is
        # actually sharded across both TensorCores; if not, switch to an explicit
        # core axis (pltpu.CORE_PARALLEL / pl.core_map) — kept portable here.
        compiler_params=pltpu.CompilerParams(
            dimension_semantics=("parallel",),
            vmem_limit_bytes=vmem_limit,
        ),
        cost_estimate=pl.CostEstimate(
            flops=flops,
            transcendentals=transcendentals,
            bytes_accessed=bytes_accessed,
        ),
    )(x_bf, w1, w2, w3, w4, w5)

    return out_padded[:N, :out_dim]


def init_params(key, input_dim, output_dim, dtype=jnp.float32):
    dims = [(input_dim, HIDDEN1), (HIDDEN1, HIDDEN2), (HIDDEN2, HIDDEN2),
            (HIDDEN2, HIDDEN2), (HIDDEN2, output_dim)]
    keys = jax.random.split(key, len(dims))
    params = []
    for k, (din, dout) in zip(keys, dims):
        scale = 1.0 / jnp.sqrt(jnp.asarray(din, dtype))
        # stored as (in, out); equivalent to PyTorch (out, in) weight transposed
        params.append(scale * jax.random.normal(k, (din, dout), dtype=dtype))
    return tuple(params)


def _ref_bf16(x2d, params):
    # Pure-JAX reference of the same mixed-precision math the kernel performs
    # (bf16 inputs to every matmul, f32 accumulation, f32 SiLU).
    h = x2d.astype(jnp.bfloat16)
    for i, w in enumerate(params):
        h = jnp.dot(h, w.astype(jnp.bfloat16), preferred_element_type=jnp.float32)
        if i < len(params) - 1:
            h = (h * jax.nn.sigmoid(h)).astype(jnp.bfloat16)
    return h.astype(jnp.float32)


if __name__ == "__main__":
    key = jax.random.PRNGKey(0)
    kx, kp = jax.random.split(key)

    batch, seq = 2, 8
    x = jax.random.normal(kx, (batch, seq, INPUT_DIM), dtype=jnp.float32)
    params = init_params(kp, INPUT_DIM, OUTPUT_DIM)

    # Main path: exact-multiple N.
    x2d = x.reshape(batch * seq, INPUT_DIM)
    out2d = samer_classifier_forward(x2d, params)
    out = out2d.reshape(batch, seq, OUTPUT_DIM)
    jax.block_until_ready(out)

    expected = _ref_bf16(x2d, params).reshape(batch, seq, OUTPUT_DIM)
    assert jnp.allclose(out, expected, atol=1e-2, rtol=1e-2), (
        float(jnp.max(jnp.abs(out - expected))))

    # Also exercise the ragged-N padding + multi-step grid path.
    x_ragged = jax.random.normal(kx, (20, INPUT_DIM), dtype=jnp.float32)
    out_ragged = samer_classifier_forward(x_ragged, params)
    jax.block_until_ready(out_ragged)
    exp_ragged = _ref_bf16(x_ragged, params)
    assert out_ragged.shape == (20, OUTPUT_DIM)
    assert jnp.allclose(out_ragged, exp_ragged, atol=1e-2, rtol=1e-2)

    # And a larger batch that triggers the 2-sub-chunk interleaved body.
    x_big = jax.random.normal(kx, (512, INPUT_DIM), dtype=jnp.float32)
    out_big = samer_classifier_forward(x_big, params)
    jax.block_until_ready(out_big)
    exp_big = _ref_bf16(x_big, params)
    assert out_big.shape == (512, OUTPUT_DIM)
    assert jnp.allclose(out_big, exp_big, atol=1e-2, rtol=1e-2)

    print("KERNEL_OK")
</pallas_src>

<mosaic_0001>
module attributes {stable_mosaic.version = 11 : i64} {
  func.func @kernel(%arg0: i32, %arg1: memref<16x32xbf16, #tpu.memory_space<vmem>>, %arg2: memref<32x2048xbf16, #tpu.memory_space<vmem>>, %arg3: memref<2048x1024xbf16, #tpu.memory_space<vmem>>, %arg4: memref<1024x1024xbf16, #tpu.memory_space<vmem>>, %arg5: memref<1024x1024xbf16, #tpu.memory_space<vmem>>, %arg6: memref<1024x128xbf16, #tpu.memory_space<vmem>>, %arg7: memref<16x128xf32, #tpu.memory_space<vmem>>) attributes {dimension_semantics = [#tpu.dimension_semantics<parallel>], iteration_bounds = array<i64: 1>, scalar_prefetch = 0 : i64, scratch_operands = 0 : i64, tpu.core_type = #tpu.core_type<tc>, window_params = [{transform_indices = @transform_0, window_bounds = array<i64: 16, 32>}, {pipeline_mode = #tpu.pipeline_mode<synchronous>, transform_indices = @transform_1, window_bounds = array<i64: 32, 2048>}, {pipeline_mode = #tpu.pipeline_mode<synchronous>, transform_indices = @transform_2, window_bounds = array<i64: 2048, 1024>}, {pipeline_mode = #tpu.pipeline_mode<synchronous>, transform_indices = @transform_3, window_bounds = array<i64: 1024, 1024>}, {pipeline_mode = #tpu.pipeline_mode<synchronous>, transform_indices = @transform_4, window_bounds = array<i64: 1024, 1024>}, {pipeline_mode = #tpu.pipeline_mode<synchronous>, transform_indices = @transform_5, window_bounds = array<i64: 1024, 128>}, {transform_indices = @transform_6, window_bounds = array<i64: 16, 128>}]} {
    %c0 = arith.constant 0 : index
    %c0_0 = arith.constant 0 : index
    %0 = vector.load %arg1[%c0, %c0_0] : memref<16x32xbf16, #tpu.memory_space<vmem>>, vector<16x32xbf16>
    %c0_1 = arith.constant 0 : index
    %c0_2 = arith.constant 0 : index
    %1 = vector.load %arg2[%c0_1, %c0_2] : memref<32x2048xbf16, #tpu.memory_space<vmem>>, vector<32x2048xbf16>
    %cst = arith.constant dense<0.000000e+00> : vector<16x2048xf32>
    %2 = tpu.matmul %0, %1, %cst {dimension_numbers = #tpu.dot_dimension_numbers<[1], [0], [0], [1], [0, 0, 1, 1], [], []>} : vector<16x32xbf16>, vector<32x2048xbf16>, vector<16x2048xf32> -> vector<16x2048xf32>
    %cst_3 = arith.constant 5.000000e-01 : f32
    %3 = vector.broadcast %cst_3 : f32 to vector<16x2048xf32>
    %4 = arith.mulf %3, %2 : vector<16x2048xf32>
    %5 = math.tanh %4 : vector<16x2048xf32>
    %cst_4 = arith.constant 5.000000e-01 : f32
    %6 = vector.broadcast %cst_4 : f32 to vector<16x2048xf32>
    %7 = arith.mulf %6, %5 : vector<16x2048xf32>
    %cst_5 = arith.constant 5.000000e-01 : f32
    %8 = vector.broadcast %cst_5 : f32 to vector<16x2048xf32>
    %9 = arith.addf %7, %8 : vector<16x2048xf32>
    %10 = arith.mulf %2, %9 : vector<16x2048xf32>
    %11 = arith.truncf %10 : vector<16x2048xf32> to vector<16x2048xbf16>
    %c0_6 = arith.constant 0 : index
    %c0_7 = arith.constant 0 : index
    %12 = vector.load %arg3[%c0_6, %c0_7] : memref<2048x1024xbf16, #tpu.memory_space<vmem>>, vector<2048x1024xbf16>
    %cst_8 = arith.constant dense<0.000000e+00> : vector<16x1024xf32>
    %13 = tpu.matmul %11, %12, %cst_8 {dimension_numbers = #tpu.dot_dimension_numbers<[1], [0], [0], [1], [0, 0, 1, 1], [], []>} : vector<16x2048xbf16>, vector<2048x1024xbf16>, vector<16x1024xf32> -> vector<16x1024xf32>
    %cst_9 = arith.constant 5.000000e-01 : f32
    %14 = vector.broadcast %cst_9 : f32 to vector<16x1024xf32>
    %15 = arith.mulf %14, %13 : vector<16x1024xf32>
    %16 = math.tanh %15 : vector<16x1024xf32>
    %cst_10 = arith.constant 5.000000e-01 : f32
    %17 = vector.broadcast %cst_10 : f32 to vector<16x1024xf32>
    %18 = arith.mulf %17, %16 : vector<16x1024xf32>
    %cst_11 = arith.constant 5.000000e-01 : f32
    %19 = vector.broadcast %cst_11 : f32 to vector<16x1024xf32>
    %20 = arith.addf %18, %19 : vector<16x1024xf32>
    %21 = arith.mulf %13, %20 : vector<16x1024xf32>
    %22 = arith.truncf %21 : vector<16x1024xf32> to vector<16x1024xbf16>
    %c0_12 = arith.constant 0 : index
    %c0_13 = arith.constant 0 : index
    %23 = vector.load %arg4[%c0_12, %c0_13] : memref<1024x1024xbf16, #tpu.memory_space<vmem>>, vector<1024x1024xbf16>
    %cst_14 = arith.constant dense<0.000000e+00> : vector<16x1024xf32>
    %24 = tpu.matmul %22, %23, %cst_14 {dimension_numbers = #tpu.dot_dimension_numbers<[1], [0], [0], [1], [0, 0, 1, 1], [], []>} : vector<16x1024xbf16>, vector<1024x1024xbf16>, vector<16x1024xf32> -> vector<16x1024xf32>
    %cst_15 = arith.constant 5.000000e-01 : f32
    %25 = vector.broadcast %cst_15 : f32 to vector<16x1024xf32>
    %26 = arith.mulf %25, %24 : vector<16x1024xf32>
    %27 = math.tanh %26 : vector<16x1024xf32>
    %cst_16 = arith.constant 5.000000e-01 : f32
    %28 = vector.broadcast %cst_16 : f32 to vector<16x1024xf32>
    %29 = arith.mulf %28, %27 : vector<16x1024xf32>
    %cst_17 = arith.constant 5.000000e-01 : f32
    %30 = vector.broadcast %cst_17 : f32 to vector<16x1024xf32>
    %31 = arith.addf %29, %30 : vector<16x1024xf32>
    %32 = arith.mulf %24, %31 : vector<16x1024xf32>
    %33 = arith.truncf %32 : vector<16x1024xf32> to vector<16x1024xbf16>
    %c0_18 = arith.constant 0 : index
    %c0_19 = arith.constant 0 : index
    %34 = vector.load %arg5[%c0_18, %c0_19] : memref<1024x1024xbf16, #tpu.memory_space<vmem>>, vector<1024x1024xbf16>
    %cst_20 = arith.constant dense<0.000000e+00> : vector<16x1024xf32>
    %35 = tpu.matmul %33, %34, %cst_20 {dimension_numbers = #tpu.dot_dimension_numbers<[1], [0], [0], [1], [0, 0, 1, 1], [], []>} : vector<16x1024xbf16>, vector<1024x1024xbf16>, vector<16x1024xf32> -> vector<16x1024xf32>
    %cst_21 = arith.constant 5.000000e-01 : f32
    %36 = vector.broadcast %cst_21 : f32 to vector<16x1024xf32>
    %37 = arith.mulf %36, %35 : vector<16x1024xf32>
    %38 = math.tanh %37 : vector<16x1024xf32>
    %cst_22 = arith.constant 5.000000e-01 : f32
    %39 = vector.broadcast %cst_22 : f32 to vector<16x1024xf32>
    %40 = arith.mulf %39, %38 : vector<16x1024xf32>
    %cst_23 = arith.constant 5.000000e-01 : f32
    %41 = vector.broadcast %cst_23 : f32 to vector<16x1024xf32>
    %42 = arith.addf %40, %41 : vector<16x1024xf32>
    %43 = arith.mulf %35, %42 : vector<16x1024xf32>
    %44 = arith.truncf %43 : vector<16x1024xf32> to vector<16x1024xbf16>
    %c0_24 = arith.constant 0 : index
    %c0_25 = arith.constant 0 : index
    %45 = vector.load %arg6[%c0_24, %c0_25] : memref<1024x128xbf16, #tpu.memory_space<vmem>>, vector<1024x128xbf16>
    %cst_26 = arith.constant dense<0.000000e+00> : vector<16x128xf32>
    %46 = tpu.matmul %44, %45, %cst_26 {dimension_numbers = #tpu.dot_dimension_numbers<[1], [0], [0], [1], [0, 0, 1, 1], [], []>} : vector<16x1024xbf16>, vector<1024x128xbf16>, vector<16x128xf32> -> vector<16x128xf32>
    %c0_27 = arith.constant 0 : index
    %c0_28 = arith.constant 0 : index
    %47 = vector.load %arg7[%c0_27, %c0_28] : memref<16x128xf32, #tpu.memory_space<vmem>>, vector<16x128xf32>
    tpu.vector_store %arg7[%c0_27, %c0_28], %46 {strides = array<i32>} : memref<16x128xf32, #tpu.memory_space<vmem>>, vector<16x128xf32>,
    return
  }
  func.func @transform_0(%arg0: i32) -> (i32, i32) {
    %c0_i32 = arith.constant 0 : i32
    %c0_i32_0 = arith.constant 0 : i32
    return %arg0, %c0_i32 : i32, i32
  }
  func.func @transform_1(%arg0: i32) -> (i32, i32) {
    %c0_i32 = arith.constant 0 : i32
    %c0_i32_0 = arith.constant 0 : i32
    %c0_i32_1 = arith.constant 0 : i32
    return %c0_i32, %c0_i32_0 : i32, i32
  }
  func.func @transform_2(%arg0: i32) -> (i32, i32) {
    %c0_i32 = arith.constant 0 : i32
    %c0_i32_0 = arith.constant 0 : i32
    %c0_i32_1 = arith.constant 0 : i32
    return %c0_i32, %c0_i32_0 : i32, i32
  }
  func.func @transform_3(%arg0: i32) -> (i32, i32) {
    %c0_i32 = arith.constant 0 : i32
    %c0_i32_0 = arith.constant 0 : i32
    %c0_i32_1 = arith.constant 0 : i32
    return %c0_i32, %c0_i32_0 : i32, i32
  }
  func.func @transform_4(%arg0: i32) -> (i32, i32) {
    %c0_i32 = arith.constant 0 : i32
    %c0_i32_0 = arith.constant 0 : i32
    %c0_i32_1 = arith.constant 0 : i32
    return %c0_i32, %c0_i32_0 : i32, i32
  }
  func.func @transform_5(%arg0: i32) -> (i32, i32) {
    %c0_i32 = arith.constant 0 : i32
    %c0_i32_0 = arith.constant 0 : i32
    %c0_i32_1 = arith.constant 0 : i32
    return %c0_i32, %c0_i32_0 : i32, i32
  }
  func.func @transform_6(%arg0: i32) -> (i32, i32) {
    %c0_i32 = arith.constant 0 : i32
    %c0_i32_0 = arith.constant 0 : i32
    return %arg0, %c0_i32 : i32, i32
  }
}

</mosaic_0001>

<bundles_post_ra>
// kernel: tpu_custom_call.1
= control target key start
LH: loop header
LB: loop body
LE: loop exit
PB: predicated region body
PF: predicated region fallthrough
CT: control target
= control target key end

     0   :  { %11 = vsyncpa [#allocation3], 0  ;;  %s20383_s0 = inlined_call_operand.hbm [shape: bf16[16,32], index: 0, kind: input, shape index: {}]   ;;  %s20384_s1 = inlined_call_operand.hbm [shape: bf16[32,2048], index: 1, kind: input, shape index: {}]   ;;  %s20385_s2 = inlined_call_operand.hbm [shape: bf16[2048,1024], index: 2, kind: input, shape index: {}]   ;;  %s20386_s3 = inlined_call_operand.hbm [shape: bf16[1024,1024], index: 3, kind: input, shape index: {}]   ;;  %s20387_s4 = inlined_call_operand.hbm [shape: bf16[1024,1024], index: 4, kind: input, shape index: {}]   ;;  %s20388_s5 = inlined_call_operand.hbm [shape: bf16[1024,128], index: 5, kind: input, shape index: {}]   ;;  %s20389_s6 = inlined_call_operand.hbm [shape: f32[16,128], index: 6, kind: output, shape index: {}]  }
   0x1   :  { %12 = vsyncpa [#allocation6], 0 }
   0x2   :  { %13 = vsyncpa [#allocation9], 0 }
   0x3   :  { %14 = vsyncpa [#allocation12], 0 }
   0x4   :  { %15 = vsyncpa [#allocation4], 0  ;;  %s19685_s21 = smov [#allocation5]   ;;  %s19521_s25 = scalar_lea.hbm %s20384_s1, 4096 }
   0x5   :  { %s33_s22 = sshll.u32 %s19685_s21, 4  ;;  %p19522_p0 = scmp.ne.s32.totalorder %s20384_s1, %s19521_s25  ;;  %s34_s22 = int_to_ptr.vmem [resolvable:$true] %s33_s22 }
   0x6   :  { %p19525_p1 = scmp.lt.u32.totalorder %s19521_s25, %s20384_s1 }
   0x8   :  { %p19527_p2 = pnand %p19525_p1, %p19522_p0 }
   0xa   :  { %19530 = shalt.err (!%p19527_p2)
}
   0xb   :  { %s19531_s30 = scalar_lea.vmem %s34_s22, 4096  ;;  %p19536_p4 = scmp.lt.s32.totalorder %s34_s22, %s34_s22 }
   0xc   :  { %p19532_p3 = scmp.ne.s32.totalorder %s34_s22, %s19531_s30  ;;  %p19537_p5 = scmp.lt.s32.totalorder %s19531_s30, %s19531_s30 }
   0xe   :  { %p19538_p6 = por %p19537_p5, %p19536_p4 }
  0x10   :  { %p19539_p7 = pnand %p19538_p6, %p19532_p3 }
  0x12   :  { %19542 = shalt.err (!%p19539_p7)
}
  0x13   :  { %s19686_s7 = smov 1024   ;;  %s19687_s8 = smov 64  }
  0x14   :  { %39 = dma.hbm_to_vmem [thread:$0]  %s20384_s1, 4096, %s34_s22, [#allocation6], %s19686_s7, %s19686_s7, %s19687_s8  }
  0x15   :  { %s19688_s11 = smov [#allocation8]   ;;  %s19689_s13 = smov [#allocation2]  }
  0x16   :  { %s57_s12 = sshll.u32 %s19688_s11, 4  ;;  %s21_s14 = sshll.u32 %s19689_s13, 4  ;;  %s58_s12 = int_to_ptr.vmem [resolvable:$true] %s57_s12  ;;  %s22_s14 = int_to_ptr.vmem [resolvable:$true] %s21_s14 }
  0x17   :  { %s19543_s17 = scalar_lea.hbm %s20386_s3, 65536 }
  0x18   :  { %p19544_p8 = scmp.ne.s32.totalorder %s20386_s3, %s19543_s17  ;;  %p19547_p9 = scmp.lt.u32.totalorder %s19543_s17, %s20386_s3 }
  0x1a   :  { %p19549_p10 = pnand %p19547_p9, %p19544_p8 }
  0x1c   :  { %19552 = shalt.err (!%p19549_p10)
}
  0x1d   :  { %s19553_s1 = scalar_lea.vmem %s58_s12, 65536  ;;  %p19558_p12 = scmp.lt.s32.totalorder %s58_s12, %s58_s12 }
  0x1e   :  { %p19554_p11 = scmp.ne.s32.totalorder %s58_s12, %s19553_s1  ;;  %p19559_p13 = scmp.lt.s32.totalorder %s19553_s1, %s19553_s1 }
  0x20   :  { %p19560_p0 = por %p19559_p13, %p19558_p12 }
  0x22   :  { %p19561_p1 = pnand %p19560_p0, %p19554_p11 }
  0x24   :  { %19564 = shalt.err (!%p19561_p1)
}
  0x25   :  { %s19690_s22 = smov 512   ;;  %s19691_s23 = smov 32  }
  0x26   :  { %63 = dma.hbm_to_vmem [thread:$0]  %s20386_s3, 65536, %s58_s12, [#allocation9], %s19690_s22, %s19690_s22, %s19691_s23  }
  0x27   :  { %s19565_s28 = scalar_lea.hbm %s20383_s0, 128 }
  0x28   :  { %p19566_p2 = scmp.ne.s32.totalorder %s20383_s0, %s19565_s28  ;;  %p19569_p3 = scmp.lt.u32.totalorder %s19565_s28, %s20383_s0 }
  0x2a   :  { %p19571_p4 = pnand %p19569_p3, %p19566_p2 }
  0x2c   :  { %19574 = shalt.err (!%p19571_p4)
}
  0x2d   :  { %s19575_s10 = scalar_lea.vmem %s22_s14, 128  ;;  %p19580_p6 = scmp.lt.s32.totalorder %s22_s14, %s22_s14 }
  0x2e   :  { %p19576_p5 = scmp.ne.s32.totalorder %s22_s14, %s19575_s10  ;;  %p19581_p7 = scmp.lt.s32.totalorder %s19575_s10, %s19575_s10 }
  0x30   :  { %p19582_p8 = por %p19581_p7, %p19580_p6 }
  0x32   :  { %p19583_p9 = pnand %p19582_p8, %p19576_p5 }
  0x34   :  { %19586 = shalt.err (!%p19583_p9)
}
  0x35   :  { %s19692_s3 = smov 4   ;;  %s19693_s13 = smov [#allocation7]  }
  0x36   :  { %27 = dma.hbm_to_vmem [thread:$0]  %s20383_s0, 128, %s22_s14, [#allocation3], %s19687_s8, %s19687_s8, %s19692_s3  }
  0x37   :  { %s45_s15 = sshll.u32 %s19693_s13, 4  ;;  %s19694_s16 = smov [#allocation10]   ;;  %s46_s15 = int_to_ptr.vmem [resolvable:$true] %s45_s15 }
  0x38   :  { %s69_s17 = sshll.u32 %s19694_s16, 4  ;;  %s19587_s20 = scalar_lea.hbm %s20385_s2, 131072  ;;  %s19778_s17 = int_to_ptr.vmem [resolvable:$true] %s69_s17 }
  0x39   :  { %p19588_p10 = scmp.ne.s32.totalorder %s20385_s2, %s19587_s20  ;;  %p19591_p11 = scmp.lt.u32.totalorder %s19587_s20, %s20385_s2 }
  0x3b   :  { %p19593_p12 = pnand %p19591_p11, %p19588_p10 }
  0x3d   :  { %19596 = shalt.err (!%p19593_p12)
}
  0x3e   :  { %s19597_s0 = scalar_lea.vmem %s46_s15, 131072  ;;  %p19602_p0 = scmp.lt.s32.totalorder %s46_s15, %s46_s15 }
  0x3f   :  { %p19598_p13 = scmp.ne.s32.totalorder %s46_s15, %s19597_s0  ;;  %p19603_p1 = scmp.lt.s32.totalorder %s19597_s0, %s19597_s0 }
  0x41   :  { %p19604_p2 = por %p19603_p1, %p19602_p0 }
  0x43   :  { %p19605_p3 = pnand %p19604_p2, %p19598_p13 }
  0x45   :  { %19608 = shalt.err (!%p19605_p3)
}
  0x46   :  { %51 = dma.hbm_to_vmem [thread:$0]  %s20385_s2, 131072, %s46_s15, [#allocation6], %s19690_s22, %s19690_s22, %s19691_s23  }
  0x47   :  { %s19609_s29 = scalar_lea.hbm %s20387_s4, 65536 }
  0x48   :  { %p19610_p4 = scmp.ne.s32.totalorder %s20387_s4, %s19609_s29  ;;  %p19613_p5 = scmp.lt.u32.totalorder %s19609_s29, %s20387_s4 }
  0x4a   :  { %p19615_p6 = pnand %p19613_p5, %p19610_p4 }
  0x4c   :  { %19618 = shalt.err (!%p19615_p6)
}
  0x4d   :  { %s19619_s11 = scalar_lea.vmem %s19778_s17, 65536  ;;  %p19624_p8 = scmp.lt.s32.totalorder %s19778_s17, %s19778_s17 }
  0x4e   :  { %p19620_p7 = scmp.ne.s32.totalorder %s19778_s17, %s19619_s11  ;;  %p19625_p9 = scmp.lt.s32.totalorder %s19619_s11, %s19619_s11 }
  0x50   :  { %p19626_p10 = por %p19625_p9, %p19624_p8 }
  0x52   :  { %p19627_p11 = pnand %p19626_p10, %p19620_p7 }
  0x54   :  { %19630 = shalt.err (!%p19627_p11)
}
  0x55   :  { %75 = dma.hbm_to_vmem [thread:$0]  %s20387_s4, 65536, %s19778_s17, [#allocation9], %s19690_s22, %s19690_s22, %s19691_s23  }
  0x56   :  { %s19695_s13 = smov [#allocation11]   ;;  %s19631_s19 = scalar_lea.hbm %s20388_s5, 8192 }
  0x57   :  { %s81_s15 = sshll.u32 %s19695_s13, 4  ;;  %p19632_p12 = scmp.ne.s32.totalorder %s20388_s5, %s19631_s19  ;;  %s82_s15 = int_to_ptr.vmem [resolvable:$true] %s81_s15 }
  0x58   :  { %p19635_p13 = scmp.lt.u32.totalorder %s19631_s19, %s20388_s5 }
  0x5a   :  { %p19637_p0 = pnand %p19635_p13, %p19632_p12 }
  0x5c   :  { %19640 = shalt.err (!%p19637_p0)
}
  0x5d   :  { %s19641_s25 = scalar_lea.vmem %s82_s15, 8192  ;;  %p19646_p2 = scmp.lt.s32.totalorder %s82_s15, %s82_s15 }
  0x5e   :  { %p19642_p1 = scmp.ne.s32.totalorder %s82_s15, %s19641_s25  ;;  %p19647_p3 = scmp.lt.s32.totalorder %s19641_s25, %s19641_s25 }
  0x60   :  { %p19648_p4 = por %p19647_p3, %p19646_p2 }
  0x62   :  { %p19649_p5 = pnand %p19648_p4, %p19642_p1 }
  0x64   :  { %19652 = shalt.err (!%p19649_p5)
}
  0x65   :  { %87 = dma.hbm_to_vmem [thread:$0]  %s20388_s5, 8192, %s82_s15, [#allocation12], %s19687_s8, %s19687_s8, %s19692_s3  }
  0x66   :  { %19675 = dma.done.wait [#allocation3], 128  }
  0x67   :  { %19676 = vsyncadd [#allocation3], 4294967168 }
  0x68   :  { %19677 = dma.done.wait [#allocation6], 135168  }
  0x69   :  { %19678 = vsyncadd [#allocation6], 4294832128 }
  0x6a   :  { %19679 = dma.done.wait [#allocation9], 131072  }
  0x6b   :  { %19680 = vsyncadd [#allocation9], 4294836224 }
  0x6c   :  { %19681 = dma.done.wait [#allocation12], 8192  }
  0x6d   :  { %19682 = vsyncadd [#allocation12], 4294959104  ;;  %v19696_v0 = vmov 0   ;;  %v109_v1 = vld [vmem:[#allocation5] sm:$0xff]  ;;  %v110_v8 = vld [vmem:[#allocation5 + $0x8] sm:$0xff]  ;;  %vm306_vm0 = vcmask 261120  }
  0x6e   :  { %342 = vmatprep.mubr.bf16.mxu0 %v19696_v0  ;;  %385 = vmatprep.mubr.bf16.mxu1 %v19696_v0  ;;  %v117_v2 = vld [vmem:[#allocation5 + $0x40] sm:$0xff]  ;;  %v118_v9 = vld [vmem:[#allocation5 + $0x48] sm:$0xff]  ;;  %v111_v14 = vld [vmem:[#allocation5 + $0x10] sm:$0xff]  ;;  %s19697_s5 = smov [#allocation13]  }
  0x6f   :  { %v125_v3 = vld [vmem:[#allocation5 + $0x80] sm:$0xff]  ;;  %v16834_v4 = vcombine.high %v109_v1, %v117_v2  ;;  %v16833_v5 = vcombine.low %v109_v1, %v117_v2  ;;  %v16836_v10 = vcombine.high %v110_v8, %v118_v9  ;;  %v16835_v11 = vcombine.low %v110_v8, %v118_v9  ;;  %v126_v12 = vld [vmem:[#allocation5 + $0x88] sm:$0xff]  ;;  %v119_v17 = vld [vmem:[#allocation5 + $0x50] sm:$0xff]  ;;  %s16817_s8 = sshll.u32 %s19697_s5, 4  ;;  %s16818_s8 = int_to_ptr.vmem [resolvable:$true] %s16817_s8 }
  0x70   :  { %v133_v6 = vld [vmem:[#allocation5 + $0xc0] sm:$0xff]  ;;  %v134_v13 = vld [vmem:[#allocation5 + $0xc8] sm:$0xff]  ;;  %v16838_v18 = vcombine.high %v111_v14, %v119_v17  ;;  %v127_v20 = vld [vmem:[#allocation5 + $0x90] sm:$0xff]  ;;  %v16837_v25 = vcombine.low %v111_v14, %v119_v17  ;;  %s19653_s23 = scalar_lea.vmem %s16818_s8, 256  ;;  %p19658_p7 = scmp.lt.s32.totalorder %s16818_s8, %s16818_s8 }
  0x71   :  { %v16850_v7 = vcombine.high %v125_v3, %v133_v6  ;;  %310 = vmatprep.subr.bf16.mxu0 %v16834_v4  ;;  %v16849_v15 = vcombine.low %v125_v3, %v133_v6  ;;  %v16852_v16 = vcombine.high %v126_v12, %v134_v13  ;;  %353 = vmatprep.subr.bf16.mxu1 %v16836_v10  ;;  %v135_v21 = vld [vmem:[#allocation5 + $0xd0] sm:$0xff]  ;;  %v19832_v22 = vld [vmem:[#allocation2] sm:$0xff]   ;;  %v113_v30 = vld [vmem:[#allocation5 + $0x20] sm:$0xff]  ;;  %p19654_p6 = scmp.ne.s32.totalorder %s16818_s8, %s19653_s23  ;;  %p19659_p8 = scmp.lt.s32.totalorder %s19653_s23, %s19653_s23 }
  0x72   :  { %311 = vmatpush1.bf16.msra.mxu0 %v16833_v5  ;;  %354 = vmatpush1.bf16.msra.mxu1 %v16835_v11  ;;  %v16851_v19 = vcombine.low %v126_v12, %v134_v13  ;;  %v112_v23 = vld [vmem:[#allocation5 + $0x18] sm:$0xff]  ;;  %v16854_v29 = vcombine.high %v127_v20, %v135_v21  ;;  %v121_v31 = vld [vmem:[#allocation5 + $0x60] sm:$0xff]  ;;  %v16853_v34 = vcombine.low %v127_v20, %v135_v21  ;;  %v114_v35 = vld [vmem:[#allocation5 + $0x28] sm:$0xff] }
  0x73   :  { %312 = vmatprep.subr.bf16.mxu0 %v16850_v7  ;;  %355 = vmatprep.subr.bf16.mxu1 %v16852_v16  ;;  %v120_v24 = vld [vmem:[#allocation5 + $0x58] sm:$0xff]  ;;  %v122_v36 = vld [vmem:[#allocation5 + $0x68] sm:$0xff]  ;;  %v16842_v37 = vcombine.high %v113_v30, %v121_v31  ;;  %v129_v38 = vld [vmem:[#allocation5 + $0xa0] sm:$0xff]  ;;  %v16841_v42 = vcombine.low %v113_v30, %v121_v31  ;;  %p19660_p9 = por %p19659_p8, %p19658_p7 }
  0x74   :  { %v16840_v26 = vcombine.high %v112_v23, %v120_v24  ;;  %v128_v27 = vld [vmem:[#allocation5 + $0x98] sm:$0xff]  ;;  %v16839_v32 = vcombine.low %v112_v23, %v120_v24  ;;  %v137_v39 = vld [vmem:[#allocation5 + $0xe0] sm:$0xff]  ;;  %v16844_v41 = vcombine.high %v114_v35, %v122_v36  ;;  %v130_v43 = vld [vmem:[#allocation5 + $0xa8] sm:$0xff]  ;;  %v16843_v48 = vcombine.low %v114_v35, %v122_v36 }
  0x75   :  { %v136_v28 = vld [vmem:[#allocation5 + $0xd8] sm:$0xff]  ;;  %v138_v44 = vld [vmem:[#allocation5 + $0xe8] sm:$0xff]  ;;  %v16858_v45 = vcombine.high %v129_v38, %v137_v39  ;;  %v115_v46 = vld [vmem:[#allocation5 + $0x30] sm:$0xff]  ;;  %v16857_v50 = vcombine.low %v129_v38, %v137_v39  ;;  %p19661_p10 = pnand %p19660_p9, %p19654_p6 }
  0x76   :  { %313 = vmatpush1.bf16.msra.mxu0 %v16849_v15  ;;  %356 = vmatpush1.bf16.msra.mxu1 %v16851_v19  ;;  %v16856_v33 = vcombine.high %v128_v27, %v136_v28  ;;  %v16855_v40 = vcombine.low %v128_v27, %v136_v28  ;;  %v123_v47 = vld [vmem:[#allocation5 + $0x70] sm:$0xff]  ;;  %v16860_v49 = vcombine.high %v130_v43, %v138_v44  ;;  %v116_v51 = vld [vmem:[#allocation5 + $0x38] sm:$0xff]  ;;  %v830_v61 = vld [vmem:[#allocation7] sm:$0xff] }
  0x77   :  { %396 = vmatprep.subr.bf16.mxu0 %v16838_v18  ;;  %439 = vmatprep.subr.bf16.mxu1 %v16840_v26  ;;  %v124_v52 = vld [vmem:[#allocation5 + $0x78] sm:$0xff]  ;;  %v16846_v53 = vcombine.high %v115_v46, %v123_v47  ;;  %v131_v54 = vld [vmem:[#allocation5 + $0xb0] sm:$0xff]  ;;  %v16859_v56 = vcombine.low %v130_v43, %v138_v44  ;;  %v16845_v59 = vcombine.low %v115_v46, %v123_v47  ;;  %v834_v62 = vld [vmem:[#allocation7 + $0x20] sm:$0xff] }
  0x78   :  { %v139_v55 = vld [vmem:[#allocation5 + $0xf0] sm:$0xff]  ;;  %v16848_v57 = vcombine.high %v116_v51, %v124_v52  ;;  %v132_v58 = vld [vmem:[#allocation5 + $0xb8] sm:$0xff]  ;;  %v16847_v1 = vcombine.low %v116_v51, %v124_v52  ;;  %v831_v2 = vld [vmem:[#allocation7 + $0x8] sm:$0xff]  ;;  %v16874_v8 = vcombine.high %v830_v61, %v834_v62  ;;  %v16873_v13 = vcombine.low %v830_v61, %v834_v62 }
  0x79   :  { %16865 = vmatmul.mubr.msk.bf16.vlgmr.msra.gmra.mrb[0].mxu0 %vm306_vm0, %v19832_v22  ;;  %16866 = vmatmul.mubr.msk.bf16.vlgmr.msra.gmra.mrb[0].mxu1 %vm306_vm0, %v19832_v22  ;;  %v140_v60 = vld [vmem:[#allocation5 + $0xf8] sm:$0xff]  ;;  %v16862_v63 = vcombine.high %v131_v54, %v139_v55  ;;  %v835_v3 = vld [vmem:[#allocation7 + $0x28] sm:$0xff]  ;;  %v16861_v5 = vcombine.low %v131_v54, %v139_v55  ;;  %v838_v6 = vld [vmem:[#allocation7 + $0x40] sm:$0xff] }
  0x7a   :  { %397 = vmatpush1.bf16.msra.mxu0 %v16837_v25  ;;  %428 = vmatprep.mubr.bf16.mxu0 %v19696_v0  ;;  %v16864_v4 = vcombine.high %v132_v58, %v140_v60  ;;  %v842_v7 = vld [vmem:[#allocation7 + $0x60] sm:$0xff]  ;;  %v16863_v9 = vcombine.low %v132_v58, %v140_v60  ;;  %v839_v10 = vld [vmem:[#allocation7 + $0x48] sm:$0xff]  ;;  %v16876_v12 = vcombine.high %v831_v2, %v835_v3 }
  0x7b   :  { %398 = vmatprep.subr.bf16.mxu0 %v16854_v29  ;;  %440 = vmatpush1.bf16.msra.mxu1 %v16839_v32  ;;  %v843_v11 = vld [vmem:[#allocation7 + $0x68] sm:$0xff]  ;;  %v846_v14 = vld [vmem:[#allocation7 + $0x80] sm:$0xff]  ;;  %v16882_v16 = vcombine.high %v838_v6, %v842_v7  ;;  %v16875_v17 = vcombine.low %v831_v2, %v835_v3 }
  0x7c   :  { %471 = vmatprep.mubr.bf16.mxu1 %v19696_v0  ;;  %441 = vmatprep.subr.bf16.mxu1 %v16856_v33  ;;  %v850_v15 = vld [vmem:[#allocation7 + $0xa0] sm:$0xff]  ;;  %v847_v18 = vld [vmem:[#allocation7 + $0x88] sm:$0xff]  ;;  %v16884_v20 = vcombine.high %v839_v10, %v843_v11  ;;  %v16883_v25 = vcombine.low %v839_v10, %v843_v11 }
  0x7d   :  { %v851_v19 = vld [vmem:[#allocation7 + $0xa8] sm:$0xff]  ;;  %v854_v21 = vld [vmem:[#allocation7 + $0xc0] sm:$0xff]  ;;  %v16890_v24 = vcombine.high %v846_v14, %v850_v15  ;;  %v16889_v29 = vcombine.low %v846_v14, %v850_v15 }
  0x7e   :  { %399 = vmatpush1.bf16.msra.mxu0 %v16853_v34  ;;  %v858_v23 = vld [vmem:[#allocation7 + $0xe0] sm:$0xff]  ;;  %v855_v26 = vld [vmem:[#allocation7 + $0xc8] sm:$0xff]  ;;  %v16892_v28 = vcombine.high %v847_v18, %v851_v19  ;;  %v16891_v33 = vcombine.low %v847_v18, %v851_v19 }
  0x7f   :  { %482 = vmatprep.subr.bf16.mxu0 %v16842_v37  ;;  %442 = vmatpush1.bf16.msra.mxu1 %v16855_v40  ;;  %v859_v27 = vld [vmem:[#allocation7 + $0xe8] sm:$0xff]  ;;  %v862_v30 = vld [vmem:[#allocation7 + $0x100] sm:$0xff]  ;;  %v16898_v32 = vcombine.high %v854_v21, %v858_v23  ;;  %v16897_v36 = vcombine.low %v854_v21, %v858_v23 }
  0x80   :  { %525 = vmatprep.subr.bf16.mxu1 %v16844_v41  ;;  %v866_v31 = vld [vmem:[#allocation7 + $0x120] sm:$0xff]  ;;  %v863_v34 = vld [vmem:[#allocation7 + $0x108] sm:$0xff]  ;;  %v16899_v40 = vcombine.low %v855_v26, %v859_v27 }
  0x81   :  { %16867 = vmatmul.mubr.msk.bf16.vlgmr.msra.gmra.mrb[4].mxu0 %vm306_vm0, %v19832_v22  ;;  %v867_v35 = vld [vmem:[#allocation7 + $0x128] sm:$0xff]  ;;  %v870_v37 = vld [vmem:[#allocation7 + $0x140] sm:$0xff]  ;;  %v16906_v39 = vcombine.high %v862_v30, %v866_v31  ;;  %v16905_v44 = vcombine.low %v862_v30, %v866_v31 }
  0x82   :  { %483 = vmatpush1.bf16.msra.mxu0 %v16841_v42  ;;  %514 = vmatprep.mubr.bf16.mxu0 %v19696_v0  ;;  %v874_v38 = vld [vmem:[#allocation7 + $0x160] sm:$0xff]  ;;  %v871_v41 = vld [vmem:[#allocation7 + $0x148] sm:$0xff]  ;;  %v16908_v43 = vcombine.high %v863_v34, %v867_v35 }
  0x83   :  { %484 = vmatprep.subr.bf16.mxu0 %v16858_v45  ;;  %16868 = vmatmul.mubr.msk.bf16.vlgmr.msra.gmra.mrb[4].mxu1 %vm306_vm0, %v19832_v22  ;;  %v875_v42 = vld [vmem:[#allocation7 + $0x168] sm:$0xff]  ;;  %v878_v45 = vld [vmem:[#allocation7 + $0x180] sm:$0xff]  ;;  %v16914_v47 = vcombine.high %v870_v37, %v874_v38  ;;  %v16913_v52 = vcombine.low %v870_v37, %v874_v38 }
  0x84   :  { %526 = vmatpush1.bf16.msra.mxu1 %v16843_v48  ;;  %557 = vmatprep.mubr.bf16.mxu1 %v19696_v0  ;;  %v882_v46 = vld [vmem:[#allocation7 + $0x1a0] sm:$0xff]  ;;  %v16907_v48 = vcombine.low %v863_v34, %v867_v35  ;;  %v16916_v51 = vcombine.high %v871_v41, %v875_v42  ;;  %v891_v58 = vld [vmem:[#allocation7 + $0x1e8] sm:$0xff] }
  0x85   :  { %527 = vmatprep.subr.bf16.mxu1 %v16860_v49  ;;  %v879_v49 = vld [vmem:[#allocation7 + $0x188] sm:$0xff]  ;;  %v890_v54 = vld [vmem:[#allocation7 + $0x1e0] sm:$0xff]  ;;  %v16922_v55 = vcombine.high %v878_v45, %v882_v46  ;;  %v16921_v60 = vcombine.low %v878_v45, %v882_v46 }
  0x86   :  { %485 = vmatpush1.bf16.msra.mxu0 %v16857_v50  ;;  %v883_v50 = vld [vmem:[#allocation7 + $0x1a8] sm:$0xff]  ;;  %v894_v61 = vld [vmem:[#allocation7 + $0x200] sm:$0xff] }
  0x87   :  { %568 = vmatprep.subr.bf16.mxu0 %v16846_v53  ;;  %v886_v53 = vld [vmem:[#allocation7 + $0x1c0] sm:$0xff]  ;;  %v895_v2 = vld [vmem:[#allocation7 + $0x208] sm:$0xff] }
  0x88   :  { %528 = vmatpush1.bf16.msra.mxu1 %v16859_v56  ;;  %v16915_v56 = vcombine.low %v871_v41, %v875_v42  ;;  %v898_v62 = vld [vmem:[#allocation7 + $0x220] sm:$0xff]  ;;  %v899_v3 = vld [vmem:[#allocation7 + $0x228] sm:$0xff] }
  0x89   :  { %16869 = vmatmul.mubr.msk.bf16.vlgmr.msra.gmra.mrb[8].mxu0 %vm306_vm0, %v19832_v22  ;;  %611 = vmatprep.subr.bf16.mxu1 %v16848_v57  ;;  %v887_v57 = vld [vmem:[#allocation7 + $0x1c8] sm:$0xff]  ;;  %v16939_v15 = vcombine.low %v895_v2, %v899_v3  ;;  %v910_v19 = vld [vmem:[#allocation7 + $0x280] sm:$0xff] }
  0x8a   :  { %569 = vmatpush1.bf16.msra.mxu0 %v16845_v59  ;;  %600 = vmatprep.mubr.bf16.mxu0 %v19696_v0  ;;  %v16924_v59 = vcombine.high %v879_v49, %v883_v50  ;;  %v903_v10 = vld [vmem:[#allocation7 + $0x248] sm:$0xff]  ;;  %v926_v35 = vld [vmem:[#allocation7 + $0x300] sm:$0xff] }
  0x8b   :  { %570 = vmatprep.subr.bf16.mxu0 %v16862_v63  ;;  %16870 = vmatmul.mubr.msk.bf16.vlgmr.msra.gmra.mrb[8].mxu1 %vm306_vm0, %v19832_v22  ;;  %v16930_v63 = vcombine.high %v886_v53, %v890_v54  ;;  %v907_v11 = vld [vmem:[#allocation7 + $0x268] sm:$0xff]  ;;  %v934_v42 = vld [vmem:[#allocation7 + $0x340] sm:$0xff] }
  0x8c   :  { %612 = vmatpush1.bf16.msra.mxu1 %v16847_v1  ;;  %643 = vmatprep.mubr.bf16.mxu1 %v19696_v0  ;;  %v16881_v0 = vcombine.low %v838_v6, %v842_v7  ;;  %v16923_v1 = vcombine.low %v879_v49, %v883_v50  ;;  %v902_v6 = vld [vmem:[#allocation7 + $0x240] sm:$0xff]  ;;  %v16947_v18 = vcombine.low %v903_v10, %v907_v11  ;;  %v915_v23 = vld [vmem:[#allocation7 + $0x2a8] sm:$0xff] }
  0x8d   :  { %613 = vmatprep.subr.bf16.mxu1 %v16864_v4  ;;  %v16932_v4 = vcombine.high %v887_v57, %v891_v58  ;;  %v906_v7 = vld [vmem:[#allocation7 + $0x260] sm:$0xff]  ;;  %v923_v31 = vld [vmem:[#allocation7 + $0x2e8] sm:$0xff] }
  0x8e   :  { %571 = vmatpush1.bf16.msra.mxu0 %v16861_v5  ;;  %v16929_v5 = vcombine.low %v886_v53, %v890_v54  ;;  %v16946_v14 = vcombine.high %v902_v6, %v906_v7  ;;  %v931_v38 = vld [vmem:[#allocation7 + $0x328] sm:$0xff]  ;;  %v942_v50 = vld [vmem:[#allocation7 + $0x380] sm:$0xff] }
  0x8f   :  { %6974 = vmatprep.subr.bf16.mxu0 %v16874_v8  ;;  %v16938_v8 = vcombine.high %v894_v61, %v898_v62  ;;  %v939_v46 = vld [vmem:[#allocation7 + $0x368] sm:$0xff] }
  0x90   :  { %614 = vmatpush1.bf16.msra.mxu1 %v16863_v9  ;;  %v16931_v9 = vcombine.low %v887_v57, %v891_v58  ;;  %v947_v54 = vld [vmem:[#allocation7 + $0x3a8] sm:$0xff]  ;;  %v950_v58 = vld [vmem:[#allocation7 + $0x3c0] sm:$0xff] }
  0x91   :  { %16871 = vmatmul.mubr.msk.bf16.vlgmr.msra.gmra.mrb[12].mxu0 %vm306_vm0, %v19832_v22  ;;  %7318 = vmatprep.subr.bf16.mxu1 %v16876_v12  ;;  %v16940_v12 = vcombine.high %v895_v2, %v899_v3  ;;  %v19856_v3 = vld [vmem:[#allocation7 + $0x400] sm:$0xff] }
  0x92   :  { %6975 = vmatpush1.bf16.msra.mxu0 %v16873_v13  ;;  %v16937_v13 = vcombine.low %v894_v61, %v898_v62  ;;  %v955_v62 = vld [vmem:[#allocation7 + $0x3e8] sm:$0xff] }
  0x93   :  { %16872 = vmatmul.mubr.msk.bf16.vlgmr.msra.gmra.mrb[12].mxu1 %vm306_vm0, %v19832_v22  ;;  %6976 = vmatprep.subr.bf16.mxu0 %v16882_v16  ;;  %v16900_v22 = vcombine.high %v855_v26, %v859_v27  ;;  %v16948_v16 = vcombine.high %v903_v10, %v907_v11  ;;  %v918_v27 = vld [vmem:[#allocation7 + $0x2c0] sm:$0xff] }
  0x94   :  { %7319 = vmatpush1.bf16.msra.mxu1 %v16875_v17  ;;  %v16945_v17 = vcombine.low %v902_v6, %v906_v7  ;;  %v19864_v7 = vld [vmem:[#allocation7 + $0x428] sm:$0xff] }
  0x95   :  { %7320 = vmatprep.subr.bf16.mxu1 %v16884_v20  ;;  %v914_v20 = vld [vmem:[#allocation7 + $0x2a0] sm:$0xff] }
  0x96   :  { %6977 = vmatpush1.bf16.msra.mxu0 %v16881_v0  ;;  %v911_v0 = vld [vmem:[#allocation7 + $0x288] sm:$0xff]  ;;  %v16954_v21 = vcombine.high %v910_v19, %v914_v20 }
  0x97   :  { %6978 = vmatprep.subr.bf16.mxu0 %v16890_v24  ;;  %v16953_v24 = vcombine.low %v910_v19, %v914_v20  ;;  %v16956_v26 = vcombine.high %v911_v0, %v915_v23 }
  0x98   :  { %7321 = vmatpush1.bf16.msra.mxu1 %v16883_v25  ;;  %v16955_v25 = vcombine.low %v911_v0, %v915_v23 }
  0x99   :  { %7322 = vmatprep.subr.bf16.mxu1 %v16892_v28  ;;  %v922_v28 = vld [vmem:[#allocation7 + $0x2e0] sm:$0xff] }
  0x9a   :  { %6979 = vmatpush1.bf16.msra.mxu0 %v16889_v29  ;;  %v919_v29 = vld [vmem:[#allocation7 + $0x2c8] sm:$0xff]  ;;  %v16962_v30 = vcombine.high %v918_v27, %v922_v28 }
  0x9b   :  { %6980 = vmatprep.subr.bf16.mxu0 %v16898_v32  ;;  %v16961_v32 = vcombine.low %v918_v27, %v922_v28  ;;  %v16964_v34 = vcombine.high %v919_v29, %v923_v31 }
  0x9c   :  { %7323 = vmatpush1.bf16.msra.mxu1 %v16891_v33  ;;  %v16963_v33 = vcombine.low %v919_v29, %v923_v31 }
  0x9d   :  { %7324 = vmatprep.subr.bf16.mxu1 %v16900_v22  ;;  %v930_v22 = vld [vmem:[#allocation7 + $0x320] sm:$0xff] }
  0x9e   :  { %6981 = vmatpush1.bf16.msra.mxu0 %v16897_v36  ;;  %v927_v36 = vld [vmem:[#allocation7 + $0x308] sm:$0xff]  ;;  %v16970_v37 = vcombine.high %v926_v35, %v930_v22 }
  0x9f   :  { %6982 = vmatprep.subr.bf16.mxu0 %v16906_v39  ;;  %v16969_v39 = vcombine.low %v926_v35, %v930_v22  ;;  %v16972_v41 = vcombine.high %v927_v36, %v931_v38  ;;  %v19902_v22 = vld [vmem:[#allocation7 + $0x440] sm:$0xff] }
  0xa0   :  { %7325 = vmatpush1.bf16.msra.mxu1 %v16899_v40  ;;  %v16971_v40 = vcombine.low %v927_v36, %v931_v38  ;;  %v19904_v36 = vld [vmem:[#allocation7 + $0x460] sm:$0xff] }
  0xa1   :  { %7326 = vmatprep.subr.bf16.mxu1 %v16908_v43  ;;  %v938_v43 = vld [vmem:[#allocation7 + $0x360] sm:$0xff] }
  0xa2   :  { %6983 = vmatpush1.bf16.msra.mxu0 %v16905_v44  ;;  %v935_v44 = vld [vmem:[#allocation7 + $0x348] sm:$0xff]  ;;  %v16978_v45 = vcombine.high %v934_v42, %v938_v43 }
  0xa3   :  { %6984 = vmatprep.subr.bf16.mxu0 %v16914_v47  ;;  %v16977_v47 = vcombine.low %v934_v42, %v938_v43  ;;  %v16980_v49 = vcombine.high %v935_v44, %v939_v46  ;;  %v19908_v42 = vld [vmem:[#allocation7 + $0x468] sm:$0xff] }
  0xa4   :  { %7327 = vmatpush1.bf16.msra.mxu1 %v16907_v48  ;;  %v16979_v48 = vcombine.low %v935_v44, %v939_v46  ;;  %v17009_v46 = vcombine.low %v19902_v22, %v19904_v36 }
  0xa5   :  { %7328 = vmatprep.subr.bf16.mxu1 %v16916_v51  ;;  %v946_v51 = vld [vmem:[#allocation7 + $0x3a0] sm:$0xff] }
  0xa6   :  { %6985 = vmatpush1.bf16.msra.mxu0 %v16913_v52  ;;  %v943_v52 = vld [vmem:[#allocation7 + $0x388] sm:$0xff]  ;;  %v16986_v53 = vcombine.high %v942_v50, %v946_v51 }
  0xa7   :  { %6986 = vmatprep.subr.bf16.mxu0 %v16922_v55  ;;  %v16985_v55 = vcombine.low %v942_v50, %v946_v51  ;;  %v16988_v57 = vcombine.high %v943_v52, %v947_v54  ;;  %v17010_v51 = vcombine.high %v19902_v22, %v19904_v36  ;;  %v995_v22 = vld [vmem:[#allocation7 + $0x528] sm:$0xff] }
  0xa8   :  { %7329 = vmatpush1.bf16.msra.mxu1 %v16915_v56  ;;  %v16987_v56 = vcombine.low %v943_v52, %v947_v54 }
  0xa9   :  { %7330 = vmatprep.subr.bf16.mxu1 %v16924_v59  ;;  %v954_v59 = vld [vmem:[#allocation7 + $0x3e0] sm:$0xff] }
  0xaa   :  { %6987 = vmatpush1.bf16.msra.mxu0 %v16921_v60  ;;  %v951_v60 = vld [vmem:[#allocation7 + $0x3c8] sm:$0xff]  ;;  %v16994_v61 = vcombine.high %v950_v58, %v954_v59 }
  0xab   :  { %6988 = vmatprep.subr.bf16.mxu0 %v16930_v63  ;;  %v16993_v63 = vcombine.low %v950_v58, %v954_v59  ;;  %v16996_v2 = vcombine.high %v951_v60, %v955_v62 }
  0xac   :  { %7331 = vmatpush1.bf16.msra.mxu1 %v16923_v1  ;;  %v16995_v1 = vcombine.low %v951_v60, %v955_v62 }
  0xad   :  { %7332 = vmatprep.subr.bf16.mxu1 %v16932_v4  ;;  %v19858_v4 = vld [vmem:[#allocation7 + $0x420] sm:$0xff] }
  0xae   :  { %6989 = vmatpush1.bf16.msra.mxu0 %v16929_v5  ;;  %v19860_v5 = vld [vmem:[#allocation7 + $0x408] sm:$0xff]  ;;  %v17002_v6 = vcombine.high %v19856_v3, %v19858_v4 }
  0xaf   :  { %6990 = vmatprep.subr.bf16.mxu0 %v16938_v8  ;;  %v17001_v8 = vcombine.low %v19856_v3, %v19858_v4  ;;  %v17004_v10 = vcombine.high %v19860_v5, %v19864_v7 }
  0xb0   :  { %7333 = vmatpush1.bf16.msra.mxu1 %v16931_v9  ;;  %v17003_v9 = vcombine.low %v19860_v5, %v19864_v7  ;;  %v982_v5 = vld [vmem:[#allocation7 + $0x4c0] sm:$0xff] }
  0xb1   :  { %7334 = vmatprep.subr.bf16.mxu1 %v16940_v12 }
  0xb2   :  { %6991 = vmatpush1.bf16.msra.mxu0 %v16937_v13 }
  0xb3   :  { %6992 = vmatprep.subr.bf16.mxu0 %v16946_v14 }
  0xb4   :  { %7335 = vmatpush1.bf16.msra.mxu1 %v16939_v15 }
  0xb5   :  { %7336 = vmatprep.subr.bf16.mxu1 %v16948_v16 }
  0xb6   :  { %6993 = vmatpush1.bf16.msra.mxu0 %v16945_v17 }
  0xb7   :  { %6994 = vmatprep.subr.bf16.mxu0 %v16954_v21 }
  0xb8   :  { %7337 = vmatpush1.bf16.msra.mxu1 %v16947_v18 }
  0xb9   :  { %7338 = vmatprep.subr.bf16.mxu1 %v16956_v26 }
  0xba   :  { %6995 = vmatpush1.bf16.msra.mxu0 %v16953_v24 }
  0xbb   :  { %6996 = vmatprep.subr.bf16.mxu0 %v16962_v30 }
  0xbc   :  { %7339 = vmatpush1.bf16.msra.mxu1 %v16955_v25 }
  0xbd   :  { %7340 = vmatprep.subr.bf16.mxu1 %v16964_v34 }
  0xbe   :  { %6997 = vmatpush1.bf16.msra.mxu0 %v16961_v32 }
  0xbf   :  { %6998 = vmatprep.subr.bf16.mxu0 %v16970_v37 }
  0xc0   :  { %7341 = vmatpush1.bf16.msra.mxu1 %v16963_v33 }
  0xc1   :  { %7342 = vmatprep.subr.bf16.mxu1 %v16972_v41  ;;  %v19906_v41 = vld [vmem:[#allocation7 + $0x448] sm:$0xff] }
  0xc2   :  { %6999 = vmatpush1.bf16.msra.mxu0 %v16969_v39 }
  0xc3   :  { %7000 = vmatprep.subr.bf16.mxu0 %v16978_v45 }
  0xc4   :  { %7343 = vmatpush1.bf16.msra.mxu1 %v16971_v40 }
  0xc5   :  { %7344 = vmatprep.subr.bf16.mxu1 %v16980_v49 }
  0xc6   :  { %7001 = vmatpush1.bf16.msra.mxu0 %v16977_v47 }
  0xc7   :  { %7002 = vmatprep.subr.bf16.mxu0 %v16986_v53 }
  0xc8   :  { %7345 = vmatpush1.bf16.msra.mxu1 %v16979_v48 }
  0xc9   :  { %7346 = vmatprep.subr.bf16.mxu1 %v16988_v57  ;;  %v17012_v57 = vcombine.high %v19906_v41, %v19908_v42 }
  0xca   :  { %7003 = vmatpush1.bf16.msra.mxu0 %v16985_v55 }
  0xcb   :  { %7004 = vmatprep.subr.bf16.mxu0 %v16994_v61 }
  0xcc   :  { %7347 = vmatpush1.bf16.msra.mxu1 %v16987_v56 }
  0xcd   :  { %7348 = vmatprep.subr.bf16.mxu1 %v16996_v2 }
  0xce   :  { %7005 = vmatpush1.bf16.msra.mxu0 %v16993_v63 }
  0xcf   :  { %7017 = vmatprep.subr.bf16.mxu0 %v17002_v6 }
  0xd0   :  { %7349 = vmatpush1.bf16.msra.mxu1 %v16995_v1 }
  0xd1   :  { %7361 = vmatprep.subr.bf16.mxu1 %v17004_v10 }
 0x14c   :  { %v344_v11 = vpop.f32.mrb[0].mxu0  ;;  %v19874_v16 = vpop.f32.mrb[0].mxu1 }
 0x14d   :  { %v654_v12 = vmul.f32 0.5, %v344_v11  ;;  %v346_v13 = vpop.f32.mrb[1].mxu0  ;;  %v656_v19 = vmul.f32 0.5, %v19874_v16  ;;  %v19880_v20 = vpop.f32.mrb[1].mxu1 }
 0x14e   :  { %v655_v14 = vmul.f32 0.5, %v346_v13  ;;  %v19872_v15 = vpop.f32.mrb[2].mxu0  ;;  %v657_v21 = vmul.f32 0.5, %v19880_v20  ;;  %v19884_v23 = vpop.f32.mrb[2].mxu1 }
 0x14f   :  { %19361 = vtanh.f32 %v654_v12  ;;  %v670_v17 = vmul.f32 0.5, %v19872_v15  ;;  %v19877_v18 = vpop.f32.mrb[3].mxu0  ;;  %v672_v24 = vmul.f32 0.5, %v19884_v23  ;;  %v19887_v25 = vpop.f32.mrb[3].mxu1 }
 0x150   :  { %19363 = vtanh.f32 %v655_v14  ;;  %v671_v0 = vmul.f32 0.5, %v19877_v18  ;;  %v673_v26 = vmul.f32 0.5, %v19887_v25 }
 0x151   :  { %19365 = vtanh.f32 %v670_v17 }
 0x152   :  { %19367 = vtanh.f32 %v671_v0 }
 0x153   :  { %19369 = vtanh.f32 %v656_v19 }
 0x154   :  { %19371 = vtanh.f32 %v657_v21  ;;  %v19890_v27 = vpop.f32.mrb[4].mxu0 }
 0x155   :  { %19373 = vtanh.f32 %v672_v24  ;;  %v658_v28 = vmul.f32 0.5, %v19890_v27  ;;  %v19893_v29 = vpop.f32.mrb[5].mxu0 }
 0x156   :  { %19375 = vtanh.f32 %v673_v26  ;;  %v659_v30 = vmul.f32 0.5, %v19893_v29  ;;  %v19896_v31 = vpop.f32.mrb[6].mxu0 }
 0x157   :  { %19377 = vtanh.f32 %v658_v28  ;;  %v674_v32 = vmul.f32 0.5, %v19896_v31  ;;  %v19899_v33 = vpop.f32.mrb[7].mxu0 }
 0x158   :  { %19379 = vtanh.f32 %v659_v30  ;;  %v675_v34 = vmul.f32 0.5, %v19899_v33 }
 0x159   :  { %v19362_v35 = vpop.eup %19361  ;;  %19381 = vtanh.f32 %v674_v32 }
 0x15a   :  { %v19364_v37 = vpop.eup %19363  ;;  %v718_v38 = vmul.f32 0.5, %v19362_v35  ;;  %19383 = vtanh.f32 %v675_v34 }
 0x15b   :  { %v19366_v39 = vpop.eup %19365  ;;  %v719_v40 = vmul.f32 0.5, %v19364_v37 }
 0x15c   :  { %v19368_v43 = vpop.eup %19367  ;;  %v750_v44 = vadd.f32 0.5, %v718_v38  ;;  %v734_v45 = vmul.f32 0.5, %v19366_v39  ;;  %v19912_v47 = vpop.f32.mrb[8].mxu0 }
 0x15d   :  { %v19370_v48 = vpop.eup %19369  ;;  %v751_v49 = vadd.f32 0.5, %v719_v40  ;;  %v735_v50 = vmul.f32 0.5, %v19368_v43  ;;  %v662_v52 = vmul.f32 0.5, %v19912_v47  ;;  %v19917_v53 = vpop.f32.mrb[9].mxu0 }
 0x15e   :  { %v19372_v54 = vpop.eup %19371  ;;  %v782_v55 = vmul.f32 %v750_v44, %v344_v11  ;;  %v766_v56 = vadd.f32 0.5, %v734_v45  ;;  %v720_v58 = vmul.f32 0.5, %v19370_v48  ;;  %v19921_v63 = vpop.f32.mrb[10].mxu0  ;;  %v663_v12 = vmul.f32 0.5, %v19917_v53  ;;  %v975_v45 = vld [vmem:[#allocation7 + $0x488] sm:$0xff] }
 0x15f   :  { %v19374_v59 = vpop.eup %19373  ;;  %v783_v60 = vmul.f32 %v751_v49, %v346_v13  ;;  %v767_v61 = vadd.f32 0.5, %v735_v50  ;;  %v721_v62 = vmul.f32 0.5, %v19372_v54  ;;  %19385 = vtanh.f32 %v662_v52  ;;  %v19925_v11 = vpop.f32.mrb[11].mxu0  ;;  %v979_v48 = vld [vmem:[#allocation7 + $0x4a8] sm:$0xff] }
 0x160   :  { %v19376_v1 = vpop.eup %19375  ;;  %v798_v2 = vmul.f32 %v766_v56, %v19872_v15  ;;  %v752_v6 = vadd.f32 0.5, %v720_v58  ;;  %v736_v10 = vmul.f32 0.5, %v19374_v59  ;;  %v678_v13 = vmul.f32 0.5, %v19921_v63 }
 0x161   :  { %v19378_v14 = vpop.eup %19377  ;;  %v799_v17 = vmul.f32 %v767_v61, %v19877_v18  ;;  %v753_v19 = vadd.f32 0.5, %v721_v62  ;;  %v737_v0 = vmul.f32 0.5, %v19376_v1  ;;  %v19935_v18 = vld [vmem:[#allocation7 + $0x480] sm:$0xff]  ;;  %19387 = vtanh.f32 %v663_v12 }
 0x162   :  { %v19380_v21 = vpop.eup %19379  ;;  %v19929_v24 = vpack.c.bf16 %v798_v2, %v782_v55  ;;  %v784_v26 = vmul.f32 %v752_v6, %v19874_v16  ;;  %v768_v28 = vadd.f32 0.5, %v736_v10  ;;  %v722_v15 = vmul.f32 0.5, %v19378_v14  ;;  %v978_v16 = vld [vmem:[#allocation7 + $0x4a0] sm:$0xff] }
 0x163   :  { %v19382_v30 = vpop.eup %19381  ;;  %v19932_v32 = vpack.c.bf16 %v799_v17, %v783_v60  ;;  %v785_v34 = vmul.f32 %v753_v19, %v19880_v20  ;;  %v769_v35 = vadd.f32 0.5, %v737_v0  ;;  %v723_v37 = vmul.f32 0.5, %v19380_v21  ;;  %v990_v12 = vld [vmem:[#allocation7 + $0x500] sm:$0xff]  ;;  %v991_v0 = vld [vmem:[#allocation7 + $0x508] sm:$0xff] }
 0x164   :  { %v19384_v38 = vpop.eup %19383  ;;  %v800_v39 = vmul.f32 %v768_v28, %v19884_v23  ;;  %v754_v40 = vadd.f32 0.5, %v722_v15  ;;  %v738_v43 = vmul.f32 0.5, %v19382_v30  ;;  %v19938_v44 = vpop.f32.mrb[12].mxu0  ;;  %19389 = vtanh.f32 %v678_v13  ;;  %v994_v19 = vld [vmem:[#allocation7 + $0x520] sm:$0xff] }
 0x165   :  { %7006 = vmatprep.mubr.bf16.mxu0 %v19932_v32  ;;  %7350 = vmatprep.mubr.bf16.mxu1 %v19932_v32  ;;  %v801_v20 = vmul.f32 %v769_v35, %v19887_v25  ;;  %v755_v49 = vadd.f32 0.5, %v723_v37  ;;  %v739_v50 = vmul.f32 0.5, %v19384_v38  ;;  %v679_v55 = vmul.f32 0.5, %v19925_v11  ;;  %v19949_v56 = vpop.f32.mrb[13].mxu0  ;;  %v1002_v37 = vld [vmem:[#allocation7 + $0x560] sm:$0xff]  ;;  %v999_v38 = vld [vmem:[#allocation7 + $0x548] sm:$0xff] }
 0x166   :  { %7007 = vmatmul.mubr.bf16.vlgmr.msra.gmra.mrb[16].mxu0 %v19929_v24  ;;  %7351 = vmatmul.mubr.bf16.vlgmr.msra.gmra.mrb[16].mxu1 %v19929_v24  ;;  %v19945_v23 = vpack.c.bf16 %v800_v39, %v784_v26  ;;  %v786_v52 = vmul.f32 %v754_v40, %v19890_v27  ;;  %v770_v54 = vadd.f32 0.5, %v738_v43  ;;  %v17011_v25 = vcombine.low %v19906_v41, %v19908_v42  ;;  %v19962_v60 = vpop.f32.mrb[14].mxu0  ;;  %v986_v41 = vld [vmem:[#allocation7 + $0x4e0] sm:$0xff]  ;;  %v987_v42 = vld [vmem:[#allocation7 + $0x4e8] sm:$0xff] }
 0x167   :  { %7018 = vmatpush1.bf16.msra.mxu0 %v17001_v8  ;;  %7362 = vmatpush1.bf16.msra.mxu1 %v17003_v9  ;;  %v19959_v58 = vpack.c.bf16 %v801_v20, %v785_v34  ;;  %v787_v27 = vmul.f32 %v755_v49, %v19893_v29  ;;  %v771_v59 = vadd.f32 0.5, %v739_v50  ;;  %v17018_v3 = vcombine.high %v19935_v18, %v978_v16  ;;  %v19969_v8 = vpop.f32.mrb[15].mxu0  ;;  %v983_v29 = vld [vmem:[#allocation7 + $0x4c8] sm:$0xff]  ;;  %v998_v34 = vld [vmem:[#allocation7 + $0x540] sm:$0xff] }
 0x168   :  { %7019 = vmatprep.subr.bf16.mxu0 %v17010_v51  ;;  %7363 = vmatprep.subr.bf16.mxu1 %v17012_v57  ;;  %v17020_v4 = vcombine.high %v975_v45, %v979_v48  ;;  %v802_v7 = vmul.f32 %v770_v54, %v19896_v31  ;;  %19391 = vtanh.f32 %v679_v55  ;;  %v666_v57 = vmul.f32 0.5, %v19938_v44  ;;  %v1010_v54 = vld [vmem:[#allocation7 + $0x5a0] sm:$0xff] }
 0x169   :  { %v19386_v9 = vpop.eup %19385  ;;  %7049 = vmatprep.mubr.bf16.mxu0 %v19959_v58  ;;  %7393 = vmatprep.mubr.bf16.mxu1 %v19959_v58  ;;  %v803_v51 = vmul.f32 %v771_v59, %v19899_v33  ;;  %v17017_v61 = vcombine.low %v19935_v18, %v978_v16  ;;  %v17019_v1 = vcombine.low %v975_v45, %v979_v48  ;;  %v667_v6 = vmul.f32 0.5, %v19949_v56  ;;  %v1003_v18 = vld [vmem:[#allocation7 + $0x568] sm:$0xff] }
 0x16a   :  { %v19976_v62 = vpack.c.bf16 %v802_v7, %v786_v52  ;;  %v726_v31 = vmul.f32 0.5, %v19386_v9  ;;  %19393 = vtanh.f32 %v666_v57  ;;  %v17026_v33 = vcombine.high %v982_v5, %v986_v41  ;;  %v1006_v52 = vld [vmem:[#allocation7 + $0x580] sm:$0xff]  ;;  %v1011_v59 = vld [vmem:[#allocation7 + $0x5a8] sm:$0xff] }
 0x16b   :  { %7020 = vmatpush1.bf16.msra.mxu0 %v17009_v46  ;;  %7364 = vmatpush1.bf16.msra.mxu1 %v17011_v25  ;;  %v19981_v2 = vpack.c.bf16 %v803_v51, %v787_v27  ;;  %v17028_v10 = vcombine.high %v983_v29, %v987_v42  ;;  %v682_v14 = vmul.f32 0.5, %v19962_v60  ;;  %v683_v17 = vmul.f32 0.5, %v19969_v8  ;;  %v19388_v36 = vpop.eup %19387  ;;  %v1007_v27 = vld [vmem:[#allocation7 + $0x588] sm:$0xff]  ;;  %v1014_v51 = vld [vmem:[#allocation7 + $0x5c0] sm:$0xff] }
 0x16c   :  { %7021 = vmatprep.subr.bf16.mxu0 %v17018_v3  ;;  %7365 = vmatprep.subr.bf16.mxu1 %v17020_v4  ;;  %19395 = vtanh.f32 %v667_v6  ;;  %v758_v46 = vadd.f32 0.5, %v726_v31  ;;  %v17025_v21 = vcombine.low %v982_v5, %v986_v41  ;;  %v17027_v26 = vcombine.low %v983_v29, %v987_v42  ;;  %v1018_v57 = vld [vmem:[#allocation7 + $0x5e0] sm:$0xff]  ;;  %v1019_v6 = vld [vmem:[#allocation7 + $0x5e8] sm:$0xff] }
 0x16d   :  { %19397 = vtanh.f32 %v682_v14  ;;  %v727_v28 = vmul.f32 0.5, %v19388_v36  ;;  %v17034_v15 = vcombine.high %v990_v12, %v994_v19  ;;  %v17036_v30 = vcombine.high %v991_v0, %v995_v22 }
 0x16e   :  { %v19390_v13 = vpop.eup %19389  ;;  %19399 = vtanh.f32 %v683_v17  ;;  %v790_v43 = vmul.f32 %v758_v46, %v19912_v47  ;;  %v17033_v45 = vcombine.low %v990_v12, %v994_v19  ;;  %v17035_v48 = vcombine.low %v991_v0, %v995_v22 }
 0x16f   :  { %7022 = vmatpush1.bf16.msra.mxu0 %v17017_v61  ;;  %7366 = vmatpush1.bf16.msra.mxu1 %v17019_v1  ;;  %v742_v35 = vmul.f32 0.5, %v19390_v13  ;;  %v759_v39 = vadd.f32 0.5, %v727_v28  ;;  %v17042_v49 = vcombine.high %v998_v34, %v1002_v37  ;;  %v17044_v50 = vcombine.high %v999_v38, %v1003_v18  ;;  %v19992_v61 = vpop.f32.mrb[4].mxu1  ;;  %v1015_v1 = vld [vmem:[#allocation7 + $0x5c8] sm:$0xff] }
 0x170   :  { %7023 = vmatprep.subr.bf16.mxu0 %v17026_v33  ;;  %7367 = vmatprep.subr.bf16.mxu1 %v17028_v10  ;;  %v17041_v4 = vcombine.low %v998_v34, %v1002_v37  ;;  %v17043_v5 = vcombine.low %v999_v38, %v1003_v18  ;;  %v17049_v29 = vcombine.low %v1006_v52, %v1010_v54  ;;  %v660_v12 = vmul.f32 0.5, %v19992_v61  ;;  %v19995_v14 = vpop.f32.mrb[5].mxu1  ;;  %v1022_v34 = vld [vmem:[#allocation7 + $0x600] sm:$0xff] }
 0x171   :  { %v774_v16 = vadd.f32 0.5, %v742_v35  ;;  %v791_v3 = vmul.f32 %v759_v39, %v19917_v53  ;;  %v17050_v42 = vcombine.high %v1006_v52, %v1010_v54  ;;  %v17052_v53 = vcombine.high %v1007_v27, %v1011_v59  ;;  %v20000_v36 = vpop.f32.mrb[6].mxu1  ;;  %v1026_v39 = vld [vmem:[#allocation7 + $0x620] sm:$0xff] }
 0x172   :  { %v19392_v40 = vpop.eup %19391  ;;  %v17051_v19 = vcombine.low %v1007_v27, %v1011_v59  ;;  %v17058_v46 = vcombine.high %v1014_v51, %v1018_v57  ;;  %19401 = vtanh.f32 %v660_v12  ;;  %v676_v38 = vmul.f32 0.5, %v20000_v36  ;;  %v1034_v54 = vld [vmem:[#allocation7 + $0x660] sm:$0xff] }
 0x173   :  { %7024 = vmatpush1.bf16.msra.mxu0 %v17025_v21  ;;  %7368 = vmatpush1.bf16.msra.mxu1 %v17027_v26  ;;  %v743_v20 = vmul.f32 0.5, %v19392_v40  ;;  %v806_v55 = vmul.f32 %v774_v16, %v19921_v63  ;;  %v17060_v26 = vcombine.high %v1015_v1, %v1019_v6  ;;  %v1023_v40 = vld [vmem:[#allocation7 + $0x608] sm:$0xff]  ;;  %v1050_v12 = vld [vmem:[#allocation7 + $0x6e0] sm:$0xff] }
 0x174   :  { %7025 = vmatprep.subr.bf16.mxu0 %v17034_v15  ;;  %7369 = vmatprep.subr.bf16.mxu1 %v17036_v30  ;;  %v19394_v25 = vpop.eup %19393  ;;  %v20003_v30 = vpop.f32.mrb[7].mxu1 }
 0x175   :  { %v775_v47 = vadd.f32 0.5, %v743_v20  ;;  %v19989_v7 = vpack.c.bf16 %v806_v55, %v790_v43  ;;  %v730_v9 = vmul.f32 0.5, %v19394_v25  ;;  %v677_v18 = vmul.f32 0.5, %v20003_v30  ;;  %v1027_v43 = vld [vmem:[#allocation7 + $0x628] sm:$0xff] }
 0x176   :  { %v19396_v41 = vpop.eup %19395  ;;  %v1031_v55 = vld [vmem:[#allocation7 + $0x648] sm:$0xff]  ;;  %v17067_v25 = vcombine.low %v1023_v40, %v1027_v43 }
 0x177   :  { %7026 = vmatpush1.bf16.msra.mxu0 %v17033_v45  ;;  %7370 = vmatpush1.bf16.msra.mxu1 %v17035_v48  ;;  %v807_v63 = vmul.f32 %v775_v47, %v19925_v11  ;;  %v19398_v31 = vpop.eup %19397  ;;  %v762_v33 = vadd.f32 0.5, %v730_v9  ;;  %v731_v10 = vmul.f32 0.5, %v19396_v41  ;;  %v661_v11 = vmul.f32 0.5, %v19995_v14  ;;  %v1038_v47 = vld [vmem:[#allocation7 + $0x680] sm:$0xff]  ;;  %v1039_v9 = vld [vmem:[#allocation7 + $0x688] sm:$0xff] }
 0x178   :  { %7027 = vmatprep.subr.bf16.mxu0 %v17042_v49  ;;  %7371 = vmatprep.subr.bf16.mxu1 %v17044_v50  ;;  %v19400_v17 = vpop.eup %19399  ;;  %v746_v22 = vmul.f32 0.5, %v19398_v31  ;;  %v17057_v45 = vcombine.low %v1014_v51, %v1018_v57  ;;  %v17059_v48 = vcombine.low %v1015_v1, %v1019_v6  ;;  %v17068_v49 = vcombine.high %v1023_v40, %v1027_v43  ;;  %v1030_v50 = vld [vmem:[#allocation7 + $0x640] sm:$0xff]  ;;  %v1043_v41 = vld [vmem:[#allocation7 + $0x6a8] sm:$0xff] }
 0x179   :  { %v19997_v0 = vpack.c.bf16 %v807_v63, %v791_v3  ;;  %v763_v13 = vadd.f32 0.5, %v731_v10  ;;  %v747_v21 = vmul.f32 0.5, %v19400_v17  ;;  %v794_v28 = vmul.f32 %v762_v33, %v19938_v44  ;;  %v1046_v6 = vld [vmem:[#allocation7 + $0x6c0] sm:$0xff]  ;;  %v1047_v17 = vld [vmem:[#allocation7 + $0x6c8] sm:$0xff] }
 0x17a   :  { %v778_v15 = vadd.f32 0.5, %v746_v22  ;;  %19403 = vtanh.f32 %v661_v11  ;;  %v17074_v59 = vcombine.high %v1030_v50, %v1034_v54  ;;  %v17073_v51 = vcombine.low %v1030_v50, %v1034_v54  ;;  %v1063_v50 = vld [vmem:[#allocation7 + $0x748] sm:$0xff] }
 0x17b   :  { %7028 = vmatpush1.bf16.msra.mxu0 %v17041_v4  ;;  %7372 = vmatpush1.bf16.msra.mxu1 %v17043_v5  ;;  %v795_v35 = vmul.f32 %v763_v13, %v19949_v56  ;;  %v779_v37 = vadd.f32 0.5, %v747_v21  ;;  %19405 = vtanh.f32 %v676_v38  ;;  %v17066_v56 = vcombine.high %v1022_v34, %v1026_v39  ;;  %v1042_v5 = vld [vmem:[#allocation7 + $0x6a0] sm:$0xff]  ;;  %v1067_v54 = vld [vmem:[#allocation7 + $0x768] sm:$0xff] }
 0x17c   :  { %7029 = vmatprep.subr.bf16.mxu0 %v17050_v42  ;;  %7373 = vmatprep.subr.bf16.mxu1 %v17052_v53  ;;  %v810_v16 = vmul.f32 %v778_v15, %v19962_v60  ;;  %19407 = vtanh.f32 %v677_v18  ;;  %v1035_v60 = vld [vmem:[#allocation7 + $0x668] sm:$0xff]  ;;  %v19402_v27 = vpop.eup %19401  ;;  %v17082_v53 = vcombine.high %v1038_v47, %v1042_v5  ;;  %v17084_v1 = vcombine.high %v1039_v9, %v1043_v41  ;;  %v1058_v38 = vld [vmem:[#allocation7 + $0x720] sm:$0xff] }
 0x17d   :  { %v811_v44 = vmul.f32 %v779_v37, %v19969_v8  ;;  %v17065_v8 = vcombine.low %v1022_v34, %v1026_v39  ;;  %v17076_v3 = vcombine.high %v1031_v55, %v1035_v60  ;;  %v17075_v57 = vcombine.low %v1031_v55, %v1035_v60  ;;  %v1054_v34 = vld [vmem:[#allocation7 + $0x700] sm:$0xff]  ;;  %v1055_v18 = vld [vmem:[#allocation7 + $0x708] sm:$0xff] }
 0x17e   :  { %v20010_v20 = vpack.c.bf16 %v810_v16, %v794_v28  ;;  %v17083_v13 = vcombine.low %v1039_v9, %v1043_v41  ;;  %v17090_v28 = vcombine.high %v1046_v6, %v1050_v12  ;;  %v1059_v39 = vld [vmem:[#allocation7 + $0x728] sm:$0xff]  ;;  %v17089_v16 = vcombine.low %v1046_v6, %v1050_v12  ;;  %v1078_v9 = vld [vmem:[#allocation7 + $0x7c0] sm:$0xff] }
 0x17f   :  { %7030 = vmatpush1.bf16.msra.mxu0 %v17049_v29  ;;  %7374 = vmatpush1.bf16.msra.mxu1 %v17051_v19  ;;  %v20012_v52 = vpack.c.bf16 %v811_v44, %v795_v35  ;;  %v724_v29 = vmul.f32 0.5, %v19402_v27  ;;  %v1051_v19 = vld [vmem:[#allocation7 + $0x6e8] sm:$0xff]  ;;  %v17108_v60 = vcombine.high %v1063_v50, %v1067_v54  ;;  %v1082_v41 = vld [vmem:[#allocation7 + $0x7e0] sm:$0xff] }
 0x180   :  { %7031 = vmatprep.subr.bf16.mxu0 %v17058_v46  ;;  %7375 = vmatprep.subr.bf16.mxu1 %v17060_v26  ;;  %v17081_v46 = vcombine.low %v1038_v47, %v1042_v5  ;;  %v17092_v15 = vcombine.high %v1047_v17, %v1051_v19  ;;  %v1071_v27 = vld [vmem:[#allocation7 + $0x788] sm:$0xff]  ;;  %v17107_v47 = vcombine.low %v1063_v50, %v1067_v54 }
 0x181   :  { %v756_v63 = vadd.f32 0.5, %v724_v29  ;;  %v1079_v29 = vld [vmem:[#allocation7 + $0x7c8] sm:$0xff] }
 0x182   :  { %v1087_v12 = vld [vmem:[#allocation7 + $0x808] sm:$0xff] }
 0x183   :  { %7032 = vmatpush1.bf16.msra.mxu0 %v17057_v45  ;;  %7376 = vmatpush1.bf16.msra.mxu1 %v17059_v48  ;;  %v788_v21 = vmul.f32 %v756_v63, %v19992_v61  ;;  %v17091_v61 = vcombine.low %v1047_v17, %v1051_v19  ;;  %v17098_v45 = vcombine.high %v1054_v34, %v1058_v38  ;;  %v20022_v63 = vpop.f32.mrb[8].mxu1  ;;  %v1091_v17 = vld [vmem:[#allocation7 + $0x828] sm:$0xff] }
 0x184   :  { %7033 = vmatprep.subr.bf16.mxu0 %v17066_v56  ;;  %7377 = vmatprep.subr.bf16.mxu1 %v17068_v49  ;;  %v19404_v4 = vpop.eup %19403  ;;  %v17100_v48 = vcombine.high %v1055_v18, %v1059_v39  ;;  %v1062_v56 = vld [vmem:[#allocation7 + $0x740] sm:$0xff]  ;;  %v664_v6 = vmul.f32 0.5, %v20022_v63 }
 0x185   :  { %v725_v42 = vmul.f32 0.5, %v19404_v4  ;;  %v19406_v31 = vpop.eup %19405  ;;  %v1066_v49 = vld [vmem:[#allocation7 + $0x760] sm:$0xff] }
 0x186   :  { %v19408_v10 = vpop.eup %19407  ;;  %v740_v22 = vmul.f32 0.5, %v19406_v31  ;;  %v17106_v55 = vcombine.high %v1062_v56, %v1066_v49  ;;  %v17122_v31 = vcombine.high %v1078_v9, %v1082_v41  ;;  %19409 = vtanh.f32 %v664_v6 }
 0x187   :  { %7034 = vmatpush1.bf16.msra.mxu0 %v17065_v8  ;;  %7378 = vmatpush1.bf16.msra.mxu1 %v17067_v25  ;;  %v757_v33 = vadd.f32 0.5, %v725_v42  ;;  %v741_v11 = vmul.f32 0.5, %v19408_v10  ;;  %v1070_v8 = vld [vmem:[#allocation7 + $0x780] sm:$0xff]  ;;  %v1083_v42 = vld [vmem:[#allocation7 + $0x7e8] sm:$0xff] }
 0x188   :  { %7035 = vmatprep.subr.bf16.mxu0 %v17074_v59  ;;  %7379 = vmatprep.subr.bf16.mxu1 %v17076_v3  ;;  %v772_v26 = vadd.f32 0.5, %v740_v22  ;;  %v1074_v25 = vld [vmem:[#allocation7 + $0x7a0] sm:$0xff]  ;;  %v1075_v59 = vld [vmem:[#allocation7 + $0x7a8] sm:$0xff]  ;;  %v17105_v3 = vcombine.low %v1062_v56, %v1066_v49  ;;  %v17121_v22 = vcombine.low %v1078_v9, %v1082_v41 }
 0x189   :  { %v789_v35 = vmul.f32 %v757_v33, %v19995_v14  ;;  %v773_v37 = vadd.f32 0.5, %v741_v11  ;;  %v17114_v4 = vcombine.high %v1070_v8, %v1074_v25  ;;  %v17116_v5 = vcombine.high %v1071_v27, %v1075_v59  ;;  %v20025_v33 = vpop.f32.mrb[9].mxu1  ;;  %v1090_v10 = vld [vmem:[#allocation7 + $0x820] sm:$0xff]  ;;  %v1103_v56 = vld [vmem:[#allocation7 + $0x888] sm:$0xff] }
 0x18a   :  { %v804_v40 = vmul.f32 %v772_v26, %v20000_v36  ;;  %v17097_v36 = vcombine.low %v1054_v34, %v1058_v38  ;;  %v665_v19 = vmul.f32 0.5, %v20025_v33  ;;  %v17123_v11 = vcombine.low %v1079_v29, %v1083_v42  ;;  %v1094_v26 = vld [vmem:[#allocation7 + $0x840] sm:$0xff]  ;;  %v1107_v49 = vld [vmem:[#allocation7 + $0x8a8] sm:$0xff] }
 0x18b   :  { %7036 = vmatpush1.bf16.msra.mxu0 %v17073_v51  ;;  %7380 = vmatpush1.bf16.msra.mxu1 %v17075_v57  ;;  %v805_v43 = vmul.f32 %v773_v37, %v20003_v30  ;;  %v17099_v30 = vcombine.low %v1055_v18, %v1059_v39  ;;  %v17113_v51 = vcombine.low %v1070_v8, %v1074_v25  ;;  %v1098_v34 = vld [vmem:[#allocation7 + $0x860] sm:$0xff]  ;;  %v1099_v37 = vld [vmem:[#allocation7 + $0x868] sm:$0xff] }
 0x18c   :  { %7037 = vmatprep.subr.bf16.mxu0 %v17082_v53  ;;  %7381 = vmatprep.subr.bf16.mxu1 %v17084_v1  ;;  %v20018_v44 = vpack.c.bf16 %v804_v40, %v788_v21  ;;  %v17115_v57 = vcombine.low %v1071_v27, %v1075_v59  ;;  %v17124_v53 = vcombine.high %v1079_v29, %v1083_v42  ;;  %v1086_v1 = vld [vmem:[#allocation7 + $0x800] sm:$0xff]  ;;  %19411 = vtanh.f32 %v665_v19 }
 0x18d   :  { %v20020_v14 = vpack.c.bf16 %v805_v43, %v789_v35  ;;  %v17132_v21 = vcombine.high %v1087_v12, %v1091_v17  ;;  %v1095_v35 = vld [vmem:[#allocation7 + $0x848] sm:$0xff]  ;;  %v17129_v18 = vcombine.low %v1086_v1, %v1090_v10  ;;  %v17131_v39 = vcombine.low %v1087_v12, %v1091_v17  ;;  %v1110_v25 = vld [vmem:[#allocation7 + $0x8c0] sm:$0xff] }
 0x18e   :  { %v17138_v43 = vcombine.high %v1094_v26, %v1098_v34  ;;  %v17137_v54 = vcombine.low %v1094_v26, %v1098_v34  ;;  %v17148_v8 = vcombine.high %v1103_v56, %v1107_v49  ;;  %v1122_v19 = vld [vmem:[#allocation7 + $0x920] sm:$0xff] }
 0x18f   :  { %7038 = vmatpush1.bf16.msra.mxu0 %v17081_v46  ;;  %7382 = vmatpush1.bf16.msra.mxu1 %v17083_v13  ;;  %v20028_v46 = vpop.f32.mrb[10].mxu1  ;;  %v17130_v13 = vcombine.high %v1086_v1, %v1090_v10  ;;  %v1118_v10 = vld [vmem:[#allocation7 + $0x900] sm:$0xff] }
 0x190   :  { %7039 = vmatprep.subr.bf16.mxu0 %v17090_v28  ;;  %7383 = vmatprep.subr.bf16.mxu1 %v17092_v15  ;;  %v680_v28 = vmul.f32 0.5, %v20028_v46  ;;  %v20031_v15 = vpop.f32.mrb[11].mxu1 }
 0x191   :  { %v681_v38 = vmul.f32 0.5, %v20031_v15  ;;  %v20034_v40 = vpop.f32.mrb[12].mxu1 }
 0x192   :  { %19413 = vtanh.f32 %v680_v28  ;;  %v20039_v50 = vpop.f32.mrb[13].mxu1 }
 0x193   :  { %7040 = vmatpush1.bf16.msra.mxu0 %v17089_v16  ;;  %7384 = vmatpush1.bf16.msra.mxu1 %v17091_v61  ;;  %19415 = vtanh.f32 %v681_v38  ;;  %v17140_v16 = vcombine.high %v1095_v35, %v1099_v37  ;;  %v1102_v61 = vld [vmem:[#allocation7 + $0x880] sm:$0xff]  ;;  %v20042_v27 = vpop.f32.mrb[14].mxu1  ;;  %v17162_v38 = vcombine.high %v1118_v10, %v1122_v19 }
 0x194   :  { %7041 = vmatprep.subr.bf16.mxu0 %v17098_v45  ;;  %7385 = vmatprep.subr.bf16.mxu1 %v17100_v48  ;;  %v668_v45 = vmul.f32 0.5, %v20034_v40  ;;  %v1106_v48 = vld [vmem:[#allocation7 + $0x8a0] sm:$0xff]  ;;  %v684_v9 = vmul.f32 0.5, %v20042_v27  ;;  %v20047_v41 = vpop.f32.mrb[15].mxu1 }
 0x195   :  { %v685_v42 = vmul.f32 0.5, %v20047_v41 }
 0x196   :  { %19417 = vtanh.f32 %v668_v45  ;;  %v1127_v45 = vld [vmem:[#allocation7 + $0x948] sm:$0xff] }
 0x197   :  { %7042 = vmatpush1.bf16.msra.mxu0 %v17097_v36  ;;  %7386 = vmatpush1.bf16.msra.mxu1 %v17099_v30  ;;  %v17139_v36 = vcombine.low %v1095_v35, %v1099_v37  ;;  %v669_v30 = vmul.f32 0.5, %v20039_v50 }
 0x198   :  { %7043 = vmatprep.subr.bf16.mxu0 %v17106_v55  ;;  %7387 = vmatprep.subr.bf16.mxu1 %v17108_v60  ;;  %v19410_v55 = vpop.eup %19409  ;;  %v17146_v60 = vcombine.high %v1102_v61, %v1106_v48 }
 0x199   :  { %v19412_v59 = vpop.eup %19411  ;;  %19419 = vtanh.f32 %v669_v30 }
 0x19a   :  { %v729_v29 = vmul.f32 0.5, %v19412_v59  ;;  %19421 = vtanh.f32 %v684_v9 }
 0x19b   :  { %7044 = vmatpush1.bf16.msra.mxu0 %v17105_v3  ;;  %7388 = vmatpush1.bf16.msra.mxu1 %v17107_v47  ;;  %v1114_v3 = vld [vmem:[#allocation7 + $0x8e0] sm:$0xff]  ;;  %v1111_v47 = vld [vmem:[#allocation7 + $0x8c8] sm:$0xff]  ;;  %19423 = vtanh.f32 %v685_v42 }
 0x19c   :  { %7045 = vmatprep.subr.bf16.mxu0 %v17114_v4  ;;  %7389 = vmatprep.subr.bf16.mxu1 %v17116_v5  ;;  %v1115_v4 = vld [vmem:[#allocation7 + $0x8e8] sm:$0xff]  ;;  %v728_v5 = vmul.f32 0.5, %v19410_v55  ;;  %v17154_v1 = vcombine.high %v1110_v25, %v1114_v3  ;;  %v761_v12 = vadd.f32 0.5, %v729_v29  ;;  %v17153_v26 = vcombine.low %v1110_v25, %v1114_v3 }
 0x19d   :  { %v17156_v6 = vcombine.high %v1111_v47, %v1115_v4  ;;  %v17155_v28 = vcombine.low %v1111_v47, %v1115_v4  ;;  %v1138_v47 = vld [vmem:[#allocation7 + $0x9a0] sm:$0xff]  ;;  %v1135_v4 = vld [vmem:[#allocation7 + $0x988] sm:$0xff] }
 0x19f   :  { %7046 = vmatpush1.bf16.msra.mxu0 %v17113_v51  ;;  %7390 = vmatpush1.bf16.msra.mxu1 %v17115_v57  ;;  %v17145_v51 = vcombine.low %v1102_v61, %v1106_v48  ;;  %v17147_v57 = vcombine.low %v1103_v56, %v1107_v49  ;;  %v1131_v48 = vld [vmem:[#allocation7 + $0x968] sm:$0xff] }
 0x1a0   :  { %7047 = vmatprep.subr.bf16.mxu0 %v17122_v31  ;;  %7391 = vmatprep.subr.bf16.mxu1 %v17124_v53  ;;  %v760_v31 = vadd.f32 0.5, %v728_v5  ;;  %v19414_v53 = vpop.eup %19413  ;;  %v1139_v5 = vld [vmem:[#allocation7 + $0x9a8] sm:$0xff] }
 0x1a1   :  { %v19416_v17 = vpop.eup %19415 }
 0x1a2   :  { %v792_v34 = vmul.f32 %v760_v31, %v20022_v63  ;;  %v19418_v37 = vpop.eup %19417 }
 0x1a3   :  { %7048 = vmatpush1.bf16.msra.mxu0 %v17121_v22  ;;  %7392 = vmatpush1.bf16.msra.mxu1 %v17123_v11  ;;  %v1119_v22 = vld [vmem:[#allocation7 + $0x908] sm:$0xff]  ;;  %v732_v49 = vmul.f32 0.5, %v19418_v37  ;;  %v19420_v63 = vpop.eup %19419 }
 0x1a4   :  { %7060 = vmatprep.subr.bf16.mxu0 %v17130_v13  ;;  %7404 = vmatprep.subr.bf16.mxu1 %v17132_v21  ;;  %v1123_v11 = vld [vmem:[#allocation7 + $0x928] sm:$0xff]  ;;  %v744_v13 = vmul.f32 0.5, %v19414_v53  ;;  %v745_v21 = vmul.f32 0.5, %v19416_v17  ;;  %v733_v3 = vmul.f32 0.5, %v19420_v63  ;;  %v17180_v53 = vcombine.high %v1135_v4, %v1139_v5 }
 0x1a5   :  { %v17163_v30 = vcombine.low %v1119_v22, %v1123_v11  ;;  %v764_v59 = vadd.f32 0.5, %v732_v49  ;;  %v1143_v17 = vld [vmem:[#allocation7 + $0x9c8] sm:$0xff] }
 0x1a6   :  { %7050 = vmatmul.mubr.bf16.vlgmr.msra.gmra.mrb[16].mxu0 %v19945_v23  ;;  %7394 = vmatmul.mubr.bf16.vlgmr.msra.gmra.mrb[16].mxu1 %v19945_v23  ;;  %v776_v35 = vadd.f32 0.5, %v744_v13  ;;  %v777_v61 = vadd.f32 0.5, %v745_v21  ;;  %v765_v9 = vadd.f32 0.5, %v733_v3 }
 0x1a7   :  { %7061 = vmatpush1.bf16.msra.mxu0 %v17129_v18  ;;  %7405 = vmatpush1.bf16.msra.mxu1 %v17131_v39  ;;  %v17164_v18 = vcombine.high %v1119_v22, %v1123_v11  ;;  %v1126_v39 = vld [vmem:[#allocation7 + $0x940] sm:$0xff] }
 0x1a8   :  { %7062 = vmatprep.subr.bf16.mxu0 %v17138_v43  ;;  %7406 = vmatprep.subr.bf16.mxu1 %v17140_v16  ;;  %v1130_v43 = vld [vmem:[#allocation7 + $0x960] sm:$0xff]  ;;  %v793_v16 = vmul.f32 %v761_v12, %v20025_v33  ;;  %v808_v56 = vmul.f32 %v776_v35, %v20028_v46  ;;  %v19422_v46 = vpop.eup %19421  ;;  %v797_v22 = vmul.f32 %v765_v9, %v20039_v50  ;;  %v1179_v9 = vld [vmem:[#allocation7 + $0xae8] sm:$0xff] }
 0x1a9   :  { %7092 = vmatprep.mubr.bf16.mxu0 %v19981_v2  ;;  %7436 = vmatprep.mubr.bf16.mxu1 %v19981_v2  ;;  %v17170_v55 = vcombine.high %v1126_v39, %v1130_v43  ;;  %v1134_v33 = vld [vmem:[#allocation7 + $0x980] sm:$0xff]  ;;  %v748_v29 = vmul.f32 0.5, %v19422_v46  ;;  %v17169_v42 = vcombine.low %v1126_v39, %v1130_v43  ;;  %v1155_v39 = vld [vmem:[#allocation7 + $0xa28] sm:$0xff] }
 0x1aa   :  { %v17178_v31 = vcombine.high %v1134_v33, %v1138_v47  ;;  %v1146_v12 = vld [vmem:[#allocation7 + $0x9e0] sm:$0xff]  ;;  %v17177_v21 = vcombine.low %v1134_v33, %v1138_v47  ;;  %v1171_v33 = vld [vmem:[#allocation7 + $0xaa8] sm:$0xff] }
 0x1ab   :  { %7063 = vmatpush1.bf16.msra.mxu0 %v17137_v54  ;;  %7407 = vmatpush1.bf16.msra.mxu1 %v17139_v36  ;;  %v17161_v54 = vcombine.low %v1118_v10, %v1122_v19  ;;  %v809_v36 = vmul.f32 %v777_v61, %v20031_v15  ;;  %v19424_v15 = vpop.eup %19423  ;;  %v780_v10 = vadd.f32 0.5, %v748_v29  ;;  %v1147_v19 = vld [vmem:[#allocation7 + $0x9e8] sm:$0xff]  ;;  %v1158_v61 = vld [vmem:[#allocation7 + $0xa40] sm:$0xff] }
 0x1ac   :  { %7064 = vmatprep.subr.bf16.mxu0 %v17146_v60  ;;  %7408 = vmatprep.subr.bf16.mxu1 %v17148_v8  ;;  %v20054_v60 = vpack.c.bf16 %v808_v56, %v792_v34  ;;  %v17172_v8 = vcombine.high %v1127_v45, %v1131_v48  ;;  %v17188_v35 = vcombine.high %v1143_v17, %v1147_v19  ;;  %v1163_v56 = vld [vmem:[#allocation7 + $0xa68] sm:$0xff] }
 0x1ad   :  { %v20056_v25 = vpack.c.bf16 %v809_v36, %v793_v16  ;;  %v812_v13 = vmul.f32 %v780_v10, %v20042_v27  ;;  %v17187_v43 = vcombine.low %v1143_v17, %v1147_v19 }
 0x1af   :  { %7065 = vmatpush1.bf16.msra.mxu0 %v17145_v51  ;;  %7409 = vmatpush1.bf16.msra.mxu1 %v17147_v57  ;;  %v17171_v51 = vcombine.low %v1127_v45, %v1131_v48  ;;  %v749_v57 = vmul.f32 0.5, %v19424_v15  ;;  %v1162_v45 = vld [vmem:[#allocation7 + $0xa60] sm:$0xff]  ;;  %v1159_v48 = vld [vmem:[#allocation7 + $0xa48] sm:$0xff] }
 0x1b0   :  { %7066 = vmatprep.subr.bf16.mxu0 %v17154_v1  ;;  %7410 = vmatprep.subr.bf16.mxu1 %v17156_v6  ;;  %v1142_v1 = vld [vmem:[#allocation7 + $0x9c0] sm:$0xff]  ;;  %v796_v6 = vmul.f32 %v764_v59, %v20034_v40  ;;  %v17202_v36 = vcombine.high %v1158_v61, %v1162_v45  ;;  %v17204_v63 = vcombine.high %v1159_v48, %v1163_v56  ;;  %v1175_v15 = vld [vmem:[#allocation7 + $0xac8] sm:$0xff] }
 0x1b1   :  { %v781_v11 = vadd.f32 0.5, %v749_v57  ;;  %v17186_v34 = vcombine.high %v1142_v1, %v1146_v12  ;;  %v1150_v40 = vld [vmem:[#allocation7 + $0xa00] sm:$0xff]  ;;  %v17185_v27 = vcombine.low %v1142_v1, %v1146_v12  ;;  %v17201_v59 = vcombine.low %v1158_v61, %v1162_v45  ;;  %v1183_v1 = vld [vmem:[#allocation7 + $0xb08] sm:$0xff] }
 0x1b2   :  { %v20062_v37 = vpack.c.bf16 %v812_v13, %v796_v6  ;;  %v17203_v3 = vcombine.low %v1159_v48, %v1163_v56  ;;  %v17220_v57 = vcombine.high %v1175_v15, %v1179_v9  ;;  %v1187_v6 = vld [vmem:[#allocation7 + $0xb28] sm:$0xff]  ;;  %v17219_v12 = vcombine.low %v1175_v15, %v1179_v9  ;;  %v1206_v61 = vld [vmem:[#allocation7 + $0xbc0] sm:$0xff] }
 0x1b3   :  { %7067 = vmatpush1.bf16.msra.mxu0 %v17153_v26  ;;  %7411 = vmatpush1.bf16.msra.mxu1 %v17155_v28  ;;  %v17179_v26 = vcombine.low %v1135_v4, %v1139_v5  ;;  %v813_v28 = vmul.f32 %v781_v11, %v20047_v41  ;;  %v1174_v4 = vld [vmem:[#allocation7 + $0xac0] sm:$0xff]  ;;  %v17228_v19 = vcombine.high %v1183_v1, %v1187_v6  ;;  %v1191_v13 = vld [vmem:[#allocation7 + $0xb48] sm:$0xff] }
 0x1b4   :  { %7068 = vmatprep.subr.bf16.mxu0 %v17162_v38  ;;  %7412 = vmatprep.subr.bf16.mxu1 %v17164_v18  ;;  %v1154_v38 = vld [vmem:[#allocation7 + $0xa20] sm:$0xff]  ;;  %v1151_v18 = vld [vmem:[#allocation7 + $0xa08] sm:$0xff] }
 0x1b5   :  { %v20064_v50 = vpack.c.bf16 %v813_v28, %v797_v22  ;;  %v17194_v16 = vcombine.high %v1150_v40, %v1154_v38  ;;  %v17196_v41 = vcombine.high %v1151_v18, %v1155_v39  ;;  %v17193_v49 = vcombine.low %v1150_v40, %v1154_v38  ;;  %v1178_v5 = vld [vmem:[#allocation7 + $0xae0] sm:$0xff]  ;;  %v1207_v48 = vld [vmem:[#allocation7 + $0xbc8] sm:$0xff] }
 0x1b6   :  { %v17217_v10 = vcombine.low %v1174_v4, %v1178_v5  ;;  %v1190_v22 = vld [vmem:[#allocation7 + $0xb40] sm:$0xff]  ;;  %v17227_v28 = vcombine.low %v1183_v1, %v1187_v6  ;;  %v1211_v56 = vld [vmem:[#allocation7 + $0xbe8] sm:$0xff] }
 0x1b7   :  { %7069 = vmatpush1.bf16.msra.mxu0 %v17161_v54  ;;  %7413 = vmatpush1.bf16.msra.mxu1 %v17163_v30  ;;  %v17195_v54 = vcombine.low %v1151_v18, %v1155_v39  ;;  %v1166_v30 = vld [vmem:[#allocation7 + $0xa80] sm:$0xff]  ;;  %v1199_v18 = vld [vmem:[#allocation7 + $0xb88] sm:$0xff] }
 0x1b8   :  { %7070 = vmatprep.subr.bf16.mxu0 %v17170_v55  ;;  %7414 = vmatprep.subr.bf16.mxu1 %v17172_v8  ;;  %v1170_v55 = vld [vmem:[#allocation7 + $0xaa0] sm:$0xff]  ;;  %v1167_v8 = vld [vmem:[#allocation7 + $0xa88] sm:$0xff] }
 0x1b9   :  { %v17210_v46 = vcombine.high %v1166_v30, %v1170_v55  ;;  %v17212_v47 = vcombine.high %v1167_v8, %v1171_v33  ;;  %v17209_v29 = vcombine.low %v1166_v30, %v1170_v55  ;;  %v1194_v11 = vld [vmem:[#allocation7 + $0xb60] sm:$0xff]  ;;  %v1203_v39 = vld [vmem:[#allocation7 + $0xba8] sm:$0xff] }
 0x1ba   :  { %v1198_v40 = vld [vmem:[#allocation7 + $0xb80] sm:$0xff]  ;;  %v1223_v15 = vld [vmem:[#allocation7 + $0xc48] sm:$0xff] }
 0x1bb   :  { %7071 = vmatpush1.bf16.msra.mxu0 %v17169_v42  ;;  %7415 = vmatpush1.bf16.msra.mxu1 %v17171_v51  ;;  %v17211_v42 = vcombine.low %v1167_v8, %v1171_v33  ;;  %v17218_v51 = vcombine.high %v1174_v4, %v1178_v5  ;;  %v1202_v38 = vld [vmem:[#allocation7 + $0xba0] sm:$0xff]  ;;  %v1215_v8 = vld [vmem:[#allocation7 + $0xc08] sm:$0xff] }
 0x1bc   :  { %7072 = vmatprep.subr.bf16.mxu0 %v17178_v31  ;;  %7416 = vmatprep.subr.bf16.mxu1 %v17180_v53  ;;  %v1182_v31 = vld [vmem:[#allocation7 + $0xb00] sm:$0xff]  ;;  %v1219_v33 = vld [vmem:[#allocation7 + $0xc28] sm:$0xff] }
 0x1bd   :  { %v1186_v53 = vld [vmem:[#allocation7 + $0xb20] sm:$0xff]  ;;  %v1227_v9 = vld [vmem:[#allocation7 + $0xc68] sm:$0xff] }
 0x1be   :  { %v17226_v17 = vcombine.high %v1182_v31, %v1186_v53  ;;  %v1210_v45 = vld [vmem:[#allocation7 + $0xbe0] sm:$0xff]  ;;  %v1231_v1 = vld [vmem:[#allocation7 + $0xc88] sm:$0xff] }
 0x1bf   :  { %7073 = vmatpush1.bf16.msra.mxu0 %v17177_v21  ;;  %7417 = vmatpush1.bf16.msra.mxu1 %v17179_v26  ;;  %v1195_v21 = vld [vmem:[#allocation7 + $0xb68] sm:$0xff]  ;;  %v17225_v26 = vcombine.low %v1182_v31, %v1186_v53  ;;  %v1214_v30 = vld [vmem:[#allocation7 + $0xc00] sm:$0xff] }
 0x1c0   :  { %7074 = vmatprep.subr.bf16.mxu0 %v17186_v34  ;;  %7418 = vmatprep.subr.bf16.mxu1 %v17188_v35  ;;  %v17234_v34 = vcombine.high %v1190_v22, %v1194_v11  ;;  %v17236_v35 = vcombine.high %v1191_v13, %v1195_v21  ;;  %v1218_v55 = vld [vmem:[#allocation7 + $0xc20] sm:$0xff]  ;;  %v1235_v6 = vld [vmem:[#allocation7 + $0xca8] sm:$0xff] }
 0x1c1   :  { %v1222_v4 = vld [vmem:[#allocation7 + $0xc40] sm:$0xff] }
 0x1c2   :  { %v1226_v5 = vld [vmem:[#allocation7 + $0xc60] sm:$0xff] }
 0x1c3   :  { %7075 = vmatpush1.bf16.msra.mxu0 %v17185_v27  ;;  %7419 = vmatpush1.bf16.msra.mxu1 %v17187_v43  ;;  %v17233_v27 = vcombine.low %v1190_v22, %v1194_v11  ;;  %v17235_v43 = vcombine.low %v1191_v13, %v1195_v21  ;;  %v1230_v31 = vld [vmem:[#allocation7 + $0xc80] sm:$0xff]  ;;  %v1239_v13 = vld [vmem:[#allocation7 + $0xcc8] sm:$0xff] }
 0x1c4   :  { %7076 = vmatprep.subr.bf16.mxu0 %v17194_v16  ;;  %7420 = vmatprep.subr.bf16.mxu1 %v17196_v41  ;;  %v17242_v16 = vcombine.high %v1198_v40, %v1202_v38  ;;  %v17244_v41 = vcombine.high %v1199_v18, %v1203_v39  ;;  %v1234_v53 = vld [vmem:[#allocation7 + $0xca0] sm:$0xff]  ;;  %v1243_v21 = vld [vmem:[#allocation7 + $0xce8] sm:$0xff] }
 0x1c5   :  { %v1238_v22 = vld [vmem:[#allocation7 + $0xcc0] sm:$0xff] }
 0x1c6   :  { %v1242_v11 = vld [vmem:[#allocation7 + $0xce0] sm:$0xff] }
 0x1c7   :  { %7077 = vmatpush1.bf16.msra.mxu0 %v17193_v49  ;;  %7421 = vmatpush1.bf16.msra.mxu1 %v17195_v54  ;;  %v17241_v49 = vcombine.low %v1198_v40, %v1202_v38  ;;  %v17243_v54 = vcombine.low %v1199_v18, %v1203_v39  ;;  %v1246_v40 = vld [vmem:[#allocation7 + $0xd00] sm:$0xff]  ;;  %v1247_v18 = vld [vmem:[#allocation7 + $0xd08] sm:$0xff] }
 0x1c8   :  { %7078 = vmatprep.subr.bf16.mxu0 %v17202_v36  ;;  %7422 = vmatprep.subr.bf16.mxu1 %v17204_v63  ;;  %v17250_v36 = vcombine.high %v1206_v61, %v1210_v45  ;;  %v17252_v63 = vcombine.high %v1207_v48, %v1211_v56  ;;  %v1250_v38 = vld [vmem:[#allocation7 + $0xd20] sm:$0xff]  ;;  %v1251_v39 = vld [vmem:[#allocation7 + $0xd28] sm:$0xff] }
 0x1cb   :  { %7079 = vmatpush1.bf16.msra.mxu0 %v17201_v59  ;;  %7423 = vmatpush1.bf16.msra.mxu1 %v17203_v3  ;;  %v17249_v59 = vcombine.low %v1206_v61, %v1210_v45  ;;  %v17251_v3 = vcombine.low %v1207_v48, %v1211_v56  ;;  %v1254_v61 = vld [vmem:[#allocation7 + $0xd40] sm:$0xff]  ;;  %v1255_v48 = vld [vmem:[#allocation7 + $0xd48] sm:$0xff] }
 0x1cc   :  { %7080 = vmatprep.subr.bf16.mxu0 %v17210_v46  ;;  %7424 = vmatprep.subr.bf16.mxu1 %v17212_v47  ;;  %v17258_v46 = vcombine.high %v1214_v30, %v1218_v55  ;;  %v17260_v47 = vcombine.high %v1215_v8, %v1219_v33  ;;  %v1258_v45 = vld [vmem:[#allocation7 + $0xd60] sm:$0xff]  ;;  %v1259_v56 = vld [vmem:[#allocation7 + $0xd68] sm:$0xff] }
 0x1cf   :  { %7081 = vmatpush1.bf16.msra.mxu0 %v17209_v29  ;;  %7425 = vmatpush1.bf16.msra.mxu1 %v17211_v42  ;;  %v17257_v29 = vcombine.low %v1214_v30, %v1218_v55  ;;  %v17259_v42 = vcombine.low %v1215_v8, %v1219_v33  ;;  %v1262_v30 = vld [vmem:[#allocation7 + $0xd80] sm:$0xff]  ;;  %v1263_v8 = vld [vmem:[#allocation7 + $0xd88] sm:$0xff] }
 0x1d0   :  { %7082 = vmatprep.subr.bf16.mxu0 %v17218_v51  ;;  %7426 = vmatprep.subr.bf16.mxu1 %v17220_v57  ;;  %v17266_v51 = vcombine.high %v1222_v4, %v1226_v5  ;;  %v17268_v57 = vcombine.high %v1223_v15, %v1227_v9  ;;  %v1266_v55 = vld [vmem:[#allocation7 + $0xda0] sm:$0xff]  ;;  %v1267_v33 = vld [vmem:[#allocation7 + $0xda8] sm:$0xff] }
 0x1d3   :  { %7083 = vmatpush1.bf16.msra.mxu0 %v17217_v10  ;;  %7427 = vmatpush1.bf16.msra.mxu1 %v17219_v12  ;;  %v17265_v10 = vcombine.low %v1222_v4, %v1226_v5  ;;  %v17267_v12 = vcombine.low %v1223_v15, %v1227_v9  ;;  %v1270_v4 = vld [vmem:[#allocation7 + $0xdc0] sm:$0xff]  ;;  %v1271_v15 = vld [vmem:[#allocation7 + $0xdc8] sm:$0xff] }
 0x1d4   :  { %7084 = vmatprep.subr.bf16.mxu0 %v17226_v17  ;;  %7428 = vmatprep.subr.bf16.mxu1 %v17228_v19  ;;  %v17274_v17 = vcombine.high %v1230_v31, %v1234_v53  ;;  %v17276_v19 = vcombine.high %v1231_v1, %v1235_v6  ;;  %v1274_v5 = vld [vmem:[#allocation7 + $0xde0] sm:$0xff]  ;;  %v1275_v9 = vld [vmem:[#allocation7 + $0xde8] sm:$0xff] }
 0x1d7   :  { %7085 = vmatpush1.bf16.msra.mxu0 %v17225_v26  ;;  %7429 = vmatpush1.bf16.msra.mxu1 %v17227_v28  ;;  %v17273_v26 = vcombine.low %v1230_v31, %v1234_v53  ;;  %v17275_v28 = vcombine.low %v1231_v1, %v1235_v6  ;;  %v1278_v31 = vld [vmem:[#allocation7 + $0xe00] sm:$0xff]  ;;  %v1279_v1 = vld [vmem:[#allocation7 + $0xe08] sm:$0xff] }
 0x1d8   :  { %7086 = vmatprep.subr.bf16.mxu0 %v17234_v34  ;;  %7430 = vmatprep.subr.bf16.mxu1 %v17236_v35  ;;  %v17282_v34 = vcombine.high %v1238_v22, %v1242_v11  ;;  %v17284_v35 = vcombine.high %v1239_v13, %v1243_v21  ;;  %v1282_v53 = vld [vmem:[#allocation7 + $0xe20] sm:$0xff]  ;;  %v1283_v6 = vld [vmem:[#allocation7 + $0xe28] sm:$0xff] }
 0x1db   :  { %7087 = vmatpush1.bf16.msra.mxu0 %v17233_v27  ;;  %7431 = vmatpush1.bf16.msra.mxu1 %v17235_v43  ;;  %v17281_v27 = vcombine.low %v1238_v22, %v1242_v11  ;;  %v17283_v43 = vcombine.low %v1239_v13, %v1243_v21  ;;  %v1286_v22 = vld [vmem:[#allocation7 + $0xe40] sm:$0xff]  ;;  %v1287_v13 = vld [vmem:[#allocation7 + $0xe48] sm:$0xff] }
 0x1dc   :  { %7088 = vmatprep.subr.bf16.mxu0 %v17242_v16  ;;  %7432 = vmatprep.subr.bf16.mxu1 %v17244_v41  ;;  %v17290_v16 = vcombine.high %v1246_v40, %v1250_v38  ;;  %v17292_v41 = vcombine.high %v1247_v18, %v1251_v39  ;;  %v1290_v11 = vld [vmem:[#allocation7 + $0xe60] sm:$0xff]  ;;  %v1291_v21 = vld [vmem:[#allocation7 + $0xe68] sm:$0xff] }
 0x1df   :  { %7089 = vmatpush1.bf16.msra.mxu0 %v17241_v49  ;;  %7433 = vmatpush1.bf16.msra.mxu1 %v17243_v54  ;;  %v17289_v49 = vcombine.low %v1246_v40, %v1250_v38  ;;  %v17291_v54 = vcombine.low %v1247_v18, %v1251_v39  ;;  %v1294_v40 = vld [vmem:[#allocation7 + $0xe80] sm:$0xff]  ;;  %v1295_v18 = vld [vmem:[#allocation7 + $0xe88] sm:$0xff] }
 0x1e0   :  { %7090 = vmatprep.subr.bf16.mxu0 %v17250_v36  ;;  %7434 = vmatprep.subr.bf16.mxu1 %v17252_v63  ;;  %v17298_v36 = vcombine.high %v1254_v61, %v1258_v45  ;;  %v17300_v63 = vcombine.high %v1255_v48, %v1259_v56  ;;  %v1298_v38 = vld [vmem:[#allocation7 + $0xea0] sm:$0xff]  ;;  %v1299_v39 = vld [vmem:[#allocation7 + $0xea8] sm:$0xff] }
 0x1e3   :  { %7091 = vmatpush1.bf16.msra.mxu0 %v17249_v59  ;;  %7435 = vmatpush1.bf16.msra.mxu1 %v17251_v3  ;;  %v17297_v59 = vcombine.low %v1254_v61, %v1258_v45  ;;  %v17299_v3 = vcombine.low %v1255_v48, %v1259_v56  ;;  %v1302_v61 = vld [vmem:[#allocation7 + $0xec0] sm:$0xff]  ;;  %v1303_v48 = vld [vmem:[#allocation7 + $0xec8] sm:$0xff] }
 0x1e4   :  { %7103 = vmatprep.subr.bf16.mxu0 %v17258_v46  ;;  %7447 = vmatprep.subr.bf16.mxu1 %v17260_v47  ;;  %v17306_v46 = vcombine.high %v1262_v30, %v1266_v55  ;;  %v17308_v47 = vcombine.high %v1263_v8, %v1267_v33  ;;  %v1306_v45 = vld [vmem:[#allocation7 + $0xee0] sm:$0xff]  ;;  %v1307_v56 = vld [vmem:[#allocation7 + $0xee8] sm:$0xff] }
 0x1e6   :  { %7093 = vmatmul.mubr.bf16.vlgmr.msra.gmra.mrb[16].mxu0 %v19976_v62  ;;  %7437 = vmatmul.mubr.bf16.vlgmr.msra.gmra.mrb[16].mxu1 %v19976_v62 }
 0x1e7   :  { %7104 = vmatpush1.bf16.msra.mxu0 %v17257_v29  ;;  %7448 = vmatpush1.bf16.msra.mxu1 %v17259_v42  ;;  %v17305_v29 = vcombine.low %v1262_v30, %v1266_v55  ;;  %v17307_v42 = vcombine.low %v1263_v8, %v1267_v33  ;;  %v1310_v30 = vld [vmem:[#allocation7 + $0xf00] sm:$0xff]  ;;  %v1311_v8 = vld [vmem:[#allocation7 + $0xf08] sm:$0xff] }
 0x1e8   :  { %7105 = vmatprep.subr.bf16.mxu0 %v17266_v51  ;;  %7449 = vmatprep.subr.bf16.mxu1 %v17268_v57  ;;  %v17314_v51 = vcombine.high %v1270_v4, %v1274_v5  ;;  %v17316_v57 = vcombine.high %v1271_v15, %v1275_v9  ;;  %v1314_v55 = vld [vmem:[#allocation7 + $0xf20] sm:$0xff]  ;;  %v1315_v33 = vld [vmem:[#allocation7 + $0xf28] sm:$0xff] }
 0x1e9   :  { %7135 = vmatprep.mubr.bf16.mxu0 %v20020_v14  ;;  %7479 = vmatprep.mubr.bf16.mxu1 %v20020_v14 }
 0x1eb   :  { %7106 = vmatpush1.bf16.msra.mxu0 %v17265_v10  ;;  %7450 = vmatpush1.bf16.msra.mxu1 %v17267_v12  ;;  %v17313_v10 = vcombine.low %v1270_v4, %v1274_v5  ;;  %v17315_v12 = vcombine.low %v1271_v15, %v1275_v9  ;;  %v1318_v4 = vld [vmem:[#allocation7 + $0xf40] sm:$0xff]  ;;  %v1319_v15 = vld [vmem:[#allocation7 + $0xf48] sm:$0xff] }
 0x1ec   :  { %7107 = vmatprep.subr.bf16.mxu0 %v17274_v17  ;;  %7451 = vmatprep.subr.bf16.mxu1 %v17276_v19  ;;  %v17322_v17 = vcombine.high %v1278_v31, %v1282_v53  ;;  %v17324_v19 = vcombine.high %v1279_v1, %v1283_v6  ;;  %v1322_v5 = vld [vmem:[#allocation7 + $0xf60] sm:$0xff]  ;;  %v1323_v9 = vld [vmem:[#allocation7 + $0xf68] sm:$0xff] }
 0x1ef   :  { %7108 = vmatpush1.bf16.msra.mxu0 %v17273_v26  ;;  %7452 = vmatpush1.bf16.msra.mxu1 %v17275_v28  ;;  %v17321_v26 = vcombine.low %v1278_v31, %v1282_v53  ;;  %v17323_v28 = vcombine.low %v1279_v1, %v1283_v6  ;;  %v1326_v31 = vld [vmem:[#allocation7 + $0xf80] sm:$0xff]  ;;  %v1327_v1 = vld [vmem:[#allocation7 + $0xf88] sm:$0xff] }
 0x1f0   :  { %7109 = vmatprep.subr.bf16.mxu0 %v17282_v34  ;;  %7453 = vmatprep.subr.bf16.mxu1 %v17284_v35  ;;  %v17330_v34 = vcombine.high %v1286_v22, %v1290_v11  ;;  %v17332_v35 = vcombine.high %v1287_v13, %v1291_v21  ;;  %v1330_v53 = vld [vmem:[#allocation7 + $0xfa0] sm:$0xff]  ;;  %v1331_v6 = vld [vmem:[#allocation7 + $0xfa8] sm:$0xff] }
 0x1f3   :  { %7110 = vmatpush1.bf16.msra.mxu0 %v17281_v27  ;;  %7454 = vmatpush1.bf16.msra.mxu1 %v17283_v43  ;;  %v17329_v27 = vcombine.low %v1286_v22, %v1290_v11  ;;  %v17331_v43 = vcombine.low %v1287_v13, %v1291_v21  ;;  %v1334_v22 = vld [vmem:[#allocation7 + $0xfc0] sm:$0xff]  ;;  %v1335_v13 = vld [vmem:[#allocation7 + $0xfc8] sm:$0xff] }
 0x1f4   :  { %7111 = vmatprep.subr.bf16.mxu0 %v17290_v16  ;;  %7455 = vmatprep.subr.bf16.mxu1 %v17292_v41  ;;  %v17338_v16 = vcombine.high %v1294_v40, %v1298_v38  ;;  %v17340_v41 = vcombine.high %v1295_v18, %v1299_v39  ;;  %v1338_v11 = vld [vmem:[#allocation7 + $0xfe0] sm:$0xff]  ;;  %v1339_v21 = vld [vmem:[#allocation7 + $0xfe8] sm:$0xff] }
 0x1f7   :  { %7112 = vmatpush1.bf16.msra.mxu0 %v17289_v49  ;;  %7456 = vmatpush1.bf16.msra.mxu1 %v17291_v54  ;;  %v17337_v49 = vcombine.low %v1294_v40, %v1298_v38  ;;  %v17339_v54 = vcombine.low %v1295_v18, %v1299_v39  ;;  %v1342_v40 = vld [vmem:[#allocation7 + $0x1000] sm:$0xff]  ;;  %v1343_v18 = vld [vmem:[#allocation7 + $0x1008] sm:$0xff] }
 0x1f8   :  { %7113 = vmatprep.subr.bf16.mxu0 %v17298_v36  ;;  %7457 = vmatprep.subr.bf16.mxu1 %v17300_v63  ;;  %v17346_v36 = vcombine.high %v1302_v61, %v1306_v45  ;;  %v17348_v63 = vcombine.high %v1303_v48, %v1307_v56  ;;  %v1346_v38 = vld [vmem:[#allocation7 + $0x1020] sm:$0xff]  ;;  %v1347_v39 = vld [vmem:[#allocation7 + $0x1028] sm:$0xff] }
 0x1fb   :  { %7114 = vmatpush1.bf16.msra.mxu0 %v17297_v59  ;;  %7458 = vmatpush1.bf16.msra.mxu1 %v17299_v3  ;;  %v17345_v59 = vcombine.low %v1302_v61, %v1306_v45  ;;  %v17347_v3 = vcombine.low %v1303_v48, %v1307_v56  ;;  %v1350_v61 = vld [vmem:[#allocation7 + $0x1040] sm:$0xff]  ;;  %v1351_v48 = vld [vmem:[#allocation7 + $0x1048] sm:$0xff] }
 0x1fc   :  { %7115 = vmatprep.subr.bf16.mxu0 %v17306_v46  ;;  %7459 = vmatprep.subr.bf16.mxu1 %v17308_v47  ;;  %v17354_v46 = vcombine.high %v1310_v30, %v1314_v55  ;;  %v17356_v47 = vcombine.high %v1311_v8, %v1315_v33  ;;  %v1354_v45 = vld [vmem:[#allocation7 + $0x1060] sm:$0xff]  ;;  %v1355_v56 = vld [vmem:[#allocation7 + $0x1068] sm:$0xff] }
 0x1ff   :  { %7116 = vmatpush1.bf16.msra.mxu0 %v17305_v29  ;;  %7460 = vmatpush1.bf16.msra.mxu1 %v17307_v42  ;;  %v17353_v29 = vcombine.low %v1310_v30, %v1314_v55  ;;  %v17355_v42 = vcombine.low %v1311_v8, %v1315_v33  ;;  %v1358_v30 = vld [vmem:[#allocation7 + $0x1080] sm:$0xff]  ;;  %v1359_v8 = vld [vmem:[#allocation7 + $0x1088] sm:$0xff] }
 0x200   :  { %7117 = vmatprep.subr.bf16.mxu0 %v17314_v51  ;;  %7461 = vmatprep.subr.bf16.mxu1 %v17316_v57  ;;  %v17362_v51 = vcombine.high %v1318_v4, %v1322_v5  ;;  %v17364_v57 = vcombine.high %v1319_v15, %v1323_v9  ;;  %v1362_v55 = vld [vmem:[#allocation7 + $0x10a0] sm:$0xff]  ;;  %v1363_v33 = vld [vmem:[#allocation7 + $0x10a8] sm:$0xff] }
 0x203   :  { %7118 = vmatpush1.bf16.msra.mxu0 %v17313_v10  ;;  %7462 = vmatpush1.bf16.msra.mxu1 %v17315_v12  ;;  %v17361_v10 = vcombine.low %v1318_v4, %v1322_v5  ;;  %v17363_v12 = vcombine.low %v1319_v15, %v1323_v9  ;;  %v1366_v4 = vld [vmem:[#allocation7 + $0x10c0] sm:$0xff]  ;;  %v1367_v15 = vld [vmem:[#allocation7 + $0x10c8] sm:$0xff] }
 0x204   :  { %7119 = vmatprep.subr.bf16.mxu0 %v17322_v17  ;;  %7463 = vmatprep.subr.bf16.mxu1 %v17324_v19  ;;  %v17370_v17 = vcombine.high %v1326_v31, %v1330_v53  ;;  %v17372_v19 = vcombine.high %v1327_v1, %v1331_v6  ;;  %v1370_v5 = vld [vmem:[#allocation7 + $0x10e0] sm:$0xff]  ;;  %v1371_v9 = vld [vmem:[#allocation7 + $0x10e8] sm:$0xff] }
 0x207   :  { %7120 = vmatpush1.bf16.msra.mxu0 %v17321_v26  ;;  %7464 = vmatpush1.bf16.msra.mxu1 %v17323_v28  ;;  %v17369_v26 = vcombine.low %v1326_v31, %v1330_v53  ;;  %v17371_v28 = vcombine.low %v1327_v1, %v1331_v6  ;;  %v1374_v31 = vld [vmem:[#allocation7 + $0x1100] sm:$0xff]  ;;  %v1375_v1 = vld [vmem:[#allocation7 + $0x1108] sm:$0xff] }
 0x208   :  { %7121 = vmatprep.subr.bf16.mxu0 %v17330_v34  ;;  %7465 = vmatprep.subr.bf16.mxu1 %v17332_v35  ;;  %v17378_v34 = vcombine.high %v1334_v22, %v1338_v11  ;;  %v17380_v35 = vcombine.high %v1335_v13, %v1339_v21  ;;  %v1378_v53 = vld [vmem:[#allocation7 + $0x1120] sm:$0xff]  ;;  %v1379_v6 = vld [vmem:[#allocation7 + $0x1128] sm:$0xff] }
 0x20b   :  { %7122 = vmatpush1.bf16.msra.mxu0 %v17329_v27  ;;  %7466 = vmatpush1.bf16.msra.mxu1 %v17331_v43  ;;  %v17377_v27 = vcombine.low %v1334_v22, %v1338_v11  ;;  %v17379_v43 = vcombine.low %v1335_v13, %v1339_v21  ;;  %v1382_v22 = vld [vmem:[#allocation7 + $0x1140] sm:$0xff]  ;;  %v1383_v13 = vld [vmem:[#allocation7 + $0x1148] sm:$0xff] }
 0x20c   :  { %7123 = vmatprep.subr.bf16.mxu0 %v17338_v16  ;;  %7467 = vmatprep.subr.bf16.mxu1 %v17340_v41  ;;  %v17386_v16 = vcombine.high %v1342_v40, %v1346_v38  ;;  %v17388_v41 = vcombine.high %v1343_v18, %v1347_v39  ;;  %v1386_v11 = vld [vmem:[#allocation7 + $0x1160] sm:$0xff]  ;;  %v1387_v21 = vld [vmem:[#allocation7 + $0x1168] sm:$0xff] }
 0x20f   :  { %7124 = vmatpush1.bf16.msra.mxu0 %v17337_v49  ;;  %7468 = vmatpush1.bf16.msra.mxu1 %v17339_v54  ;;  %v17385_v49 = vcombine.low %v1342_v40, %v1346_v38  ;;  %v17387_v54 = vcombine.low %v1343_v18, %v1347_v39  ;;  %v1390_v40 = vld [vmem:[#allocation7 + $0x1180] sm:$0xff]  ;;  %v1391_v18 = vld [vmem:[#allocation7 + $0x1188] sm:$0xff] }
 0x210   :  { %7125 = vmatprep.subr.bf16.mxu0 %v17346_v36  ;;  %7469 = vmatprep.subr.bf16.mxu1 %v17348_v63  ;;  %v17394_v36 = vcombine.high %v1350_v61, %v1354_v45  ;;  %v17396_v63 = vcombine.high %v1351_v48, %v1355_v56  ;;  %v1394_v38 = vld [vmem:[#allocation7 + $0x11a0] sm:$0xff]  ;;  %v1395_v39 = vld [vmem:[#allocation7 + $0x11a8] sm:$0xff] }
 0x213   :  { %7126 = vmatpush1.bf16.msra.mxu0 %v17345_v59  ;;  %7470 = vmatpush1.bf16.msra.mxu1 %v17347_v3  ;;  %v17393_v59 = vcombine.low %v1350_v61, %v1354_v45  ;;  %v17395_v3 = vcombine.low %v1351_v48, %v1355_v56  ;;  %v1398_v61 = vld [vmem:[#allocation7 + $0x11c0] sm:$0xff]  ;;  %v1399_v48 = vld [vmem:[#allocation7 + $0x11c8] sm:$0xff] }
 0x214   :  { %7127 = vmatprep.subr.bf16.mxu0 %v17354_v46  ;;  %7471 = vmatprep.subr.bf16.mxu1 %v17356_v47  ;;  %v17402_v46 = vcombine.high %v1358_v30, %v1362_v55  ;;  %v17404_v47 = vcombine.high %v1359_v8, %v1363_v33  ;;  %v1402_v45 = vld [vmem:[#allocation7 + $0x11e0] sm:$0xff]  ;;  %v1403_v56 = vld [vmem:[#allocation7 + $0x11e8] sm:$0xff] }
 0x217   :  { %7128 = vmatpush1.bf16.msra.mxu0 %v17353_v29  ;;  %7472 = vmatpush1.bf16.msra.mxu1 %v17355_v42  ;;  %v17401_v29 = vcombine.low %v1358_v30, %v1362_v55  ;;  %v17403_v42 = vcombine.low %v1359_v8, %v1363_v33  ;;  %v1406_v30 = vld [vmem:[#allocation7 + $0x1200] sm:$0xff]  ;;  %v1407_v8 = vld [vmem:[#allocation7 + $0x1208] sm:$0xff] }
 0x218   :  { %7129 = vmatprep.subr.bf16.mxu0 %v17362_v51  ;;  %7473 = vmatprep.subr.bf16.mxu1 %v17364_v57  ;;  %v17410_v51 = vcombine.high %v1366_v4, %v1370_v5  ;;  %v17412_v57 = vcombine.high %v1367_v15, %v1371_v9  ;;  %v1410_v55 = vld [vmem:[#allocation7 + $0x1220] sm:$0xff]  ;;  %v1411_v33 = vld [vmem:[#allocation7 + $0x1228] sm:$0xff] }
 0x21b   :  { %7130 = vmatpush1.bf16.msra.mxu0 %v17361_v10  ;;  %7474 = vmatpush1.bf16.msra.mxu1 %v17363_v12  ;;  %v17409_v10 = vcombine.low %v1366_v4, %v1370_v5  ;;  %v17411_v12 = vcombine.low %v1367_v15, %v1371_v9  ;;  %v1414_v4 = vld [vmem:[#allocation7 + $0x1240] sm:$0xff]  ;;  %v1415_v15 = vld [vmem:[#allocation7 + $0x1248] sm:$0xff] }
 0x21c   :  { %7131 = vmatprep.subr.bf16.mxu0 %v17370_v17  ;;  %7475 = vmatprep.subr.bf16.mxu1 %v17372_v19  ;;  %v17418_v17 = vcombine.high %v1374_v31, %v1378_v53  ;;  %v17420_v19 = vcombine.high %v1375_v1, %v1379_v6  ;;  %v1418_v5 = vld [vmem:[#allocation7 + $0x1260] sm:$0xff]  ;;  %v1419_v9 = vld [vmem:[#allocation7 + $0x1268] sm:$0xff] }
 0x21f   :  { %7132 = vmatpush1.bf16.msra.mxu0 %v17369_v26  ;;  %7476 = vmatpush1.bf16.msra.mxu1 %v17371_v28  ;;  %v17417_v26 = vcombine.low %v1374_v31, %v1378_v53  ;;  %v17419_v28 = vcombine.low %v1375_v1, %v1379_v6  ;;  %v1422_v31 = vld [vmem:[#allocation7 + $0x1280] sm:$0xff]  ;;  %v1423_v1 = vld [vmem:[#allocation7 + $0x1288] sm:$0xff] }
 0x220   :  { %7133 = vmatprep.subr.bf16.mxu0 %v17378_v34  ;;  %7477 = vmatprep.subr.bf16.mxu1 %v17380_v35  ;;  %v17426_v34 = vcombine.high %v1382_v22, %v1386_v11  ;;  %v17428_v35 = vcombine.high %v1383_v13, %v1387_v21  ;;  %v1426_v53 = vld [vmem:[#allocation7 + $0x12a0] sm:$0xff]  ;;  %v1427_v6 = vld [vmem:[#allocation7 + $0x12a8] sm:$0xff] }
 0x223   :  { %7134 = vmatpush1.bf16.msra.mxu0 %v17377_v27  ;;  %7478 = vmatpush1.bf16.msra.mxu1 %v17379_v43  ;;  %v17425_v27 = vcombine.low %v1382_v22, %v1386_v11  ;;  %v17427_v43 = vcombine.low %v1383_v13, %v1387_v21  ;;  %v1430_v22 = vld [vmem:[#allocation7 + $0x12c0] sm:$0xff]  ;;  %v1431_v13 = vld [vmem:[#allocation7 + $0x12c8] sm:$0xff] }
 0x224   :  { %7146 = vmatprep.subr.bf16.mxu0 %v17386_v16  ;;  %7490 = vmatprep.subr.bf16.mxu1 %v17388_v41  ;;  %v17434_v16 = vcombine.high %v1390_v40, %v1394_v38  ;;  %v17436_v41 = vcombine.high %v1391_v18, %v1395_v39  ;;  %v1434_v11 = vld [vmem:[#allocation7 + $0x12e0] sm:$0xff]  ;;  %v1435_v21 = vld [vmem:[#allocation7 + $0x12e8] sm:$0xff] }
 0x226   :  { %7136 = vmatmul.mubr.bf16.vlgmr.msra.gmra.mrb[16].mxu0 %v20018_v44  ;;  %7480 = vmatmul.mubr.bf16.vlgmr.msra.gmra.mrb[16].mxu1 %v20018_v44 }
 0x227   :  { %7147 = vmatpush1.bf16.msra.mxu0 %v17385_v49  ;;  %7178 = vmatprep.mubr.bf16.mxu0 %v19997_v0  ;;  %v17433_v49 = vcombine.low %v1390_v40, %v1394_v38  ;;  %v1438_v40 = vld [vmem:[#allocation7 + $0x1300] sm:$0xff] }
 0x228   :  { %7491 = vmatpush1.bf16.msra.mxu1 %v17387_v54  ;;  %7522 = vmatprep.mubr.bf16.mxu1 %v19997_v0  ;;  %v17435_v54 = vcombine.low %v1391_v18, %v1395_v39  ;;  %v1442_v38 = vld [vmem:[#allocation7 + $0x1320] sm:$0xff]  ;;  %v1439_v18 = vld [vmem:[#allocation7 + $0x1308] sm:$0xff] }
 0x229   :  { %7148 = vmatprep.subr.bf16.mxu0 %v17394_v36  ;;  %7492 = vmatprep.subr.bf16.mxu1 %v17396_v63  ;;  %v17442_v36 = vcombine.high %v1398_v61, %v1402_v45  ;;  %v17444_v63 = vcombine.high %v1399_v48, %v1403_v56  ;;  %v1443_v39 = vld [vmem:[#allocation7 + $0x1328] sm:$0xff] }
 0x22b   :  { %7149 = vmatpush1.bf16.msra.mxu0 %v17393_v59  ;;  %v17441_v59 = vcombine.low %v1398_v61, %v1402_v45  ;;  %v1446_v61 = vld [vmem:[#allocation7 + $0x1340] sm:$0xff] }
 0x22c   :  { %7493 = vmatpush1.bf16.msra.mxu1 %v17395_v3  ;;  %7150 = vmatprep.subr.bf16.mxu0 %v17402_v46  ;;  %v17443_v3 = vcombine.low %v1399_v48, %v1403_v56  ;;  %v17450_v46 = vcombine.high %v1406_v30, %v1410_v55  ;;  %v1450_v45 = vld [vmem:[#allocation7 + $0x1360] sm:$0xff]  ;;  %v1447_v48 = vld [vmem:[#allocation7 + $0x1348] sm:$0xff] }
 0x22d   :  { %7494 = vmatprep.subr.bf16.mxu1 %v17404_v47  ;;  %v17452_v47 = vcombine.high %v1407_v8, %v1411_v33  ;;  %v1451_v56 = vld [vmem:[#allocation7 + $0x1368] sm:$0xff] }
 0x22f   :  { %7151 = vmatpush1.bf16.msra.mxu0 %v17401_v29  ;;  %v17449_v29 = vcombine.low %v1406_v30, %v1410_v55  ;;  %v1454_v30 = vld [vmem:[#allocation7 + $0x1380] sm:$0xff] }
 0x230   :  { %7495 = vmatpush1.bf16.msra.mxu1 %v17403_v42  ;;  %7152 = vmatprep.subr.bf16.mxu0 %v17410_v51  ;;  %v17451_v42 = vcombine.low %v1407_v8, %v1411_v33  ;;  %v17458_v51 = vcombine.high %v1414_v4, %v1418_v5  ;;  %v1458_v55 = vld [vmem:[#allocation7 + $0x13a0] sm:$0xff]  ;;  %v1455_v8 = vld [vmem:[#allocation7 + $0x1388] sm:$0xff] }
 0x231   :  { %7496 = vmatprep.subr.bf16.mxu1 %v17412_v57  ;;  %v17460_v57 = vcombine.high %v1415_v15, %v1419_v9  ;;  %v1459_v33 = vld [vmem:[#allocation7 + $0x13a8] sm:$0xff] }
 0x233   :  { %7153 = vmatpush1.bf16.msra.mxu0 %v17409_v10  ;;  %v17457_v10 = vcombine.low %v1414_v4, %v1418_v5  ;;  %v1462_v4 = vld [vmem:[#allocation7 + $0x13c0] sm:$0xff] }
 0x234   :  { %7497 = vmatpush1.bf16.msra.mxu1 %v17411_v12  ;;  %7154 = vmatprep.subr.bf16.mxu0 %v17418_v17  ;;  %v17459_v12 = vcombine.low %v1415_v15, %v1419_v9  ;;  %v17466_v17 = vcombine.high %v1422_v31, %v1426_v53  ;;  %v1466_v5 = vld [vmem:[#allocation7 + $0x13e0] sm:$0xff]  ;;  %v1463_v15 = vld [vmem:[#allocation7 + $0x13c8] sm:$0xff] }
 0x235   :  { %7498 = vmatprep.subr.bf16.mxu1 %v17420_v19  ;;  %v17468_v19 = vcombine.high %v1423_v1, %v1427_v6  ;;  %v1467_v9 = vld [vmem:[#allocation7 + $0x13e8] sm:$0xff] }
 0x237   :  { %7155 = vmatpush1.bf16.msra.mxu0 %v17417_v26  ;;  %v17465_v26 = vcombine.low %v1422_v31, %v1426_v53  ;;  %v1470_v31 = vld [vmem:[#allocation7 + $0x1400] sm:$0xff] }
 0x238   :  { %7499 = vmatpush1.bf16.msra.mxu1 %v17419_v28  ;;  %7156 = vmatprep.subr.bf16.mxu0 %v17426_v34  ;;  %v17467_v28 = vcombine.low %v1423_v1, %v1427_v6  ;;  %v17474_v34 = vcombine.high %v1430_v22, %v1434_v11  ;;  %v1474_v53 = vld [vmem:[#allocation7 + $0x1420] sm:$0xff]  ;;  %v1471_v1 = vld [vmem:[#allocation7 + $0x1408] sm:$0xff] }
 0x239   :  { %7500 = vmatprep.subr.bf16.mxu1 %v17428_v35  ;;  %v17476_v35 = vcombine.high %v1431_v13, %v1435_v21  ;;  %v1475_v6 = vld [vmem:[#allocation7 + $0x1428] sm:$0xff] }
 0x23b   :  { %7157 = vmatpush1.bf16.msra.mxu0 %v17425_v27  ;;  %v17473_v27 = vcombine.low %v1430_v22, %v1434_v11  ;;  %v1478_v22 = vld [vmem:[#allocation7 + $0x1440] sm:$0xff] }
 0x23c   :  { %7501 = vmatpush1.bf16.msra.mxu1 %v17427_v43  ;;  %7158 = vmatprep.subr.bf16.mxu0 %v17434_v16  ;;  %v17475_v43 = vcombine.low %v1431_v13, %v1435_v21  ;;  %v17482_v16 = vcombine.high %v1438_v40, %v1442_v38  ;;  %v1482_v11 = vld [vmem:[#allocation7 + $0x1460] sm:$0xff]  ;;  %v17513_v13 = vcombine.low %v1470_v31, %v1474_v53  ;;  %v1479_v21 = vld [vmem:[#allocation7 + $0x1448] sm:$0xff] }
 0x23d   :  { %7502 = vmatprep.subr.bf16.mxu1 %v17436_v41  ;;  %v17484_v41 = vcombine.high %v1439_v18, %v1443_v39 }
 0x23f   :  { %7159 = vmatpush1.bf16.msra.mxu0 %v17433_v49  ;;  %v17481_v49 = vcombine.low %v1438_v40, %v1442_v38  ;;  %v1490_v40 = vld [vmem:[#allocation7 + $0x14a0] sm:$0xff] }
 0x240   :  { %7503 = vmatpush1.bf16.msra.mxu1 %v17435_v54  ;;  %7160 = vmatprep.subr.bf16.mxu0 %v17442_v36  ;;  %v17483_v54 = vcombine.low %v1439_v18, %v1443_v39  ;;  %v17490_v36 = vcombine.high %v1446_v61, %v1450_v45  ;;  %v1487_v18 = vld [vmem:[#allocation7 + $0x1488] sm:$0xff] }
 0x241   :  { %7504 = vmatprep.subr.bf16.mxu1 %v17444_v63  ;;  %v17492_v63 = vcombine.high %v1447_v48, %v1451_v56  ;;  %v1491_v39 = vld [vmem:[#allocation7 + $0x14a8] sm:$0xff] }
 0x243   :  { %7161 = vmatpush1.bf16.msra.mxu0 %v17441_v59  ;;  %v17489_v59 = vcombine.low %v1446_v61, %v1450_v45  ;;  %v1494_v61 = vld [vmem:[#allocation7 + $0x14c0] sm:$0xff] }
 0x244   :  { %7505 = vmatpush1.bf16.msra.mxu1 %v17443_v3  ;;  %7162 = vmatprep.subr.bf16.mxu0 %v17450_v46  ;;  %v17491_v3 = vcombine.low %v1447_v48, %v1451_v56  ;;  %v17498_v46 = vcombine.high %v1454_v30, %v1458_v55  ;;  %v1498_v45 = vld [vmem:[#allocation7 + $0x14e0] sm:$0xff]  ;;  %v1495_v48 = vld [vmem:[#allocation7 + $0x14c8] sm:$0xff] }
 0x245   :  { %7506 = vmatprep.subr.bf16.mxu1 %v17452_v47  ;;  %v17500_v47 = vcombine.high %v1455_v8, %v1459_v33  ;;  %v1499_v56 = vld [vmem:[#allocation7 + $0x14e8] sm:$0xff] }
 0x247   :  { %7163 = vmatpush1.bf16.msra.mxu0 %v17449_v29  ;;  %v17497_v29 = vcombine.low %v1454_v30, %v1458_v55  ;;  %v1502_v30 = vld [vmem:[#allocation7 + $0x1500] sm:$0xff] }
 0x248   :  { %7507 = vmatpush1.bf16.msra.mxu1 %v17451_v42  ;;  %7164 = vmatprep.subr.bf16.mxu0 %v17458_v51  ;;  %v17499_v42 = vcombine.low %v1455_v8, %v1459_v33  ;;  %v17506_v51 = vcombine.high %v1462_v4, %v1466_v5  ;;  %v1506_v55 = vld [vmem:[#allocation7 + $0x1520] sm:$0xff]  ;;  %v1503_v8 = vld [vmem:[#allocation7 + $0x1508] sm:$0xff] }
 0x249   :  { %7508 = vmatprep.subr.bf16.mxu1 %v17460_v57  ;;  %v17508_v57 = vcombine.high %v1463_v15, %v1467_v9  ;;  %v1507_v33 = vld [vmem:[#allocation7 + $0x1528] sm:$0xff] }
 0x24b   :  { %7165 = vmatpush1.bf16.msra.mxu0 %v17457_v10  ;;  %v17505_v10 = vcombine.low %v1462_v4, %v1466_v5  ;;  %v1510_v4 = vld [vmem:[#allocation7 + $0x1540] sm:$0xff] }
 0x24c   :  { %7509 = vmatpush1.bf16.msra.mxu1 %v17459_v12  ;;  %7166 = vmatprep.subr.bf16.mxu0 %v17466_v17  ;;  %v17507_v12 = vcombine.low %v1463_v15, %v1467_v9  ;;  %v17514_v17 = vcombine.high %v1470_v31, %v1474_v53  ;;  %v1514_v5 = vld [vmem:[#allocation7 + $0x1560] sm:$0xff]  ;;  %v1511_v15 = vld [vmem:[#allocation7 + $0x1548] sm:$0xff] }
 0x24d   :  { %7510 = vmatprep.subr.bf16.mxu1 %v17468_v19  ;;  %v17516_v19 = vcombine.high %v1471_v1, %v1475_v6  ;;  %v1515_v9 = vld [vmem:[#allocation7 + $0x1568] sm:$0xff]  ;;  %v1518_v31 = vld [vmem:[#allocation7 + $0x1580] sm:$0xff] }
 0x24e   :  { %v1522_v53 = vld [vmem:[#allocation7 + $0x15a0] sm:$0xff] }
 0x24f   :  { %7167 = vmatpush1.bf16.msra.mxu0 %v17465_v26  ;;  %v1483_v26 = vld [vmem:[#allocation7 + $0x1468] sm:$0xff] }
 0x250   :  { %7511 = vmatpush1.bf16.msra.mxu1 %v17467_v28  ;;  %7168 = vmatprep.subr.bf16.mxu0 %v17474_v34  ;;  %v17515_v28 = vcombine.low %v1471_v1, %v1475_v6  ;;  %v17522_v34 = vcombine.high %v1478_v22, %v1482_v11  ;;  %v17524_v38 = vcombine.high %v1479_v21, %v1483_v26  ;;  %v1519_v1 = vld [vmem:[#allocation7 + $0x1588] sm:$0xff] }
 0x251   :  { %7512 = vmatprep.subr.bf16.mxu1 %v17476_v35  ;;  %v1486_v35 = vld [vmem:[#allocation7 + $0x1480] sm:$0xff]  ;;  %v1523_v6 = vld [vmem:[#allocation7 + $0x15a8] sm:$0xff] }
 0x253   :  { %7169 = vmatpush1.bf16.msra.mxu0 %v17473_v27  ;;  %v17521_v27 = vcombine.low %v1478_v22, %v1482_v11  ;;  %v1526_v22 = vld [vmem:[#allocation7 + $0x15c0] sm:$0xff] }
 0x254   :  { %7513 = vmatpush1.bf16.msra.mxu1 %v17475_v43  ;;  %7170 = vmatprep.subr.bf16.mxu0 %v17482_v16  ;;  %v17523_v43 = vcombine.low %v1479_v21, %v1483_v26  ;;  %v17530_v16 = vcombine.high %v1486_v35, %v1490_v40  ;;  %v1530_v11 = vld [vmem:[#allocation7 + $0x15e0] sm:$0xff]  ;;  %v1531_v21 = vld [vmem:[#allocation7 + $0x15e8] sm:$0xff]  ;;  %v17561_v26 = vcombine.low %v1518_v31, %v1522_v53 }
 0x255   :  { %7514 = vmatprep.subr.bf16.mxu1 %v17484_v41  ;;  %v17532_v41 = vcombine.high %v1487_v18, %v1491_v39 }
 0x257   :  { %7171 = vmatpush1.bf16.msra.mxu0 %v17481_v49  ;;  %v17529_v49 = vcombine.low %v1486_v35, %v1490_v40  ;;  %v1534_v40 = vld [vmem:[#allocation7 + $0x1600] sm:$0xff] }
 0x258   :  { %7515 = vmatpush1.bf16.msra.mxu1 %v17483_v54  ;;  %7172 = vmatprep.subr.bf16.mxu0 %v17490_v36  ;;  %v17531_v54 = vcombine.low %v1487_v18, %v1491_v39  ;;  %v17538_v36 = vcombine.high %v1494_v61, %v1498_v45  ;;  %v1535_v18 = vld [vmem:[#allocation7 + $0x1608] sm:$0xff] }
 0x259   :  { %7516 = vmatprep.subr.bf16.mxu1 %v17492_v63  ;;  %v17540_v63 = vcombine.high %v1495_v48, %v1499_v56  ;;  %v1539_v39 = vld [vmem:[#allocation7 + $0x1628] sm:$0xff] }
 0x25b   :  { %7173 = vmatpush1.bf16.msra.mxu0 %v17489_v59  ;;  %v17537_v59 = vcombine.low %v1494_v61, %v1498_v45  ;;  %v1542_v61 = vld [vmem:[#allocation7 + $0x1640] sm:$0xff] }
 0x25c   :  { %7517 = vmatpush1.bf16.msra.mxu1 %v17491_v3  ;;  %7174 = vmatprep.subr.bf16.mxu0 %v17498_v46  ;;  %v17539_v3 = vcombine.low %v1495_v48, %v1499_v56  ;;  %v17546_v46 = vcombine.high %v1502_v30, %v1506_v55  ;;  %v1546_v45 = vld [vmem:[#allocation7 + $0x1660] sm:$0xff]  ;;  %v1543_v48 = vld [vmem:[#allocation7 + $0x1648] sm:$0xff] }
 0x25d   :  { %7518 = vmatprep.subr.bf16.mxu1 %v17500_v47  ;;  %v17548_v47 = vcombine.high %v1503_v8, %v1507_v33  ;;  %v1547_v56 = vld [vmem:[#allocation7 + $0x1668] sm:$0xff] }
 0x25f   :  { %7175 = vmatpush1.bf16.msra.mxu0 %v17497_v29  ;;  %v17545_v29 = vcombine.low %v1502_v30, %v1506_v55  ;;  %v1550_v30 = vld [vmem:[#allocation7 + $0x1680] sm:$0xff] }
 0x260   :  { %7519 = vmatpush1.bf16.msra.mxu1 %v17499_v42  ;;  %7176 = vmatprep.subr.bf16.mxu0 %v17506_v51  ;;  %v17547_v42 = vcombine.low %v1503_v8, %v1507_v33  ;;  %v17554_v51 = vcombine.high %v1510_v4, %v1514_v5  ;;  %v1554_v55 = vld [vmem:[#allocation7 + $0x16a0] sm:$0xff]  ;;  %v1551_v8 = vld [vmem:[#allocation7 + $0x1688] sm:$0xff] }
 0x261   :  { %7520 = vmatprep.subr.bf16.mxu1 %v17508_v57  ;;  %v17556_v57 = vcombine.high %v1511_v15, %v1515_v9  ;;  %v1555_v33 = vld [vmem:[#allocation7 + $0x16a8] sm:$0xff] }
 0x263   :  { %7177 = vmatpush1.bf16.msra.mxu0 %v17505_v10  ;;  %v17553_v10 = vcombine.low %v1510_v4, %v1514_v5  ;;  %v1558_v4 = vld [vmem:[#allocation7 + $0x16c0] sm:$0xff] }
 0x264   :  { %7521 = vmatpush1.bf16.msra.mxu1 %v17507_v12  ;;  %7189 = vmatprep.subr.bf16.mxu0 %v17514_v17  ;;  %v17555_v12 = vcombine.low %v1511_v15, %v1515_v9  ;;  %v17562_v17 = vcombine.high %v1518_v31, %v1522_v53  ;;  %v1562_v5 = vld [vmem:[#allocation7 + $0x16e0] sm:$0xff]  ;;  %v1559_v15 = vld [vmem:[#allocation7 + $0x16c8] sm:$0xff] }
 0x265   :  { %7533 = vmatprep.subr.bf16.mxu1 %v17516_v19  ;;  %v17564_v19 = vcombine.high %v1519_v1, %v1523_v6  ;;  %v1563_v9 = vld [vmem:[#allocation7 + $0x16e8] sm:$0xff]  ;;  %v1566_v31 = vld [vmem:[#allocation7 + $0x1700] sm:$0xff] }
 0x266   :  { %7179 = vmatmul.mubr.bf16.vlgmr.msra.gmra.mrb[16].mxu0 %v19989_v7  ;;  %v1570_v53 = vld [vmem:[#allocation7 + $0x1720] sm:$0xff] }
 0x267   :  { %7523 = vmatmul.mubr.bf16.vlgmr.msra.gmra.mrb[16].mxu1 %v19989_v7  ;;  %7190 = vmatpush1.bf16.msra.mxu0 %v17513_v13  ;;  %v1527_v13 = vld [vmem:[#allocation7 + $0x15c8] sm:$0xff] }
 0x268   :  { %7221 = vmatprep.mubr.bf16.mxu0 %v20056_v25  ;;  %7534 = vmatpush1.bf16.msra.mxu1 %v17515_v28  ;;  %v17563_v28 = vcombine.low %v1519_v1, %v1523_v6  ;;  %v17572_v35 = vcombine.high %v1527_v13, %v1531_v21  ;;  %v1567_v1 = vld [vmem:[#allocation7 + $0x1708] sm:$0xff] }
 0x269   :  { %7565 = vmatprep.mubr.bf16.mxu1 %v20056_v25  ;;  %7191 = vmatprep.subr.bf16.mxu0 %v17522_v34  ;;  %v17570_v34 = vcombine.high %v1526_v22, %v1530_v11  ;;  %v1571_v6 = vld [vmem:[#allocation7 + $0x1728] sm:$0xff] }
 0x26a   :  { %7535 = vmatprep.subr.bf16.mxu1 %v17524_v38  ;;  %v1538_v38 = vld [vmem:[#allocation7 + $0x1620] sm:$0xff] }
 0x26b   :  { %7192 = vmatpush1.bf16.msra.mxu0 %v17521_v27  ;;  %v17569_v27 = vcombine.low %v1526_v22, %v1530_v11  ;;  %v1574_v22 = vld [vmem:[#allocation7 + $0x1740] sm:$0xff] }
 0x26c   :  { %7536 = vmatpush1.bf16.msra.mxu1 %v17523_v43  ;;  %7193 = vmatprep.subr.bf16.mxu0 %v17530_v16  ;;  %v17571_v43 = vcombine.low %v1527_v13, %v1531_v21  ;;  %v17578_v16 = vcombine.high %v1534_v40, %v1538_v38  ;;  %v1578_v11 = vld [vmem:[#allocation7 + $0x1760] sm:$0xff]  ;;  %v1575_v13 = vld [vmem:[#allocation7 + $0x1748] sm:$0xff] }
 0x26d   :  { %7537 = vmatprep.subr.bf16.mxu1 %v17532_v41  ;;  %v17580_v41 = vcombine.high %v1535_v18, %v1539_v39  ;;  %v1579_v21 = vld [vmem:[#allocation7 + $0x1768] sm:$0xff] }
 0x26f   :  { %7194 = vmatpush1.bf16.msra.mxu0 %v17529_v49  ;;  %v17577_v49 = vcombine.low %v1534_v40, %v1538_v38  ;;  %v1582_v40 = vld [vmem:[#allocation7 + $0x1780] sm:$0xff] }
 0x270   :  { %7538 = vmatpush1.bf16.msra.mxu1 %v17531_v54  ;;  %7195 = vmatprep.subr.bf16.mxu0 %v17538_v36  ;;  %v17579_v54 = vcombine.low %v1535_v18, %v1539_v39  ;;  %v17586_v36 = vcombine.high %v1542_v61, %v1546_v45  ;;  %v1586_v38 = vld [vmem:[#allocation7 + $0x17a0] sm:$0xff]  ;;  %v1583_v18 = vld [vmem:[#allocation7 + $0x1788] sm:$0xff] }
 0x271   :  { %7539 = vmatprep.subr.bf16.mxu1 %v17540_v63  ;;  %v17588_v63 = vcombine.high %v1543_v48, %v1547_v56  ;;  %v1587_v39 = vld [vmem:[#allocation7 + $0x17a8] sm:$0xff] }
 0x273   :  { %7196 = vmatpush1.bf16.msra.mxu0 %v17537_v59  ;;  %v17585_v59 = vcombine.low %v1542_v61, %v1546_v45  ;;  %v1590_v61 = vld [vmem:[#allocation7 + $0x17c0] sm:$0xff] }
 0x274   :  { %7540 = vmatpush1.bf16.msra.mxu1 %v17539_v3  ;;  %7197 = vmatprep.subr.bf16.mxu0 %v17546_v46  ;;  %v17587_v3 = vcombine.low %v1543_v48, %v1547_v56  ;;  %v17594_v46 = vcombine.high %v1550_v30, %v1554_v55  ;;  %v1594_v45 = vld [vmem:[#allocation7 + $0x17e0] sm:$0xff]  ;;  %v1591_v48 = vld [vmem:[#allocation7 + $0x17c8] sm:$0xff] }
 0x275   :  { %7541 = vmatprep.subr.bf16.mxu1 %v17548_v47  ;;  %v17596_v47 = vcombine.high %v1551_v8, %v1555_v33  ;;  %v1595_v56 = vld [vmem:[#allocation7 + $0x17e8] sm:$0xff] }
 0x277   :  { %7198 = vmatpush1.bf16.msra.mxu0 %v17545_v29  ;;  %v17593_v29 = vcombine.low %v1550_v30, %v1554_v55  ;;  %v1598_v30 = vld [vmem:[#allocation7 + $0x1800] sm:$0xff] }
 0x278   :  { %7542 = vmatpush1.bf16.msra.mxu1 %v17547_v42  ;;  %7199 = vmatprep.subr.bf16.mxu0 %v17554_v51  ;;  %v17595_v42 = vcombine.low %v1551_v8, %v1555_v33  ;;  %v17602_v51 = vcombine.high %v1558_v4, %v1562_v5  ;;  %v1602_v55 = vld [vmem:[#allocation7 + $0x1820] sm:$0xff]  ;;  %v1599_v8 = vld [vmem:[#allocation7 + $0x1808] sm:$0xff] }
 0x279   :  { %7543 = vmatprep.subr.bf16.mxu1 %v17556_v57  ;;  %v17604_v57 = vcombine.high %v1559_v15, %v1563_v9  ;;  %v1603_v33 = vld [vmem:[#allocation7 + $0x1828] sm:$0xff] }
 0x27b   :  { %7200 = vmatpush1.bf16.msra.mxu0 %v17553_v10  ;;  %v17601_v10 = vcombine.low %v1558_v4, %v1562_v5  ;;  %v1606_v4 = vld [vmem:[#allocation7 + $0x1840] sm:$0xff] }
 0x27c   :  { %7544 = vmatpush1.bf16.msra.mxu1 %v17555_v12  ;;  %7201 = vmatprep.subr.bf16.mxu0 %v17562_v17  ;;  %v17603_v12 = vcombine.low %v1559_v15, %v1563_v9  ;;  %v17610_v17 = vcombine.high %v1566_v31, %v1570_v53  ;;  %v1610_v5 = vld [vmem:[#allocation7 + $0x1860] sm:$0xff]  ;;  %v17641_v15 = vcombine.low %v1598_v30, %v1602_v55  ;;  %v1607_v9 = vld [vmem:[#allocation7 + $0x1848] sm:$0xff] }
 0x27d   :  { %7545 = vmatprep.subr.bf16.mxu1 %v17564_v19  ;;  %v17612_v19 = vcombine.high %v1567_v1, %v1571_v6 }
 0x27f   :  { %7202 = vmatpush1.bf16.msra.mxu0 %v17561_v26  ;;  %v17609_v26 = vcombine.low %v1566_v31, %v1570_v53  ;;  %v1618_v31 = vld [vmem:[#allocation7 + $0x18a0] sm:$0xff] }
 0x280   :  { %7546 = vmatpush1.bf16.msra.mxu1 %v17563_v28  ;;  %7203 = vmatprep.subr.bf16.mxu0 %v17570_v34  ;;  %v17611_v28 = vcombine.low %v1567_v1, %v1571_v6  ;;  %v17618_v34 = vcombine.high %v1574_v22, %v1578_v11  ;;  %v1615_v1 = vld [vmem:[#allocation7 + $0x1888] sm:$0xff] }
 0x281   :  { %7547 = vmatprep.subr.bf16.mxu1 %v17572_v35  ;;  %v17620_v35 = vcombine.high %v1575_v13, %v1579_v21  ;;  %v1619_v6 = vld [vmem:[#allocation7 + $0x18a8] sm:$0xff] }
 0x283   :  { %7204 = vmatpush1.bf16.msra.mxu0 %v17569_v27  ;;  %v17617_v27 = vcombine.low %v1574_v22, %v1578_v11  ;;  %v1622_v22 = vld [vmem:[#allocation7 + $0x18c0] sm:$0xff] }
 0x284   :  { %7548 = vmatpush1.bf16.msra.mxu1 %v17571_v43  ;;  %7205 = vmatprep.subr.bf16.mxu0 %v17578_v16  ;;  %v17619_v43 = vcombine.low %v1575_v13, %v1579_v21  ;;  %v17626_v16 = vcombine.high %v1582_v40, %v1586_v38  ;;  %v1626_v11 = vld [vmem:[#allocation7 + $0x18e0] sm:$0xff]  ;;  %v1623_v13 = vld [vmem:[#allocation7 + $0x18c8] sm:$0xff] }
 0x285   :  { %7549 = vmatprep.subr.bf16.mxu1 %v17580_v41  ;;  %v17628_v41 = vcombine.high %v1583_v18, %v1587_v39  ;;  %v1627_v21 = vld [vmem:[#allocation7 + $0x18e8] sm:$0xff] }
 0x287   :  { %7206 = vmatpush1.bf16.msra.mxu0 %v17577_v49  ;;  %v17625_v49 = vcombine.low %v1582_v40, %v1586_v38  ;;  %v1630_v40 = vld [vmem:[#allocation7 + $0x1900] sm:$0xff] }
 0x288   :  { %7550 = vmatpush1.bf16.msra.mxu1 %v17579_v54  ;;  %7207 = vmatprep.subr.bf16.mxu0 %v17586_v36  ;;  %v17627_v54 = vcombine.low %v1583_v18, %v1587_v39  ;;  %v17634_v36 = vcombine.high %v1590_v61, %v1594_v45  ;;  %v1634_v38 = vld [vmem:[#allocation7 + $0x1920] sm:$0xff]  ;;  %v1631_v18 = vld [vmem:[#allocation7 + $0x1908] sm:$0xff] }
 0x289   :  { %7551 = vmatprep.subr.bf16.mxu1 %v17588_v63  ;;  %v17636_v63 = vcombine.high %v1591_v48, %v1595_v56  ;;  %v1635_v39 = vld [vmem:[#allocation7 + $0x1928] sm:$0xff] }
 0x28b   :  { %7208 = vmatpush1.bf16.msra.mxu0 %v17585_v59  ;;  %v17633_v59 = vcombine.low %v1590_v61, %v1594_v45  ;;  %v1638_v61 = vld [vmem:[#allocation7 + $0x1940] sm:$0xff] }
 0x28c   :  { %7552 = vmatpush1.bf16.msra.mxu1 %v17587_v3  ;;  %7209 = vmatprep.subr.bf16.mxu0 %v17594_v46  ;;  %v17635_v3 = vcombine.low %v1591_v48, %v1595_v56  ;;  %v17642_v46 = vcombine.high %v1598_v30, %v1602_v55  ;;  %v1642_v45 = vld [vmem:[#allocation7 + $0x1960] sm:$0xff]  ;;  %v1639_v48 = vld [vmem:[#allocation7 + $0x1948] sm:$0xff] }
 0x28d   :  { %7553 = vmatprep.subr.bf16.mxu1 %v17596_v47  ;;  %v17644_v47 = vcombine.high %v1599_v8, %v1603_v33  ;;  %v1643_v56 = vld [vmem:[#allocation7 + $0x1968] sm:$0xff]  ;;  %v1646_v30 = vld [vmem:[#allocation7 + $0x1980] sm:$0xff] }
 0x28e   :  { %v1650_v55 = vld [vmem:[#allocation7 + $0x19a0] sm:$0xff] }
 0x28f   :  { %7210 = vmatpush1.bf16.msra.mxu0 %v17593_v29  ;;  %v1611_v29 = vld [vmem:[#allocation7 + $0x1868] sm:$0xff] }
 0x290   :  { %7554 = vmatpush1.bf16.msra.mxu1 %v17595_v42  ;;  %7211 = vmatprep.subr.bf16.mxu0 %v17602_v51  ;;  %v17643_v42 = vcombine.low %v1599_v8, %v1603_v33  ;;  %v17650_v51 = vcombine.high %v1606_v4, %v1610_v5  ;;  %v17652_v53 = vcombine.high %v1607_v9, %v1611_v29  ;;  %v1647_v8 = vld [vmem:[#allocation7 + $0x1988] sm:$0xff] }
 0x291   :  { %7555 = vmatprep.subr.bf16.mxu1 %v17604_v57  ;;  %v1614_v57 = vld [vmem:[#allocation7 + $0x1880] sm:$0xff]  ;;  %v1651_v33 = vld [vmem:[#allocation7 + $0x19a8] sm:$0xff] }
 0x293   :  { %7212 = vmatpush1.bf16.msra.mxu0 %v17601_v10  ;;  %v17649_v10 = vcombine.low %v1606_v4, %v1610_v5  ;;  %v1654_v4 = vld [vmem:[#allocation7 + $0x19c0] sm:$0xff] }
 0x294   :  { %7556 = vmatpush1.bf16.msra.mxu1 %v17603_v12  ;;  %7213 = vmatprep.subr.bf16.mxu0 %v17610_v17  ;;  %v17651_v12 = vcombine.low %v1607_v9, %v1611_v29  ;;  %v17658_v17 = vcombine.high %v1614_v57, %v1618_v31  ;;  %v1658_v5 = vld [vmem:[#allocation7 + $0x19e0] sm:$0xff]  ;;  %v1659_v9 = vld [vmem:[#allocation7 + $0x19e8] sm:$0xff]  ;;  %v17689_v29 = vcombine.low %v1646_v30, %v1650_v55 }
 0x295   :  { %7557 = vmatprep.subr.bf16.mxu1 %v17612_v19  ;;  %v17660_v19 = vcombine.high %v1615_v1, %v1619_v6 }
 0x297   :  { %7214 = vmatpush1.bf16.msra.mxu0 %v17609_v26  ;;  %v17657_v26 = vcombine.low %v1614_v57, %v1618_v31  ;;  %v1662_v31 = vld [vmem:[#allocation7 + $0x1a00] sm:$0xff] }
 0x298   :  { %7558 = vmatpush1.bf16.msra.mxu1 %v17611_v28  ;;  %7215 = vmatprep.subr.bf16.mxu0 %v17618_v34  ;;  %v17659_v28 = vcombine.low %v1615_v1, %v1619_v6  ;;  %v17666_v34 = vcombine.high %v1622_v22, %v1626_v11  ;;  %v1663_v1 = vld [vmem:[#allocation7 + $0x1a08] sm:$0xff] }
 0x299   :  { %7559 = vmatprep.subr.bf16.mxu1 %v17620_v35  ;;  %v17668_v35 = vcombine.high %v1623_v13, %v1627_v21  ;;  %v1667_v6 = vld [vmem:[#allocation7 + $0x1a28] sm:$0xff] }
 0x29b   :  { %7216 = vmatpush1.bf16.msra.mxu0 %v17617_v27  ;;  %v17665_v27 = vcombine.low %v1622_v22, %v1626_v11  ;;  %v1670_v22 = vld [vmem:[#allocation7 + $0x1a40] sm:$0xff] }
 0x29c   :  { %7560 = vmatpush1.bf16.msra.mxu1 %v17619_v43  ;;  %7217 = vmatprep.subr.bf16.mxu0 %v17626_v16  ;;  %v17667_v43 = vcombine.low %v1623_v13, %v1627_v21  ;;  %v17674_v16 = vcombine.high %v1630_v40, %v1634_v38  ;;  %v1674_v11 = vld [vmem:[#allocation7 + $0x1a60] sm:$0xff]  ;;  %v1671_v13 = vld [vmem:[#allocation7 + $0x1a48] sm:$0xff] }
 0x29d   :  { %7561 = vmatprep.subr.bf16.mxu1 %v17628_v41  ;;  %v17676_v41 = vcombine.high %v1631_v18, %v1635_v39  ;;  %v1675_v21 = vld [vmem:[#allocation7 + $0x1a68] sm:$0xff] }
 0x29f   :  { %7218 = vmatpush1.bf16.msra.mxu0 %v17625_v49  ;;  %v17673_v49 = vcombine.low %v1630_v40, %v1634_v38  ;;  %v1678_v40 = vld [vmem:[#allocation7 + $0x1a80] sm:$0xff] }
 0x2a0   :  { %7562 = vmatpush1.bf16.msra.mxu1 %v17627_v54  ;;  %7219 = vmatprep.subr.bf16.mxu0 %v17634_v36  ;;  %v17675_v54 = vcombine.low %v1631_v18, %v1635_v39  ;;  %v17682_v36 = vcombine.high %v1638_v61, %v1642_v45  ;;  %v1682_v38 = vld [vmem:[#allocation7 + $0x1aa0] sm:$0xff]  ;;  %v1679_v18 = vld [vmem:[#allocation7 + $0x1a88] sm:$0xff] }
 0x2a1   :  { %7563 = vmatprep.subr.bf16.mxu1 %v17636_v63  ;;  %v17684_v63 = vcombine.high %v1639_v48, %v1643_v56  ;;  %v1683_v39 = vld [vmem:[#allocation7 + $0x1aa8] sm:$0xff] }
 0x2a3   :  { %7220 = vmatpush1.bf16.msra.mxu0 %v17633_v59  ;;  %v17681_v59 = vcombine.low %v1638_v61, %v1642_v45  ;;  %v1686_v61 = vld [vmem:[#allocation7 + $0x1ac0] sm:$0xff] }
 0x2a4   :  { %7564 = vmatpush1.bf16.msra.mxu1 %v17635_v3  ;;  %7232 = vmatprep.subr.bf16.mxu0 %v17642_v46  ;;  %v17683_v3 = vcombine.low %v1639_v48, %v1643_v56  ;;  %v17690_v46 = vcombine.high %v1646_v30, %v1650_v55  ;;  %v1690_v45 = vld [vmem:[#allocation7 + $0x1ae0] sm:$0xff]  ;;  %v1687_v48 = vld [vmem:[#allocation7 + $0x1ac8] sm:$0xff] }
 0x2a5   :  { %7576 = vmatprep.subr.bf16.mxu1 %v17644_v47  ;;  %v17692_v47 = vcombine.high %v1647_v8, %v1651_v33  ;;  %v1691_v56 = vld [vmem:[#allocation7 + $0x1ae8] sm:$0xff]  ;;  %v1694_v30 = vld [vmem:[#allocation7 + $0x1b00] sm:$0xff] }
 0x2a6   :  { %7222 = vmatmul.mubr.bf16.vlgmr.msra.gmra.mrb[16].mxu0 %v20054_v60  ;;  %v1698_v55 = vld [vmem:[#allocation7 + $0x1b20] sm:$0xff] }
 0x2a7   :  { %7566 = vmatmul.mubr.bf16.vlgmr.msra.gmra.mrb[16].mxu1 %v20054_v60  ;;  %7233 = vmatpush1.bf16.msra.mxu0 %v17641_v15  ;;  %v1655_v15 = vld [vmem:[#allocation7 + $0x19c8] sm:$0xff] }
 0x2a8   :  { %7264 = vmatprep.mubr.bf16.mxu0 %v20012_v52  ;;  %7577 = vmatpush1.bf16.msra.mxu1 %v17643_v42  ;;  %v17691_v42 = vcombine.low %v1647_v8, %v1651_v33  ;;  %v17700_v57 = vcombine.high %v1655_v15, %v1659_v9  ;;  %v1695_v8 = vld [vmem:[#allocation7 + $0x1b08] sm:$0xff] }
 0x2a9   :  { %7608 = vmatprep.mubr.bf16.mxu1 %v20012_v52  ;;  %7234 = vmatprep.subr.bf16.mxu0 %v17650_v51  ;;  %v17698_v51 = vcombine.high %v1654_v4, %v1658_v5  ;;  %v1699_v33 = vld [vmem:[#allocation7 + $0x1b28] sm:$0xff] }
 0x2aa   :  { %7578 = vmatprep.subr.bf16.mxu1 %v17652_v53  ;;  %v1666_v53 = vld [vmem:[#allocation7 + $0x1a20] sm:$0xff] }
 0x2ab   :  { %7235 = vmatpush1.bf16.msra.mxu0 %v17649_v10  ;;  %v17697_v10 = vcombine.low %v1654_v4, %v1658_v5  ;;  %v1702_v4 = vld [vmem:[#allocation7 + $0x1b40] sm:$0xff] }
 0x2ac   :  { %7579 = vmatpush1.bf16.msra.mxu1 %v17651_v12  ;;  %7236 = vmatprep.subr.bf16.mxu0 %v17658_v17  ;;  %v17699_v12 = vcombine.low %v1655_v15, %v1659_v9  ;;  %v17706_v17 = vcombine.high %v1662_v31, %v1666_v53  ;;  %v1706_v5 = vld [vmem:[#allocation7 + $0x1b60] sm:$0xff]  ;;  %v1703_v15 = vld [vmem:[#allocation7 + $0x1b48] sm:$0xff] }
 0x2ad   :  { %7580 = vmatprep.subr.bf16.mxu1 %v17660_v19  ;;  %v17708_v19 = vcombine.high %v1663_v1, %v1667_v6  ;;  %v1707_v9 = vld [vmem:[#allocation7 + $0x1b68] sm:$0xff] }
 0x2af   :  { %7237 = vmatpush1.bf16.msra.mxu0 %v17657_v26  ;;  %v17705_v26 = vcombine.low %v1662_v31, %v1666_v53  ;;  %v1710_v31 = vld [vmem:[#allocation7 + $0x1b80] sm:$0xff] }
 0x2b0   :  { %7581 = vmatpush1.bf16.msra.mxu1 %v17659_v28  ;;  %7238 = vmatprep.subr.bf16.mxu0 %v17666_v34  ;;  %v17707_v28 = vcombine.low %v1663_v1, %v1667_v6  ;;  %v17714_v34 = vcombine.high %v1670_v22, %v1674_v11  ;;  %v1714_v53 = vld [vmem:[#allocation7 + $0x1ba0] sm:$0xff]  ;;  %v1711_v1 = vld [vmem:[#allocation7 + $0x1b88] sm:$0xff] }
 0x2b1   :  { %7582 = vmatprep.subr.bf16.mxu1 %v17668_v35  ;;  %v17716_v35 = vcombine.high %v1671_v13, %v1675_v21  ;;  %v1715_v6 = vld [vmem:[#allocation7 + $0x1ba8] sm:$0xff] }
 0x2b3   :  { %7239 = vmatpush1.bf16.msra.mxu0 %v17665_v27  ;;  %v17713_v27 = vcombine.low %v1670_v22, %v1674_v11  ;;  %v1718_v22 = vld [vmem:[#allocation7 + $0x1bc0] sm:$0xff] }
 0x2b4   :  { %7583 = vmatpush1.bf16.msra.mxu1 %v17667_v43  ;;  %7240 = vmatprep.subr.bf16.mxu0 %v17674_v16  ;;  %v17715_v43 = vcombine.low %v1671_v13, %v1675_v21  ;;  %v17722_v16 = vcombine.high %v1678_v40, %v1682_v38  ;;  %v1722_v11 = vld [vmem:[#allocation7 + $0x1be0] sm:$0xff]  ;;  %v1719_v13 = vld [vmem:[#allocation7 + $0x1bc8] sm:$0xff] }
 0x2b5   :  { %7584 = vmatprep.subr.bf16.mxu1 %v17676_v41  ;;  %v17724_v41 = vcombine.high %v1679_v18, %v1683_v39  ;;  %v1723_v21 = vld [vmem:[#allocation7 + $0x1be8] sm:$0xff] }
 0x2b7   :  { %7241 = vmatpush1.bf16.msra.mxu0 %v17673_v49  ;;  %v17721_v49 = vcombine.low %v1678_v40, %v1682_v38  ;;  %v1726_v40 = vld [vmem:[#allocation7 + $0x1c00] sm:$0xff] }
 0x2b8   :  { %7585 = vmatpush1.bf16.msra.mxu1 %v17675_v54  ;;  %7242 = vmatprep.subr.bf16.mxu0 %v17682_v36  ;;  %v17723_v54 = vcombine.low %v1679_v18, %v1683_v39  ;;  %v17730_v36 = vcombine.high %v1686_v61, %v1690_v45  ;;  %v1730_v38 = vld [vmem:[#allocation7 + $0x1c20] sm:$0xff]  ;;  %v1727_v18 = vld [vmem:[#allocation7 + $0x1c08] sm:$0xff] }
 0x2b9   :  { %7586 = vmatprep.subr.bf16.mxu1 %v17684_v63  ;;  %v17732_v63 = vcombine.high %v1687_v48, %v1691_v56  ;;  %v1731_v39 = vld [vmem:[#allocation7 + $0x1c28] sm:$0xff] }
 0x2bb   :  { %7243 = vmatpush1.bf16.msra.mxu0 %v17681_v59  ;;  %v17729_v59 = vcombine.low %v1686_v61, %v1690_v45  ;;  %v1734_v61 = vld [vmem:[#allocation7 + $0x1c40] sm:$0xff] }
 0x2bc   :  { %7587 = vmatpush1.bf16.msra.mxu1 %v17683_v3  ;;  %7244 = vmatprep.subr.bf16.mxu0 %v17690_v46  ;;  %v17731_v3 = vcombine.low %v1687_v48, %v1691_v56  ;;  %v17738_v46 = vcombine.high %v1694_v30, %v1698_v55  ;;  %v1738_v45 = vld [vmem:[#allocation7 + $0x1c60] sm:$0xff]  ;;  %v17769_v48 = vcombine.low %v1726_v40, %v1730_v38  ;;  %v1735_v56 = vld [vmem:[#allocation7 + $0x1c48] sm:$0xff] }
 0x2bd   :  { %7588 = vmatprep.subr.bf16.mxu1 %v17692_v47  ;;  %v17740_v47 = vcombine.high %v1695_v8, %v1699_v33 }
 0x2bf   :  { %7245 = vmatpush1.bf16.msra.mxu0 %v17689_v29  ;;  %v17737_v29 = vcombine.low %v1694_v30, %v1698_v55  ;;  %v1746_v30 = vld [vmem:[#allocation7 + $0x1ca0] sm:$0xff] }
 0x2c0   :  { %7589 = vmatpush1.bf16.msra.mxu1 %v17691_v42  ;;  %7246 = vmatprep.subr.bf16.mxu0 %v17698_v51  ;;  %v17739_v42 = vcombine.low %v1695_v8, %v1699_v33  ;;  %v17746_v51 = vcombine.high %v1702_v4, %v1706_v5  ;;  %v1743_v8 = vld [vmem:[#allocation7 + $0x1c88] sm:$0xff] }
 0x2c1   :  { %7590 = vmatprep.subr.bf16.mxu1 %v17700_v57  ;;  %v17748_v57 = vcombine.high %v1703_v15, %v1707_v9  ;;  %v1747_v33 = vld [vmem:[#allocation7 + $0x1ca8] sm:$0xff] }
 0x2c3   :  { %7247 = vmatpush1.bf16.msra.mxu0 %v17697_v10  ;;  %v17745_v10 = vcombine.low %v1702_v4, %v1706_v5  ;;  %v1750_v4 = vld [vmem:[#allocation7 + $0x1cc0] sm:$0xff] }
 0x2c4   :  { %7591 = vmatpush1.bf16.msra.mxu1 %v17699_v12  ;;  %7248 = vmatprep.subr.bf16.mxu0 %v17706_v17  ;;  %v17747_v12 = vcombine.low %v1703_v15, %v1707_v9  ;;  %v17754_v17 = vcombine.high %v1710_v31, %v1714_v53  ;;  %v1754_v5 = vld [vmem:[#allocation7 + $0x1ce0] sm:$0xff]  ;;  %v1751_v15 = vld [vmem:[#allocation7 + $0x1cc8] sm:$0xff] }
 0x2c5   :  { %7592 = vmatprep.subr.bf16.mxu1 %v17708_v19  ;;  %v17756_v19 = vcombine.high %v1711_v1, %v1715_v6  ;;  %v1755_v9 = vld [vmem:[#allocation7 + $0x1ce8] sm:$0xff] }
 0x2c7   :  { %7249 = vmatpush1.bf16.msra.mxu0 %v17705_v26  ;;  %v17753_v26 = vcombine.low %v1710_v31, %v1714_v53  ;;  %v1758_v31 = vld [vmem:[#allocation7 + $0x1d00] sm:$0xff] }
 0x2c8   :  { %7593 = vmatpush1.bf16.msra.mxu1 %v17707_v28  ;;  %7250 = vmatprep.subr.bf16.mxu0 %v17714_v34  ;;  %v17755_v28 = vcombine.low %v1711_v1, %v1715_v6  ;;  %v17762_v34 = vcombine.high %v1718_v22, %v1722_v11  ;;  %v1762_v53 = vld [vmem:[#allocation7 + $0x1d20] sm:$0xff]  ;;  %v1759_v1 = vld [vmem:[#allocation7 + $0x1d08] sm:$0xff] }
 0x2c9   :  { %7594 = vmatprep.subr.bf16.mxu1 %v17716_v35  ;;  %v17764_v35 = vcombine.high %v1719_v13, %v1723_v21  ;;  %v1763_v6 = vld [vmem:[#allocation7 + $0x1d28] sm:$0xff] }
 0x2cb   :  { %7251 = vmatpush1.bf16.msra.mxu0 %v17713_v27  ;;  %v17761_v27 = vcombine.low %v1718_v22, %v1722_v11  ;;  %v1766_v22 = vld [vmem:[#allocation7 + $0x1d40] sm:$0xff] }
 0x2cc   :  { %7595 = vmatpush1.bf16.msra.mxu1 %v17715_v43  ;;  %7252 = vmatprep.subr.bf16.mxu0 %v17722_v16  ;;  %v17763_v43 = vcombine.low %v1719_v13, %v1723_v21  ;;  %v17770_v16 = vcombine.high %v1726_v40, %v1730_v38  ;;  %v1770_v11 = vld [vmem:[#allocation7 + $0x1d60] sm:$0xff]  ;;  %v1767_v13 = vld [vmem:[#allocation7 + $0x1d48] sm:$0xff] }
 0x2cd   :  { %7596 = vmatprep.subr.bf16.mxu1 %v17724_v41  ;;  %v17772_v41 = vcombine.high %v1727_v18, %v1731_v39  ;;  %v1771_v21 = vld [vmem:[#allocation7 + $0x1d68] sm:$0xff]  ;;  %v1774_v40 = vld [vmem:[#allocation7 + $0x1d80] sm:$0xff] }
 0x2ce   :  { %v1778_v38 = vld [vmem:[#allocation7 + $0x1da0] sm:$0xff] }
 0x2cf   :  { %7253 = vmatpush1.bf16.msra.mxu0 %v17721_v49  ;;  %v1739_v49 = vld [vmem:[#allocation7 + $0x1c68] sm:$0xff] }
 0x2d0   :  { %7597 = vmatpush1.bf16.msra.mxu1 %v17723_v54  ;;  %7254 = vmatprep.subr.bf16.mxu0 %v17730_v36  ;;  %v17771_v54 = vcombine.low %v1727_v18, %v1731_v39  ;;  %v17778_v36 = vcombine.high %v1734_v61, %v1738_v45  ;;  %v17780_v55 = vcombine.high %v1735_v56, %v1739_v49  ;;  %v1775_v18 = vld [vmem:[#allocation7 + $0x1d88] sm:$0xff] }
 0x2d1   :  { %7598 = vmatprep.subr.bf16.mxu1 %v17732_v63  ;;  %v1742_v63 = vld [vmem:[#allocation7 + $0x1c80] sm:$0xff]  ;;  %v1779_v39 = vld [vmem:[#allocation7 + $0x1da8] sm:$0xff] }
 0x2d3   :  { %7255 = vmatpush1.bf16.msra.mxu0 %v17729_v59  ;;  %v17777_v59 = vcombine.low %v1734_v61, %v1738_v45  ;;  %v1782_v61 = vld [vmem:[#allocation7 + $0x1dc0] sm:$0xff] }
 0x2d4   :  { %7599 = vmatpush1.bf16.msra.mxu1 %v17731_v3  ;;  %7256 = vmatprep.subr.bf16.mxu0 %v17738_v46  ;;  %v17779_v3 = vcombine.low %v1735_v56, %v1739_v49  ;;  %v17786_v46 = vcombine.high %v1742_v63, %v1746_v30  ;;  %v1786_v45 = vld [vmem:[#allocation7 + $0x1de0] sm:$0xff]  ;;  %v1787_v56 = vld [vmem:[#allocation7 + $0x1de8] sm:$0xff]  ;;  %v17817_v49 = vcombine.low %v1774_v40, %v1778_v38 }
 0x2d5   :  { %7600 = vmatprep.subr.bf16.mxu1 %v17740_v47  ;;  %v17788_v47 = vcombine.high %v1743_v8, %v1747_v33 }
 0x2d7   :  { %7257 = vmatpush1.bf16.msra.mxu0 %v17737_v29  ;;  %v17785_v29 = vcombine.low %v1742_v63, %v1746_v30  ;;  %v1790_v30 = vld [vmem:[#allocation7 + $0x1e00] sm:$0xff] }
 0x2d8   :  { %7601 = vmatpush1.bf16.msra.mxu1 %v17739_v42  ;;  %7258 = vmatprep.subr.bf16.mxu0 %v17746_v51  ;;  %v17787_v42 = vcombine.low %v1743_v8, %v1747_v33  ;;  %v17794_v51 = vcombine.high %v1750_v4, %v1754_v5  ;;  %v1791_v8 = vld [vmem:[#allocation7 + $0x1e08] sm:$0xff] }
 0x2d9   :  { %7602 = vmatprep.subr.bf16.mxu1 %v17748_v57  ;;  %v17796_v57 = vcombine.high %v1751_v15, %v1755_v9  ;;  %v1795_v33 = vld [vmem:[#allocation7 + $0x1e28] sm:$0xff] }
 0x2db   :  { %7259 = vmatpush1.bf16.msra.mxu0 %v17745_v10  ;;  %v17793_v10 = vcombine.low %v1750_v4, %v1754_v5  ;;  %v1798_v4 = vld [vmem:[#allocation7 + $0x1e40] sm:$0xff] }
 0x2dc   :  { %7603 = vmatpush1.bf16.msra.mxu1 %v17747_v12  ;;  %7260 = vmatprep.subr.bf16.mxu0 %v17754_v17  ;;  %v17795_v12 = vcombine.low %v1751_v15, %v1755_v9  ;;  %v17802_v17 = vcombine.high %v1758_v31, %v1762_v53  ;;  %v1802_v5 = vld [vmem:[#allocation7 + $0x1e60] sm:$0xff]  ;;  %v1799_v15 = vld [vmem:[#allocation7 + $0x1e48] sm:$0xff] }
 0x2dd   :  { %7604 = vmatprep.subr.bf16.mxu1 %v17756_v19  ;;  %v17804_v19 = vcombine.high %v1759_v1, %v1763_v6  ;;  %v1803_v9 = vld [vmem:[#allocation7 + $0x1e68] sm:$0xff] }
 0x2df   :  { %7261 = vmatpush1.bf16.msra.mxu0 %v17753_v26  ;;  %v17801_v26 = vcombine.low %v1758_v31, %v1762_v53  ;;  %v1806_v31 = vld [vmem:[#allocation7 + $0x1e80] sm:$0xff] }
 0x2e0   :  { %7605 = vmatpush1.bf16.msra.mxu1 %v17755_v28  ;;  %7262 = vmatprep.subr.bf16.mxu0 %v17762_v34  ;;  %v17803_v28 = vcombine.low %v1759_v1, %v1763_v6  ;;  %v17810_v34 = vcombine.high %v1766_v22, %v1770_v11  ;;  %v1810_v53 = vld [vmem:[#allocation7 + $0x1ea0] sm:$0xff]  ;;  %v1807_v1 = vld [vmem:[#allocation7 + $0x1e88] sm:$0xff] }
 0x2e1   :  { %7606 = vmatprep.subr.bf16.mxu1 %v17764_v35  ;;  %v17812_v35 = vcombine.high %v1767_v13, %v1771_v21  ;;  %v1811_v6 = vld [vmem:[#allocation7 + $0x1ea8] sm:$0xff] }
 0x2e3   :  { %7263 = vmatpush1.bf16.msra.mxu0 %v17761_v27  ;;  %v17809_v27 = vcombine.low %v1766_v22, %v1770_v11  ;;  %v1814_v22 = vld [vmem:[#allocation7 + $0x1ec0] sm:$0xff] }
 0x2e4   :  { %7607 = vmatpush1.bf16.msra.mxu1 %v17763_v43  ;;  %7275 = vmatprep.subr.bf16.mxu0 %v17770_v16  ;;  %v17811_v43 = vcombine.low %v1767_v13, %v1771_v21  ;;  %v17818_v16 = vcombine.high %v1774_v40, %v1778_v38  ;;  %v1818_v11 = vld [vmem:[#allocation7 + $0x1ee0] sm:$0xff]  ;;  %v1815_v13 = vld [vmem:[#allocation7 + $0x1ec8] sm:$0xff] }
 0x2e5   :  { %7619 = vmatprep.subr.bf16.mxu1 %v17772_v41  ;;  %v17820_v41 = vcombine.high %v1775_v18, %v1779_v39  ;;  %v1819_v21 = vld [vmem:[#allocation7 + $0x1ee8] sm:$0xff]  ;;  %v1822_v40 = vld [vmem:[#allocation7 + $0x1f00] sm:$0xff] }
 0x2e6   :  { %7265 = vmatmul.mubr.bf16.vlgmr.msra.gmra.mrb[16].mxu0 %v20010_v20  ;;  %v1826_v38 = vld [vmem:[#allocation7 + $0x1f20] sm:$0xff] }
 0x2e7   :  { %7609 = vmatmul.mubr.bf16.vlgmr.msra.gmra.mrb[16].mxu1 %v20010_v20  ;;  %7276 = vmatpush1.bf16.msra.mxu0 %v17769_v48  ;;  %v1783_v48 = vld [vmem:[#allocation7 + $0x1dc8] sm:$0xff] }
 0x2e8   :  { %7307 = vmatprep.mubr.bf16.mxu0 %v20064_v50  ;;  %7620 = vmatpush1.bf16.msra.mxu1 %v17771_v54  ;;  %v17819_v54 = vcombine.low %v1775_v18, %v1779_v39  ;;  %v17828_v63 = vcombine.high %v1783_v48, %v1787_v56  ;;  %v1823_v18 = vld [vmem:[#allocation7 + $0x1f08] sm:$0xff] }
 0x2e9   :  { %7651 = vmatprep.mubr.bf16.mxu1 %v20064_v50  ;;  %7277 = vmatprep.subr.bf16.mxu0 %v17778_v36  ;;  %v17826_v36 = vcombine.high %v1782_v61, %v1786_v45  ;;  %v1827_v39 = vld [vmem:[#allocation7 + $0x1f28] sm:$0xff] }
 0x2ea   :  { %7621 = vmatprep.subr.bf16.mxu1 %v17780_v55  ;;  %v1794_v55 = vld [vmem:[#allocation7 + $0x1e20] sm:$0xff] }
 0x2eb   :  { %7278 = vmatpush1.bf16.msra.mxu0 %v17777_v59  ;;  %v17825_v59 = vcombine.low %v1782_v61, %v1786_v45  ;;  %v1830_v61 = vld [vmem:[#allocation7 + $0x1f40] sm:$0xff] }
 0x2ec   :  { %7622 = vmatpush1.bf16.msra.mxu1 %v17779_v3  ;;  %7279 = vmatprep.subr.bf16.mxu0 %v17786_v46  ;;  %v17827_v3 = vcombine.low %v1783_v48, %v1787_v56  ;;  %v17834_v46 = vcombine.high %v1790_v30, %v1794_v55  ;;  %v1834_v45 = vld [vmem:[#allocation7 + $0x1f60] sm:$0xff]  ;;  %v1831_v48 = vld [vmem:[#allocation7 + $0x1f48] sm:$0xff] }
 0x2ed   :  { %7623 = vmatprep.subr.bf16.mxu1 %v17788_v47  ;;  %v17836_v47 = vcombine.high %v1791_v8, %v1795_v33  ;;  %v1835_v56 = vld [vmem:[#allocation7 + $0x1f68] sm:$0xff] }
 0x2ef   :  { %7280 = vmatpush1.bf16.msra.mxu0 %v17785_v29  ;;  %v17833_v29 = vcombine.low %v1790_v30, %v1794_v55  ;;  %v1838_v30 = vld [vmem:[#allocation7 + $0x1f80] sm:$0xff] }
 0x2f0   :  { %7624 = vmatpush1.bf16.msra.mxu1 %v17787_v42  ;;  %7281 = vmatprep.subr.bf16.mxu0 %v17794_v51  ;;  %v17835_v42 = vcombine.low %v1791_v8, %v1795_v33  ;;  %v17842_v51 = vcombine.high %v1798_v4, %v1802_v5  ;;  %v1842_v55 = vld [vmem:[#allocation7 + $0x1fa0] sm:$0xff]  ;;  %v1839_v8 = vld [vmem:[#allocation7 + $0x1f88] sm:$0xff] }
 0x2f1   :  { %7625 = vmatprep.subr.bf16.mxu1 %v17796_v57  ;;  %v17844_v57 = vcombine.high %v1799_v15, %v1803_v9  ;;  %v1843_v33 = vld [vmem:[#allocation7 + $0x1fa8] sm:$0xff] }
 0x2f3   :  { %7282 = vmatpush1.bf16.msra.mxu0 %v17793_v10  ;;  %v17841_v10 = vcombine.low %v1798_v4, %v1802_v5  ;;  %v1846_v4 = vld [vmem:[#allocation7 + $0x1fc0] sm:$0xff] }
 0x2f4   :  { %7626 = vmatpush1.bf16.msra.mxu1 %v17795_v12  ;;  %7283 = vmatprep.subr.bf16.mxu0 %v17802_v17  ;;  %v17843_v12 = vcombine.low %v1799_v15, %v1803_v9  ;;  %v17850_v17 = vcombine.high %v1806_v31, %v1810_v53  ;;  %v1850_v5 = vld [vmem:[#allocation7 + $0x1fe0] sm:$0xff]  ;;  %v1847_v15 = vld [vmem:[#allocation7 + $0x1fc8] sm:$0xff] }
 0x2f5   :  { %7627 = vmatprep.subr.bf16.mxu1 %v17804_v19  ;;  %v17852_v19 = vcombine.high %v1807_v1, %v1811_v6  ;;  %v1851_v9 = vld [vmem:[#allocation7 + $0x1fe8] sm:$0xff] }
 0x2f7   :  { %7284 = vmatpush1.bf16.msra.mxu0 %v17801_v26  ;;  %v17849_v26 = vcombine.low %v1806_v31, %v1810_v53  ;;  %v832_v31 = vld [vmem:[#allocation7 + $0x10] sm:$0xff] }
 0x2f8   :  { %7628 = vmatpush1.bf16.msra.mxu1 %v17803_v28  ;;  %7285 = vmatprep.subr.bf16.mxu0 %v17810_v34  ;;  %v17851_v28 = vcombine.low %v1807_v1, %v1811_v6  ;;  %v17858_v34 = vcombine.high %v1814_v22, %v1818_v11  ;;  %v836_v53 = vld [vmem:[#allocation7 + $0x30] sm:$0xff]  ;;  %v833_v1 = vld [vmem:[#allocation7 + $0x18] sm:$0xff] }
 0x2f9   :  { %7629 = vmatprep.subr.bf16.mxu1 %v17812_v35  ;;  %v17860_v35 = vcombine.high %v1815_v13, %v1819_v21  ;;  %v837_v6 = vld [vmem:[#allocation7 + $0x38] sm:$0xff] }
 0x2fb   :  { %7286 = vmatpush1.bf16.msra.mxu0 %v17809_v27  ;;  %v17857_v27 = vcombine.low %v1814_v22, %v1818_v11  ;;  %v840_v22 = vld [vmem:[#allocation7 + $0x50] sm:$0xff] }
 0x2fc   :  { %7630 = vmatpush1.bf16.msra.mxu1 %v17811_v43  ;;  %7287 = vmatprep.subr.bf16.mxu0 %v17818_v16  ;;  %v17859_v43 = vcombine.low %v1815_v13, %v1819_v21  ;;  %v17866_v16 = vcombine.high %v1822_v40, %v1826_v38  ;;  %v844_v11 = vld [vmem:[#allocation7 + $0x70] sm:$0xff]  ;;  %v16877_v13 = vcombine.low %v832_v31, %v836_v53  ;;  %v841_v21 = vld [vmem:[#allocation7 + $0x58] sm:$0xff] }
 0x2fd   :  { %7631 = vmatprep.subr.bf16.mxu1 %v17820_v41  ;;  %v17868_v41 = vcombine.high %v1823_v18, %v1827_v39 }
 0x2ff   :  { %7288 = vmatpush1.bf16.msra.mxu0 %v17817_v49  ;;  %v17865_v49 = vcombine.low %v1822_v40, %v1826_v38  ;;  %v852_v40 = vld [vmem:[#allocation7 + $0xb0] sm:$0xff] }
 0x300   :  { %7632 = vmatpush1.bf16.msra.mxu1 %v17819_v54  ;;  %7289 = vmatprep.subr.bf16.mxu0 %v17826_v36  ;;  %v17867_v54 = vcombine.low %v1823_v18, %v1827_v39  ;;  %v17874_v36 = vcombine.high %v1830_v61, %v1834_v45  ;;  %v849_v18 = vld [vmem:[#allocation7 + $0x98] sm:$0xff] }
 0x301   :  { %7633 = vmatprep.subr.bf16.mxu1 %v17828_v63  ;;  %v17876_v63 = vcombine.high %v1831_v48, %v1835_v56  ;;  %v853_v39 = vld [vmem:[#allocation7 + $0xb8] sm:$0xff] }
 0x303   :  { %7290 = vmatpush1.bf16.msra.mxu0 %v17825_v59  ;;  %v17873_v59 = vcombine.low %v1830_v61, %v1834_v45  ;;  %v856_v61 = vld [vmem:[#allocation7 + $0xd0] sm:$0xff] }
 0x304   :  { %7634 = vmatpush1.bf16.msra.mxu1 %v17827_v3  ;;  %7291 = vmatprep.subr.bf16.mxu0 %v17834_v46  ;;  %v17875_v3 = vcombine.low %v1831_v48, %v1835_v56  ;;  %v17882_v46 = vcombine.high %v1838_v30, %v1842_v55  ;;  %v860_v45 = vld [vmem:[#allocation7 + $0xf0] sm:$0xff]  ;;  %v857_v48 = vld [vmem:[#allocation7 + $0xd8] sm:$0xff] }
 0x305   :  { %7635 = vmatprep.subr.bf16.mxu1 %v17836_v47  ;;  %v17884_v47 = vcombine.high %v1839_v8, %v1843_v33  ;;  %v861_v56 = vld [vmem:[#allocation7 + $0xf8] sm:$0xff] }
 0x307   :  { %7292 = vmatpush1.bf16.msra.mxu0 %v17833_v29  ;;  %v17881_v29 = vcombine.low %v1838_v30, %v1842_v55  ;;  %v864_v30 = vld [vmem:[#allocation7 + $0x110] sm:$0xff] }
 0x308   :  { %7636 = vmatpush1.bf16.msra.mxu1 %v17835_v42  ;;  %7293 = vmatprep.subr.bf16.mxu0 %v17842_v51  ;;  %v17883_v42 = vcombine.low %v1839_v8, %v1843_v33  ;;  %v17890_v51 = vcombine.high %v1846_v4, %v1850_v5  ;;  %v868_v55 = vld [vmem:[#allocation7 + $0x130] sm:$0xff]  ;;  %v865_v8 = vld [vmem:[#allocation7 + $0x118] sm:$0xff] }
 0x309   :  { %7637 = vmatprep.subr.bf16.mxu1 %v17844_v57  ;;  %v17892_v57 = vcombine.high %v1847_v15, %v1851_v9  ;;  %v869_v33 = vld [vmem:[#allocation7 + $0x138] sm:$0xff] }
 0x30b   :  { %7294 = vmatpush1.bf16.msra.mxu0 %v17841_v10  ;;  %v17889_v10 = vcombine.low %v1846_v4, %v1850_v5  ;;  %v876_v4 = vld [vmem:[#allocation7 + $0x170] sm:$0xff]  ;;  %v873_v5 = vld [vmem:[#allocation7 + $0x158] sm:$0xff] }
 0x30c   :  { %7638 = vmatpush1.bf16.msra.mxu1 %v17843_v12  ;;  %7295 = vmatprep.subr.bf16.mxu0 %v17850_v17  ;;  %v17891_v12 = vcombine.low %v1847_v15, %v1851_v9  ;;  %v16878_v17 = vcombine.high %v832_v31, %v836_v53  ;;  %v877_v15 = vld [vmem:[#allocation7 + $0x178] sm:$0xff]  ;;  %v16909_v9 = vcombine.low %v864_v30, %v868_v55  ;;  %v884_v31 = vld [vmem:[#allocation7 + $0x1b0] sm:$0xff] }
 0x30d   :  { %7639 = vmatprep.subr.bf16.mxu1 %v17852_v19  ;;  %v16880_v19 = vcombine.high %v833_v1, %v837_v6  ;;  %v881_v53 = vld [vmem:[#allocation7 + $0x198] sm:$0xff] }
 0x30f   :  { %7296 = vmatpush1.bf16.msra.mxu0 %v17849_v26  ;;  %v845_v26 = vld [vmem:[#allocation7 + $0x78] sm:$0xff] }
 0x310   :  { %7640 = vmatpush1.bf16.msra.mxu1 %v17851_v28  ;;  %7297 = vmatprep.subr.bf16.mxu0 %v17858_v34  ;;  %v16879_v28 = vcombine.low %v833_v1, %v837_v6  ;;  %v16886_v34 = vcombine.high %v840_v22, %v844_v11  ;;  %v16888_v38 = vcombine.high %v841_v21, %v845_v26  ;;  %v885_v1 = vld [vmem:[#allocation7 + $0x1b8] sm:$0xff] }
 0x311   :  { %7641 = vmatprep.subr.bf16.mxu1 %v17860_v35  ;;  %v848_v35 = vld [vmem:[#allocation7 + $0x90] sm:$0xff] }
 0x313   :  { %7298 = vmatpush1.bf16.msra.mxu0 %v17857_v27  ;;  %v16885_v27 = vcombine.low %v840_v22, %v844_v11  ;;  %v892_v22 = vld [vmem:[#allocation7 + $0x1f0] sm:$0xff]  ;;  %v889_v11 = vld [vmem:[#allocation7 + $0x1d8] sm:$0xff] }
 0x314   :  { %7642 = vmatpush1.bf16.msra.mxu1 %v17859_v43  ;;  %7299 = vmatprep.subr.bf16.mxu0 %v17866_v16  ;;  %v16887_v43 = vcombine.low %v841_v21, %v845_v26  ;;  %v16894_v16 = vcombine.high %v848_v35, %v852_v40  ;;  %v16927_v26 = vcombine.low %v881_v53, %v885_v1 }
 0x315   :  { %7643 = vmatprep.subr.bf16.mxu1 %v17868_v41  ;;  %v16896_v41 = vcombine.high %v849_v18, %v853_v39 }
 0x317   :  { %7300 = vmatpush1.bf16.msra.mxu0 %v17865_v49  ;;  %v16893_v49 = vcombine.low %v848_v35, %v852_v40  ;;  %v896_v35 = vld [vmem:[#allocation7 + $0x210] sm:$0xff] }
 0x318   :  { %7644 = vmatpush1.bf16.msra.mxu1 %v17867_v54  ;;  %7301 = vmatprep.subr.bf16.mxu0 %v17874_v36  ;;  %v16895_v54 = vcombine.low %v849_v18, %v853_v39  ;;  %v16902_v36 = vcombine.high %v856_v61, %v860_v45  ;;  %v900_v40 = vld [vmem:[#allocation7 + $0x230] sm:$0xff]  ;;  %v901_v18 = vld [vmem:[#allocation7 + $0x238] sm:$0xff] }
 0x319   :  { %7645 = vmatprep.subr.bf16.mxu1 %v17876_v63  ;;  %v16904_v63 = vcombine.high %v857_v48, %v861_v56 }
 0x31b   :  { %7302 = vmatpush1.bf16.msra.mxu0 %v17873_v59  ;;  %v16903_v59 = vcombine.low %v857_v48, %v861_v56  ;;  %v909_v48 = vld [vmem:[#allocation7 + $0x278] sm:$0xff]  ;;  %v16941_v56 = vcombine.low %v896_v35, %v900_v40 }
 0x31c   :  { %7646 = vmatpush1.bf16.msra.mxu1 %v17875_v3  ;;  %7303 = vmatprep.subr.bf16.mxu0 %v17882_v46  ;;  %v16910_v3 = vcombine.high %v864_v30, %v868_v55  ;;  %v16912_v46 = vcombine.high %v865_v8, %v869_v33  ;;  %v916_v30 = vld [vmem:[#allocation7 + $0x2b0] sm:$0xff]  ;;  %v913_v55 = vld [vmem:[#allocation7 + $0x298] sm:$0xff] }
 0x31d   :  { %7647 = vmatprep.subr.bf16.mxu1 %v17884_v47  ;;  %v872_v47 = vld [vmem:[#allocation7 + $0x150] sm:$0xff] }
 0x31e   :  { %v16917_v6 = vcombine.low %v872_v47, %v876_v4 }
 0x31f   :  { %7304 = vmatpush1.bf16.msra.mxu0 %v17881_v29  ;;  %v16911_v29 = vcombine.low %v865_v8, %v869_v33  ;;  %v917_v8 = vld [vmem:[#allocation7 + $0x2b8] sm:$0xff] }
 0x320   :  { %7648 = vmatpush1.bf16.msra.mxu1 %v17883_v42  ;;  %7305 = vmatprep.subr.bf16.mxu0 %v17890_v51  ;;  %v16918_v42 = vcombine.high %v872_v47, %v876_v4  ;;  %v16920_v51 = vcombine.high %v873_v5, %v877_v15  ;;  %v924_v47 = vld [vmem:[#allocation7 + $0x2f0] sm:$0xff]  ;;  %v921_v4 = vld [vmem:[#allocation7 + $0x2d8] sm:$0xff] }
 0x321   :  { %7649 = vmatprep.subr.bf16.mxu1 %v17892_v57  ;;  %v880_v57 = vld [vmem:[#allocation7 + $0x190] sm:$0xff] }
 0x322   :  { %v16925_v21 = vcombine.low %v880_v57, %v884_v31 }
 0x323   :  { %7306 = vmatpush1.bf16.msra.mxu0 %v17889_v10  ;;  %v16919_v10 = vcombine.low %v873_v5, %v877_v15  ;;  %v925_v5 = vld [vmem:[#allocation7 + $0x2f8] sm:$0xff] }
 0x324   :  { %7650 = vmatpush1.bf16.msra.mxu1 %v17891_v12  ;;  %7662 = vmatprep.subr.bf16.mxu0 %v16878_v17  ;;  %v16926_v12 = vcombine.high %v880_v57, %v884_v31  ;;  %v16928_v17 = vcombine.high %v881_v53, %v885_v1  ;;  %v932_v57 = vld [vmem:[#allocation7 + $0x330] sm:$0xff]  ;;  %v929_v31 = vld [vmem:[#allocation7 + $0x318] sm:$0xff] }
 0x325   :  { %8006 = vmatprep.subr.bf16.mxu1 %v16880_v19  ;;  %v888_v19 = vld [vmem:[#allocation7 + $0x1d0] sm:$0xff]  ;;  %v933_v53 = vld [vmem:[#allocation7 + $0x338] sm:$0xff] }
 0x326   :  { %7308 = vmatmul.mubr.bf16.vlgmr.msra.gmra.mrb[16].mxu0 %v20062_v37  ;;  %v16933_v39 = vcombine.low %v888_v19, %v892_v22 }
 0x327   :  { %7652 = vmatmul.mubr.bf16.vlgmr.msra.gmra.mrb[16].mxu1 %v20062_v37  ;;  %7663 = vmatpush1.bf16.msra.mxu0 %v16877_v13  ;;  %v893_v13 = vld [vmem:[#allocation7 + $0x1f8] sm:$0xff] }
 0x328   :  { %7694 = vmatprep.mubr.bf16.mxu0 %v19932_v32  ;;  %8007 = vmatpush1.bf16.msra.mxu1 %v16879_v28  ;;  %v16934_v28 = vcombine.high %v888_v19, %v892_v22  ;;  %v940_v19 = vld [vmem:[#allocation7 + $0x370] sm:$0xff]  ;;  %v937_v22 = vld [vmem:[#allocation7 + $0x358] sm:$0xff] }
 0x329   :  { %8038 = vmatprep.mubr.bf16.mxu1 %v19932_v32  ;;  %7664 = vmatprep.subr.bf16.mxu0 %v16886_v34  ;;  %v16901_v32 = vcombine.low %v856_v61, %v860_v45  ;;  %v16936_v34 = vcombine.high %v889_v11, %v893_v13  ;;  %v908_v61 = vld [vmem:[#allocation7 + $0x270] sm:$0xff]  ;;  %v905_v45 = vld [vmem:[#allocation7 + $0x258] sm:$0xff] }
 0x32a   :  { %8008 = vmatprep.subr.bf16.mxu1 %v16888_v38  ;;  %v897_v38 = vld [vmem:[#allocation7 + $0x218] sm:$0xff] }
 0x32b   :  { %7665 = vmatpush1.bf16.msra.mxu0 %v16885_v27  ;;  %v16935_v27 = vcombine.low %v889_v11, %v893_v13  ;;  %v941_v11 = vld [vmem:[#allocation7 + $0x378] sm:$0xff] }
 0x32c   :  { %8009 = vmatpush1.bf16.msra.mxu1 %v16887_v43  ;;  %7666 = vmatprep.subr.bf16.mxu0 %v16894_v16  ;;  %v16942_v43 = vcombine.high %v896_v35, %v900_v40  ;;  %v16944_v16 = vcombine.high %v897_v38, %v901_v18  ;;  %v948_v35 = vld [vmem:[#allocation7 + $0x3b0] sm:$0xff]  ;;  %v945_v40 = vld [vmem:[#allocation7 + $0x398] sm:$0xff] }
 0x32d   :  { %8010 = vmatprep.subr.bf16.mxu1 %v16896_v41  ;;  %v904_v41 = vld [vmem:[#allocation7 + $0x250] sm:$0xff] }
 0x32e   :  { %v16949_v33 = vcombine.low %v904_v41, %v908_v61 }
 0x32f   :  { %7667 = vmatpush1.bf16.msra.mxu0 %v16893_v49  ;;  %v16943_v49 = vcombine.low %v897_v38, %v901_v18  ;;  %v949_v38 = vld [vmem:[#allocation7 + $0x3b8] sm:$0xff] }
 0x330   :  { %8011 = vmatpush1.bf16.msra.mxu1 %v16895_v54  ;;  %7668 = vmatprep.subr.bf16.mxu0 %v16902_v36  ;;  %v16950_v54 = vcombine.high %v904_v41, %v908_v61  ;;  %v16952_v36 = vcombine.high %v905_v45, %v909_v48  ;;  %v956_v41 = vld [vmem:[#allocation7 + $0x3f0] sm:$0xff]  ;;  %v953_v61 = vld [vmem:[#allocation7 + $0x3d8] sm:$0xff] }
 0x331   :  { %8012 = vmatprep.subr.bf16.mxu1 %v16904_v63  ;;  %v912_v63 = vld [vmem:[#allocation7 + $0x290] sm:$0xff] }
 0x332   :  { %v16957_v15 = vcombine.low %v912_v63, %v916_v30 }
 0x333   :  { %7669 = vmatpush1.bf16.msra.mxu0 %v16901_v32  ;;  %v16951_v32 = vcombine.low %v905_v45, %v909_v48  ;;  %v957_v45 = vld [vmem:[#allocation7 + $0x3f8] sm:$0xff] }
 0x334   :  { %8013 = vmatpush1.bf16.msra.mxu1 %v16903_v59  ;;  %7670 = vmatprep.subr.bf16.mxu0 %v16910_v3  ;;  %v16958_v59 = vcombine.high %v912_v63, %v916_v30  ;;  %v16960_v3 = vcombine.high %v913_v55, %v917_v8  ;;  %v964_v63 = vld [vmem:[#allocation7 + $0x430] sm:$0xff]  ;;  %v961_v30 = vld [vmem:[#allocation7 + $0x418] sm:$0xff] }
 0x335   :  { %8014 = vmatprep.subr.bf16.mxu1 %v16912_v46  ;;  %v920_v46 = vld [vmem:[#allocation7 + $0x2d0] sm:$0xff] }
 0x336   :  { %v16965_v1 = vcombine.low %v920_v46, %v924_v47 }
 0x337   :  { %7671 = vmatpush1.bf16.msra.mxu0 %v16909_v9  ;;  %v16959_v9 = vcombine.low %v913_v55, %v917_v8  ;;  %v965_v55 = vld [vmem:[#allocation7 + $0x438] sm:$0xff] }
 0x338   :  { %8015 = vmatpush1.bf16.msra.mxu1 %v16911_v29  ;;  %7672 = vmatprep.subr.bf16.mxu0 %v16918_v42  ;;  %v16966_v29 = vcombine.high %v920_v46, %v924_v47  ;;  %v16968_v42 = vcombine.high %v921_v4, %v925_v5  ;;  %v972_v46 = vld [vmem:[#allocation7 + $0x470] sm:$0xff] }
 0x339   :  { %8016 = vmatprep.subr.bf16.mxu1 %v16920_v51  ;;  %v928_v51 = vld [vmem:[#allocation7 + $0x310] sm:$0xff] }
 0x33a   :  { %v16973_v13 = vcombine.low %v928_v51, %v932_v57 }
 0x33b   :  { %7673 = vmatpush1.bf16.msra.mxu0 %v16917_v6  ;;  %v16967_v6 = vcombine.low %v921_v4, %v925_v5  ;;  %v969_v4 = vld [vmem:[#allocation7 + $0x458] sm:$0xff] }
 0x33c   :  { %8017 = vmatpush1.bf16.msra.mxu1 %v16919_v10  ;;  %7674 = vmatprep.subr.bf16.mxu0 %v16926_v12  ;;  %v16974_v10 = vcombine.high %v928_v51, %v932_v57  ;;  %v16976_v12 = vcombine.high %v929_v31, %v933_v53  ;;  %v973_v5 = vld [vmem:[#allocation7 + $0x478] sm:$0xff] }
 0x33d   :  { %8018 = vmatprep.subr.bf16.mxu1 %v16928_v17  ;;  %v936_v17 = vld [vmem:[#allocation7 + $0x350] sm:$0xff]  ;;  %v17016_v51 = vcombine.high %v969_v4, %v973_v5  ;;  %v977_v57 = vld [vmem:[#allocation7 + $0x498] sm:$0xff] }
 0x33e   :  { %v16981_v18 = vcombine.low %v936_v17, %v940_v19 }
 0x33f   :  { %7675 = vmatpush1.bf16.msra.mxu0 %v16925_v21  ;;  %v16975_v21 = vcombine.low %v929_v31, %v933_v53  ;;  %v981_v31 = vld [vmem:[#allocation7 + $0x4b8] sm:$0xff] }
 0x340   :  { %8019 = vmatpush1.bf16.msra.mxu1 %v16927_v26  ;;  %7676 = vmatprep.subr.bf16.mxu0 %v16934_v28  ;;  %v16982_v26 = vcombine.high %v936_v17, %v940_v19  ;;  %v16984_v28 = vcombine.high %v937_v22, %v941_v11  ;;  %v988_v17 = vld [vmem:[#allocation7 + $0x4f0] sm:$0xff]  ;;  %v985_v19 = vld [vmem:[#allocation7 + $0x4d8] sm:$0xff] }
 0x341   :  { %8020 = vmatprep.subr.bf16.mxu1 %v16936_v34  ;;  %v944_v34 = vld [vmem:[#allocation7 + $0x390] sm:$0xff] }
 0x342   :  { %v16989_v48 = vcombine.low %v944_v34, %v948_v35 }
 0x343   :  { %7677 = vmatpush1.bf16.msra.mxu0 %v16933_v39  ;;  %v16983_v39 = vcombine.low %v937_v22, %v941_v11  ;;  %v989_v22 = vld [vmem:[#allocation7 + $0x4f8] sm:$0xff] }
 0x344   :  { %8021 = vmatpush1.bf16.msra.mxu1 %v16935_v27  ;;  %7678 = vmatprep.subr.bf16.mxu0 %v16942_v43  ;;  %v16990_v27 = vcombine.high %v944_v34, %v948_v35  ;;  %v16992_v43 = vcombine.high %v945_v40, %v949_v38  ;;  %v993_v34 = vld [vmem:[#allocation7 + $0x518] sm:$0xff] }
 0x345   :  { %8022 = vmatprep.subr.bf16.mxu1 %v16944_v16  ;;  %v952_v16 = vld [vmem:[#allocation7 + $0x3d0] sm:$0xff]  ;;  %v997_v35 = vld [vmem:[#allocation7 + $0x538] sm:$0xff] }
 0x346   :  { %v16997_v8 = vcombine.low %v952_v16, %v956_v41 }
 0x347   :  { %7679 = vmatpush1.bf16.msra.mxu0 %v16941_v56  ;;  %v16991_v56 = vcombine.low %v945_v40, %v949_v38  ;;  %v17031_v40 = vcombine.low %v985_v19, %v989_v22 }
 0x348   :  { %8023 = vmatpush1.bf16.msra.mxu1 %v16943_v49  ;;  %7680 = vmatprep.subr.bf16.mxu0 %v16950_v54  ;;  %v16998_v49 = vcombine.high %v952_v16, %v956_v41  ;;  %v17000_v54 = vcombine.high %v953_v61, %v957_v45  ;;  %v1005_v16 = vld [vmem:[#allocation7 + $0x578] sm:$0xff] }
 0x349   :  { %8024 = vmatprep.subr.bf16.mxu1 %v16952_v36  ;;  %v960_v36 = vld [vmem:[#allocation7 + $0x410] sm:$0xff] }
 0x34a   :  { %v17005_v47 = vcombine.low %v960_v36, %v964_v63 }
 0x34b   :  { %7681 = vmatpush1.bf16.msra.mxu0 %v16949_v33  ;;  %v16999_v33 = vcombine.low %v953_v61, %v957_v45  ;;  %v17039_v61 = vcombine.low %v993_v34, %v997_v35 }
 0x34c   :  { %8025 = vmatpush1.bf16.msra.mxu1 %v16951_v32  ;;  %7682 = vmatprep.subr.bf16.mxu0 %v16958_v59  ;;  %v17006_v32 = vcombine.high %v960_v36, %v964_v63  ;;  %v17008_v59 = vcombine.high %v961_v30, %v965_v55  ;;  %v1013_v36 = vld [vmem:[#allocation7 + $0x5b8] sm:$0xff] }
 0x34d   :  { %8026 = vmatprep.subr.bf16.mxu1 %v16960_v3  ;;  %v968_v3 = vld [vmem:[#allocation7 + $0x450] sm:$0xff] }
 0x34e   :  { %v17013_v53 = vcombine.low %v968_v3, %v972_v46 }
 0x34f   :  { %7683 = vmatpush1.bf16.msra.mxu0 %v16957_v15  ;;  %v17007_v15 = vcombine.low %v961_v30, %v965_v55 }
 0x350   :  { %8027 = vmatpush1.bf16.msra.mxu1 %v16959_v9  ;;  %7684 = vmatprep.subr.bf16.mxu0 %v16966_v29  ;;  %v17014_v9 = vcombine.high %v968_v3, %v972_v46  ;;  %v976_v29 = vld [vmem:[#allocation7 + $0x490] sm:$0xff]  ;;  %v1021_v3 = vld [vmem:[#allocation7 + $0x5f8] sm:$0xff] }
 0x351   :  { %8028 = vmatprep.subr.bf16.mxu1 %v16968_v42  ;;  %v980_v42 = vld [vmem:[#allocation7 + $0x4b0] sm:$0xff] }
 0x352   :  { %v17021_v11 = vcombine.low %v976_v29, %v980_v42 }
 0x353   :  { %7685 = vmatpush1.bf16.msra.mxu0 %v16965_v1  ;;  %v17015_v1 = vcombine.low %v969_v4, %v973_v5 }
 0x354   :  { %8029 = vmatpush1.bf16.msra.mxu1 %v16967_v6  ;;  %7686 = vmatprep.subr.bf16.mxu0 %v16974_v10  ;;  %v17022_v6 = vcombine.high %v976_v29, %v980_v42  ;;  %v17024_v10 = vcombine.high %v977_v57, %v981_v31  ;;  %v1025_v29 = vld [vmem:[#allocation7 + $0x618] sm:$0xff] }
 0x355   :  { %8030 = vmatprep.subr.bf16.mxu1 %v16976_v12  ;;  %v984_v12 = vld [vmem:[#allocation7 + $0x4d0] sm:$0xff]  ;;  %v1029_v42 = vld [vmem:[#allocation7 + $0x638] sm:$0xff] }
 0x357   :  { %7687 = vmatpush1.bf16.msra.mxu0 %v16973_v13  ;;  %v17030_v13 = vcombine.high %v984_v12, %v988_v17 }
 0x358   :  { %8031 = vmatpush1.bf16.msra.mxu1 %v16975_v21  ;;  %7688 = vmatprep.subr.bf16.mxu0 %v16982_v26  ;;  %v17032_v21 = vcombine.high %v985_v19, %v989_v22  ;;  %v992_v26 = vld [vmem:[#allocation7 + $0x510] sm:$0xff]  ;;  %v17071_v19 = vcombine.low %v1025_v29, %v1029_v42 }
 0x359   :  { %8032 = vmatprep.subr.bf16.mxu1 %v16984_v28  ;;  %v996_v28 = vld [vmem:[#allocation7 + $0x530] sm:$0xff] }
 0x35a   :  { %v17038_v38 = vcombine.high %v992_v26, %v996_v28  ;;  %v17037_v41 = vcombine.low %v992_v26, %v996_v28  ;;  %v1045_v26 = vld [vmem:[#allocation7 + $0x6b8] sm:$0xff] }
 0x35b   :  { %7689 = vmatpush1.bf16.msra.mxu0 %v16981_v18  ;;  %v17040_v18 = vcombine.high %v993_v34, %v997_v35 }
 0x35c   :  { %8033 = vmatpush1.bf16.msra.mxu1 %v16983_v39  ;;  %7690 = vmatprep.subr.bf16.mxu0 %v16990_v27  ;;  %v1000_v39 = vld [vmem:[#allocation7 + $0x550] sm:$0xff] }
 0x35d   :  { %8034 = vmatprep.subr.bf16.mxu1 %v16992_v43  ;;  %v1004_v27 = vld [vmem:[#allocation7 + $0x570] sm:$0xff]  ;;  %v1001_v43 = vld [vmem:[#allocation7 + $0x558] sm:$0xff] }
 0x35e   :  { %v17046_v45 = vcombine.high %v1000_v39, %v1004_v27  ;;  %v17045_v63 = vcombine.low %v1000_v39, %v1004_v27  ;;  %v17047_v30 = vcombine.low %v1001_v43, %v1005_v16  ;;  %v1053_v39 = vld [vmem:[#allocation7 + $0x6f8] sm:$0xff] }
 0x35f   :  { %7691 = vmatpush1.bf16.msra.mxu0 %v16989_v48  ;;  %v17048_v48 = vcombine.high %v1001_v43, %v1005_v16 }
 0x360   :  { %8035 = vmatpush1.bf16.msra.mxu1 %v16991_v56  ;;  %7692 = vmatprep.subr.bf16.mxu0 %v16998_v49  ;;  %v1008_v56 = vld [vmem:[#allocation7 + $0x590] sm:$0xff] }
 0x361   :  { %8036 = vmatprep.subr.bf16.mxu1 %v17000_v54  ;;  %v1012_v49 = vld [vmem:[#allocation7 + $0x5b0] sm:$0xff]  ;;  %v1009_v54 = vld [vmem:[#allocation7 + $0x598] sm:$0xff] }
 0x362   :  { %v17054_v55 = vcombine.high %v1008_v56, %v1012_v49  ;;  %v17053_v46 = vcombine.low %v1008_v56, %v1012_v49  ;;  %v1061_v56 = vld [vmem:[#allocation7 + $0x738] sm:$0xff] }
 0x363   :  { %7693 = vmatpush1.bf16.msra.mxu0 %v16997_v8  ;;  %v17056_v8 = vcombine.high %v1009_v54, %v1013_v36 }
 0x364   :  { %8037 = vmatpush1.bf16.msra.mxu1 %v16999_v33  ;;  %7705 = vmatprep.subr.bf16.mxu0 %v17006_v32  ;;  %v1016_v33 = vld [vmem:[#allocation7 + $0x5d0] sm:$0xff] }
 0x365   :  { %8049 = vmatprep.subr.bf16.mxu1 %v17008_v59  ;;  %v1020_v32 = vld [vmem:[#allocation7 + $0x5f0] sm:$0xff]  ;;  %v1017_v59 = vld [vmem:[#allocation7 + $0x5d8] sm:$0xff] }
 0x366   :  { %7695 = vmatmul.mubr.bf16.vlgmr.msra.gmra.mrb[20].mxu0 %v19929_v24  ;;  %v17062_v4 = vcombine.high %v1016_v33, %v1020_v32  ;;  %v17064_v5 = vcombine.high %v1017_v59, %v1021_v3 }
 0x367   :  { %8039 = vmatmul.mubr.bf16.vlgmr.msra.gmra.mrb[20].mxu1 %v19929_v24  ;;  %7706 = vmatpush1.bf16.msra.mxu0 %v17005_v47  ;;  %v17023_v24 = vcombine.low %v977_v57, %v981_v31  ;;  %v17055_v47 = vcombine.low %v1009_v54, %v1013_v36  ;;  %v17063_v57 = vcombine.low %v1017_v59, %v1021_v3 }
 0x368   :  { %7737 = vmatprep.mubr.bf16.mxu0 %v19959_v58  ;;  %8050 = vmatpush1.bf16.msra.mxu1 %v17007_v15  ;;  %v1024_v15 = vld [vmem:[#allocation7 + $0x610] sm:$0xff] }
 0x369   :  { %8081 = vmatprep.mubr.bf16.mxu1 %v19959_v58  ;;  %7707 = vmatprep.subr.bf16.mxu0 %v17014_v9  ;;  %v17029_v58 = vcombine.low %v984_v12, %v988_v17  ;;  %v1028_v9 = vld [vmem:[#allocation7 + $0x630] sm:$0xff]  ;;  %v1037_v12 = vld [vmem:[#allocation7 + $0x678] sm:$0xff] }
 0x36a   :  { %8051 = vmatprep.subr.bf16.mxu1 %v17016_v51  ;;  %v17061_v51 = vcombine.low %v1016_v33, %v1020_v32  ;;  %v17070_v31 = vcombine.high %v1024_v15, %v1028_v9  ;;  %v17069_v17 = vcombine.low %v1024_v15, %v1028_v9  ;;  %v1069_v33 = vld [vmem:[#allocation7 + $0x778] sm:$0xff] }
 0x36b   :  { %7708 = vmatpush1.bf16.msra.mxu0 %v17013_v53  ;;  %v17072_v53 = vcombine.high %v1025_v29, %v1029_v42  ;;  %v1077_v15 = vld [vmem:[#allocation7 + $0x7b8] sm:$0xff] }
 0x36c   :  { %8052 = vmatpush1.bf16.msra.mxu1 %v17015_v1  ;;  %7709 = vmatprep.subr.bf16.mxu0 %v17022_v6  ;;  %v1032_v1 = vld [vmem:[#allocation7 + $0x650] sm:$0xff] }
 0x36d   :  { %8053 = vmatprep.subr.bf16.mxu1 %v17024_v10  ;;  %v1036_v6 = vld [vmem:[#allocation7 + $0x670] sm:$0xff]  ;;  %v1033_v10 = vld [vmem:[#allocation7 + $0x658] sm:$0xff] }
 0x36e   :  { %v17078_v22 = vcombine.high %v1032_v1, %v1036_v6  ;;  %v17077_v28 = vcombine.low %v1032_v1, %v1036_v6  ;;  %v17079_v34 = vcombine.low %v1033_v10, %v1037_v12  ;;  %v1085_v1 = vld [vmem:[#allocation7 + $0x7f8] sm:$0xff] }
 0x36f   :  { %7710 = vmatpush1.bf16.msra.mxu0 %v17021_v11  ;;  %v17080_v11 = vcombine.high %v1033_v10, %v1037_v12 }
 0x370   :  { %8054 = vmatpush1.bf16.msra.mxu1 %v17023_v24  ;;  %7711 = vmatprep.subr.bf16.mxu0 %v17030_v13  ;;  %v1040_v24 = vld [vmem:[#allocation7 + $0x690] sm:$0xff] }
 0x371   :  { %8055 = vmatprep.subr.bf16.mxu1 %v17032_v21  ;;  %v1044_v13 = vld [vmem:[#allocation7 + $0x6b0] sm:$0xff]  ;;  %v1041_v21 = vld [vmem:[#allocation7 + $0x698] sm:$0xff] }
 0x372   :  { %v17086_v35 = vcombine.high %v1040_v24, %v1044_v13  ;;  %v17085_v27 = vcombine.low %v1040_v24, %v1044_v13  ;;  %v17087_v43 = vcombine.low %v1041_v21, %v1045_v26  ;;  %v1093_v24 = vld [vmem:[#allocation7 + $0x838] sm:$0xff] }
 0x373   :  { %7712 = vmatpush1.bf16.msra.mxu0 %v17029_v58  ;;  %v17088_v58 = vcombine.high %v1041_v21, %v1045_v26 }
 0x374   :  { %8056 = vmatpush1.bf16.msra.mxu1 %v17031_v40  ;;  %7713 = vmatprep.subr.bf16.mxu0 %v17038_v38  ;;  %v1048_v40 = vld [vmem:[#allocation7 + $0x6d0] sm:$0xff] }
 0x375   :  { %8057 = vmatprep.subr.bf16.mxu1 %v17040_v18  ;;  %v1052_v38 = vld [vmem:[#allocation7 + $0x6f0] sm:$0xff]  ;;  %v1049_v18 = vld [vmem:[#allocation7 + $0x6d8] sm:$0xff] }
 0x376   :  { %v17094_v16 = vcombine.high %v1048_v40, %v1052_v38  ;;  %v17093_v49 = vcombine.low %v1048_v40, %v1052_v38  ;;  %v17095_v54 = vcombine.low %v1049_v18, %v1053_v39  ;;  %v1097_v40 = vld [vmem:[#allocation7 + $0x858] sm:$0xff] }
 0x377   :  { %7714 = vmatpush1.bf16.msra.mxu0 %v17037_v41  ;;  %v17096_v41 = vcombine.high %v1049_v18, %v1053_v39  ;;  %v1101_v38 = vld [vmem:[#allocation7 + $0x878] sm:$0xff] }
 0x378   :  { %8058 = vmatpush1.bf16.msra.mxu1 %v17039_v61  ;;  %7715 = vmatprep.subr.bf16.mxu0 %v17046_v45  ;;  %v1056_v61 = vld [vmem:[#allocation7 + $0x710] sm:$0xff] }
 0x379   :  { %8059 = vmatprep.subr.bf16.mxu1 %v17048_v48  ;;  %v1060_v45 = vld [vmem:[#allocation7 + $0x730] sm:$0xff]  ;;  %v1057_v48 = vld [vmem:[#allocation7 + $0x718] sm:$0xff] }
 0x37a   :  { %v17102_v36 = vcombine.high %v1056_v61, %v1060_v45  ;;  %v17101_v32 = vcombine.low %v1056_v61, %v1060_v45  ;;  %v17103_v59 = vcombine.low %v1057_v48, %v1061_v56  ;;  %v1109_v61 = vld [vmem:[#allocation7 + $0x8b8] sm:$0xff] }
 0x37b   :  { %7716 = vmatpush1.bf16.msra.mxu0 %v17045_v63  ;;  %v17104_v63 = vcombine.high %v1057_v48, %v1061_v56  ;;  %v17143_v48 = vcombine.low %v1097_v40, %v1101_v38 }
 0x37c   :  { %8060 = vmatpush1.bf16.msra.mxu1 %v17047_v30  ;;  %7717 = vmatprep.subr.bf16.mxu0 %v17054_v55  ;;  %v1064_v30 = vld [vmem:[#allocation7 + $0x750] sm:$0xff] }
 0x37d   :  { %8061 = vmatprep.subr.bf16.mxu1 %v17056_v8  ;;  %v1068_v55 = vld [vmem:[#allocation7 + $0x770] sm:$0xff]  ;;  %v1065_v8 = vld [vmem:[#allocation7 + $0x758] sm:$0xff] }
 0x37e   :  { %v17110_v3 = vcombine.high %v1064_v30, %v1068_v55  ;;  %v17109_v9 = vcombine.low %v1064_v30, %v1068_v55  ;;  %v17111_v29 = vcombine.low %v1065_v8, %v1069_v33  ;;  %v1117_v30 = vld [vmem:[#allocation7 + $0x8f8] sm:$0xff] }
 0x37f   :  { %7718 = vmatpush1.bf16.msra.mxu0 %v17053_v46  ;;  %v17112_v46 = vcombine.high %v1065_v8, %v1069_v33 }
 0x380   :  { %8062 = vmatpush1.bf16.msra.mxu1 %v17055_v47  ;;  %7719 = vmatprep.subr.bf16.mxu0 %v17062_v4  ;;  %v1072_v47 = vld [vmem:[#allocation7 + $0x790] sm:$0xff] }
 0x381   :  { %8063 = vmatprep.subr.bf16.mxu1 %v17064_v5  ;;  %v1076_v4 = vld [vmem:[#allocation7 + $0x7b0] sm:$0xff]  ;;  %v1073_v5 = vld [vmem:[#allocation7 + $0x798] sm:$0xff] }
 0x382   :  { %v17118_v42 = vcombine.high %v1072_v47, %v1076_v4  ;;  %v17117_v6 = vcombine.low %v1072_v47, %v1076_v4  ;;  %v17119_v10 = vcombine.low %v1073_v5, %v1077_v15 }
 0x383   :  { %7720 = vmatpush1.bf16.msra.mxu0 %v17061_v51  ;;  %v17120_v51 = vcombine.high %v1073_v5, %v1077_v15  ;;  %v1128_v15 = vld [vmem:[#allocation7 + $0x950] sm:$0xff] }
 0x384   :  { %8064 = vmatpush1.bf16.msra.mxu1 %v17063_v57  ;;  %7721 = vmatprep.subr.bf16.mxu0 %v17070_v31  ;;  %v1080_v57 = vld [vmem:[#allocation7 + $0x7d0] sm:$0xff] }
 0x385   :  { %8065 = vmatprep.subr.bf16.mxu1 %v17072_v53  ;;  %v1084_v31 = vld [vmem:[#allocation7 + $0x7f0] sm:$0xff]  ;;  %v1081_v53 = vld [vmem:[#allocation7 + $0x7d8] sm:$0xff] }
 0x386   :  { %v17126_v12 = vcombine.high %v1080_v57, %v1084_v31  ;;  %v17125_v13 = vcombine.low %v1080_v57, %v1084_v31  ;;  %v17127_v21 = vcombine.low %v1081_v53, %v1085_v1 }
 0x387   :  { %7722 = vmatpush1.bf16.msra.mxu0 %v17069_v17  ;;  %v17128_v17 = vcombine.high %v1081_v53, %v1085_v1  ;;  %v1136_v1 = vld [vmem:[#allocation7 + $0x990] sm:$0xff] }
 0x388   :  { %8066 = vmatpush1.bf16.msra.mxu1 %v17071_v19  ;;  %7723 = vmatprep.subr.bf16.mxu0 %v17078_v22  ;;  %v1088_v19 = vld [vmem:[#allocation7 + $0x810] sm:$0xff] }
 0x389   :  { %8067 = vmatprep.subr.bf16.mxu1 %v17080_v11  ;;  %v1092_v22 = vld [vmem:[#allocation7 + $0x830] sm:$0xff]  ;;  %v1089_v11 = vld [vmem:[#allocation7 + $0x818] sm:$0xff] }
 0x38a   :  { %v17134_v26 = vcombine.high %v1088_v19, %v1092_v22  ;;  %v17135_v18 = vcombine.low %v1089_v11, %v1093_v24 }
 0x38b   :  { %7724 = vmatpush1.bf16.msra.mxu0 %v17077_v28  ;;  %v17136_v28 = vcombine.high %v1089_v11, %v1093_v24  ;;  %v1144_v24 = vld [vmem:[#allocation7 + $0x9d0] sm:$0xff] }
 0x38c   :  { %8068 = vmatpush1.bf16.msra.mxu1 %v17079_v34  ;;  %7725 = vmatprep.subr.bf16.mxu0 %v17086_v35  ;;  %v1096_v34 = vld [vmem:[#allocation7 + $0x850] sm:$0xff] }
 0x38d   :  { %8069 = vmatprep.subr.bf16.mxu1 %v17088_v58  ;;  %v1100_v35 = vld [vmem:[#allocation7 + $0x870] sm:$0xff]  ;;  %v17133_v58 = vcombine.low %v1088_v19, %v1092_v22 }
 0x38e   :  { %v17142_v39 = vcombine.high %v1096_v34, %v1100_v35  ;;  %v17141_v45 = vcombine.low %v1096_v34, %v1100_v35 }
 0x38f   :  { %7726 = vmatpush1.bf16.msra.mxu0 %v17085_v27  ;;  %v1104_v27 = vld [vmem:[#allocation7 + $0x890] sm:$0xff] }
 0x390   :  { %8070 = vmatpush1.bf16.msra.mxu1 %v17087_v43  ;;  %7727 = vmatprep.subr.bf16.mxu0 %v17094_v16  ;;  %v1108_v43 = vld [vmem:[#allocation7 + $0x8b0] sm:$0xff]  ;;  %v17144_v16 = vcombine.high %v1097_v40, %v1101_v38 }
 0x391   :  { %8071 = vmatprep.subr.bf16.mxu1 %v17096_v41  ;;  %v1105_v41 = vld [vmem:[#allocation7 + $0x898] sm:$0xff]  ;;  %v17150_v56 = vcombine.high %v1104_v27, %v1108_v43  ;;  %v17149_v55 = vcombine.low %v1104_v27, %v1108_v43  ;;  %v1152_v40 = vld [vmem:[#allocation7 + $0xa10] sm:$0xff] }
 0x392   :  { %v1156_v38 = vld [vmem:[#allocation7 + $0xa30] sm:$0xff] }
 0x393   :  { %7728 = vmatpush1.bf16.msra.mxu0 %v17093_v49  ;;  %v17152_v49 = vcombine.high %v1105_v41, %v1109_v61 }
 0x394   :  { %8072 = vmatpush1.bf16.msra.mxu1 %v17095_v54  ;;  %7729 = vmatprep.subr.bf16.mxu0 %v17102_v36  ;;  %v1112_v54 = vld [vmem:[#allocation7 + $0x8d0] sm:$0xff] }
 0x395   :  { %8073 = vmatprep.subr.bf16.mxu1 %v17104_v63  ;;  %v1116_v36 = vld [vmem:[#allocation7 + $0x8f0] sm:$0xff]  ;;  %v1113_v63 = vld [vmem:[#allocation7 + $0x8d8] sm:$0xff] }
 0x396   :  { %v17158_v8 = vcombine.high %v1112_v54, %v1116_v36  ;;  %v17160_v33 = vcombine.high %v1113_v63, %v1117_v30  ;;  %v17159_v47 = vcombine.low %v1113_v63, %v1117_v30  ;;  %v1168_v30 = vld [vmem:[#allocation7 + $0xa90] sm:$0xff] }
 0x397   :  { %7730 = vmatpush1.bf16.msra.mxu0 %v17101_v32  ;;  %v1120_v32 = vld [vmem:[#allocation7 + $0x910] sm:$0xff] }
 0x398   :  { %8074 = vmatpush1.bf16.msra.mxu1 %v17103_v59  ;;  %7731 = vmatprep.subr.bf16.mxu0 %v17110_v3  ;;  %v1124_v59 = vld [vmem:[#allocation7 + $0x930] sm:$0xff]  ;;  %v1121_v3 = vld [vmem:[#allocation7 + $0x918] sm:$0xff] }
 0x399   :  { %8075 = vmatprep.subr.bf16.mxu1 %v17112_v46  ;;  %v1125_v46 = vld [vmem:[#allocation7 + $0x938] sm:$0xff]  ;;  %v17166_v4 = vcombine.high %v1120_v32, %v1124_v59 }
 0x39a   :  { %v17168_v5 = vcombine.high %v1121_v3, %v1125_v46  ;;  %v17167_v57 = vcombine.low %v1121_v3, %v1125_v46  ;;  %v1176_v46 = vld [vmem:[#allocation7 + $0xad0] sm:$0xff] }
 0x39b   :  { %7732 = vmatpush1.bf16.msra.mxu0 %v17109_v9  ;;  %v1132_v9 = vld [vmem:[#allocation7 + $0x970] sm:$0xff] }
 0x39c   :  { %8076 = vmatpush1.bf16.msra.mxu1 %v17111_v29  ;;  %7733 = vmatprep.subr.bf16.mxu0 %v17118_v42  ;;  %v1129_v29 = vld [vmem:[#allocation7 + $0x958] sm:$0xff]  ;;  %v17174_v31 = vcombine.high %v1128_v15, %v1132_v9 }
 0x39d   :  { %8077 = vmatprep.subr.bf16.mxu1 %v17120_v51  ;;  %v1133_v42 = vld [vmem:[#allocation7 + $0x978] sm:$0xff]  ;;  %v17165_v51 = vcombine.low %v1120_v32, %v1124_v59 }
 0x39e   :  { %v17176_v53 = vcombine.high %v1129_v29, %v1133_v42  ;;  %v17175_v19 = vcombine.low %v1129_v29, %v1133_v42  ;;  %v1184_v42 = vld [vmem:[#allocation7 + $0xb10] sm:$0xff] }
 0x39f   :  { %7734 = vmatpush1.bf16.msra.mxu0 %v17117_v6  ;;  %v1140_v6 = vld [vmem:[#allocation7 + $0x9b0] sm:$0xff] }
 0x3a0   :  { %8078 = vmatpush1.bf16.msra.mxu1 %v17119_v10  ;;  %7735 = vmatprep.subr.bf16.mxu0 %v17126_v12  ;;  %v1137_v10 = vld [vmem:[#allocation7 + $0x998] sm:$0xff]  ;;  %v17182_v22 = vcombine.high %v1136_v1, %v1140_v6 }
 0x3a1   :  { %8079 = vmatprep.subr.bf16.mxu1 %v17128_v17  ;;  %v1141_v12 = vld [vmem:[#allocation7 + $0x9b8] sm:$0xff]  ;;  %v17173_v17 = vcombine.low %v1128_v15, %v1132_v9 }
 0x3a2   :  { %v17184_v11 = vcombine.high %v1137_v10, %v1141_v12  ;;  %v17183_v34 = vcombine.low %v1137_v10, %v1141_v12  ;;  %v1192_v12 = vld [vmem:[#allocation7 + $0xb50] sm:$0xff] }
 0x3a3   :  { %7736 = vmatpush1.bf16.msra.mxu0 %v17125_v13  ;;  %v1148_v13 = vld [vmem:[#allocation7 + $0x9f0] sm:$0xff] }
 0x3a4   :  { %8080 = vmatpush1.bf16.msra.mxu1 %v17127_v21  ;;  %7748 = vmatprep.subr.bf16.mxu0 %v17134_v26  ;;  %v1145_v21 = vld [vmem:[#allocation7 + $0x9d8] sm:$0xff]  ;;  %v17190_v35 = vcombine.high %v1144_v24, %v1148_v13  ;;  %v17189_v27 = vcombine.low %v1144_v24, %v1148_v13 }
 0x3a5   :  { %8092 = vmatprep.subr.bf16.mxu1 %v17136_v28  ;;  %v1149_v26 = vld [vmem:[#allocation7 + $0x9f8] sm:$0xff]  ;;  %v17181_v28 = vcombine.low %v1136_v1, %v1140_v6 }
 0x3a6   :  { %7738 = vmatmul.mubr.bf16.vlgmr.msra.gmra.mrb[20].mxu0 %v19945_v23  ;;  %v17191_v43 = vcombine.low %v1145_v21, %v1149_v26 }
 0x3a7   :  { %8082 = vmatmul.mubr.bf16.vlgmr.msra.gmra.mrb[20].mxu1 %v19945_v23  ;;  %7749 = vmatpush1.bf16.msra.mxu0 %v17133_v58  ;;  %v17151_v23 = vcombine.low %v1105_v41, %v1109_v61  ;;  %v17192_v58 = vcombine.high %v1145_v21, %v1149_v26  ;;  %v1160_v61 = vld [vmem:[#allocation7 + $0xa50] sm:$0xff] }
 0x3a8   :  { %7780 = vmatprep.mubr.bf16.mxu0 %v19981_v2  ;;  %8093 = vmatpush1.bf16.msra.mxu1 %v17135_v18  ;;  %v1153_v18 = vld [vmem:[#allocation7 + $0xa18] sm:$0xff]  ;;  %v1200_v26 = vld [vmem:[#allocation7 + $0xb90] sm:$0xff] }
 0x3a9   :  { %8124 = vmatprep.mubr.bf16.mxu1 %v19981_v2  ;;  %7750 = vmatprep.subr.bf16.mxu0 %v17142_v39  ;;  %v17157_v2 = vcombine.low %v1112_v54, %v1116_v36  ;;  %v1157_v39 = vld [vmem:[#allocation7 + $0xa38] sm:$0xff] }
 0x3aa   :  { %8094 = vmatprep.subr.bf16.mxu1 %v17144_v16  ;;  %v17198_v16 = vcombine.high %v1152_v40, %v1156_v38  ;;  %v17200_v41 = vcombine.high %v1153_v18, %v1157_v39  ;;  %v17199_v54 = vcombine.low %v1153_v18, %v1157_v39  ;;  %v1208_v39 = vld [vmem:[#allocation7 + $0xbd0] sm:$0xff] }
 0x3ab   :  { %7751 = vmatpush1.bf16.msra.mxu0 %v17141_v45  ;;  %v1164_v45 = vld [vmem:[#allocation7 + $0xa70] sm:$0xff] }
 0x3ac   :  { %8095 = vmatpush1.bf16.msra.mxu1 %v17143_v48  ;;  %7752 = vmatprep.subr.bf16.mxu0 %v17150_v56  ;;  %v1161_v48 = vld [vmem:[#allocation7 + $0xa58] sm:$0xff]  ;;  %v17206_v36 = vcombine.high %v1160_v61, %v1164_v45 }
 0x3ad   :  { %8096 = vmatprep.subr.bf16.mxu1 %v17152_v49  ;;  %v1165_v56 = vld [vmem:[#allocation7 + $0xa78] sm:$0xff]  ;;  %v17197_v49 = vcombine.low %v1152_v40, %v1156_v38 }
 0x3ae   :  { %v17208_v63 = vcombine.high %v1161_v48, %v1165_v56  ;;  %v17207_v32 = vcombine.low %v1161_v48, %v1165_v56  ;;  %v1216_v56 = vld [vmem:[#allocation7 + $0xc10] sm:$0xff] }
 0x3af   :  { %7753 = vmatpush1.bf16.msra.mxu0 %v17149_v55  ;;  %v1172_v55 = vld [vmem:[#allocation7 + $0xab0] sm:$0xff] }
 0x3b0   :  { %8097 = vmatpush1.bf16.msra.mxu1 %v17151_v23  ;;  %7754 = vmatprep.subr.bf16.mxu0 %v17158_v8  ;;  %v1169_v23 = vld [vmem:[#allocation7 + $0xa98] sm:$0xff]  ;;  %v17214_v59 = vcombine.high %v1168_v30, %v1172_v55 }
 0x3b1   :  { %8098 = vmatprep.subr.bf16.mxu1 %v17160_v33  ;;  %v1173_v8 = vld [vmem:[#allocation7 + $0xab8] sm:$0xff]  ;;  %v17205_v33 = vcombine.low %v1160_v61, %v1164_v45 }
 0x3b2   :  { %v17216_v3 = vcombine.high %v1169_v23, %v1173_v8  ;;  %v17215_v15 = vcombine.low %v1169_v23, %v1173_v8  ;;  %v1224_v8 = vld [vmem:[#allocation7 + $0xc50] sm:$0xff] }
 0x3b3   :  { %7755 = vmatpush1.bf16.msra.mxu0 %v17157_v2  ;;  %v1180_v2 = vld [vmem:[#allocation7 + $0xaf0] sm:$0xff] }
 0x3b4   :  { %8099 = vmatpush1.bf16.msra.mxu1 %v17159_v47  ;;  %7756 = vmatprep.subr.bf16.mxu0 %v17166_v4  ;;  %v1177_v47 = vld [vmem:[#allocation7 + $0xad8] sm:$0xff]  ;;  %v17222_v9 = vcombine.high %v1176_v46, %v1180_v2 }
 0x3b5   :  { %8100 = vmatprep.subr.bf16.mxu1 %v17168_v5  ;;  %v1181_v4 = vld [vmem:[#allocation7 + $0xaf8] sm:$0xff]  ;;  %v17213_v5 = vcombine.low %v1168_v30, %v1172_v55 }
 0x3b6   :  { %v17224_v29 = vcombine.high %v1177_v47, %v1181_v4  ;;  %v17223_v1 = vcombine.low %v1177_v47, %v1181_v4  ;;  %v1232_v47 = vld [vmem:[#allocation7 + $0xc90] sm:$0xff] }
 0x3b7   :  { %7757 = vmatpush1.bf16.msra.mxu0 %v17165_v51  ;;  %v1188_v51 = vld [vmem:[#allocation7 + $0xb30] sm:$0xff] }
 0x3b8   :  { %8101 = vmatpush1.bf16.msra.mxu1 %v17167_v57  ;;  %7758 = vmatprep.subr.bf16.mxu0 %v17174_v31  ;;  %v1185_v57 = vld [vmem:[#allocation7 + $0xb18] sm:$0xff]  ;;  %v17230_v6 = vcombine.high %v1184_v42, %v1188_v51  ;;  %v1236_v4 = vld [vmem:[#allocation7 + $0xcb0] sm:$0xff] }
 0x3b9   :  { %8102 = vmatprep.subr.bf16.mxu1 %v17176_v53  ;;  %v1189_v31 = vld [vmem:[#allocation7 + $0xb38] sm:$0xff]  ;;  %v17221_v53 = vcombine.low %v1176_v46, %v1180_v2 }
 0x3ba   :  { %v17232_v10 = vcombine.high %v1185_v57, %v1189_v31  ;;  %v17231_v24 = vcombine.low %v1185_v57, %v1189_v31  ;;  %v1240_v31 = vld [vmem:[#allocation7 + $0xcd0] sm:$0xff] }
 0x3bb   :  { %7759 = vmatpush1.bf16.msra.mxu0 %v17173_v17  ;;  %v1196_v17 = vld [vmem:[#allocation7 + $0xb70] sm:$0xff] }
 0x3bc   :  { %8103 = vmatpush1.bf16.msra.mxu1 %v17175_v19  ;;  %7760 = vmatprep.subr.bf16.mxu0 %v17182_v22  ;;  %v1193_v19 = vld [vmem:[#allocation7 + $0xb58] sm:$0xff]  ;;  %v17238_v13 = vcombine.high %v1192_v12, %v1196_v17 }
 0x3bd   :  { %8104 = vmatprep.subr.bf16.mxu1 %v17184_v11  ;;  %v1197_v22 = vld [vmem:[#allocation7 + $0xb78] sm:$0xff]  ;;  %v17229_v11 = vcombine.low %v1184_v42, %v1188_v51  ;;  %v17278_v51 = vcombine.high %v1232_v47, %v1236_v4 }
 0x3be   :  { %v17240_v21 = vcombine.high %v1193_v19, %v1197_v22  ;;  %v17239_v40 = vcombine.low %v1193_v19, %v1197_v22  ;;  %v1248_v19 = vld [vmem:[#allocation7 + $0xd10] sm:$0xff] }
 0x3bf   :  { %7761 = vmatpush1.bf16.msra.mxu0 %v17181_v28  ;;  %v1204_v28 = vld [vmem:[#allocation7 + $0xbb0] sm:$0xff] }
 0x3c0   :  { %8105 = vmatpush1.bf16.msra.mxu1 %v17183_v34  ;;  %7762 = vmatprep.subr.bf16.mxu0 %v17190_v35  ;;  %v1201_v34 = vld [vmem:[#allocation7 + $0xb98] sm:$0xff]  ;;  %v17246_v38 = vcombine.high %v1200_v26, %v1204_v28  ;;  %v1252_v22 = vld [vmem:[#allocation7 + $0xd30] sm:$0xff] }
 0x3c1   :  { %8106 = vmatprep.subr.bf16.mxu1 %v17192_v58  ;;  %v1205_v35 = vld [vmem:[#allocation7 + $0xbb8] sm:$0xff]  ;;  %v17237_v58 = vcombine.low %v1192_v12, %v1196_v17 }
 0x3c2   :  { %v17248_v18 = vcombine.high %v1201_v34, %v1205_v35  ;;  %v17247_v61 = vcombine.low %v1201_v34, %v1205_v35  ;;  %v1260_v34 = vld [vmem:[#allocation7 + $0xd70] sm:$0xff]  ;;  %v1257_v35 = vld [vmem:[#allocation7 + $0xd58] sm:$0xff] }
 0x3c3   :  { %7763 = vmatpush1.bf16.msra.mxu0 %v17189_v27  ;;  %v1212_v27 = vld [vmem:[#allocation7 + $0xbf0] sm:$0xff] }
 0x3c4   :  { %8107 = vmatpush1.bf16.msra.mxu1 %v17191_v43  ;;  %7764 = vmatprep.subr.bf16.mxu0 %v17198_v16  ;;  %v1209_v43 = vld [vmem:[#allocation7 + $0xbd8] sm:$0xff]  ;;  %v17254_v45 = vcombine.high %v1208_v39, %v1212_v27 }
 0x3c5   :  { %8108 = vmatprep.subr.bf16.mxu1 %v17200_v41  ;;  %v1213_v16 = vld [vmem:[#allocation7 + $0xbf8] sm:$0xff]  ;;  %v17245_v41 = vcombine.low %v1200_v26, %v1204_v28  ;;  %v1256_v28 = vld [vmem:[#allocation7 + $0xd50] sm:$0xff] }
 0x3c6   :  { %v17256_v48 = vcombine.high %v1209_v43, %v1213_v16  ;;  %v17255_v30 = vcombine.low %v1209_v43, %v1213_v16  ;;  %v1268_v43 = vld [vmem:[#allocation7 + $0xdb0] sm:$0xff]  ;;  %v1265_v16 = vld [vmem:[#allocation7 + $0xd98] sm:$0xff] }
 0x3c7   :  { %7765 = vmatpush1.bf16.msra.mxu0 %v17197_v49  ;;  %v1220_v49 = vld [vmem:[#allocation7 + $0xc30] sm:$0xff] }
 0x3c8   :  { %8109 = vmatpush1.bf16.msra.mxu1 %v17199_v54  ;;  %7766 = vmatprep.subr.bf16.mxu0 %v17206_v36  ;;  %v1217_v54 = vld [vmem:[#allocation7 + $0xc18] sm:$0xff]  ;;  %v17262_v55 = vcombine.high %v1216_v56, %v1220_v49 }
 0x3c9   :  { %8110 = vmatprep.subr.bf16.mxu1 %v17208_v63  ;;  %v1221_v36 = vld [vmem:[#allocation7 + $0xc38] sm:$0xff]  ;;  %v17253_v63 = vcombine.low %v1208_v39, %v1212_v27  ;;  %v1264_v27 = vld [vmem:[#allocation7 + $0xd90] sm:$0xff] }
 0x3ca   :  { %v17264_v23 = vcombine.high %v1217_v54, %v1221_v36  ;;  %v17263_v46 = vcombine.low %v1217_v54, %v1221_v36  ;;  %v1272_v54 = vld [vmem:[#allocation7 + $0xdd0] sm:$0xff] }
 0x3cb   :  { %7767 = vmatpush1.bf16.msra.mxu0 %v17205_v33  ;;  %v1228_v33 = vld [vmem:[#allocation7 + $0xc70] sm:$0xff] }
 0x3cc   :  { %8111 = vmatpush1.bf16.msra.mxu1 %v17207_v32  ;;  %7768 = vmatprep.subr.bf16.mxu0 %v17214_v59  ;;  %v17261_v32 = vcombine.low %v1216_v56, %v1220_v49  ;;  %v1225_v59 = vld [vmem:[#allocation7 + $0xc58] sm:$0xff]  ;;  %v17270_v2 = vcombine.high %v1224_v8, %v1228_v33  ;;  %v1276_v36 = vld [vmem:[#allocation7 + $0xdf0] sm:$0xff] }
 0x3cd   :  { %8112 = vmatprep.subr.bf16.mxu1 %v17216_v3  ;;  %v1229_v3 = vld [vmem:[#allocation7 + $0xc78] sm:$0xff] }
 0x3ce   :  { %v17271_v42 = vcombine.low %v1225_v59, %v1229_v3 }
 0x3cf   :  { %7769 = vmatpush1.bf16.msra.mxu0 %v17213_v5  ;;  %v17272_v5 = vcombine.high %v1225_v59, %v1229_v3 }
 0x3d0   :  { %8113 = vmatpush1.bf16.msra.mxu1 %v17215_v15  ;;  %7770 = vmatprep.subr.bf16.mxu0 %v17222_v9  ;;  %v1233_v15 = vld [vmem:[#allocation7 + $0xc98] sm:$0xff] }
 0x3d1   :  { %8114 = vmatprep.subr.bf16.mxu1 %v17224_v29  ;;  %v1237_v9 = vld [vmem:[#allocation7 + $0xcb8] sm:$0xff]  ;;  %v17269_v29 = vcombine.low %v1224_v8, %v1228_v33 }
 0x3d2   :  { %v17280_v57 = vcombine.high %v1233_v15, %v1237_v9  ;;  %v1277_v8 = vld [vmem:[#allocation7 + $0xdf8] sm:$0xff] }
 0x3d3   :  { %7771 = vmatpush1.bf16.msra.mxu0 %v17221_v53  ;;  %v1244_v53 = vld [vmem:[#allocation7 + $0xcf0] sm:$0xff] }
 0x3d4   :  { %8115 = vmatpush1.bf16.msra.mxu1 %v17223_v1  ;;  %7772 = vmatprep.subr.bf16.mxu0 %v17230_v6  ;;  %v1241_v1 = vld [vmem:[#allocation7 + $0xcd8] sm:$0xff]  ;;  %v17286_v12 = vcombine.high %v1240_v31, %v1244_v53 }
 0x3d5   :  { %8116 = vmatprep.subr.bf16.mxu1 %v17232_v10  ;;  %v1245_v6 = vld [vmem:[#allocation7 + $0xcf8] sm:$0xff]  ;;  %v17277_v10 = vcombine.low %v1232_v47, %v1236_v4 }
 0x3d6   :  { %v17288_v17 = vcombine.high %v1241_v1, %v1245_v6 }
 0x3d7   :  { %7773 = vmatpush1.bf16.msra.mxu0 %v17229_v11  ;;  %v1249_v11 = vld [vmem:[#allocation7 + $0xd18] sm:$0xff] }
 0x3d8   :  { %8117 = vmatpush1.bf16.msra.mxu1 %v17231_v24  ;;  %7774 = vmatprep.subr.bf16.mxu0 %v17238_v13  ;;  %v1253_v24 = vld [vmem:[#allocation7 + $0xd38] sm:$0xff]  ;;  %v17287_v13 = vcombine.low %v1241_v1, %v1245_v6 }
 0x3d9   :  { %8118 = vmatprep.subr.bf16.mxu1 %v17240_v21  ;;  %v17294_v21 = vcombine.high %v1248_v19, %v1252_v22  ;;  %v17296_v26 = vcombine.high %v1249_v11, %v1253_v24  ;;  %v1281_v1 = vld [vmem:[#allocation7 + $0xe18] sm:$0xff] }
 0x3da   :  { %v1285_v6 = vld [vmem:[#allocation7 + $0xe38] sm:$0xff] }
 0x3db   :  { %7775 = vmatpush1.bf16.msra.mxu0 %v17237_v58  ;;  %v1261_v58 = vld [vmem:[#allocation7 + $0xd78] sm:$0xff] }
 0x3dc   :  { %8119 = vmatpush1.bf16.msra.mxu1 %v17239_v40  ;;  %7776 = vmatprep.subr.bf16.mxu0 %v17246_v38  ;;  %v17293_v40 = vcombine.low %v1248_v19, %v1252_v22  ;;  %v17295_v38 = vcombine.low %v1249_v11, %v1253_v24  ;;  %v17304_v39 = vcombine.high %v1257_v35, %v1261_v58  ;;  %v1288_v22 = vld [vmem:[#allocation7 + $0xe50] sm:$0xff]  ;;  %v1289_v24 = vld [vmem:[#allocation7 + $0xe58] sm:$0xff] }
 0x3dd   :  { %8120 = vmatprep.subr.bf16.mxu1 %v17248_v18  ;;  %v17302_v18 = vcombine.high %v1256_v28, %v1260_v34  ;;  %v17328_v19 = vcombine.high %v1281_v1, %v1285_v6  ;;  %v1292_v11 = vld [vmem:[#allocation7 + $0xe70] sm:$0xff] }
 0x3df   :  { %7777 = vmatpush1.bf16.msra.mxu0 %v17245_v41  ;;  %v1269_v41 = vld [vmem:[#allocation7 + $0xdb8] sm:$0xff] }
 0x3e0   :  { %8121 = vmatpush1.bf16.msra.mxu1 %v17247_v61  ;;  %7778 = vmatprep.subr.bf16.mxu0 %v17254_v45  ;;  %v17301_v61 = vcombine.low %v1256_v28, %v1260_v34  ;;  %v17303_v45 = vcombine.low %v1257_v35, %v1261_v58  ;;  %v17312_v49 = vcombine.high %v1265_v16, %v1269_v41  ;;  %v1296_v34 = vld [vmem:[#allocation7 + $0xe90] sm:$0xff] }
 0x3e1   :  { %8122 = vmatprep.subr.bf16.mxu1 %v17256_v48  ;;  %v17310_v48 = vcombine.high %v1264_v27, %v1268_v43  ;;  %v1300_v35 = vld [vmem:[#allocation7 + $0xeb0] sm:$0xff] }
 0x3e3   :  { %7779 = vmatpush1.bf16.msra.mxu0 %v17253_v63 }
 0x3e4   :  { %8123 = vmatpush1.bf16.msra.mxu1 %v17255_v30  ;;  %7791 = vmatprep.subr.bf16.mxu0 %v17262_v55 }
 0x3e5   :  { %8135 = vmatprep.subr.bf16.mxu1 %v17264_v23  ;;  %v1273_v23 = vld [vmem:[#allocation7 + $0xdd8] sm:$0xff] }
 0x3e6   :  { %7781 = vmatmul.mubr.bf16.vlgmr.msra.gmra.mrb[20].mxu0 %v19976_v62 }
 0x3e7   :  { %8125 = vmatmul.mubr.bf16.vlgmr.msra.gmra.mrb[20].mxu1 %v19976_v62  ;;  %7792 = vmatpush1.bf16.msra.mxu0 %v17261_v32  ;;  %v17279_v62 = vcombine.low %v1233_v15, %v1237_v9  ;;  %v17318_v9 = vcombine.high %v1272_v54, %v1276_v36 }
 0x3e8   :  { %7823 = vmatprep.mubr.bf16.mxu0 %v20020_v14  ;;  %8136 = vmatpush1.bf16.msra.mxu1 %v17263_v46  ;;  %v17309_v46 = vcombine.low %v1264_v27, %v1268_v43  ;;  %v17333_v27 = vcombine.low %v1288_v22, %v1292_v11 }
 0x3e9   :  { %8167 = vmatprep.mubr.bf16.mxu1 %v20020_v14  ;;  %7793 = vmatprep.subr.bf16.mxu0 %v17270_v2  ;;  %v17285_v14 = vcombine.low %v1240_v31, %v1244_v53  ;;  %v17311_v2 = vcombine.low %v1265_v16, %v1269_v41  ;;  %v1284_v31 = vld [vmem:[#allocation7 + $0xe30] sm:$0xff] }
 0x3ea   :  { %8137 = vmatprep.subr.bf16.mxu1 %v17272_v5 }
 0x3eb   :  { %7794 = vmatpush1.bf16.msra.mxu0 %v17269_v29 }
 0x3ec   :  { %8138 = vmatpush1.bf16.msra.mxu1 %v17271_v42  ;;  %7795 = vmatprep.subr.bf16.mxu0 %v17278_v51  ;;  %v17320_v51 = vcombine.high %v1273_v23, %v1277_v8 }
 0x3ed   :  { %8139 = vmatprep.subr.bf16.mxu1 %v17280_v57  ;;  %v1280_v57 = vld [vmem:[#allocation7 + $0xe10] sm:$0xff] }
 0x3ef   :  { %7796 = vmatpush1.bf16.msra.mxu0 %v17277_v10 }
 0x3f0   :  { %8140 = vmatpush1.bf16.msra.mxu1 %v17279_v62  ;;  %7797 = vmatprep.subr.bf16.mxu0 %v17286_v12  ;;  %v17317_v62 = vcombine.low %v1272_v54, %v1276_v36  ;;  %v17319_v12 = vcombine.low %v1273_v23, %v1277_v8  ;;  %v1304_v54 = vld [vmem:[#allocation7 + $0xed0] sm:$0xff]  ;;  %v1305_v8 = vld [vmem:[#allocation7 + $0xed8] sm:$0xff] }
 0x3f1   :  { %8141 = vmatprep.subr.bf16.mxu1 %v17288_v17  ;;  %v17326_v17 = vcombine.high %v1280_v57, %v1284_v31  ;;  %v1308_v36 = vld [vmem:[#allocation7 + $0xef0] sm:$0xff] }
 0x3f3   :  { %7798 = vmatpush1.bf16.msra.mxu0 %v17285_v14  ;;  %v1293_v14 = vld [vmem:[#allocation7 + $0xe78] sm:$0xff] }
 0x3f4   :  { %8142 = vmatpush1.bf16.msra.mxu1 %v17287_v13  ;;  %7799 = vmatprep.subr.bf16.mxu0 %v17294_v21  ;;  %v17325_v13 = vcombine.low %v1280_v57, %v1284_v31  ;;  %v17327_v21 = vcombine.low %v1281_v1, %v1285_v6  ;;  %v17336_v28 = vcombine.high %v1289_v24, %v1293_v14 }
 0x3f5   :  { %8143 = vmatprep.subr.bf16.mxu1 %v17296_v26  ;;  %v17334_v26 = vcombine.high %v1288_v22, %v1292_v11  ;;  %v17335_v41 = vcombine.low %v1289_v24, %v1293_v14  ;;  %v17350_v57 = vcombine.high %v1304_v54, %v1308_v36  ;;  %v17349_v11 = vcombine.low %v1304_v54, %v1308_v36  ;;  %v1313_v24 = vld [vmem:[#allocation7 + $0xf18] sm:$0xff]  ;;  %v1328_v54 = vld [vmem:[#allocation7 + $0xf90] sm:$0xff] }
 0x3f6   :  { %v1317_v14 = vld [vmem:[#allocation7 + $0xf38] sm:$0xff] }
 0x3f7   :  { %7800 = vmatpush1.bf16.msra.mxu0 %v17293_v40  ;;  %v1297_v40 = vld [vmem:[#allocation7 + $0xe98] sm:$0xff] }
 0x3f8   :  { %8144 = vmatpush1.bf16.msra.mxu1 %v17295_v38  ;;  %7801 = vmatprep.subr.bf16.mxu0 %v17302_v18  ;;  %v1301_v38 = vld [vmem:[#allocation7 + $0xeb8] sm:$0xff] }
 0x3f9   :  { %v20102_v56 = vpop.f32.mrb[16].mxu0  ;;  %8145 = vmatprep.subr.bf16.mxu1 %v17304_v39  ;;  %v1329_v36 = vld [vmem:[#allocation7 + $0xf98] sm:$0xff] }
 0x3fa   :  { %v8350_v63 = vmul.f32 0.5, %v20102_v56  ;;  %v20105_v30 = vpop.f32.mrb[16].mxu1  ;;  %v20107_v55 = vpop.f32.mrb[17].mxu0 }
 0x3fb   :  { %v8352_v33 = vmul.f32 0.5, %v20105_v30  ;;  %v8351_v32 = vmul.f32 0.5, %v20107_v55  ;;  %v20111_v59 = vpop.f32.mrb[17].mxu1  ;;  %v20113_v3 = vpop.f32.mrb[18].mxu0  ;;  %7802 = vmatpush1.bf16.msra.mxu0 %v17301_v61  ;;  %v17342_v61 = vcombine.high %v1296_v34, %v1300_v35 }
 0x3fc   :  { %19425 = vtanh.f32 %v8350_v63  ;;  %v8353_v47 = vmul.f32 0.5, %v20111_v59  ;;  %v8358_v4 = vmul.f32 0.5, %v20113_v3  ;;  %v20117_v5 = vpop.f32.mrb[18].mxu1  ;;  %8146 = vmatpush1.bf16.msra.mxu1 %v17303_v45  ;;  %v20119_v15 = vpop.f32.mrb[19].mxu0  ;;  %7803 = vmatprep.subr.bf16.mxu0 %v17310_v48 }
 0x3fd   :  { %19427 = vtanh.f32 %v8352_v33  ;;  %v8360_v29 = vmul.f32 0.5, %v20117_v5  ;;  %v20122_v42 = vpop.f32.mrb[19].mxu1  ;;  %8147 = vmatprep.subr.bf16.mxu1 %v17312_v49  ;;  %v8359_v53 = vmul.f32 0.5, %v20119_v15  ;;  %v17344_v49 = vcombine.high %v1297_v40, %v1301_v38  ;;  %v1309_v33 = vld [vmem:[#allocation7 + $0xef8] sm:$0xff] }
 0x3fe   :  { %19429 = vtanh.f32 %v8351_v32  ;;  %v8361_v10 = vmul.f32 0.5, %v20122_v42 }
 0x3ff   :  { %19431 = vtanh.f32 %v8353_v47  ;;  %7804 = vmatpush1.bf16.msra.mxu0 %v17309_v46  ;;  %v17341_v47 = vcombine.low %v1296_v34, %v1300_v35 }
 0x400   :  { %19433 = vtanh.f32 %v8358_v4  ;;  %8148 = vmatpush1.bf16.msra.mxu1 %v17311_v2  ;;  %7805 = vmatprep.subr.bf16.mxu0 %v17318_v9 }
 0x401   :  { %19435 = vtanh.f32 %v8360_v29  ;;  %8149 = vmatprep.subr.bf16.mxu1 %v17320_v51  ;;  %v17343_v51 = vcombine.low %v1297_v40, %v1301_v38 }
 0x402   :  { %19437 = vtanh.f32 %v8359_v53 }
 0x403   :  { %19439 = vtanh.f32 %v8361_v10  ;;  %7806 = vmatpush1.bf16.msra.mxu0 %v17317_v62  ;;  %v17352_v10 = vcombine.high %v1305_v8, %v1309_v33  ;;  %v1312_v62 = vld [vmem:[#allocation7 + $0xf10] sm:$0xff] }
 0x404   :  { %8150 = vmatpush1.bf16.msra.mxu1 %v17319_v12  ;;  %7807 = vmatprep.subr.bf16.mxu0 %v17326_v17  ;;  %v1316_v12 = vld [vmem:[#allocation7 + $0xf30] sm:$0xff] }
 0x405   :  { %8151 = vmatprep.subr.bf16.mxu1 %v17328_v19  ;;  %v17358_v40 = vcombine.high %v1312_v62, %v1316_v12 }
 0x406   :  { %v19426_v58 = vpop.eup %19425 }
 0x407   :  { %v19428_v18 = vpop.eup %19427  ;;  %v8382_v39 = vmul.f32 0.5, %v19426_v58  ;;  %7808 = vmatpush1.bf16.msra.mxu0 %v17325_v13 }
 0x408   :  { %v19430_v43 = vpop.eup %19429  ;;  %v8384_v16 = vmul.f32 0.5, %v19428_v18  ;;  %8152 = vmatpush1.bf16.msra.mxu1 %v17327_v21  ;;  %7809 = vmatprep.subr.bf16.mxu0 %v17334_v26 }
 0x409   :  { %v19432_v45 = vpop.eup %19431  ;;  %v8383_v48 = vmul.f32 0.5, %v19430_v43  ;;  %8153 = vmatprep.subr.bf16.mxu1 %v17336_v28  ;;  %v8398_v46 = vadd.f32 0.5, %v8382_v39  ;;  %v17351_v28 = vcombine.low %v1305_v8, %v1309_v33 }
 0x40a   :  { %v19434_v63 = vpop.eup %19433  ;;  %v8385_v23 = vmul.f32 0.5, %v19432_v45  ;;  %v8400_v9 = vadd.f32 0.5, %v8384_v16 }
 0x40b   :  { %v19436_v32 = vpop.eup %19435  ;;  %v8390_v2 = vmul.f32 0.5, %v19434_v63  ;;  %7810 = vmatpush1.bf16.msra.mxu0 %v17333_v27  ;;  %v8399_v53 = vadd.f32 0.5, %v8383_v48  ;;  %v8414_v13 = vmul.f32 %v8398_v46, %v20102_v56  ;;  %v17360_v56 = vcombine.high %v1313_v24, %v1317_v14  ;;  %v1324_v27 = vld [vmem:[#allocation7 + $0xf70] sm:$0xff]  ;;  %v1333_v63 = vld [vmem:[#allocation7 + $0xfb8] sm:$0xff] }
 0x40c   :  { %v19438_v4 = vpop.eup %19437  ;;  %v8392_v29 = vmul.f32 0.5, %v19436_v32  ;;  %8154 = vmatpush1.bf16.msra.mxu1 %v17335_v41  ;;  %7811 = vmatprep.subr.bf16.mxu0 %v17342_v61  ;;  %v8401_v17 = vadd.f32 0.5, %v8385_v23  ;;  %v8416_v34 = vmul.f32 %v8400_v9, %v20105_v30  ;;  %v1325_v41 = vld [vmem:[#allocation7 + $0xf78] sm:$0xff]  ;;  %v17376_v33 = vcombine.high %v1329_v36, %v1333_v63  ;;  %v1336_v32 = vld [vmem:[#allocation7 + $0xfd0] sm:$0xff] }
 0x40d   :  { %v19440_v31 = vpop.eup %19439  ;;  %v8406_v1 = vadd.f32 0.5, %v8390_v2  ;;  %v8391_v6 = vmul.f32 0.5, %v19438_v4  ;;  %8155 = vmatprep.subr.bf16.mxu1 %v17344_v49  ;;  %v8415_v38 = vmul.f32 %v8399_v53, %v20107_v55  ;;  %v17357_v55 = vcombine.low %v1312_v62, %v1316_v12  ;;  %v1340_v46 = vld [vmem:[#allocation7 + $0xff0] sm:$0xff]  ;;  %v1337_v2 = vld [vmem:[#allocation7 + $0xfd8] sm:$0xff] }
 0x40e   :  { %v8408_v19 = vadd.f32 0.5, %v8392_v29  ;;  %v8393_v22 = vmul.f32 0.5, %v19440_v31  ;;  %v8417_v43 = vmul.f32 %v8401_v17, %v20111_v59  ;;  %v1332_v59 = vld [vmem:[#allocation7 + $0xfb0] sm:$0xff]  ;;  %v17375_v9 = vcombine.low %v1329_v36, %v1333_v63  ;;  %v1345_v53 = vld [vmem:[#allocation7 + $0x1018] sm:$0xff] }
 0x40f   :  { %v8422_v21 = vmul.f32 %v8406_v1, %v20113_v3  ;;  %v8407_v26 = vadd.f32 0.5, %v8391_v6  ;;  %7812 = vmatpush1.bf16.msra.mxu0 %v17341_v47  ;;  %v1320_v3 = vld [vmem:[#allocation7 + $0xf50] sm:$0xff]  ;;  %v17374_v8 = vcombine.high %v1328_v54, %v1332_v59  ;;  %v1341_v47 = vld [vmem:[#allocation7 + $0xff8] sm:$0xff]  ;;  %v17373_v4 = vcombine.low %v1328_v54, %v1332_v59 }
 0x410   :  { %v8424_v35 = vmul.f32 %v8408_v19, %v20117_v5  ;;  %v8409_v58 = vadd.f32 0.5, %v8393_v22  ;;  %8156 = vmatpush1.bf16.msra.mxu1 %v17343_v51  ;;  %7813 = vmatprep.subr.bf16.mxu0 %v17350_v57  ;;  %v1321_v5 = vld [vmem:[#allocation7 + $0xf58] sm:$0xff]  ;;  %v17366_v48 = vcombine.high %v1320_v3, %v1324_v27  ;;  %v17382_v29 = vcombine.high %v1336_v32, %v1340_v46  ;;  %v1344_v57 = vld [vmem:[#allocation7 + $0x1010] sm:$0xff] }
 0x411   :  { %v20131_v18 = vpack.c.bf16 %v8422_v21, %v8414_v13  ;;  %v8423_v39 = vmul.f32 %v8407_v26, %v20119_v15  ;;  %8157 = vmatprep.subr.bf16.mxu1 %v17352_v10  ;;  %v17359_v15 = vcombine.low %v1313_v24, %v1317_v14  ;;  %v17368_v49 = vcombine.high %v1321_v5, %v1325_v41  ;;  %v1348_v31 = vld [vmem:[#allocation7 + $0x1030] sm:$0xff]  ;;  %v1349_v1 = vld [vmem:[#allocation7 + $0x1038] sm:$0xff] }
 0x412   :  { %v20135_v16 = vpack.c.bf16 %v8424_v35, %v8416_v34  ;;  %v8425_v30 = vmul.f32 %v8409_v58, %v20122_v42  ;;  %v17365_v42 = vcombine.low %v1320_v3, %v1324_v27  ;;  %v17367_v23 = vcombine.low %v1321_v5, %v1325_v41  ;;  %v1352_v17 = vld [vmem:[#allocation7 + $0x1050] sm:$0xff]  ;;  %v1357_v24 = vld [vmem:[#allocation7 + $0x1078] sm:$0xff] }
 0x413   :  { %v20138_v61 = vpack.c.bf16 %v8423_v39, %v8415_v38  ;;  %7814 = vmatpush1.bf16.msra.mxu0 %v17349_v11  ;;  %v17384_v51 = vcombine.high %v1337_v2, %v1341_v47  ;;  %v17381_v6 = vcombine.low %v1336_v32, %v1340_v46  ;;  %v17383_v10 = vcombine.low %v1337_v2, %v1341_v47  ;;  %v1356_v19 = vld [vmem:[#allocation7 + $0x1070] sm:$0xff]  ;;  %v1353_v11 = vld [vmem:[#allocation7 + $0x1058] sm:$0xff] }
 0x414   :  { %v20140_v45 = vpack.c.bf16 %v8425_v30, %v8417_v43  ;;  %8158 = vmatpush1.bf16.msra.mxu1 %v17351_v28  ;;  %7815 = vmatprep.subr.bf16.mxu0 %v17358_v40  ;;  %v17390_v62 = vcombine.high %v1344_v57, %v1348_v31  ;;  %v17392_v12 = vcombine.high %v1345_v53, %v1349_v1  ;;  %v1360_v21 = vld [vmem:[#allocation7 + $0x1090] sm:$0xff]  ;;  %v1361_v34 = vld [vmem:[#allocation7 + $0x1098] sm:$0xff] }
 0x415   :  { %8159 = vmatprep.subr.bf16.mxu1 %v17360_v56  ;;  %v17389_v22 = vcombine.low %v1344_v57, %v1348_v31  ;;  %v17391_v14 = vcombine.low %v1345_v53, %v1349_v1  ;;  %v17398_v13 = vcombine.high %v1352_v17, %v1356_v19  ;;  %v1364_v26 = vld [vmem:[#allocation7 + $0x10b0] sm:$0xff]  ;;  %v17400_v28 = vcombine.high %v1353_v11, %v1357_v24  ;;  %v1365_v35 = vld [vmem:[#allocation7 + $0x10b8] sm:$0xff] }
 0x416   :  { %v17397_v58 = vcombine.low %v1352_v17, %v1356_v19  ;;  %v17399_v40 = vcombine.low %v1353_v11, %v1357_v24  ;;  %v17406_v38 = vcombine.high %v1360_v21, %v1364_v26  ;;  %v17408_v39 = vcombine.high %v1361_v34, %v1365_v35  ;;  %v1368_v56 = vld [vmem:[#allocation7 + $0x10d0] sm:$0xff]  ;;  %v1369_v27 = vld [vmem:[#allocation7 + $0x10d8] sm:$0xff] }
 0x417   :  { %7816 = vmatpush1.bf16.msra.mxu0 %v17357_v55  ;;  %v1372_v3 = vld [vmem:[#allocation7 + $0x10f0] sm:$0xff]  ;;  %v1373_v43 = vld [vmem:[#allocation7 + $0x10f8] sm:$0xff]  ;;  %v17405_v30 = vcombine.low %v1360_v21, %v1364_v26 }
 0x418   :  { %8160 = vmatpush1.bf16.msra.mxu1 %v17359_v15  ;;  %7817 = vmatprep.subr.bf16.mxu0 %v17366_v48  ;;  %v17414_v5 = vcombine.high %v1368_v56, %v1372_v3  ;;  %v17416_v41 = vcombine.high %v1369_v27, %v1373_v43  ;;  %v1376_v55 = vld [vmem:[#allocation7 + $0x1110] sm:$0xff]  ;;  %v1377_v48 = vld [vmem:[#allocation7 + $0x1118] sm:$0xff]  ;;  %v17415_v54 = vcombine.low %v1369_v27, %v1373_v43 }
 0x419   :  { %8161 = vmatprep.subr.bf16.mxu1 %v17368_v49  ;;  %v1380_v15 = vld [vmem:[#allocation7 + $0x1130] sm:$0xff]  ;;  %v1381_v49 = vld [vmem:[#allocation7 + $0x1138] sm:$0xff] }
 0x41a   :  { %v17422_v59 = vcombine.high %v1376_v55, %v1380_v15  ;;  %v17424_v36 = vcombine.high %v1377_v48, %v1381_v49  ;;  %v1384_v63 = vld [vmem:[#allocation7 + $0x1150] sm:$0xff]  ;;  %v17423_v32 = vcombine.low %v1377_v48, %v1381_v49 }
 0x41b   :  { %7818 = vmatpush1.bf16.msra.mxu0 %v17365_v42  ;;  %v1388_v42 = vld [vmem:[#allocation7 + $0x1170] sm:$0xff] }
 0x41c   :  { %8162 = vmatpush1.bf16.msra.mxu1 %v17367_v23  ;;  %7819 = vmatprep.subr.bf16.mxu0 %v17374_v8  ;;  %v1385_v23 = vld [vmem:[#allocation7 + $0x1158] sm:$0xff]  ;;  %v17430_v46 = vcombine.high %v1384_v63, %v1388_v42  ;;  %v1392_v47 = vld [vmem:[#allocation7 + $0x1190] sm:$0xff] }
 0x41d   :  { %8163 = vmatprep.subr.bf16.mxu1 %v17376_v33  ;;  %v1389_v8 = vld [vmem:[#allocation7 + $0x1178] sm:$0xff]  ;;  %v17421_v33 = vcombine.low %v1376_v55, %v1380_v15  ;;  %v1400_v1 = vld [vmem:[#allocation7 + $0x11d0] sm:$0xff] }
 0x41e   :  { %v17432_v2 = vcombine.high %v1385_v23, %v1389_v8  ;;  %v17431_v57 = vcombine.low %v1385_v23, %v1389_v8  ;;  %v1408_v11 = vld [vmem:[#allocation7 + $0x1210] sm:$0xff] }
 0x41f   :  { %7820 = vmatpush1.bf16.msra.mxu0 %v17373_v4  ;;  %v1396_v4 = vld [vmem:[#allocation7 + $0x11b0] sm:$0xff] }
 0x420   :  { %8164 = vmatpush1.bf16.msra.mxu1 %v17375_v9  ;;  %7821 = vmatprep.subr.bf16.mxu0 %v17382_v29  ;;  %v1393_v9 = vld [vmem:[#allocation7 + $0x1198] sm:$0xff]  ;;  %v17438_v31 = vcombine.high %v1392_v47, %v1396_v4  ;;  %v1412_v24 = vld [vmem:[#allocation7 + $0x1230] sm:$0xff] }
 0x421   :  { %8165 = vmatprep.subr.bf16.mxu1 %v17384_v51  ;;  %v1397_v29 = vld [vmem:[#allocation7 + $0x11b8] sm:$0xff]  ;;  %v17429_v51 = vcombine.low %v1384_v63, %v1388_v42  ;;  %v1424_v43 = vld [vmem:[#allocation7 + $0x1290] sm:$0xff] }
 0x422   :  { %v17440_v53 = vcombine.high %v1393_v9, %v1397_v29  ;;  %v17439_v17 = vcombine.low %v1393_v9, %v1397_v29  ;;  %v1432_v49 = vld [vmem:[#allocation7 + $0x12d0] sm:$0xff] }
 0x423   :  { %7822 = vmatpush1.bf16.msra.mxu0 %v17381_v6  ;;  %v1404_v6 = vld [vmem:[#allocation7 + $0x11f0] sm:$0xff] }
 0x424   :  { %8166 = vmatpush1.bf16.msra.mxu1 %v17383_v10  ;;  %7834 = vmatprep.subr.bf16.mxu0 %v17390_v62  ;;  %v1401_v10 = vld [vmem:[#allocation7 + $0x11d8] sm:$0xff]  ;;  %v17446_v19 = vcombine.high %v1400_v1, %v1404_v6  ;;  %v17445_v21 = vcombine.low %v1400_v1, %v1404_v6  ;;  %v1440_v8 = vld [vmem:[#allocation7 + $0x1310] sm:$0xff] }
 0x425   :  { %8178 = vmatprep.subr.bf16.mxu1 %v17392_v12  ;;  %v1405_v62 = vld [vmem:[#allocation7 + $0x11f8] sm:$0xff]  ;;  %v17437_v12 = vcombine.low %v1392_v47, %v1396_v4  ;;  %v1448_v29 = vld [vmem:[#allocation7 + $0x1350] sm:$0xff] }
 0x426   :  { %7824 = vmatmul.mubr.bf16.vlgmr.msra.gmra.mrb[20].mxu0 %v20018_v44  ;;  %v17447_v26 = vcombine.low %v1401_v10, %v1405_v62 }
 0x427   :  { %8168 = vmatmul.mubr.bf16.vlgmr.msra.gmra.mrb[20].mxu1 %v20018_v44  ;;  %7835 = vmatpush1.bf16.msra.mxu0 %v17389_v22  ;;  %v17407_v44 = vcombine.low %v1361_v34, %v1365_v35  ;;  %v17448_v22 = vcombine.high %v1401_v10, %v1405_v62  ;;  %v1416_v35 = vld [vmem:[#allocation7 + $0x1250] sm:$0xff] }
 0x428   :  { %7866 = vmatprep.mubr.bf16.mxu0 %v19997_v0  ;;  %8179 = vmatpush1.bf16.msra.mxu1 %v17391_v14  ;;  %v1409_v14 = vld [vmem:[#allocation7 + $0x1218] sm:$0xff]  ;;  %v1456_v62 = vld [vmem:[#allocation7 + $0x1390] sm:$0xff] }
 0x429   :  { %8210 = vmatprep.mubr.bf16.mxu1 %v19997_v0  ;;  %7836 = vmatprep.subr.bf16.mxu0 %v17398_v13  ;;  %v17413_v0 = vcombine.low %v1368_v56, %v1372_v3  ;;  %v1413_v13 = vld [vmem:[#allocation7 + $0x1238] sm:$0xff] }
 0x42a   :  { %8180 = vmatprep.subr.bf16.mxu1 %v17400_v28  ;;  %v17454_v28 = vcombine.high %v1408_v11, %v1412_v24  ;;  %v17456_v34 = vcombine.high %v1409_v14, %v1413_v13  ;;  %v17455_v56 = vcombine.low %v1409_v14, %v1413_v13  ;;  %v1464_v13 = vld [vmem:[#allocation7 + $0x13d0] sm:$0xff] }
 0x42b   :  { %7837 = vmatpush1.bf16.msra.mxu0 %v17397_v58  ;;  %v1420_v58 = vld [vmem:[#allocation7 + $0x1270] sm:$0xff] }
 0x42c   :  { %8181 = vmatpush1.bf16.msra.mxu1 %v17399_v40  ;;  %7838 = vmatprep.subr.bf16.mxu0 %v17406_v38  ;;  %v1417_v40 = vld [vmem:[#allocation7 + $0x1258] sm:$0xff]  ;;  %v17462_v3 = vcombine.high %v1416_v35, %v1420_v58 }
 0x42d   :  { %8182 = vmatprep.subr.bf16.mxu1 %v17408_v39  ;;  %v1421_v38 = vld [vmem:[#allocation7 + $0x1278] sm:$0xff]  ;;  %v17453_v39 = vcombine.low %v1408_v11, %v1412_v24 }
 0x42e   :  { %v17464_v27 = vcombine.high %v1417_v40, %v1421_v38  ;;  %v17463_v55 = vcombine.low %v1417_v40, %v1421_v38  ;;  %v1472_v38 = vld [vmem:[#allocation7 + $0x1410] sm:$0xff] }
 0x42f   :  { %7839 = vmatpush1.bf16.msra.mxu0 %v17405_v30  ;;  %v1428_v30 = vld [vmem:[#allocation7 + $0x12b0] sm:$0xff] }
 0x430   :  { %8183 = vmatpush1.bf16.msra.mxu1 %v17407_v44  ;;  %7840 = vmatprep.subr.bf16.mxu0 %v17414_v5  ;;  %v1425_v44 = vld [vmem:[#allocation7 + $0x1298] sm:$0xff]  ;;  %v17470_v15 = vcombine.high %v1424_v43, %v1428_v30 }
 0x431   :  { %8184 = vmatprep.subr.bf16.mxu1 %v17416_v41  ;;  %v1429_v5 = vld [vmem:[#allocation7 + $0x12b8] sm:$0xff]  ;;  %v17461_v41 = vcombine.low %v1416_v35, %v1420_v58 }
 0x432   :  { %v17472_v48 = vcombine.high %v1425_v44, %v1429_v5  ;;  %v17471_v63 = vcombine.low %v1425_v44, %v1429_v5  ;;  %v1480_v5 = vld [vmem:[#allocation7 + $0x1450] sm:$0xff] }
 0x433   :  { %7841 = vmatpush1.bf16.msra.mxu0 %v17413_v0  ;;  %v1436_v0 = vld [vmem:[#allocation7 + $0x12f0] sm:$0xff] }
 0x434   :  { %8185 = vmatpush1.bf16.msra.mxu1 %v17415_v54  ;;  %7842 = vmatprep.subr.bf16.mxu0 %v17422_v59  ;;  %v1433_v54 = vld [vmem:[#allocation7 + $0x12d8] sm:$0xff]  ;;  %v17478_v42 = vcombine.high %v1432_v49, %v1436_v0 }
 0x435   :  { %8186 = vmatprep.subr.bf16.mxu1 %v17424_v36  ;;  %v1437_v59 = vld [vmem:[#allocation7 + $0x12f8] sm:$0xff]  ;;  %v17469_v36 = vcombine.low %v1424_v43, %v1428_v30 }
 0x436   :  { %v17480_v23 = vcombine.high %v1433_v54, %v1437_v59  ;;  %v17479_v47 = vcombine.low %v1433_v54, %v1437_v59  ;;  %v1488_v54 = vld [vmem:[#allocation7 + $0x1490] sm:$0xff] }
 0x437   :  { %7843 = vmatpush1.bf16.msra.mxu0 %v17421_v33  ;;  %v1444_v33 = vld [vmem:[#allocation7 + $0x1330] sm:$0xff] }
 0x438   :  { %8187 = vmatpush1.bf16.msra.mxu1 %v17423_v32  ;;  %7844 = vmatprep.subr.bf16.mxu0 %v17430_v46  ;;  %v1441_v32 = vld [vmem:[#allocation7 + $0x1318] sm:$0xff]  ;;  %v17486_v4 = vcombine.high %v1440_v8, %v1444_v33  ;;  %v1492_v59 = vld [vmem:[#allocation7 + $0x14b0] sm:$0xff] }
 0x439   :  { %8188 = vmatprep.subr.bf16.mxu1 %v17432_v2  ;;  %v1445_v46 = vld [vmem:[#allocation7 + $0x1338] sm:$0xff]  ;;  %v17477_v2 = vcombine.low %v1432_v49, %v1436_v0 }
 0x43a   :  { %v17488_v9 = vcombine.high %v1441_v32, %v1445_v46  ;;  %v17487_v1 = vcombine.low %v1441_v32, %v1445_v46  ;;  %v1496_v46 = vld [vmem:[#allocation7 + $0x14d0] sm:$0xff] }
 0x43b   :  { %7845 = vmatpush1.bf16.msra.mxu0 %v17429_v51  ;;  %v1452_v51 = vld [vmem:[#allocation7 + $0x1370] sm:$0xff] }
 0x43c   :  { %8189 = vmatpush1.bf16.msra.mxu1 %v17431_v57  ;;  %7846 = vmatprep.subr.bf16.mxu0 %v17438_v31  ;;  %v1449_v57 = vld [vmem:[#allocation7 + $0x1358] sm:$0xff]  ;;  %v17494_v6 = vcombine.high %v1448_v29, %v1452_v51 }
 0x43d   :  { %8190 = vmatprep.subr.bf16.mxu1 %v17440_v53  ;;  %v1453_v31 = vld [vmem:[#allocation7 + $0x1378] sm:$0xff]  ;;  %v17485_v53 = vcombine.low %v1440_v8, %v1444_v33  ;;  %v17534_v33 = vcombine.high %v1488_v54, %v1492_v59 }
 0x43e   :  { %v17496_v10 = vcombine.high %v1449_v57, %v1453_v31  ;;  %v17495_v11 = vcombine.low %v1449_v57, %v1453_v31  ;;  %v1504_v57 = vld [vmem:[#allocation7 + $0x1510] sm:$0xff] }
 0x43f   :  { %7847 = vmatpush1.bf16.msra.mxu0 %v17437_v12  ;;  %v1460_v12 = vld [vmem:[#allocation7 + $0x13b0] sm:$0xff] }
 0x440   :  { %8191 = vmatpush1.bf16.msra.mxu1 %v17439_v17  ;;  %7848 = vmatprep.subr.bf16.mxu0 %v17446_v19  ;;  %v1457_v17 = vld [vmem:[#allocation7 + $0x1398] sm:$0xff]  ;;  %v17502_v24 = vcombine.high %v1456_v62, %v1460_v12  ;;  %v1508_v31 = vld [vmem:[#allocation7 + $0x1530] sm:$0xff] }
 0x441   :  { %8192 = vmatprep.subr.bf16.mxu1 %v17448_v22  ;;  %v1461_v19 = vld [vmem:[#allocation7 + $0x13b8] sm:$0xff]  ;;  %v17493_v22 = vcombine.low %v1448_v29, %v1452_v51 }
 0x442   :  { %v17504_v14 = vcombine.high %v1457_v17, %v1461_v19  ;;  %v17503_v35 = vcombine.low %v1457_v17, %v1461_v19  ;;  %v1516_v17 = vld [vmem:[#allocation7 + $0x1570] sm:$0xff]  ;;  %v1513_v19 = vld [vmem:[#allocation7 + $0x1558] sm:$0xff] }
 0x443   :  { %7849 = vmatpush1.bf16.msra.mxu0 %v17445_v21  ;;  %v1468_v21 = vld [vmem:[#allocation7 + $0x13f0] sm:$0xff] }
 0x444   :  { %8193 = vmatpush1.bf16.msra.mxu1 %v17447_v26  ;;  %7850 = vmatprep.subr.bf16.mxu0 %v17454_v28  ;;  %v1465_v26 = vld [vmem:[#allocation7 + $0x13d8] sm:$0xff]  ;;  %v17510_v58 = vcombine.high %v1464_v13, %v1468_v21 }
 0x445   :  { %8194 = vmatprep.subr.bf16.mxu1 %v17456_v34  ;;  %v1469_v28 = vld [vmem:[#allocation7 + $0x13f8] sm:$0xff]  ;;  %v17501_v34 = vcombine.low %v1456_v62, %v1460_v12  ;;  %v1512_v12 = vld [vmem:[#allocation7 + $0x1550] sm:$0xff] }
 0x446   :  { %v17512_v40 = vcombine.high %v1465_v26, %v1469_v28  ;;  %v17511_v43 = vcombine.low %v1465_v26, %v1469_v28  ;;  %v1524_v26 = vld [vmem:[#allocation7 + $0x15b0] sm:$0xff]  ;;  %v1521_v28 = vld [vmem:[#allocation7 + $0x1598] sm:$0xff] }
 0x447   :  { %7851 = vmatpush1.bf16.msra.mxu0 %v17453_v39  ;;  %v1476_v39 = vld [vmem:[#allocation7 + $0x1430] sm:$0xff] }
 0x448   :  { %8195 = vmatpush1.bf16.msra.mxu1 %v17455_v56  ;;  %7852 = vmatprep.subr.bf16.mxu0 %v17462_v3  ;;  %v1473_v56 = vld [vmem:[#allocation7 + $0x1418] sm:$0xff]  ;;  %v17518_v30 = vcombine.high %v1472_v38, %v1476_v39 }
 0x449   :  { %8196 = vmatprep.subr.bf16.mxu1 %v17464_v27  ;;  %v1477_v3 = vld [vmem:[#allocation7 + $0x1438] sm:$0xff]  ;;  %v17509_v27 = vcombine.low %v1464_v13, %v1468_v21  ;;  %v1520_v21 = vld [vmem:[#allocation7 + $0x1590] sm:$0xff] }
 0x44a   :  { %v17520_v44 = vcombine.high %v1473_v56, %v1477_v3  ;;  %v17519_v49 = vcombine.low %v1473_v56, %v1477_v3  ;;  %v1532_v56 = vld [vmem:[#allocation7 + $0x15f0] sm:$0xff]  ;;  %v1529_v3 = vld [vmem:[#allocation7 + $0x15d8] sm:$0xff] }
 0x44b   :  { %7853 = vmatpush1.bf16.msra.mxu0 %v17461_v41  ;;  %v1484_v41 = vld [vmem:[#allocation7 + $0x1470] sm:$0xff] }
 0x44c   :  { %8197 = vmatpush1.bf16.msra.mxu1 %v17463_v55  ;;  %7854 = vmatprep.subr.bf16.mxu0 %v17470_v15  ;;  %v17517_v55 = vcombine.low %v1472_v38, %v1476_v39  ;;  %v1481_v15 = vld [vmem:[#allocation7 + $0x1458] sm:$0xff]  ;;  %v17526_v0 = vcombine.high %v1480_v5, %v1484_v41  ;;  %v1528_v39 = vld [vmem:[#allocation7 + $0x15d0] sm:$0xff] }
 0x44d   :  { %8198 = vmatprep.subr.bf16.mxu1 %v17472_v48  ;;  %v1485_v48 = vld [vmem:[#allocation7 + $0x1478] sm:$0xff] }
 0x44e   :  { %v17527_v8 = vcombine.low %v1481_v15, %v1485_v48 }
 0x44f   :  { %7855 = vmatpush1.bf16.msra.mxu0 %v17469_v36  ;;  %v17528_v36 = vcombine.high %v1481_v15, %v1485_v48  ;;  %v1537_v15 = vld [vmem:[#allocation7 + $0x1618] sm:$0xff] }
 0x450   :  { %8199 = vmatpush1.bf16.msra.mxu1 %v17471_v63  ;;  %7856 = vmatprep.subr.bf16.mxu0 %v17478_v42  ;;  %v1489_v63 = vld [vmem:[#allocation7 + $0x1498] sm:$0xff] }
 0x451   :  { %8200 = vmatprep.subr.bf16.mxu1 %v17480_v23  ;;  %v1493_v42 = vld [vmem:[#allocation7 + $0x14b8] sm:$0xff]  ;;  %v17525_v23 = vcombine.low %v1480_v5, %v1484_v41  ;;  %v1536_v41 = vld [vmem:[#allocation7 + $0x1610] sm:$0xff] }
 0x452   :  { %v17536_v32 = vcombine.high %v1489_v63, %v1493_v42  ;;  %v1541_v48 = vld [vmem:[#allocation7 + $0x1638] sm:$0xff] }
 0x453   :  { %7857 = vmatpush1.bf16.msra.mxu0 %v17477_v2  ;;  %v1500_v2 = vld [vmem:[#allocation7 + $0x14f0] sm:$0xff] }
 0x454   :  { %8201 = vmatpush1.bf16.msra.mxu1 %v17479_v47  ;;  %7858 = vmatprep.subr.bf16.mxu0 %v17486_v4  ;;  %v1497_v47 = vld [vmem:[#allocation7 + $0x14d8] sm:$0xff]  ;;  %v17542_v29 = vcombine.high %v1496_v46, %v1500_v2 }
 0x455   :  { %8202 = vmatprep.subr.bf16.mxu1 %v17488_v9  ;;  %v1501_v4 = vld [vmem:[#allocation7 + $0x14f8] sm:$0xff]  ;;  %v17533_v9 = vcombine.low %v1488_v54, %v1492_v59  ;;  %v17584_v59 = vcombine.high %v1537_v15, %v1541_v48 }
 0x456   :  { %v17544_v51 = vcombine.high %v1497_v47, %v1501_v4 }
 0x457   :  { %7859 = vmatpush1.bf16.msra.mxu0 %v17485_v53  ;;  %v1505_v53 = vld [vmem:[#allocation7 + $0x1518] sm:$0xff] }
 0x458   :  { %8203 = vmatpush1.bf16.msra.mxu1 %v17487_v1  ;;  %7860 = vmatprep.subr.bf16.mxu0 %v17494_v6  ;;  %v1509_v1 = vld [vmem:[#allocation7 + $0x1538] sm:$0xff]  ;;  %v17543_v6 = vcombine.low %v1497_v47, %v1501_v4  ;;  %v1556_v47 = vld [vmem:[#allocation7 + $0x16b0] sm:$0xff] }
 0x459   :  { %8204 = vmatprep.subr.bf16.mxu1 %v17496_v10  ;;  %v17550_v10 = vcombine.high %v1504_v57, %v1508_v31  ;;  %v17552_v62 = vcombine.high %v1505_v53, %v1509_v1  ;;  %v1553_v4 = vld [vmem:[#allocation7 + $0x1698] sm:$0xff] }
 0x45b   :  { %7861 = vmatpush1.bf16.msra.mxu0 %v17493_v22  ;;  %v1517_v22 = vld [vmem:[#allocation7 + $0x1578] sm:$0xff] }
 0x45c   :  { %8205 = vmatpush1.bf16.msra.mxu1 %v17495_v11  ;;  %7862 = vmatprep.subr.bf16.mxu0 %v17502_v24  ;;  %v17549_v11 = vcombine.low %v1504_v57, %v1508_v31  ;;  %v17551_v24 = vcombine.low %v1505_v53, %v1509_v1  ;;  %v17560_v13 = vcombine.high %v1513_v19, %v1517_v22  ;;  %v1560_v31 = vld [vmem:[#allocation7 + $0x16d0] sm:$0xff]  ;;  %v1561_v1 = vld [vmem:[#allocation7 + $0x16d8] sm:$0xff] }
 0x45d   :  { %8206 = vmatprep.subr.bf16.mxu1 %v17504_v14  ;;  %v17558_v14 = vcombine.high %v1512_v12, %v1516_v17  ;;  %v1564_v53 = vld [vmem:[#allocation7 + $0x16f0] sm:$0xff] }
 0x45f   :  { %7863 = vmatpush1.bf16.msra.mxu0 %v17501_v34  ;;  %v1525_v34 = vld [vmem:[#allocation7 + $0x15b8] sm:$0xff] }
 0x460   :  { %8207 = vmatpush1.bf16.msra.mxu1 %v17503_v35  ;;  %7864 = vmatprep.subr.bf16.mxu0 %v17510_v58  ;;  %v17557_v35 = vcombine.low %v1512_v12, %v1516_v17  ;;  %v17559_v58 = vcombine.low %v1513_v19, %v1517_v22  ;;  %v17568_v38 = vcombine.high %v1521_v28, %v1525_v34  ;;  %v1568_v17 = vld [vmem:[#allocation7 + $0x1710] sm:$0xff]  ;;  %v1569_v22 = vld [vmem:[#allocation7 + $0x1718] sm:$0xff] }
 0x461   :  { %8208 = vmatprep.subr.bf16.mxu1 %v17512_v40  ;;  %v17566_v40 = vcombine.high %v1520_v21, %v1524_v26  ;;  %v1572_v19 = vld [vmem:[#allocation7 + $0x1730] sm:$0xff] }
 0x463   :  { %7865 = vmatpush1.bf16.msra.mxu0 %v17509_v27  ;;  %v1533_v27 = vld [vmem:[#allocation7 + $0x15f8] sm:$0xff] }
 0x464   :  { %8209 = vmatpush1.bf16.msra.mxu1 %v17511_v43  ;;  %7877 = vmatprep.subr.bf16.mxu0 %v17518_v30  ;;  %v17565_v43 = vcombine.low %v1520_v21, %v1524_v26  ;;  %v17567_v30 = vcombine.low %v1521_v28, %v1525_v34  ;;  %v17576_v5 = vcombine.high %v1529_v3, %v1533_v27  ;;  %v1576_v26 = vld [vmem:[#allocation7 + $0x1750] sm:$0xff]  ;;  %v1577_v34 = vld [vmem:[#allocation7 + $0x1758] sm:$0xff] }
 0x465   :  { %8221 = vmatprep.subr.bf16.mxu1 %v17520_v44  ;;  %v17574_v44 = vcombine.high %v1528_v39, %v1532_v56  ;;  %v1580_v28 = vld [vmem:[#allocation7 + $0x1770] sm:$0xff] }
 0x466   :  { %7867 = vmatmul.mubr.bf16.vlgmr.msra.gmra.mrb[20].mxu0 %v19989_v7 }
 0x467   :  { %8211 = vmatmul.mubr.bf16.vlgmr.msra.gmra.mrb[20].mxu1 %v19989_v7  ;;  %7878 = vmatpush1.bf16.msra.mxu0 %v17517_v55  ;;  %v17535_v7 = vcombine.low %v1489_v63, %v1493_v42  ;;  %v1540_v55 = vld [vmem:[#allocation7 + $0x1630] sm:$0xff]  ;;  %v1545_v42 = vld [vmem:[#allocation7 + $0x1658] sm:$0xff] }
 0x468   :  { %7909 = vmatprep.mubr.bf16.mxu0 %v20056_v25  ;;  %8222 = vmatpush1.bf16.msra.mxu1 %v17519_v49  ;;  %v17573_v49 = vcombine.low %v1528_v39, %v1532_v56  ;;  %v17582_v54 = vcombine.high %v1536_v41, %v1540_v55  ;;  %v1548_v63 = vld [vmem:[#allocation7 + $0x1670] sm:$0xff] }
 0x469   :  { %8253 = vmatprep.mubr.bf16.mxu1 %v20056_v25  ;;  %7879 = vmatprep.subr.bf16.mxu0 %v17526_v0  ;;  %v17541_v25 = vcombine.low %v1496_v46, %v1500_v2  ;;  %v17575_v0 = vcombine.low %v1529_v3, %v1533_v27  ;;  %v1552_v2 = vld [vmem:[#allocation7 + $0x1690] sm:$0xff]  ;;  %v1585_v27 = vld [vmem:[#allocation7 + $0x1798] sm:$0xff] }
 0x46a   :  { %8223 = vmatprep.subr.bf16.mxu1 %v17528_v36  ;;  %v1544_v36 = vld [vmem:[#allocation7 + $0x1650] sm:$0xff] }
 0x46b   :  { %7880 = vmatpush1.bf16.msra.mxu0 %v17525_v23  ;;  %v1549_v23 = vld [vmem:[#allocation7 + $0x1678] sm:$0xff]  ;;  %v1584_v56 = vld [vmem:[#allocation7 + $0x1790] sm:$0xff] }
 0x46c   :  { %8224 = vmatpush1.bf16.msra.mxu1 %v17527_v8  ;;  %7881 = vmatprep.subr.bf16.mxu0 %v17534_v33  ;;  %v17581_v8 = vcombine.low %v1536_v41, %v1540_v55  ;;  %v17583_v33 = vcombine.low %v1537_v15, %v1541_v48  ;;  %v17592_v46 = vcombine.high %v1545_v42, %v1549_v23  ;;  %v1588_v3 = vld [vmem:[#allocation7 + $0x17b0] sm:$0xff]  ;;  %v1593_v48 = vld [vmem:[#allocation7 + $0x17d8] sm:$0xff] }
 0x46d   :  { %8225 = vmatprep.subr.bf16.mxu1 %v17536_v32  ;;  %v17590_v32 = vcombine.high %v1544_v36, %v1548_v63  ;;  %v1592_v55 = vld [vmem:[#allocation7 + $0x17d0] sm:$0xff] }
 0x46e   :  { %v1596_v15 = vld [vmem:[#allocation7 + $0x17f0] sm:$0xff] }
 0x46f   :  { %7882 = vmatpush1.bf16.msra.mxu0 %v17533_v9  ;;  %v1557_v9 = vld [vmem:[#allocation7 + $0x16b8] sm:$0xff] }
 0x470   :  { %8226 = vmatpush1.bf16.msra.mxu1 %v17535_v7  ;;  %7883 = vmatprep.subr.bf16.mxu0 %v17542_v29  ;;  %v17589_v7 = vcombine.low %v1544_v36, %v1548_v63  ;;  %v17591_v29 = vcombine.low %v1545_v42, %v1549_v23  ;;  %v17600_v57 = vcombine.high %v1553_v4, %v1557_v9  ;;  %v1600_v63 = vld [vmem:[#allocation7 + $0x1810] sm:$0xff]  ;;  %v1601_v23 = vld [vmem:[#allocation7 + $0x1818] sm:$0xff] }
 0x471   :  { %8227 = vmatprep.subr.bf16.mxu1 %v17544_v51  ;;  %v17598_v51 = vcombine.high %v1552_v2, %v1556_v47  ;;  %v1604_v42 = vld [vmem:[#allocation7 + $0x1830] sm:$0xff] }
 0x473   :  { %7884 = vmatpush1.bf16.msra.mxu0 %v17541_v25  ;;  %v1565_v25 = vld [vmem:[#allocation7 + $0x16f8] sm:$0xff] }
 0x474   :  { %8228 = vmatpush1.bf16.msra.mxu1 %v17543_v6  ;;  %7885 = vmatprep.subr.bf16.mxu0 %v17550_v10  ;;  %v17597_v6 = vcombine.low %v1552_v2, %v1556_v47  ;;  %v17599_v10 = vcombine.low %v1553_v4, %v1557_v9  ;;  %v17608_v12 = vcombine.high %v1561_v1, %v1565_v25  ;;  %v1608_v47 = vld [vmem:[#allocation7 + $0x1850] sm:$0xff] }
 0x475   :  { %8229 = vmatprep.subr.bf16.mxu1 %v17552_v62  ;;  %v17606_v62 = vcombine.high %v1560_v31, %v1564_v53  ;;  %v1612_v4 = vld [vmem:[#allocation7 + $0x1870] sm:$0xff]  ;;  %v17645_v9 = vcombine.low %v1600_v63, %v1604_v42 }
 0x477   :  { %7886 = vmatpush1.bf16.msra.mxu0 %v17549_v11  ;;  %v1573_v11 = vld [vmem:[#allocation7 + $0x1738] sm:$0xff] }
 0x478   :  { %8230 = vmatpush1.bf16.msra.mxu1 %v17551_v24  ;;  %7887 = vmatprep.subr.bf16.mxu0 %v17558_v14  ;;  %v17605_v24 = vcombine.low %v1560_v31, %v1564_v53  ;;  %v17607_v14 = vcombine.low %v1561_v1, %v1565_v25  ;;  %v17616_v21 = vcombine.high %v1569_v22, %v1573_v11  ;;  %v1616_v31 = vld [vmem:[#allocation7 + $0x1890] sm:$0xff]  ;;  %v1617_v25 = vld [vmem:[#allocation7 + $0x1898] sm:$0xff] }
 0x479   :  { %8231 = vmatprep.subr.bf16.mxu1 %v17560_v13  ;;  %v17614_v13 = vcombine.high %v1568_v17, %v1572_v19  ;;  %v1620_v53 = vld [vmem:[#allocation7 + $0x18b0] sm:$0xff] }
 0x47b   :  { %7888 = vmatpush1.bf16.msra.mxu0 %v17557_v35  ;;  %v1581_v35 = vld [vmem:[#allocation7 + $0x1778] sm:$0xff] }
 0x47c   :  { %8232 = vmatpush1.bf16.msra.mxu1 %v17559_v58  ;;  %7889 = vmatprep.subr.bf16.mxu0 %v17566_v40  ;;  %v17613_v58 = vcombine.low %v1568_v17, %v1572_v19  ;;  %v17615_v40 = vcombine.low %v1569_v22, %v1573_v11  ;;  %v17624_v39 = vcombine.high %v1577_v34, %v1581_v35  ;;  %v1624_v19 = vld [vmem:[#allocation7 + $0x18d0] sm:$0xff]  ;;  %v1625_v11 = vld [vmem:[#allocation7 + $0x18d8] sm:$0xff] }
 0x47d   :  { %8233 = vmatprep.subr.bf16.mxu1 %v17568_v38  ;;  %v17622_v38 = vcombine.high %v1576_v26, %v1580_v28  ;;  %v1628_v22 = vld [vmem:[#allocation7 + $0x18f0] sm:$0xff] }
 0x47f   :  { %7890 = vmatpush1.bf16.msra.mxu0 %v17565_v43  ;;  %v1589_v43 = vld [vmem:[#allocation7 + $0x17b8] sm:$0xff] }
 0x480   :  { %8234 = vmatpush1.bf16.msra.mxu1 %v17567_v30  ;;  %7891 = vmatprep.subr.bf16.mxu0 %v17574_v44  ;;  %v17621_v30 = vcombine.low %v1576_v26, %v1580_v28  ;;  %v17623_v44 = vcombine.low %v1577_v34, %v1581_v35  ;;  %v17632_v41 = vcombine.high %v1585_v27, %v1589_v43  ;;  %v1632_v26 = vld [vmem:[#allocation7 + $0x1910] sm:$0xff]  ;;  %v1633_v34 = vld [vmem:[#allocation7 + $0x1918] sm:$0xff] }
 0x481   :  { %8235 = vmatprep.subr.bf16.mxu1 %v17576_v5  ;;  %v17630_v5 = vcombine.high %v1584_v56, %v1588_v3  ;;  %v1636_v28 = vld [vmem:[#allocation7 + $0x1930] sm:$0xff]  ;;  %v1637_v35 = vld [vmem:[#allocation7 + $0x1938] sm:$0xff] }
 0x483   :  { %7892 = vmatpush1.bf16.msra.mxu0 %v17573_v49  ;;  %v1597_v49 = vld [vmem:[#allocation7 + $0x17f8] sm:$0xff] }
 0x484   :  { %8236 = vmatpush1.bf16.msra.mxu1 %v17575_v0  ;;  %7893 = vmatprep.subr.bf16.mxu0 %v17582_v54  ;;  %v17629_v0 = vcombine.low %v1584_v56, %v1588_v3  ;;  %v17631_v54 = vcombine.low %v1585_v27, %v1589_v43  ;;  %v17640_v36 = vcombine.high %v1593_v48, %v1597_v49  ;;  %v1644_v56 = vld [vmem:[#allocation7 + $0x1970] sm:$0xff]  ;;  %v1641_v3 = vld [vmem:[#allocation7 + $0x1958] sm:$0xff] }
 0x485   :  { %8237 = vmatprep.subr.bf16.mxu1 %v17584_v59  ;;  %v17638_v59 = vcombine.high %v1592_v55, %v1596_v15  ;;  %v1645_v27 = vld [vmem:[#allocation7 + $0x1978] sm:$0xff]  ;;  %v17677_v43 = vcombine.low %v1632_v26, %v1636_v28 }
 0x487   :  { %7894 = vmatpush1.bf16.msra.mxu0 %v17581_v8  ;;  %v1605_v8 = vld [vmem:[#allocation7 + $0x1838] sm:$0xff] }
 0x488   :  { %8238 = vmatpush1.bf16.msra.mxu1 %v17583_v33  ;;  %7895 = vmatprep.subr.bf16.mxu0 %v17590_v32  ;;  %v17637_v33 = vcombine.low %v1592_v55, %v1596_v15  ;;  %v17639_v32 = vcombine.low %v1593_v48, %v1597_v49  ;;  %v17648_v2 = vcombine.high %v1601_v23, %v1605_v8  ;;  %v1652_v55 = vld [vmem:[#allocation7 + $0x19b0] sm:$0xff]  ;;  %v1649_v15 = vld [vmem:[#allocation7 + $0x1998] sm:$0xff] }
 0x489   :  { %8239 = vmatprep.subr.bf16.mxu1 %v17592_v46  ;;  %v17646_v46 = vcombine.high %v1600_v63, %v1604_v42  ;;  %v1653_v48 = vld [vmem:[#allocation7 + $0x19b8] sm:$0xff]  ;;  %v1660_v63 = vld [vmem:[#allocation7 + $0x19f0] sm:$0xff] }
 0x48a   :  { %v1657_v42 = vld [vmem:[#allocation7 + $0x19d8] sm:$0xff] }
 0x48b   :  { %7896 = vmatpush1.bf16.msra.mxu0 %v17589_v7  ;;  %v1609_v7 = vld [vmem:[#allocation7 + $0x1858] sm:$0xff] }
 0x48c   :  { %8240 = vmatpush1.bf16.msra.mxu1 %v17591_v29  ;;  %7897 = vmatprep.subr.bf16.mxu0 %v17598_v51  ;;  %v1613_v29 = vld [vmem:[#allocation7 + $0x1878] sm:$0xff]  ;;  %v17647_v51 = vcombine.low %v1601_v23, %v1605_v8 }
 0x48d   :  { %8241 = vmatprep.subr.bf16.mxu1 %v17600_v57  ;;  %v17654_v57 = vcombine.high %v1608_v47, %v1612_v4  ;;  %v17656_v1 = vcombine.high %v1609_v7, %v1613_v29  ;;  %v1661_v23 = vld [vmem:[#allocation7 + $0x19f8] sm:$0xff] }
 0x48f   :  { %7898 = vmatpush1.bf16.msra.mxu0 %v17597_v6  ;;  %v1621_v6 = vld [vmem:[#allocation7 + $0x18b8] sm:$0xff] }
 0x490   :  { %8242 = vmatpush1.bf16.msra.mxu1 %v17599_v10  ;;  %7899 = vmatprep.subr.bf16.mxu0 %v17606_v62  ;;  %v17653_v10 = vcombine.low %v1608_v47, %v1612_v4  ;;  %v17655_v62 = vcombine.low %v1609_v7, %v1613_v29  ;;  %v17664_v17 = vcombine.high %v1617_v25, %v1621_v6  ;;  %v1668_v47 = vld [vmem:[#allocation7 + $0x1a30] sm:$0xff]  ;;  %v1665_v4 = vld [vmem:[#allocation7 + $0x1a18] sm:$0xff] }
 0x491   :  { %8243 = vmatprep.subr.bf16.mxu1 %v17608_v12  ;;  %v17662_v12 = vcombine.high %v1616_v31, %v1620_v53  ;;  %v17703_v29 = vcombine.low %v1657_v42, %v1661_v23 }
 0x493   :  { %7900 = vmatpush1.bf16.msra.mxu0 %v17605_v24  ;;  %v1629_v24 = vld [vmem:[#allocation7 + $0x18f8] sm:$0xff] }
 0x494   :  { %8244 = vmatpush1.bf16.msra.mxu1 %v17607_v14  ;;  %7901 = vmatprep.subr.bf16.mxu0 %v17614_v13  ;;  %v17661_v14 = vcombine.low %v1616_v31, %v1620_v53  ;;  %v17670_v13 = vcombine.high %v1624_v19, %v1628_v22  ;;  %v1672_v31 = vld [vmem:[#allocation7 + $0x1a50] sm:$0xff] }
 0x495   :  { %8245 = vmatprep.subr.bf16.mxu1 %v17616_v21  ;;  %v17672_v21 = vcombine.high %v1625_v11, %v1629_v24  ;;  %v1676_v53 = vld [vmem:[#allocation7 + $0x1a70] sm:$0xff] }
 0x497   :  { %7902 = vmatpush1.bf16.msra.mxu0 %v17613_v58  ;;  %v17671_v58 = vcombine.low %v1625_v11, %v1629_v24  ;;  %v1685_v11 = vld [vmem:[#allocation7 + $0x1ab8] sm:$0xff]  ;;  %v17717_v24 = vcombine.low %v1672_v31, %v1676_v53 }
 0x498   :  { %8246 = vmatpush1.bf16.msra.mxu1 %v17615_v40  ;;  %7903 = vmatprep.subr.bf16.mxu0 %v17622_v38  ;;  %v17678_v40 = vcombine.high %v1632_v26, %v1636_v28  ;;  %v17680_v38 = vcombine.high %v1633_v34, %v1637_v35  ;;  %v1692_v26 = vld [vmem:[#allocation7 + $0x1af0] sm:$0xff]  ;;  %v1689_v28 = vld [vmem:[#allocation7 + $0x1ad8] sm:$0xff] }
 0x499   :  { %8247 = vmatprep.subr.bf16.mxu1 %v17624_v39  ;;  %v1640_v39 = vld [vmem:[#allocation7 + $0x1950] sm:$0xff] }
 0x49a   :  { %v17685_v49 = vcombine.low %v1640_v39, %v1644_v56 }
 0x49b   :  { %7904 = vmatpush1.bf16.msra.mxu0 %v17621_v30  ;;  %v17679_v30 = vcombine.low %v1633_v34, %v1637_v35  ;;  %v1693_v34 = vld [vmem:[#allocation7 + $0x1af8] sm:$0xff] }
 0x49c   :  { %8248 = vmatpush1.bf16.msra.mxu1 %v17623_v44  ;;  %7905 = vmatprep.subr.bf16.mxu0 %v17630_v5  ;;  %v17686_v44 = vcombine.high %v1640_v39, %v1644_v56  ;;  %v17688_v5 = vcombine.high %v1641_v3, %v1645_v27  ;;  %v1700_v39 = vld [vmem:[#allocation7 + $0x1b30] sm:$0xff]  ;;  %v1697_v56 = vld [vmem:[#allocation7 + $0x1b18] sm:$0xff] }
 0x49d   :  { %8249 = vmatprep.subr.bf16.mxu1 %v17632_v41  ;;  %v1648_v41 = vld [vmem:[#allocation7 + $0x1990] sm:$0xff] }
 0x49e   :  { %v17693_v8 = vcombine.low %v1648_v41, %v1652_v55 }
 0x49f   :  { %7906 = vmatpush1.bf16.msra.mxu0 %v17629_v0  ;;  %v17687_v0 = vcombine.low %v1641_v3, %v1645_v27  ;;  %v1701_v3 = vld [vmem:[#allocation7 + $0x1b38] sm:$0xff] }
 0x4a0   :  { %8250 = vmatpush1.bf16.msra.mxu1 %v17631_v54  ;;  %7907 = vmatprep.subr.bf16.mxu0 %v17638_v59  ;;  %v17694_v54 = vcombine.high %v1648_v41, %v1652_v55  ;;  %v17696_v59 = vcombine.high %v1649_v15, %v1653_v48  ;;  %v1708_v41 = vld [vmem:[#allocation7 + $0x1b70] sm:$0xff]  ;;  %v1705_v55 = vld [vmem:[#allocation7 + $0x1b58] sm:$0xff] }
 0x4a1   :  { %8251 = vmatprep.subr.bf16.mxu1 %v17640_v36  ;;  %v1656_v36 = vld [vmem:[#allocation7 + $0x19d0] sm:$0xff] }
 0x4a2   :  { %v17701_v7 = vcombine.low %v1656_v36, %v1660_v63 }
 0x4a3   :  { %7908 = vmatpush1.bf16.msra.mxu0 %v17637_v33  ;;  %v17695_v33 = vcombine.low %v1649_v15, %v1653_v48  ;;  %v1709_v15 = vld [vmem:[#allocation7 + $0x1b78] sm:$0xff] }
 0x4a4   :  { %8252 = vmatpush1.bf16.msra.mxu1 %v17639_v32  ;;  %7920 = vmatprep.subr.bf16.mxu0 %v17646_v46  ;;  %v17702_v32 = vcombine.high %v1656_v36, %v1660_v63  ;;  %v17704_v46 = vcombine.high %v1657_v42, %v1661_v23  ;;  %v1716_v36 = vld [vmem:[#allocation7 + $0x1bb0] sm:$0xff]  ;;  %v1713_v63 = vld [vmem:[#allocation7 + $0x1b98] sm:$0xff] }
 0x4a5   :  { %8264 = vmatprep.subr.bf16.mxu1 %v17648_v2  ;;  %v1664_v2 = vld [vmem:[#allocation7 + $0x1a10] sm:$0xff]  ;;  %v1717_v42 = vld [vmem:[#allocation7 + $0x1bb8] sm:$0xff] }
 0x4a6   :  { %7910 = vmatmul.mubr.bf16.vlgmr.msra.gmra.mrb[20].mxu0 %v20054_v60 }
 0x4a7   :  { %8254 = vmatmul.mubr.bf16.vlgmr.msra.gmra.mrb[20].mxu1 %v20054_v60  ;;  %7921 = vmatpush1.bf16.msra.mxu0 %v17645_v9  ;;  %v17663_v60 = vcombine.low %v1617_v25, %v1621_v6  ;;  %v1669_v9 = vld [vmem:[#allocation7 + $0x1a38] sm:$0xff]  ;;  %v17709_v6 = vcombine.low %v1664_v2, %v1668_v47 }
 0x4a8   :  { %7952 = vmatprep.mubr.bf16.mxu0 %v20012_v52  ;;  %8265 = vmatpush1.bf16.msra.mxu1 %v17647_v51  ;;  %v17710_v51 = vcombine.high %v1664_v2, %v1668_v47  ;;  %v1677_v25 = vld [vmem:[#allocation7 + $0x1a78] sm:$0xff]  ;;  %v1724_v2 = vld [vmem:[#allocation7 + $0x1bf0] sm:$0xff] }
 0x4a9   :  { %8296 = vmatprep.mubr.bf16.mxu1 %v20012_v52  ;;  %7922 = vmatprep.subr.bf16.mxu0 %v17654_v57  ;;  %v17669_v52 = vcombine.low %v1624_v19, %v1628_v22  ;;  %v17712_v57 = vcombine.high %v1665_v4, %v1669_v9  ;;  %v1684_v19 = vld [vmem:[#allocation7 + $0x1ab0] sm:$0xff]  ;;  %v1681_v22 = vld [vmem:[#allocation7 + $0x1a98] sm:$0xff] }
 0x4aa   :  { %8266 = vmatprep.subr.bf16.mxu1 %v17656_v1  ;;  %v1673_v1 = vld [vmem:[#allocation7 + $0x1a58] sm:$0xff] }
 0x4ab   :  { %7923 = vmatpush1.bf16.msra.mxu0 %v17653_v10  ;;  %v17711_v10 = vcombine.low %v1665_v4, %v1669_v9  ;;  %v1721_v47 = vld [vmem:[#allocation7 + $0x1bd8] sm:$0xff] }
 0x4ac   :  { %8267 = vmatpush1.bf16.msra.mxu1 %v17655_v62  ;;  %7924 = vmatprep.subr.bf16.mxu0 %v17662_v12  ;;  %v17718_v62 = vcombine.high %v1672_v31, %v1676_v53  ;;  %v17720_v12 = vcombine.high %v1673_v1, %v1677_v25  ;;  %v1725_v4 = vld [vmem:[#allocation7 + $0x1bf8] sm:$0xff]  ;;  %v1732_v31 = vld [vmem:[#allocation7 + $0x1c30] sm:$0xff] }
 0x4ad   :  { %8268 = vmatprep.subr.bf16.mxu1 %v17664_v17  ;;  %v1680_v17 = vld [vmem:[#allocation7 + $0x1a90] sm:$0xff]  ;;  %v1729_v53 = vld [vmem:[#allocation7 + $0x1c18] sm:$0xff] }
 0x4ae   :  { %v17725_v35 = vcombine.low %v1680_v17, %v1684_v19 }
 0x4af   :  { %7925 = vmatpush1.bf16.msra.mxu0 %v17661_v14  ;;  %v17719_v14 = vcombine.low %v1673_v1, %v1677_v25  ;;  %v1733_v1 = vld [vmem:[#allocation7 + $0x1c38] sm:$0xff] }
 0x4b0   :  { %8269 = vmatpush1.bf16.msra.mxu1 %v17663_v60  ;;  %7926 = vmatprep.subr.bf16.mxu0 %v17670_v13  ;;  %v17726_v60 = vcombine.high %v1680_v17, %v1684_v19  ;;  %v17728_v13 = vcombine.high %v1681_v22, %v1685_v11  ;;  %v1740_v17 = vld [vmem:[#allocation7 + $0x1c70] sm:$0xff] }
 0x4b1   :  { %8270 = vmatprep.subr.bf16.mxu1 %v17672_v21  ;;  %v1688_v21 = vld [vmem:[#allocation7 + $0x1ad0] sm:$0xff] }
 0x4b2   :  { %v17733_v27 = vcombine.low %v1688_v21, %v1692_v26 }
 0x4b3   :  { %7927 = vmatpush1.bf16.msra.mxu0 %v17669_v52  ;;  %v17727_v52 = vcombine.low %v1681_v22, %v1685_v11  ;;  %v1737_v22 = vld [vmem:[#allocation7 + $0x1c58] sm:$0xff] }
 0x4b4   :  { %8271 = vmatpush1.bf16.msra.mxu1 %v17671_v58  ;;  %7928 = vmatprep.subr.bf16.mxu0 %v17678_v40  ;;  %v17734_v58 = vcombine.high %v1688_v21, %v1692_v26  ;;  %v17736_v40 = vcombine.high %v1689_v28, %v1693_v34  ;;  %v1741_v11 = vld [vmem:[#allocation7 + $0x1c78] sm:$0xff] }
 0x4b5   :  { %8272 = vmatprep.subr.bf16.mxu1 %v17680_v38  ;;  %v1696_v38 = vld [vmem:[#allocation7 + $0x1b10] sm:$0xff]  ;;  %v17784_v21 = vcombine.high %v1737_v22, %v1741_v11  ;;  %v1745_v26 = vld [vmem:[#allocation7 + $0x1c98] sm:$0xff] }
 0x4b6   :  { %v17741_v48 = vcombine.low %v1696_v38, %v1700_v39 }
 0x4b7   :  { %7929 = vmatpush1.bf16.msra.mxu0 %v17677_v43  ;;  %v17735_v43 = vcombine.low %v1689_v28, %v1693_v34  ;;  %v1749_v28 = vld [vmem:[#allocation7 + $0x1cb8] sm:$0xff] }
 0x4b8   :  { %8273 = vmatpush1.bf16.msra.mxu1 %v17679_v30  ;;  %7930 = vmatprep.subr.bf16.mxu0 %v17686_v44  ;;  %v17742_v30 = vcombine.high %v1696_v38, %v1700_v39  ;;  %v17744_v44 = vcombine.high %v1697_v56, %v1701_v3  ;;  %v1756_v38 = vld [vmem:[#allocation7 + $0x1cf0] sm:$0xff]  ;;  %v1753_v39 = vld [vmem:[#allocation7 + $0x1cd8] sm:$0xff] }
 0x4b9   :  { %8274 = vmatprep.subr.bf16.mxu1 %v17688_v5  ;;  %v1704_v5 = vld [vmem:[#allocation7 + $0x1b50] sm:$0xff] }
 0x4ba   :  { %v17749_v23 = vcombine.low %v1704_v5, %v1708_v41 }
 0x4bb   :  { %7931 = vmatpush1.bf16.msra.mxu0 %v17685_v49  ;;  %v17743_v49 = vcombine.low %v1697_v56, %v1701_v3  ;;  %v1757_v56 = vld [vmem:[#allocation7 + $0x1cf8] sm:$0xff] }
 0x4bc   :  { %8275 = vmatpush1.bf16.msra.mxu1 %v17687_v0  ;;  %7932 = vmatprep.subr.bf16.mxu0 %v17694_v54  ;;  %v17750_v0 = vcombine.high %v1704_v5, %v1708_v41  ;;  %v17752_v54 = vcombine.high %v1705_v55, %v1709_v15  ;;  %v1761_v5 = vld [vmem:[#allocation7 + $0x1d18] sm:$0xff] }
 0x4bd   :  { %8276 = vmatprep.subr.bf16.mxu1 %v17696_v59  ;;  %v1712_v59 = vld [vmem:[#allocation7 + $0x1b90] sm:$0xff]  ;;  %v1765_v41 = vld [vmem:[#allocation7 + $0x1d38] sm:$0xff] }
 0x4be   :  { %v17757_v9 = vcombine.low %v1712_v59, %v1716_v36 }
 0x4bf   :  { %7933 = vmatpush1.bf16.msra.mxu0 %v17693_v8  ;;  %v17751_v8 = vcombine.low %v1705_v55, %v1709_v15  ;;  %v17799_v55 = vcombine.low %v1753_v39, %v1757_v56 }
 0x4c0   :  { %8277 = vmatpush1.bf16.msra.mxu1 %v17695_v33  ;;  %7934 = vmatprep.subr.bf16.mxu0 %v17702_v32  ;;  %v17758_v33 = vcombine.high %v1712_v59, %v1716_v36  ;;  %v17760_v32 = vcombine.high %v1713_v63, %v1717_v42  ;;  %v1773_v59 = vld [vmem:[#allocation7 + $0x1d78] sm:$0xff] }
 0x4c1   :  { %8278 = vmatprep.subr.bf16.mxu1 %v17704_v46  ;;  %v1720_v46 = vld [vmem:[#allocation7 + $0x1bd0] sm:$0xff] }
 0x4c2   :  { %v17765_v25 = vcombine.low %v1720_v46, %v1724_v2 }
 0x4c3   :  { %7935 = vmatpush1.bf16.msra.mxu0 %v17701_v7  ;;  %v17759_v7 = vcombine.low %v1713_v63, %v1717_v42  ;;  %v17807_v63 = vcombine.low %v1761_v5, %v1765_v41 }
 0x4c4   :  { %8279 = vmatpush1.bf16.msra.mxu1 %v17703_v29  ;;  %7936 = vmatprep.subr.bf16.mxu0 %v17710_v51  ;;  %v17766_v29 = vcombine.high %v1720_v46, %v1724_v2  ;;  %v17768_v51 = vcombine.high %v1721_v47, %v1725_v4  ;;  %v1781_v46 = vld [vmem:[#allocation7 + $0x1db8] sm:$0xff] }
 0x4c5   :  { %8280 = vmatprep.subr.bf16.mxu1 %v17712_v57  ;;  %v1728_v57 = vld [vmem:[#allocation7 + $0x1c10] sm:$0xff] }
 0x4c6   :  { %v17773_v19 = vcombine.low %v1728_v57, %v1732_v31 }
 0x4c7   :  { %7937 = vmatpush1.bf16.msra.mxu0 %v17709_v6  ;;  %v17767_v6 = vcombine.low %v1721_v47, %v1725_v4 }
 0x4c8   :  { %8281 = vmatpush1.bf16.msra.mxu1 %v17711_v10  ;;  %7938 = vmatprep.subr.bf16.mxu0 %v17718_v62  ;;  %v17774_v10 = vcombine.high %v1728_v57, %v1732_v31  ;;  %v17776_v62 = vcombine.high %v1729_v53, %v1733_v1  ;;  %v1789_v57 = vld [vmem:[#allocation7 + $0x1df8] sm:$0xff] }
 0x4c9   :  { %8282 = vmatprep.subr.bf16.mxu1 %v17720_v12  ;;  %v1736_v12 = vld [vmem:[#allocation7 + $0x1c50] sm:$0xff] }
 0x4ca   :  { %v17781_v34 = vcombine.low %v1736_v12, %v1740_v17 }
 0x4cb   :  { %7939 = vmatpush1.bf16.msra.mxu0 %v17717_v24  ;;  %v17775_v24 = vcombine.low %v1729_v53, %v1733_v1 }
 0x4cc   :  { %8283 = vmatpush1.bf16.msra.mxu1 %v17719_v14  ;;  %7940 = vmatprep.subr.bf16.mxu0 %v17726_v60  ;;  %v17782_v14 = vcombine.high %v1736_v12, %v1740_v17  ;;  %v1744_v60 = vld [vmem:[#allocation7 + $0x1c90] sm:$0xff]  ;;  %v1797_v12 = vld [vmem:[#allocation7 + $0x1e38] sm:$0xff] }
 0x4cd   :  { %8284 = vmatprep.subr.bf16.mxu1 %v17728_v13  ;;  %v1748_v13 = vld [vmem:[#allocation7 + $0x1cb0] sm:$0xff] }
 0x4ce   :  { %v17789_v3 = vcombine.low %v1744_v60, %v1748_v13 }
 0x4cf   :  { %7941 = vmatpush1.bf16.msra.mxu0 %v17725_v35  ;;  %v17783_v35 = vcombine.low %v1737_v22, %v1741_v11 }
 0x4d0   :  { %8285 = vmatpush1.bf16.msra.mxu1 %v17727_v52  ;;  %7942 = vmatprep.subr.bf16.mxu0 %v17734_v58  ;;  %v17790_v52 = vcombine.high %v1744_v60, %v1748_v13  ;;  %v17792_v58 = vcombine.high %v1745_v26, %v1749_v28  ;;  %v1801_v60 = vld [vmem:[#allocation7 + $0x1e58] sm:$0xff] }
 0x4d1   :  { %8286 = vmatprep.subr.bf16.mxu1 %v17736_v40  ;;  %v1752_v40 = vld [vmem:[#allocation7 + $0x1cd0] sm:$0xff]  ;;  %v1805_v13 = vld [vmem:[#allocation7 + $0x1e78] sm:$0xff] }
 0x4d3   :  { %7943 = vmatpush1.bf16.msra.mxu0 %v17733_v27  ;;  %v17798_v27 = vcombine.high %v1752_v40, %v1756_v38 }
 0x4d4   :  { %8287 = vmatpush1.bf16.msra.mxu1 %v17735_v43  ;;  %7944 = vmatprep.subr.bf16.mxu0 %v17742_v30  ;;  %v17800_v43 = vcombine.high %v1753_v39, %v1757_v56  ;;  %v1760_v30 = vld [vmem:[#allocation7 + $0x1d10] sm:$0xff]  ;;  %v17847_v39 = vcombine.low %v1801_v60, %v1805_v13 }
 0x4d5   :  { %8288 = vmatprep.subr.bf16.mxu1 %v17744_v44  ;;  %v1764_v44 = vld [vmem:[#allocation7 + $0x1d30] sm:$0xff] }
 0x4d6   :  { %v17806_v15 = vcombine.high %v1760_v30, %v1764_v44  ;;  %v17805_v36 = vcombine.low %v1760_v30, %v1764_v44  ;;  %v1821_v30 = vld [vmem:[#allocation7 + $0x1ef8] sm:$0xff] }
 0x4d7   :  { %7945 = vmatpush1.bf16.msra.mxu0 %v17741_v48  ;;  %v17808_v48 = vcombine.high %v1761_v5, %v1765_v41 }
 0x4d8   :  { %8289 = vmatpush1.bf16.msra.mxu1 %v17743_v49  ;;  %7946 = vmatprep.subr.bf16.mxu0 %v17750_v0  ;;  %v1768_v49 = vld [vmem:[#allocation7 + $0x1d50] sm:$0xff] }
 0x4d9   :  { %8290 = vmatprep.subr.bf16.mxu1 %v17752_v54  ;;  %v1772_v0 = vld [vmem:[#allocation7 + $0x1d70] sm:$0xff]  ;;  %v1769_v54 = vld [vmem:[#allocation7 + $0x1d58] sm:$0xff] }
 0x4da   :  { %v17814_v42 = vcombine.high %v1768_v49, %v1772_v0  ;;  %v17813_v2 = vcombine.low %v1768_v49, %v1772_v0  ;;  %v17815_v47 = vcombine.low %v1769_v54, %v1773_v59  ;;  %v1829_v49 = vld [vmem:[#allocation7 + $0x1f38] sm:$0xff] }
 0x4db   :  { %7947 = vmatpush1.bf16.msra.mxu0 %v17749_v23  ;;  %v17816_v23 = vcombine.high %v1769_v54, %v1773_v59 }
 0x4dc   :  { %8291 = vmatpush1.bf16.msra.mxu1 %v17751_v8  ;;  %7948 = vmatprep.subr.bf16.mxu0 %v17758_v33  ;;  %v1776_v8 = vld [vmem:[#allocation7 + $0x1d90] sm:$0xff] }
 0x4dd   :  { %8292 = vmatprep.subr.bf16.mxu1 %v17760_v32  ;;  %v1780_v33 = vld [vmem:[#allocation7 + $0x1db0] sm:$0xff]  ;;  %v1777_v32 = vld [vmem:[#allocation7 + $0x1d98] sm:$0xff] }
 0x4de   :  { %v17822_v4 = vcombine.high %v1776_v8, %v1780_v33  ;;  %v17821_v31 = vcombine.low %v1776_v8, %v1780_v33  ;;  %v17823_v53 = vcombine.low %v1777_v32, %v1781_v46  ;;  %v1837_v8 = vld [vmem:[#allocation7 + $0x1f78] sm:$0xff] }
 0x4df   :  { %7949 = vmatpush1.bf16.msra.mxu0 %v17757_v9  ;;  %v17824_v9 = vcombine.high %v1777_v32, %v1781_v46 }
 0x4e0   :  { %8293 = vmatpush1.bf16.msra.mxu1 %v17759_v7  ;;  %7950 = vmatprep.subr.bf16.mxu0 %v17766_v29  ;;  %v1784_v7 = vld [vmem:[#allocation7 + $0x1dd0] sm:$0xff] }
 0x4e1   :  { %8294 = vmatprep.subr.bf16.mxu1 %v17768_v51  ;;  %v1788_v29 = vld [vmem:[#allocation7 + $0x1df0] sm:$0xff]  ;;  %v1785_v51 = vld [vmem:[#allocation7 + $0x1dd8] sm:$0xff] }
 0x4e2   :  { %v17830_v1 = vcombine.high %v1784_v7, %v1788_v29  ;;  %v17829_v17 = vcombine.low %v1784_v7, %v1788_v29  ;;  %v1845_v7 = vld [vmem:[#allocation7 + $0x1fb8] sm:$0xff] }
 0x4e3   :  { %7951 = vmatpush1.bf16.msra.mxu0 %v17765_v25  ;;  %v17832_v25 = vcombine.high %v1785_v51, %v1789_v57 }
 0x4e4   :  { %8295 = vmatpush1.bf16.msra.mxu1 %v17767_v6  ;;  %7963 = vmatprep.subr.bf16.mxu0 %v17774_v10  ;;  %v1792_v6 = vld [vmem:[#allocation7 + $0x1e10] sm:$0xff] }
 0x4e5   :  { %8307 = vmatprep.subr.bf16.mxu1 %v17776_v62  ;;  %v1796_v10 = vld [vmem:[#allocation7 + $0x1e30] sm:$0xff]  ;;  %v1793_v62 = vld [vmem:[#allocation7 + $0x1e18] sm:$0xff] }
 0x4e6   :  { %7953 = vmatmul.mubr.bf16.vlgmr.msra.gmra.mrb[20].mxu0 %v20010_v20  ;;  %v17838_v22 = vcombine.high %v1792_v6, %v1796_v10  ;;  %v17840_v11 = vcombine.high %v1793_v62, %v1797_v12 }
 0x4e7   :  { %8297 = vmatmul.mubr.bf16.vlgmr.msra.gmra.mrb[20].mxu1 %v20010_v20  ;;  %7964 = vmatpush1.bf16.msra.mxu0 %v17773_v19  ;;  %v17791_v20 = vcombine.low %v1745_v26, %v1749_v28  ;;  %v17831_v19 = vcombine.low %v1785_v51, %v1789_v57  ;;  %v17839_v26 = vcombine.low %v1793_v62, %v1797_v12 }
 0x4e8   :  { %7995 = vmatprep.mubr.bf16.mxu0 %v20064_v50  ;;  %8308 = vmatpush1.bf16.msra.mxu1 %v17775_v24  ;;  %v1800_v24 = vld [vmem:[#allocation7 + $0x1e50] sm:$0xff] }
 0x4e9   :  { %8339 = vmatprep.mubr.bf16.mxu1 %v20064_v50  ;;  %7965 = vmatprep.subr.bf16.mxu0 %v17782_v14  ;;  %v17797_v50 = vcombine.low %v1752_v40, %v1756_v38  ;;  %v1804_v14 = vld [vmem:[#allocation7 + $0x1e70] sm:$0xff]  ;;  %v1813_v40 = vld [vmem:[#allocation7 + $0x1eb8] sm:$0xff] }
 0x4ea   :  { %8309 = vmatprep.subr.bf16.mxu1 %v17784_v21  ;;  %v17837_v21 = vcombine.low %v1792_v6, %v1796_v10  ;;  %v17846_v28 = vcombine.high %v1800_v24, %v1804_v14  ;;  %v17845_v38 = vcombine.low %v1800_v24, %v1804_v14  ;;  %v1853_v6 = vld [vmem:[#allocation7 + $0x1ff8] sm:$0xff]  ;;  %v8443_v24 = vld [vmem:[#allocation8 + $0x28] sm:$0xff] }
 0x4eb   :  { %7966 = vmatpush1.bf16.msra.mxu0 %v17781_v34  ;;  %v17848_v34 = vcombine.high %v1801_v60, %v1805_v13 }
 0x4ec   :  { %8310 = vmatpush1.bf16.msra.mxu1 %v17783_v35  ;;  %7967 = vmatprep.subr.bf16.mxu0 %v17790_v52  ;;  %v1808_v35 = vld [vmem:[#allocation7 + $0x1e90] sm:$0xff] }
 0x4ed   :  { %8311 = vmatprep.subr.bf16.mxu1 %v17792_v58  ;;  %v1812_v52 = vld [vmem:[#allocation7 + $0x1eb0] sm:$0xff]  ;;  %v1809_v58 = vld [vmem:[#allocation7 + $0x1e98] sm:$0xff] }
 0x4ee   :  { %v17854_v56 = vcombine.high %v1808_v35, %v1812_v52  ;;  %v17853_v44 = vcombine.low %v1808_v35, %v1812_v52  ;;  %v17855_v5 = vcombine.low %v1809_v58, %v1813_v40  ;;  %v8447_v35 = vld [vmem:[#allocation8 + $0x48] sm:$0xff] }
 0x4ef   :  { %7968 = vmatpush1.bf16.msra.mxu0 %v17789_v3  ;;  %v17856_v3 = vcombine.high %v1809_v58, %v1813_v40  ;;  %v8451_v52 = vld [vmem:[#allocation8 + $0x68] sm:$0xff] }
 0x4f0   :  { %8312 = vmatpush1.bf16.msra.mxu1 %v17791_v20  ;;  %7969 = vmatprep.subr.bf16.mxu0 %v17798_v27  ;;  %v1816_v20 = vld [vmem:[#allocation7 + $0x1ed0] sm:$0xff] }
 0x4f1   :  { %8313 = vmatprep.subr.bf16.mxu1 %v17800_v43  ;;  %v1820_v27 = vld [vmem:[#allocation7 + $0x1ef0] sm:$0xff]  ;;  %v1817_v43 = vld [vmem:[#allocation7 + $0x1ed8] sm:$0xff] }
 0x4f2   :  { %v17862_v41 = vcombine.high %v1816_v20, %v1820_v27  ;;  %v17861_v0 = vcombine.low %v1816_v20, %v1820_v27  ;;  %v17863_v54 = vcombine.low %v1817_v43, %v1821_v30  ;;  %v8459_v20 = vld [vmem:[#allocation8 + $0xa8] sm:$0xff] }
 0x4f3   :  { %7970 = vmatpush1.bf16.msra.mxu0 %v17797_v50  ;;  %v17864_v50 = vcombine.high %v1817_v43, %v1821_v30  ;;  %v17907_v43 = vcombine.low %v8447_v35, %v8451_v52 }
 0x4f4   :  { %8314 = vmatpush1.bf16.msra.mxu1 %v17799_v55  ;;  %7971 = vmatprep.subr.bf16.mxu0 %v17806_v15  ;;  %v1824_v55 = vld [vmem:[#allocation7 + $0x1f10] sm:$0xff] }
 0x4f5   :  { %8315 = vmatprep.subr.bf16.mxu1 %v17808_v48  ;;  %v1828_v15 = vld [vmem:[#allocation7 + $0x1f30] sm:$0xff]  ;;  %v1825_v48 = vld [vmem:[#allocation7 + $0x1f18] sm:$0xff] }
 0x4f6   :  { %v17870_v59 = vcombine.high %v1824_v55, %v1828_v15  ;;  %v17869_v33 = vcombine.low %v1824_v55, %v1828_v15  ;;  %v17871_v32 = vcombine.low %v1825_v48, %v1829_v49  ;;  %v8467_v55 = vld [vmem:[#allocation8 + $0xe8] sm:$0xff] }
 0x4f7   :  { %7972 = vmatpush1.bf16.msra.mxu0 %v17805_v36  ;;  %v17872_v36 = vcombine.high %v1825_v48, %v1829_v49 }
 0x4f8   :  { %8316 = vmatpush1.bf16.msra.mxu1 %v17807_v63  ;;  %7973 = vmatprep.subr.bf16.mxu0 %v17814_v42  ;;  %v1832_v63 = vld [vmem:[#allocation7 + $0x1f50] sm:$0xff] }
 0x4f9   :  { %8317 = vmatprep.subr.bf16.mxu1 %v17816_v23  ;;  %v1836_v42 = vld [vmem:[#allocation7 + $0x1f70] sm:$0xff]  ;;  %v1833_v23 = vld [vmem:[#allocation7 + $0x1f58] sm:$0xff] }
 0x4fa   :  { %v17878_v46 = vcombine.high %v1832_v63, %v1836_v42  ;;  %v17877_v29 = vcombine.low %v1832_v63, %v1836_v42  ;;  %v17879_v51 = vcombine.low %v1833_v23, %v1837_v8 }
 0x4fb   :  { %7974 = vmatpush1.bf16.msra.mxu0 %v17813_v2  ;;  %v17880_v2 = vcombine.high %v1833_v23, %v1837_v8 }
 0x4fc   :  { %8318 = vmatpush1.bf16.msra.mxu1 %v17815_v47  ;;  %7975 = vmatprep.subr.bf16.mxu0 %v17822_v4  ;;  %v1840_v47 = vld [vmem:[#allocation7 + $0x1f90] sm:$0xff] }
 0x4fd   :  { %8319 = vmatprep.subr.bf16.mxu1 %v17824_v9  ;;  %v1844_v4 = vld [vmem:[#allocation7 + $0x1fb0] sm:$0xff]  ;;  %v1841_v9 = vld [vmem:[#allocation7 + $0x1f98] sm:$0xff] }
 0x4fe   :  { %v17886_v57 = vcombine.high %v1840_v47, %v1844_v4  ;;  %v17885_v10 = vcombine.low %v1840_v47, %v1844_v4  ;;  %v17887_v62 = vcombine.low %v1841_v9, %v1845_v7 }
 0x4ff   :  { %7976 = vmatpush1.bf16.msra.mxu0 %v17821_v31  ;;  %v17888_v31 = vcombine.high %v1841_v9, %v1845_v7 }
 0x500   :  { %8320 = vmatpush1.bf16.msra.mxu1 %v17823_v53  ;;  %7977 = vmatprep.subr.bf16.mxu0 %v17830_v1  ;;  %v1848_v53 = vld [vmem:[#allocation7 + $0x1fd0] sm:$0xff] }
 0x501   :  { %8321 = vmatprep.subr.bf16.mxu1 %v17832_v25  ;;  %v1852_v1 = vld [vmem:[#allocation7 + $0x1ff0] sm:$0xff]  ;;  %v1849_v25 = vld [vmem:[#allocation7 + $0x1fd8] sm:$0xff] }
 0x502   :  { %v17894_v12 = vcombine.high %v1848_v53, %v1852_v1  ;;  %v17893_v14 = vcombine.low %v1848_v53, %v1852_v1  ;;  %v17895_v60 = vcombine.low %v1849_v25, %v1853_v6 }
 0x503   :  { %7978 = vmatpush1.bf16.msra.mxu0 %v17829_v17  ;;  %v17896_v17 = vcombine.high %v1849_v25, %v1853_v6 }
 0x504   :  { %8322 = vmatpush1.bf16.msra.mxu1 %v17831_v19  ;;  %7979 = vmatprep.subr.bf16.mxu0 %v17838_v22  ;;  %v8438_v19 = vld [vmem:[#allocation8] sm:$0xff] }
 0x505   :  { %8323 = vmatprep.subr.bf16.mxu1 %v17840_v11  ;;  %v8442_v22 = vld [vmem:[#allocation8 + $0x20] sm:$0xff]  ;;  %v8439_v11 = vld [vmem:[#allocation8 + $0x8] sm:$0xff] }
 0x506   :  { %v17898_v13 = vcombine.high %v8438_v19, %v8442_v22  ;;  %v17899_v58 = vcombine.low %v8439_v11, %v8443_v24 }
 0x507   :  { %7980 = vmatpush1.bf16.msra.mxu0 %v17837_v21  ;;  %v17900_v21 = vcombine.high %v8439_v11, %v8443_v24 }
 0x508   :  { %8324 = vmatpush1.bf16.msra.mxu1 %v17839_v26  ;;  %7981 = vmatprep.subr.bf16.mxu0 %v17846_v28  ;;  %v8446_v26 = vld [vmem:[#allocation8 + $0x40] sm:$0xff] }
 0x509   :  { %8325 = vmatprep.subr.bf16.mxu1 %v17848_v34  ;;  %v8450_v28 = vld [vmem:[#allocation8 + $0x60] sm:$0xff]  ;;  %v17897_v34 = vcombine.low %v8438_v19, %v8442_v22 }
 0x50a   :  { %v17906_v40 = vcombine.high %v8446_v26, %v8450_v28  ;;  %v17905_v27 = vcombine.low %v8446_v26, %v8450_v28 }
 0x50b   :  { %7982 = vmatpush1.bf16.msra.mxu0 %v17845_v38  ;;  %v8454_v38 = vld [vmem:[#allocation8 + $0x80] sm:$0xff] }
 0x50c   :  { %8326 = vmatpush1.bf16.msra.mxu1 %v17847_v39  ;;  %7983 = vmatprep.subr.bf16.mxu0 %v17854_v56  ;;  %v8458_v39 = vld [vmem:[#allocation8 + $0xa0] sm:$0xff]  ;;  %v17908_v56 = vcombine.high %v8447_v35, %v8451_v52 }
 0x50d   :  { %8327 = vmatprep.subr.bf16.mxu1 %v17856_v3  ;;  %v8455_v3 = vld [vmem:[#allocation8 + $0x88] sm:$0xff]  ;;  %v17914_v30 = vcombine.high %v8454_v38, %v8458_v39  ;;  %v17913_v15 = vcombine.low %v8454_v38, %v8458_v39  ;;  %v8510_v52 = vld [vmem:[#allocation8 + $0x240] sm:$0xff] }
 0x50e   :  { %v8515_v38 = vld [vmem:[#allocation8 + $0x268] sm:$0xff] }
 0x50f   :  { %7984 = vmatpush1.bf16.msra.mxu0 %v17853_v44  ;;  %v17916_v44 = vcombine.high %v8455_v3, %v8459_v20 }
 0x510   :  { %8328 = vmatpush1.bf16.msra.mxu1 %v17855_v5  ;;  %7985 = vmatprep.subr.bf16.mxu0 %v17862_v41  ;;  %v8462_v5 = vld [vmem:[#allocation8 + $0xc0] sm:$0xff] }
 0x511   :  { %8329 = vmatprep.subr.bf16.mxu1 %v17864_v50  ;;  %v8466_v41 = vld [vmem:[#allocation8 + $0xe0] sm:$0xff]  ;;  %v8463_v50 = vld [vmem:[#allocation8 + $0xc8] sm:$0xff] }
 0x512   :  { %v17922_v48 = vcombine.high %v8462_v5, %v8466_v41  ;;  %v17924_v49 = vcombine.high %v8463_v50, %v8467_v55  ;;  %v17921_v63 = vcombine.low %v8462_v5, %v8466_v41  ;;  %v17923_v42 = vcombine.low %v8463_v50, %v8467_v55 }
 0x513   :  { %7986 = vmatpush1.bf16.msra.mxu0 %v17861_v0  ;;  %v8470_v0 = vld [vmem:[#allocation8 + $0x100] sm:$0xff] }
 0x514   :  { %8330 = vmatpush1.bf16.msra.mxu1 %v17863_v54  ;;  %7987 = vmatprep.subr.bf16.mxu0 %v17870_v59  ;;  %v8474_v54 = vld [vmem:[#allocation8 + $0x120] sm:$0xff]  ;;  %v8471_v59 = vld [vmem:[#allocation8 + $0x108] sm:$0xff] }
 0x515   :  { %8331 = vmatprep.subr.bf16.mxu1 %v17872_v36  ;;  %v8475_v36 = vld [vmem:[#allocation8 + $0x128] sm:$0xff]  ;;  %v17930_v23 = vcombine.high %v8470_v0, %v8474_v54  ;;  %v17929_v47 = vcombine.low %v8470_v0, %v8474_v54 }
 0x516   :  { %v17932_v8 = vcombine.high %v8471_v59, %v8475_v36  ;;  %v17931_v4 = vcombine.low %v8471_v59, %v8475_v36 }
 0x517   :  { %7988 = vmatpush1.bf16.msra.mxu0 %v17869_v33  ;;  %v8478_v33 = vld [vmem:[#allocation8 + $0x140] sm:$0xff] }
 0x518   :  { %8332 = vmatpush1.bf16.msra.mxu1 %v17871_v32  ;;  %7989 = vmatprep.subr.bf16.mxu0 %v17878_v46  ;;  %v8482_v32 = vld [vmem:[#allocation8 + $0x160] sm:$0xff]  ;;  %v8479_v46 = vld [vmem:[#allocation8 + $0x148] sm:$0xff] }
 0x519   :  { %8333 = vmatprep.subr.bf16.mxu1 %v17880_v2  ;;  %v8483_v2 = vld [vmem:[#allocation8 + $0x168] sm:$0xff]  ;;  %v17938_v9 = vcombine.high %v8478_v33, %v8482_v32  ;;  %v17937_v53 = vcombine.low %v8478_v33, %v8482_v32 }
 0x51a   :  { %v17940_v7 = vcombine.high %v8479_v46, %v8483_v2  ;;  %v17939_v1 = vcombine.low %v8479_v46, %v8483_v2 }
 0x51b   :  { %7990 = vmatpush1.bf16.msra.mxu0 %v17877_v29  ;;  %v8486_v29 = vld [vmem:[#allocation8 + $0x180] sm:$0xff] }
 0x51c   :  { %8334 = vmatpush1.bf16.msra.mxu1 %v17879_v51  ;;  %7991 = vmatprep.subr.bf16.mxu0 %v17886_v57  ;;  %v8490_v51 = vld [vmem:[#allocation8 + $0x1a0] sm:$0xff]  ;;  %v8487_v57 = vld [vmem:[#allocation8 + $0x188] sm:$0xff] }
 0x51d   :  { %8335 = vmatprep.subr.bf16.mxu1 %v17888_v31  ;;  %v8491_v31 = vld [vmem:[#allocation8 + $0x1a8] sm:$0xff]  ;;  %v17946_v25 = vcombine.high %v8486_v29, %v8490_v51  ;;  %v17945_v19 = vcombine.low %v8486_v29, %v8490_v51 }
 0x51e   :  { %v17948_v6 = vcombine.high %v8487_v57, %v8491_v31  ;;  %v17947_v22 = vcombine.low %v8487_v57, %v8491_v31 }
 0x51f   :  { %7992 = vmatpush1.bf16.msra.mxu0 %v17885_v10  ;;  %v8494_v10 = vld [vmem:[#allocation8 + $0x1c0] sm:$0xff] }
 0x520   :  { %8336 = vmatpush1.bf16.msra.mxu1 %v17887_v62  ;;  %7993 = vmatprep.subr.bf16.mxu0 %v17894_v12  ;;  %v8498_v62 = vld [vmem:[#allocation8 + $0x1e0] sm:$0xff]  ;;  %v8495_v12 = vld [vmem:[#allocation8 + $0x1c8] sm:$0xff] }
 0x521   :  { %8337 = vmatprep.subr.bf16.mxu1 %v17896_v17  ;;  %v8499_v17 = vld [vmem:[#allocation8 + $0x1e8] sm:$0xff]  ;;  %v17954_v11 = vcombine.high %v8494_v10, %v8498_v62  ;;  %v17953_v26 = vcombine.low %v8494_v10, %v8498_v62 }
 0x522   :  { %v17956_v24 = vcombine.high %v8495_v12, %v8499_v17  ;;  %v17955_v28 = vcombine.low %v8495_v12, %v8499_v17 }
 0x523   :  { %7994 = vmatpush1.bf16.msra.mxu0 %v17893_v14  ;;  %v8502_v14 = vld [vmem:[#allocation8 + $0x200] sm:$0xff] }
 0x524   :  { %8338 = vmatpush1.bf16.msra.mxu1 %v17895_v60  ;;  %11510 = vmatprep.subr.bf16.mxu0 %v17898_v13  ;;  %v8506_v60 = vld [vmem:[#allocation8 + $0x220] sm:$0xff]  ;;  %v8503_v13 = vld [vmem:[#allocation8 + $0x208] sm:$0xff] }
 0x525   :  { %11682 = vmatprep.subr.bf16.mxu1 %v17900_v21  ;;  %v8507_v21 = vld [vmem:[#allocation8 + $0x228] sm:$0xff]  ;;  %v17961_v39 = vcombine.low %v8502_v14, %v8506_v60 }
 0x526   :  { %7996 = vmatmul.mubr.bf16.vlgmr.msra.gmra.mrb[20].mxu0 %v20062_v37  ;;  %v17964_v35 = vcombine.high %v8503_v13, %v8507_v21 }
 0x527   :  { %8340 = vmatmul.mubr.bf16.vlgmr.msra.gmra.mrb[20].mxu1 %v20062_v37  ;;  %11511 = vmatpush1.bf16.msra.mxu0 %v17897_v34  ;;  %v17915_v37 = vcombine.low %v8455_v3, %v8459_v20  ;;  %v17962_v34 = vcombine.high %v8502_v14, %v8506_v60 }
 0x528   :  { %11542 = vmatprep.mubr.bf16.mxu0 %v20138_v61  ;;  %11683 = vmatpush1.bf16.msra.mxu1 %v17899_v58  ;;  %v8514_v58 = vld [vmem:[#allocation8 + $0x260] sm:$0xff] }
 0x529   :  { %11714 = vmatprep.mubr.bf16.mxu1 %v20138_v61  ;;  %11512 = vmatprep.subr.bf16.mxu0 %v17906_v40  ;;  %v8511_v40 = vld [vmem:[#allocation8 + $0x248] sm:$0xff]  ;;  %v17970_v3 = vcombine.high %v8510_v52, %v8514_v58  ;;  %v17969_v5 = vcombine.low %v8510_v52, %v8514_v58 }
 0x52a   :  { %11684 = vmatprep.subr.bf16.mxu1 %v17908_v56  ;;  %v17963_v56 = vcombine.low %v8503_v13, %v8507_v21  ;;  %v17972_v20 = vcombine.high %v8511_v40, %v8515_v38  ;;  %v17971_v41 = vcombine.low %v8511_v40, %v8515_v38 }
 0x52b   :  { %11513 = vmatpush1.bf16.msra.mxu0 %v17905_v27  ;;  %v8518_v27 = vld [vmem:[#allocation8 + $0x280] sm:$0xff] }
 0x52c   :  { %11685 = vmatpush1.bf16.msra.mxu1 %v17907_v43  ;;  %11514 = vmatprep.subr.bf16.mxu0 %v17914_v30  ;;  %v8522_v43 = vld [vmem:[#allocation8 + $0x2a0] sm:$0xff]  ;;  %v8519_v30 = vld [vmem:[#allocation8 + $0x288] sm:$0xff] }
 0x52d   :  { %11686 = vmatprep.subr.bf16.mxu1 %v17916_v44  ;;  %v8523_v44 = vld [vmem:[#allocation8 + $0x2a8] sm:$0xff]  ;;  %v17978_v50 = vcombine.high %v8518_v27, %v8522_v43  ;;  %v17977_v0 = vcombine.low %v8518_v27, %v8522_v43 }
 0x52e   :  { %v17980_v55 = vcombine.high %v8519_v30, %v8523_v44  ;;  %v17979_v54 = vcombine.low %v8519_v30, %v8523_v44  ;;  %v8579_v27 = vld [vmem:[#allocation8 + $0x468] sm:$0xff]  ;;  %v8582_v44 = vld [vmem:[#allocation8 + $0x480] sm:$0xff] }
 0x52f   :  { %11515 = vmatpush1.bf16.msra.mxu0 %v17913_v15  ;;  %v8526_v15 = vld [vmem:[#allocation8 + $0x2c0] sm:$0xff] }
 0x530   :  { %11687 = vmatpush1.bf16.msra.mxu1 %v17915_v37  ;;  %11516 = vmatprep.subr.bf16.mxu0 %v17922_v48  ;;  %v8530_v37 = vld [vmem:[#allocation8 + $0x2e0] sm:$0xff]  ;;  %v8527_v48 = vld [vmem:[#allocation8 + $0x2c8] sm:$0xff] }
 0x531   :  { %11688 = vmatprep.subr.bf16.mxu1 %v17924_v49  ;;  %v8531_v49 = vld [vmem:[#allocation8 + $0x2e8] sm:$0xff]  ;;  %v17986_v59 = vcombine.high %v8526_v15, %v8530_v37  ;;  %v17985_v33 = vcombine.low %v8526_v15, %v8530_v37 }
 0x532   :  { %v17988_v36 = vcombine.high %v8527_v48, %v8531_v49  ;;  %v17987_v32 = vcombine.low %v8527_v48, %v8531_v49 }
 0x533   :  { %11517 = vmatpush1.bf16.msra.mxu0 %v17921_v63  ;;  %v8534_v63 = vld [vmem:[#allocation8 + $0x300] sm:$0xff] }
 0x534   :  { %11689 = vmatpush1.bf16.msra.mxu1 %v17923_v42  ;;  %11518 = vmatprep.subr.bf16.mxu0 %v17930_v23  ;;  %v8538_v42 = vld [vmem:[#allocation8 + $0x320] sm:$0xff]  ;;  %v8535_v23 = vld [vmem:[#allocation8 + $0x308] sm:$0xff] }
 0x535   :  { %11690 = vmatprep.subr.bf16.mxu1 %v17932_v8  ;;  %v8539_v8 = vld [vmem:[#allocation8 + $0x328] sm:$0xff]  ;;  %v17994_v46 = vcombine.high %v8534_v63, %v8538_v42  ;;  %v17993_v29 = vcombine.low %v8534_v63, %v8538_v42 }
 0x536   :  { %v17996_v2 = vcombine.high %v8535_v23, %v8539_v8  ;;  %v17995_v51 = vcombine.low %v8535_v23, %v8539_v8 }
 0x537   :  { %11519 = vmatpush1.bf16.msra.mxu0 %v17929_v47  ;;  %v8542_v47 = vld [vmem:[#allocation8 + $0x340] sm:$0xff] }
 0x538   :  { %11691 = vmatpush1.bf16.msra.mxu1 %v17931_v4  ;;  %11520 = vmatprep.subr.bf16.mxu0 %v17938_v9  ;;  %v8546_v4 = vld [vmem:[#allocation8 + $0x360] sm:$0xff]  ;;  %v8543_v9 = vld [vmem:[#allocation8 + $0x348] sm:$0xff] }
 0x539   :  { %11692 = vmatprep.subr.bf16.mxu1 %v17940_v7  ;;  %v8547_v7 = vld [vmem:[#allocation8 + $0x368] sm:$0xff]  ;;  %v18002_v57 = vcombine.high %v8542_v47, %v8546_v4  ;;  %v18001_v10 = vcombine.low %v8542_v47, %v8546_v4 }
 0x53a   :  { %v18004_v31 = vcombine.high %v8543_v9, %v8547_v7  ;;  %v18003_v62 = vcombine.low %v8543_v9, %v8547_v7 }
 0x53b   :  { %11521 = vmatpush1.bf16.msra.mxu0 %v17937_v53  ;;  %v8550_v53 = vld [vmem:[#allocation8 + $0x380] sm:$0xff] }
 0x53c   :  { %11693 = vmatpush1.bf16.msra.mxu1 %v17939_v1  ;;  %11522 = vmatprep.subr.bf16.mxu0 %v17946_v25  ;;  %v8554_v1 = vld [vmem:[#allocation8 + $0x3a0] sm:$0xff]  ;;  %v8551_v25 = vld [vmem:[#allocation8 + $0x388] sm:$0xff] }
 0x53d   :  { %11694 = vmatprep.subr.bf16.mxu1 %v17948_v6  ;;  %v8555_v6 = vld [vmem:[#allocation8 + $0x3a8] sm:$0xff]  ;;  %v18010_v12 = vcombine.high %v8550_v53, %v8554_v1  ;;  %v18009_v14 = vcombine.low %v8550_v53, %v8554_v1 }
 0x53e   :  { %v18012_v17 = vcombine.high %v8551_v25, %v8555_v6  ;;  %v18011_v60 = vcombine.low %v8551_v25, %v8555_v6 }
 0x53f   :  { %11523 = vmatpush1.bf16.msra.mxu0 %v17945_v19  ;;  %v8558_v19 = vld [vmem:[#allocation8 + $0x3c0] sm:$0xff] }
 0x540   :  { %11695 = vmatpush1.bf16.msra.mxu1 %v17947_v22  ;;  %11524 = vmatprep.subr.bf16.mxu0 %v17954_v11  ;;  %v8562_v22 = vld [vmem:[#allocation8 + $0x3e0] sm:$0xff]  ;;  %v8559_v11 = vld [vmem:[#allocation8 + $0x3c8] sm:$0xff] }
 0x541   :  { %11696 = vmatprep.subr.bf16.mxu1 %v17956_v24  ;;  %v8563_v24 = vld [vmem:[#allocation8 + $0x3e8] sm:$0xff]  ;;  %v18018_v13 = vcombine.high %v8558_v19, %v8562_v22  ;;  %v18017_v52 = vcombine.low %v8558_v19, %v8562_v22 }
 0x542   :  { %v18020_v21 = vcombine.high %v8559_v11, %v8563_v24  ;;  %v18019_v58 = vcombine.low %v8559_v11, %v8563_v24 }
 0x543   :  { %11525 = vmatpush1.bf16.msra.mxu0 %v17953_v26  ;;  %v8566_v26 = vld [vmem:[#allocation8 + $0x400] sm:$0xff] }
 0x544   :  { %11697 = vmatpush1.bf16.msra.mxu1 %v17955_v28  ;;  %11526 = vmatprep.subr.bf16.mxu0 %v17962_v34  ;;  %v8570_v28 = vld [vmem:[#allocation8 + $0x420] sm:$0xff]  ;;  %v8567_v34 = vld [vmem:[#allocation8 + $0x408] sm:$0xff] }
 0x545   :  { %11698 = vmatprep.subr.bf16.mxu1 %v17964_v35  ;;  %v8571_v35 = vld [vmem:[#allocation8 + $0x428] sm:$0xff]  ;;  %v18026_v40 = vcombine.high %v8566_v26, %v8570_v28 }
 0x546   :  { %v18028_v38 = vcombine.high %v8567_v34, %v8571_v35  ;;  %v18027_v43 = vcombine.low %v8567_v34, %v8571_v35 }
 0x547   :  { %11527 = vmatpush1.bf16.msra.mxu0 %v17961_v39  ;;  %v8574_v39 = vld [vmem:[#allocation8 + $0x440] sm:$0xff] }
 0x548   :  { %11699 = vmatpush1.bf16.msra.mxu1 %v17963_v56  ;;  %11528 = vmatprep.subr.bf16.mxu0 %v17970_v3  ;;  %v8578_v56 = vld [vmem:[#allocation8 + $0x460] sm:$0xff]  ;;  %v18025_v3 = vcombine.low %v8566_v26, %v8570_v28 }
 0x549   :  { %11700 = vmatprep.subr.bf16.mxu1 %v17972_v20  ;;  %v8575_v20 = vld [vmem:[#allocation8 + $0x448] sm:$0xff]  ;;  %v18034_v30 = vcombine.high %v8574_v39, %v8578_v56  ;;  %v18033_v15 = vcombine.low %v8574_v39, %v8578_v56 }
 0x54a   :  { %v18035_v37 = vcombine.low %v8575_v20, %v8579_v27 }
 0x54b   :  { %11529 = vmatpush1.bf16.msra.mxu0 %v17969_v5  ;;  %v8586_v5 = vld [vmem:[#allocation8 + $0x4a0] sm:$0xff] }
 0x54c   :  { %11701 = vmatpush1.bf16.msra.mxu1 %v17971_v41  ;;  %11530 = vmatprep.subr.bf16.mxu0 %v17978_v50  ;;  %v18036_v41 = vcombine.high %v8575_v20, %v8579_v27  ;;  %v8583_v50 = vld [vmem:[#allocation8 + $0x488] sm:$0xff]  ;;  %v18042_v48 = vcombine.high %v8582_v44, %v8586_v5  ;;  %v18041_v63 = vcombine.low %v8582_v44, %v8586_v5  ;;  %v8638_v27 = vld [vmem:[#allocation8 + $0x640] sm:$0xff] }
 0x54d   :  { %11702 = vmatprep.subr.bf16.mxu1 %v17980_v55  ;;  %v8587_v55 = vld [vmem:[#allocation8 + $0x4a8] sm:$0xff] }
 0x54e   :  { %v18044_v49 = vcombine.high %v8583_v50, %v8587_v55  ;;  %v18043_v42 = vcombine.low %v8583_v50, %v8587_v55  ;;  %v8643_v44 = vld [vmem:[#allocation8 + $0x668] sm:$0xff] }
 0x54f   :  { %11531 = vmatpush1.bf16.msra.mxu0 %v17977_v0  ;;  %v8590_v0 = vld [vmem:[#allocation8 + $0x4c0] sm:$0xff] }
 0x550   :  { %11703 = vmatpush1.bf16.msra.mxu1 %v17979_v54  ;;  %11532 = vmatprep.subr.bf16.mxu0 %v17986_v59  ;;  %v8594_v54 = vld [vmem:[#allocation8 + $0x4e0] sm:$0xff]  ;;  %v8591_v59 = vld [vmem:[#allocation8 + $0x4c8] sm:$0xff] }
 0x551   :  { %11704 = vmatprep.subr.bf16.mxu1 %v17988_v36  ;;  %v8595_v36 = vld [vmem:[#allocation8 + $0x4e8] sm:$0xff]  ;;  %v18050_v23 = vcombine.high %v8590_v0, %v8594_v54  ;;  %v18049_v47 = vcombine.low %v8590_v0, %v8594_v54 }
 0x552   :  { %v18052_v8 = vcombine.high %v8591_v59, %v8595_v36  ;;  %v18051_v4 = vcombine.low %v8591_v59, %v8595_v36 }
 0x553   :  { %11533 = vmatpush1.bf16.msra.mxu0 %v17985_v33  ;;  %v8598_v33 = vld [vmem:[#allocation8 + $0x500] sm:$0xff] }
 0x554   :  { %11705 = vmatpush1.bf16.msra.mxu1 %v17987_v32  ;;  %11534 = vmatprep.subr.bf16.mxu0 %v17994_v46  ;;  %v8602_v32 = vld [vmem:[#allocation8 + $0x520] sm:$0xff]  ;;  %v8599_v46 = vld [vmem:[#allocation8 + $0x508] sm:$0xff] }
 0x555   :  { %11706 = vmatprep.subr.bf16.mxu1 %v17996_v2  ;;  %v8603_v2 = vld [vmem:[#allocation8 + $0x528] sm:$0xff]  ;;  %v18058_v9 = vcombine.high %v8598_v33, %v8602_v32  ;;  %v18057_v53 = vcombine.low %v8598_v33, %v8602_v32 }
 0x556   :  { %v18060_v7 = vcombine.high %v8599_v46, %v8603_v2  ;;  %v18059_v1 = vcombine.low %v8599_v46, %v8603_v2 }
 0x557   :  { %11535 = vmatpush1.bf16.msra.mxu0 %v17993_v29  ;;  %v8606_v29 = vld [vmem:[#allocation8 + $0x540] sm:$0xff] }
 0x558   :  { %11707 = vmatpush1.bf16.msra.mxu1 %v17995_v51  ;;  %11536 = vmatprep.subr.bf16.mxu0 %v18002_v57  ;;  %v8610_v51 = vld [vmem:[#allocation8 + $0x560] sm:$0xff]  ;;  %v8607_v57 = vld [vmem:[#allocation8 + $0x548] sm:$0xff] }
 0x559   :  { %11708 = vmatprep.subr.bf16.mxu1 %v18004_v31  ;;  %v8611_v31 = vld [vmem:[#allocation8 + $0x568] sm:$0xff]  ;;  %v18066_v25 = vcombine.high %v8606_v29, %v8610_v51  ;;  %v18065_v19 = vcombine.low %v8606_v29, %v8610_v51 }
 0x55a   :  { %v18068_v6 = vcombine.high %v8607_v57, %v8611_v31  ;;  %v18067_v22 = vcombine.low %v8607_v57, %v8611_v31 }
 0x55b   :  { %11537 = vmatpush1.bf16.msra.mxu0 %v18001_v10  ;;  %v8614_v10 = vld [vmem:[#allocation8 + $0x580] sm:$0xff] }
 0x55c   :  { %11709 = vmatpush1.bf16.msra.mxu1 %v18003_v62  ;;  %11538 = vmatprep.subr.bf16.mxu0 %v18010_v12  ;;  %v8618_v62 = vld [vmem:[#allocation8 + $0x5a0] sm:$0xff]  ;;  %v8615_v12 = vld [vmem:[#allocation8 + $0x588] sm:$0xff] }
 0x55d   :  { %11710 = vmatprep.subr.bf16.mxu1 %v18012_v17  ;;  %v8619_v17 = vld [vmem:[#allocation8 + $0x5a8] sm:$0xff]  ;;  %v18074_v11 = vcombine.high %v8614_v10, %v8618_v62  ;;  %v18073_v26 = vcombine.low %v8614_v10, %v8618_v62 }
 0x55e   :  { %v18076_v24 = vcombine.high %v8615_v12, %v8619_v17  ;;  %v18075_v28 = vcombine.low %v8615_v12, %v8619_v17 }
 0x55f   :  { %11539 = vmatpush1.bf16.msra.mxu0 %v18009_v14  ;;  %v8622_v14 = vld [vmem:[#allocation8 + $0x5c0] sm:$0xff] }
 0x560   :  { %11711 = vmatpush1.bf16.msra.mxu1 %v18011_v60  ;;  %11540 = vmatprep.subr.bf16.mxu0 %v18018_v13  ;;  %v8626_v60 = vld [vmem:[#allocation8 + $0x5e0] sm:$0xff]  ;;  %v8623_v13 = vld [vmem:[#allocation8 + $0x5c8] sm:$0xff] }
 0x561   :  { %11712 = vmatprep.subr.bf16.mxu1 %v18020_v21  ;;  %v8627_v21 = vld [vmem:[#allocation8 + $0x5e8] sm:$0xff]  ;;  %v18082_v34 = vcombine.high %v8622_v14, %v8626_v60  ;;  %v18081_v39 = vcombine.low %v8622_v14, %v8626_v60 }
 0x562   :  { %v18084_v35 = vcombine.high %v8623_v13, %v8627_v21  ;;  %v18083_v56 = vcombine.low %v8623_v13, %v8627_v21 }
 0x563   :  { %11541 = vmatpush1.bf16.msra.mxu0 %v18017_v52  ;;  %v8630_v52 = vld [vmem:[#allocation8 + $0x600] sm:$0xff] }
 0x564   :  { %11713 = vmatpush1.bf16.msra.mxu1 %v18019_v58  ;;  %11553 = vmatprep.subr.bf16.mxu0 %v18026_v40  ;;  %v8634_v58 = vld [vmem:[#allocation8 + $0x620] sm:$0xff]  ;;  %v8631_v40 = vld [vmem:[#allocation8 + $0x608] sm:$0xff] }
 0x565   :  { %11725 = vmatprep.subr.bf16.mxu1 %v18028_v38  ;;  %v8635_v38 = vld [vmem:[#allocation8 + $0x628] sm:$0xff]  ;;  %v18089_v5 = vcombine.low %v8630_v52, %v8634_v58 }
 0x566   :  { %11543 = vmatmul.mubr.bf16.vlgmr.msra.gmra.mrb[24].mxu0 %v20131_v18  ;;  %v18092_v20 = vcombine.high %v8631_v40, %v8635_v38 }
 0x567   :  { %11715 = vmatmul.mubr.bf16.vlgmr.msra.gmra.mrb[24].mxu1 %v20131_v18  ;;  %11554 = vmatpush1.bf16.msra.mxu0 %v18025_v3  ;;  %v18090_v3 = vcombine.high %v8630_v52, %v8634_v58 }
 0x568   :  { %11585 = vmatprep.mubr.bf16.mxu0 %v20140_v45  ;;  %11726 = vmatpush1.bf16.msra.mxu1 %v18027_v43  ;;  %v8642_v43 = vld [vmem:[#allocation8 + $0x660] sm:$0xff] }
 0x569   :  { %11757 = vmatprep.mubr.bf16.mxu1 %v20140_v45  ;;  %11555 = vmatprep.subr.bf16.mxu0 %v18034_v30  ;;  %v8639_v30 = vld [vmem:[#allocation8 + $0x648] sm:$0xff]  ;;  %v18098_v50 = vcombine.high %v8638_v27, %v8642_v43  ;;  %v18097_v0 = vcombine.low %v8638_v27, %v8642_v43 }
 0x56a   :  { %11727 = vmatprep.subr.bf16.mxu1 %v18036_v41  ;;  %v18091_v41 = vcombine.low %v8631_v40, %v8635_v38  ;;  %v18100_v55 = vcombine.high %v8639_v30, %v8643_v44  ;;  %v18099_v54 = vcombine.low %v8639_v30, %v8643_v44 }
 0x56b   :  { %11556 = vmatpush1.bf16.msra.mxu0 %v18033_v15  ;;  %v8646_v15 = vld [vmem:[#allocation8 + $0x680] sm:$0xff] }
 0x56c   :  { %11728 = vmatpush1.bf16.msra.mxu1 %v18035_v37  ;;  %11557 = vmatprep.subr.bf16.mxu0 %v18042_v48  ;;  %v8650_v37 = vld [vmem:[#allocation8 + $0x6a0] sm:$0xff]  ;;  %v8647_v48 = vld [vmem:[#allocation8 + $0x688] sm:$0xff] }
 0x56d   :  { %11729 = vmatprep.subr.bf16.mxu1 %v18044_v49  ;;  %v8651_v49 = vld [vmem:[#allocation8 + $0x6a8] sm:$0xff]  ;;  %v18106_v59 = vcombine.high %v8646_v15, %v8650_v37  ;;  %v18105_v33 = vcombine.low %v8646_v15, %v8650_v37 }
 0x56e   :  { %v18108_v36 = vcombine.high %v8647_v48, %v8651_v49  ;;  %v18107_v32 = vcombine.low %v8647_v48, %v8651_v49 }
 0x56f   :  { %11558 = vmatpush1.bf16.msra.mxu0 %v18041_v63  ;;  %v8654_v63 = vld [vmem:[#allocation8 + $0x6c0] sm:$0xff] }
 0x570   :  { %11730 = vmatpush1.bf16.msra.mxu1 %v18043_v42  ;;  %11559 = vmatprep.subr.bf16.mxu0 %v18050_v23  ;;  %v8658_v42 = vld [vmem:[#allocation8 + $0x6e0] sm:$0xff]  ;;  %v8655_v23 = vld [vmem:[#allocation8 + $0x6c8] sm:$0xff] }
 0x571   :  { %11731 = vmatprep.subr.bf16.mxu1 %v18052_v8  ;;  %v8659_v8 = vld [vmem:[#allocation8 + $0x6e8] sm:$0xff]  ;;  %v18114_v46 = vcombine.high %v8654_v63, %v8658_v42  ;;  %v18113_v29 = vcombine.low %v8654_v63, %v8658_v42 }
 0x572   :  { %v18116_v2 = vcombine.high %v8655_v23, %v8659_v8  ;;  %v18115_v51 = vcombine.low %v8655_v23, %v8659_v8 }
 0x573   :  { %11560 = vmatpush1.bf16.msra.mxu0 %v18049_v47  ;;  %v8662_v47 = vld [vmem:[#allocation8 + $0x700] sm:$0xff] }
 0x574   :  { %11732 = vmatpush1.bf16.msra.mxu1 %v18051_v4  ;;  %11561 = vmatprep.subr.bf16.mxu0 %v18058_v9  ;;  %v8666_v4 = vld [vmem:[#allocation8 + $0x720] sm:$0xff]  ;;  %v8663_v9 = vld [vmem:[#allocation8 + $0x708] sm:$0xff] }
 0x575   :  { %11733 = vmatprep.subr.bf16.mxu1 %v18060_v7  ;;  %v8667_v7 = vld [vmem:[#allocation8 + $0x728] sm:$0xff]  ;;  %v18122_v57 = vcombine.high %v8662_v47, %v8666_v4  ;;  %v18121_v10 = vcombine.low %v8662_v47, %v8666_v4 }
 0x576   :  { %v18124_v31 = vcombine.high %v8663_v9, %v8667_v7  ;;  %v18123_v62 = vcombine.low %v8663_v9, %v8667_v7 }
 0x577   :  { %11562 = vmatpush1.bf16.msra.mxu0 %v18057_v53  ;;  %v8670_v53 = vld [vmem:[#allocation8 + $0x740] sm:$0xff] }
 0x578   :  { %11734 = vmatpush1.bf16.msra.mxu1 %v18059_v1  ;;  %11563 = vmatprep.subr.bf16.mxu0 %v18066_v25  ;;  %v8674_v1 = vld [vmem:[#allocation8 + $0x760] sm:$0xff]  ;;  %v8671_v25 = vld [vmem:[#allocation8 + $0x748] sm:$0xff] }
 0x579   :  { %11735 = vmatprep.subr.bf16.mxu1 %v18068_v6  ;;  %v8675_v6 = vld [vmem:[#allocation8 + $0x768] sm:$0xff]  ;;  %v18130_v12 = vcombine.high %v8670_v53, %v8674_v1  ;;  %v18129_v14 = vcombine.low %v8670_v53, %v8674_v1 }
 0x57a   :  { %v18132_v17 = vcombine.high %v8671_v25, %v8675_v6  ;;  %v18131_v60 = vcombine.low %v8671_v25, %v8675_v6 }
 0x57b   :  { %11564 = vmatpush1.bf16.msra.mxu0 %v18065_v19  ;;  %v8678_v19 = vld [vmem:[#allocation8 + $0x780] sm:$0xff] }
 0x57c   :  { %11736 = vmatpush1.bf16.msra.mxu1 %v18067_v22  ;;  %11565 = vmatprep.subr.bf16.mxu0 %v18074_v11  ;;  %v8682_v22 = vld [vmem:[#allocation8 + $0x7a0] sm:$0xff]  ;;  %v8679_v11 = vld [vmem:[#allocation8 + $0x788] sm:$0xff] }
 0x57d   :  { %11737 = vmatprep.subr.bf16.mxu1 %v18076_v24  ;;  %v8683_v24 = vld [vmem:[#allocation8 + $0x7a8] sm:$0xff]  ;;  %v18138_v13 = vcombine.high %v8678_v19, %v8682_v22  ;;  %v18137_v52 = vcombine.low %v8678_v19, %v8682_v22 }
 0x57e   :  { %v18140_v21 = vcombine.high %v8679_v11, %v8683_v24  ;;  %v18139_v58 = vcombine.low %v8679_v11, %v8683_v24 }
 0x57f   :  { %11566 = vmatpush1.bf16.msra.mxu0 %v18073_v26  ;;  %v8686_v26 = vld [vmem:[#allocation8 + $0x7c0] sm:$0xff] }
 0x580   :  { %11738 = vmatpush1.bf16.msra.mxu1 %v18075_v28  ;;  %11567 = vmatprep.subr.bf16.mxu0 %v18082_v34  ;;  %v8690_v28 = vld [vmem:[#allocation8 + $0x7e0] sm:$0xff]  ;;  %v8687_v34 = vld [vmem:[#allocation8 + $0x7c8] sm:$0xff] }
 0x581   :  { %11739 = vmatprep.subr.bf16.mxu1 %v18084_v35  ;;  %v8691_v35 = vld [vmem:[#allocation8 + $0x7e8] sm:$0xff]  ;;  %v18146_v40 = vcombine.high %v8686_v26, %v8690_v28  ;;  %v18145_v27 = vcombine.low %v8686_v26, %v8690_v28 }
 0x582   :  { %v18148_v38 = vcombine.high %v8687_v34, %v8691_v35  ;;  %v18147_v43 = vcombine.low %v8687_v34, %v8691_v35 }
 0x583   :  { %11568 = vmatpush1.bf16.msra.mxu0 %v18081_v39  ;;  %v8694_v39 = vld [vmem:[#allocation8 + $0x800] sm:$0xff] }
 0x584   :  { %11740 = vmatpush1.bf16.msra.mxu1 %v18083_v56  ;;  %11569 = vmatprep.subr.bf16.mxu0 %v18090_v3  ;;  %v8698_v56 = vld [vmem:[#allocation8 + $0x820] sm:$0xff]  ;;  %v8695_v3 = vld [vmem:[#allocation8 + $0x808] sm:$0xff] }
 0x585   :  { %11741 = vmatprep.subr.bf16.mxu1 %v18092_v20  ;;  %v8699_v20 = vld [vmem:[#allocation8 + $0x828] sm:$0xff]  ;;  %v18154_v30 = vcombine.high %v8694_v39, %v8698_v56  ;;  %v18153_v15 = vcombine.low %v8694_v39, %v8698_v56 }
 0x586   :  { %v18156_v44 = vcombine.high %v8695_v3, %v8699_v20  ;;  %v18155_v37 = vcombine.low %v8695_v3, %v8699_v20 }
 0x587   :  { %11570 = vmatpush1.bf16.msra.mxu0 %v18089_v5  ;;  %v8702_v5 = vld [vmem:[#allocation8 + $0x840] sm:$0xff] }
 0x588   :  { %11742 = vmatpush1.bf16.msra.mxu1 %v18091_v41  ;;  %11571 = vmatprep.subr.bf16.mxu0 %v18098_v50  ;;  %v8706_v41 = vld [vmem:[#allocation8 + $0x860] sm:$0xff]  ;;  %v8703_v50 = vld [vmem:[#allocation8 + $0x848] sm:$0xff] }
 0x589   :  { %11743 = vmatprep.subr.bf16.mxu1 %v18100_v55  ;;  %v8707_v55 = vld [vmem:[#allocation8 + $0x868] sm:$0xff]  ;;  %v18162_v48 = vcombine.high %v8702_v5, %v8706_v41  ;;  %v18161_v63 = vcombine.low %v8702_v5, %v8706_v41 }
 0x58a   :  { %v18164_v49 = vcombine.high %v8703_v50, %v8707_v55  ;;  %v18163_v42 = vcombine.low %v8703_v50, %v8707_v55 }
 0x58b   :  { %11572 = vmatpush1.bf16.msra.mxu0 %v18097_v0  ;;  %v8710_v0 = vld [vmem:[#allocation8 + $0x880] sm:$0xff] }
 0x58c   :  { %11744 = vmatpush1.bf16.msra.mxu1 %v18099_v54  ;;  %11573 = vmatprep.subr.bf16.mxu0 %v18106_v59  ;;  %v8714_v54 = vld [vmem:[#allocation8 + $0x8a0] sm:$0xff]  ;;  %v8711_v59 = vld [vmem:[#allocation8 + $0x888] sm:$0xff] }
 0x58d   :  { %11745 = vmatprep.subr.bf16.mxu1 %v18108_v36  ;;  %v8715_v36 = vld [vmem:[#allocation8 + $0x8a8] sm:$0xff]  ;;  %v18170_v23 = vcombine.high %v8710_v0, %v8714_v54  ;;  %v18169_v47 = vcombine.low %v8710_v0, %v8714_v54 }
 0x58e   :  { %v18172_v8 = vcombine.high %v8711_v59, %v8715_v36  ;;  %v18171_v4 = vcombine.low %v8711_v59, %v8715_v36 }
 0x58f   :  { %11574 = vmatpush1.bf16.msra.mxu0 %v18105_v33  ;;  %v8718_v33 = vld [vmem:[#allocation8 + $0x8c0] sm:$0xff] }
 0x590   :  { %11746 = vmatpush1.bf16.msra.mxu1 %v18107_v32  ;;  %11575 = vmatprep.subr.bf16.mxu0 %v18114_v46  ;;  %v8722_v32 = vld [vmem:[#allocation8 + $0x8e0] sm:$0xff]  ;;  %v8719_v46 = vld [vmem:[#allocation8 + $0x8c8] sm:$0xff] }
 0x591   :  { %11747 = vmatprep.subr.bf16.mxu1 %v18116_v2  ;;  %v8723_v2 = vld [vmem:[#allocation8 + $0x8e8] sm:$0xff]  ;;  %v18178_v9 = vcombine.high %v8718_v33, %v8722_v32  ;;  %v18177_v53 = vcombine.low %v8718_v33, %v8722_v32 }
 0x592   :  { %v18180_v7 = vcombine.high %v8719_v46, %v8723_v2  ;;  %v18179_v1 = vcombine.low %v8719_v46, %v8723_v2 }
 0x593   :  { %11576 = vmatpush1.bf16.msra.mxu0 %v18113_v29  ;;  %v8726_v29 = vld [vmem:[#allocation8 + $0x900] sm:$0xff] }
 0x594   :  { %11748 = vmatpush1.bf16.msra.mxu1 %v18115_v51  ;;  %11577 = vmatprep.subr.bf16.mxu0 %v18122_v57  ;;  %v8730_v51 = vld [vmem:[#allocation8 + $0x920] sm:$0xff]  ;;  %v8727_v57 = vld [vmem:[#allocation8 + $0x908] sm:$0xff] }
 0x595   :  { %11749 = vmatprep.subr.bf16.mxu1 %v18124_v31  ;;  %v8731_v31 = vld [vmem:[#allocation8 + $0x928] sm:$0xff]  ;;  %v18186_v25 = vcombine.high %v8726_v29, %v8730_v51  ;;  %v18185_v19 = vcombine.low %v8726_v29, %v8730_v51 }
 0x596   :  { %v18188_v6 = vcombine.high %v8727_v57, %v8731_v31  ;;  %v18187_v22 = vcombine.low %v8727_v57, %v8731_v31 }
 0x597   :  { %11578 = vmatpush1.bf16.msra.mxu0 %v18121_v10  ;;  %v8734_v10 = vld [vmem:[#allocation8 + $0x940] sm:$0xff] }
 0x598   :  { %11750 = vmatpush1.bf16.msra.mxu1 %v18123_v62  ;;  %11579 = vmatprep.subr.bf16.mxu0 %v18130_v12  ;;  %v8738_v62 = vld [vmem:[#allocation8 + $0x960] sm:$0xff]  ;;  %v8735_v12 = vld [vmem:[#allocation8 + $0x948] sm:$0xff] }
 0x599   :  { %11751 = vmatprep.subr.bf16.mxu1 %v18132_v17  ;;  %v8739_v17 = vld [vmem:[#allocation8 + $0x968] sm:$0xff]  ;;  %v18194_v11 = vcombine.high %v8734_v10, %v8738_v62  ;;  %v18193_v26 = vcombine.low %v8734_v10, %v8738_v62 }
 0x59a   :  { %v18196_v24 = vcombine.high %v8735_v12, %v8739_v17  ;;  %v18195_v28 = vcombine.low %v8735_v12, %v8739_v17 }
 0x59b   :  { %11580 = vmatpush1.bf16.msra.mxu0 %v18129_v14  ;;  %v8742_v14 = vld [vmem:[#allocation8 + $0x980] sm:$0xff] }
 0x59c   :  { %11752 = vmatpush1.bf16.msra.mxu1 %v18131_v60  ;;  %11581 = vmatprep.subr.bf16.mxu0 %v18138_v13  ;;  %v8746_v60 = vld [vmem:[#allocation8 + $0x9a0] sm:$0xff]  ;;  %v8743_v13 = vld [vmem:[#allocation8 + $0x988] sm:$0xff] }
 0x59d   :  { %11753 = vmatprep.subr.bf16.mxu1 %v18140_v21  ;;  %v8747_v21 = vld [vmem:[#allocation8 + $0x9a8] sm:$0xff]  ;;  %v18202_v34 = vcombine.high %v8742_v14, %v8746_v60  ;;  %v18201_v39 = vcombine.low %v8742_v14, %v8746_v60 }
 0x59e   :  { %v18204_v35 = vcombine.high %v8743_v13, %v8747_v21  ;;  %v18203_v56 = vcombine.low %v8743_v13, %v8747_v21 }
 0x59f   :  { %11582 = vmatpush1.bf16.msra.mxu0 %v18137_v52  ;;  %v8750_v52 = vld [vmem:[#allocation8 + $0x9c0] sm:$0xff] }
 0x5a0   :  { %11754 = vmatpush1.bf16.msra.mxu1 %v18139_v58  ;;  %11583 = vmatprep.subr.bf16.mxu0 %v18146_v40  ;;  %v8754_v58 = vld [vmem:[#allocation8 + $0x9e0] sm:$0xff]  ;;  %v8751_v40 = vld [vmem:[#allocation8 + $0x9c8] sm:$0xff] }
 0x5a1   :  { %11755 = vmatprep.subr.bf16.mxu1 %v18148_v38  ;;  %v8755_v38 = vld [vmem:[#allocation8 + $0x9e8] sm:$0xff]  ;;  %v18210_v3 = vcombine.high %v8750_v52, %v8754_v58  ;;  %v18209_v5 = vcombine.low %v8750_v52, %v8754_v58 }
 0x5a2   :  { %v18212_v20 = vcombine.high %v8751_v40, %v8755_v38  ;;  %v18211_v41 = vcombine.low %v8751_v40, %v8755_v38 }
 0x5a3   :  { %11584 = vmatpush1.bf16.msra.mxu0 %v18145_v27  ;;  %v8758_v27 = vld [vmem:[#allocation8 + $0xa00] sm:$0xff] }
 0x5a4   :  { %11756 = vmatpush1.bf16.msra.mxu1 %v18147_v43  ;;  %11596 = vmatprep.subr.bf16.mxu0 %v18154_v30  ;;  %v8762_v43 = vld [vmem:[#allocation8 + $0xa20] sm:$0xff]  ;;  %v8759_v30 = vld [vmem:[#allocation8 + $0xa08] sm:$0xff] }
 0x5a5   :  { %11768 = vmatprep.subr.bf16.mxu1 %v18156_v44  ;;  %v8763_v44 = vld [vmem:[#allocation8 + $0xa28] sm:$0xff]  ;;  %v18218_v50 = vcombine.high %v8758_v27, %v8762_v43  ;;  %v18217_v0 = vcombine.low %v8758_v27, %v8762_v43 }
 0x5a6   :  { %11586 = vmatmul.mubr.bf16.vlgmr.msra.gmra.mrb[24].mxu0 %v20135_v16  ;;  %v18220_v55 = vcombine.high %v8759_v30, %v8763_v44  ;;  %v18219_v54 = vcombine.low %v8759_v30, %v8763_v44 }
 0x5a7   :  { %11758 = vmatmul.mubr.bf16.vlgmr.msra.gmra.mrb[24].mxu1 %v20135_v16  ;;  %11597 = vmatpush1.bf16.msra.mxu0 %v18153_v15  ;;  %v8766_v15 = vld [vmem:[#allocation8 + $0xa40] sm:$0xff] }
 0x5a8   :  { %11769 = vmatpush1.bf16.msra.mxu1 %v18155_v37  ;;  %11598 = vmatprep.subr.bf16.mxu0 %v18162_v48  ;;  %v8770_v37 = vld [vmem:[#allocation8 + $0xa60] sm:$0xff]  ;;  %v8767_v48 = vld [vmem:[#allocation8 + $0xa48] sm:$0xff] }
 0x5a9   :  { %11770 = vmatprep.subr.bf16.mxu1 %v18164_v49  ;;  %v8771_v49 = vld [vmem:[#allocation8 + $0xa68] sm:$0xff]  ;;  %v18226_v59 = vcombine.high %v8766_v15, %v8770_v37  ;;  %v18225_v33 = vcombine.low %v8766_v15, %v8770_v37 }
 0x5aa   :  { %v18228_v36 = vcombine.high %v8767_v48, %v8771_v49  ;;  %v18227_v32 = vcombine.low %v8767_v48, %v8771_v49 }
 0x5ab   :  { %11599 = vmatpush1.bf16.msra.mxu0 %v18161_v63  ;;  %v8774_v63 = vld [vmem:[#allocation8 + $0xa80] sm:$0xff] }
 0x5ac   :  { %11771 = vmatpush1.bf16.msra.mxu1 %v18163_v42  ;;  %11600 = vmatprep.subr.bf16.mxu0 %v18170_v23  ;;  %v8778_v42 = vld [vmem:[#allocation8 + $0xaa0] sm:$0xff]  ;;  %v8775_v23 = vld [vmem:[#allocation8 + $0xa88] sm:$0xff] }
 0x5ad   :  { %11772 = vmatprep.subr.bf16.mxu1 %v18172_v8  ;;  %v8779_v8 = vld [vmem:[#allocation8 + $0xaa8] sm:$0xff]  ;;  %v18234_v46 = vcombine.high %v8774_v63, %v8778_v42  ;;  %v18233_v29 = vcombine.low %v8774_v63, %v8778_v42 }
 0x5ae   :  { %v18236_v2 = vcombine.high %v8775_v23, %v8779_v8  ;;  %v18235_v51 = vcombine.low %v8775_v23, %v8779_v8 }
 0x5af   :  { %11601 = vmatpush1.bf16.msra.mxu0 %v18169_v47  ;;  %v8782_v47 = vld [vmem:[#allocation8 + $0xac0] sm:$0xff] }
 0x5b0   :  { %11773 = vmatpush1.bf16.msra.mxu1 %v18171_v4  ;;  %11602 = vmatprep.subr.bf16.mxu0 %v18178_v9  ;;  %v8786_v4 = vld [vmem:[#allocation8 + $0xae0] sm:$0xff]  ;;  %v8783_v9 = vld [vmem:[#allocation8 + $0xac8] sm:$0xff] }
 0x5b1   :  { %11774 = vmatprep.subr.bf16.mxu1 %v18180_v7  ;;  %v8787_v7 = vld [vmem:[#allocation8 + $0xae8] sm:$0xff]  ;;  %v18242_v57 = vcombine.high %v8782_v47, %v8786_v4  ;;  %v18241_v10 = vcombine.low %v8782_v47, %v8786_v4 }
 0x5b2   :  { %v18244_v31 = vcombine.high %v8783_v9, %v8787_v7  ;;  %v18243_v62 = vcombine.low %v8783_v9, %v8787_v7 }
 0x5b3   :  { %11603 = vmatpush1.bf16.msra.mxu0 %v18177_v53  ;;  %v8790_v53 = vld [vmem:[#allocation8 + $0xb00] sm:$0xff] }
 0x5b4   :  { %11775 = vmatpush1.bf16.msra.mxu1 %v18179_v1  ;;  %11604 = vmatprep.subr.bf16.mxu0 %v18186_v25  ;;  %v8794_v1 = vld [vmem:[#allocation8 + $0xb20] sm:$0xff]  ;;  %v8791_v25 = vld [vmem:[#allocation8 + $0xb08] sm:$0xff] }
 0x5b5   :  { %11776 = vmatprep.subr.bf16.mxu1 %v18188_v6  ;;  %v8795_v6 = vld [vmem:[#allocation8 + $0xb28] sm:$0xff]  ;;  %v18250_v12 = vcombine.high %v8790_v53, %v8794_v1  ;;  %v18249_v14 = vcombine.low %v8790_v53, %v8794_v1 }
 0x5b6   :  { %v18252_v17 = vcombine.high %v8791_v25, %v8795_v6  ;;  %v18251_v60 = vcombine.low %v8791_v25, %v8795_v6 }
 0x5b7   :  { %11605 = vmatpush1.bf16.msra.mxu0 %v18185_v19  ;;  %v8798_v19 = vld [vmem:[#allocation8 + $0xb40] sm:$0xff] }
 0x5b8   :  { %11777 = vmatpush1.bf16.msra.mxu1 %v18187_v22  ;;  %11606 = vmatprep.subr.bf16.mxu0 %v18194_v11  ;;  %v8802_v22 = vld [vmem:[#allocation8 + $0xb60] sm:$0xff]  ;;  %v8799_v11 = vld [vmem:[#allocation8 + $0xb48] sm:$0xff] }
 0x5b9   :  { %11778 = vmatprep.subr.bf16.mxu1 %v18196_v24  ;;  %v8803_v24 = vld [vmem:[#allocation8 + $0xb68] sm:$0xff]  ;;  %v18258_v13 = vcombine.high %v8798_v19, %v8802_v22  ;;  %v18257_v52 = vcombine.low %v8798_v19, %v8802_v22 }
 0x5ba   :  { %v18260_v21 = vcombine.high %v8799_v11, %v8803_v24  ;;  %v18259_v58 = vcombine.low %v8799_v11, %v8803_v24 }
 0x5bb   :  { %11607 = vmatpush1.bf16.msra.mxu0 %v18193_v26  ;;  %v8806_v26 = vld [vmem:[#allocation8 + $0xb80] sm:$0xff] }
 0x5bc   :  { %11779 = vmatpush1.bf16.msra.mxu1 %v18195_v28  ;;  %11608 = vmatprep.subr.bf16.mxu0 %v18202_v34  ;;  %v8810_v28 = vld [vmem:[#allocation8 + $0xba0] sm:$0xff]  ;;  %v8807_v34 = vld [vmem:[#allocation8 + $0xb88] sm:$0xff] }
 0x5bd   :  { %11780 = vmatprep.subr.bf16.mxu1 %v18204_v35  ;;  %v8811_v35 = vld [vmem:[#allocation8 + $0xba8] sm:$0xff]  ;;  %v18266_v40 = vcombine.high %v8806_v26, %v8810_v28  ;;  %v18265_v27 = vcombine.low %v8806_v26, %v8810_v28 }
 0x5be   :  { %v18268_v38 = vcombine.high %v8807_v34, %v8811_v35  ;;  %v18267_v43 = vcombine.low %v8807_v34, %v8811_v35 }
 0x5bf   :  { %11609 = vmatpush1.bf16.msra.mxu0 %v18201_v39  ;;  %v8814_v39 = vld [vmem:[#allocation8 + $0xbc0] sm:$0xff] }
 0x5c0   :  { %11781 = vmatpush1.bf16.msra.mxu1 %v18203_v56  ;;  %11610 = vmatprep.subr.bf16.mxu0 %v18210_v3  ;;  %v8818_v56 = vld [vmem:[#allocation8 + $0xbe0] sm:$0xff]  ;;  %v8815_v3 = vld [vmem:[#allocation8 + $0xbc8] sm:$0xff] }
 0x5c1   :  { %11782 = vmatprep.subr.bf16.mxu1 %v18212_v20  ;;  %v8819_v20 = vld [vmem:[#allocation8 + $0xbe8] sm:$0xff]  ;;  %v18274_v30 = vcombine.high %v8814_v39, %v8818_v56  ;;  %v18273_v15 = vcombine.low %v8814_v39, %v8818_v56 }
 0x5c2   :  { %v18276_v44 = vcombine.high %v8815_v3, %v8819_v20  ;;  %v18275_v37 = vcombine.low %v8815_v3, %v8819_v20  ;;  %v8830_v20 = vld [vmem:[#allocation8 + $0xc40] sm:$0xff] }
 0x5c3   :  { %11611 = vmatpush1.bf16.msra.mxu0 %v18209_v5  ;;  %v20168_v5 = vld [vmem:[#allocation8 + $0xc00] sm:$0xff] }
 0x5c4   :  { %11783 = vmatpush1.bf16.msra.mxu1 %v18211_v41  ;;  %11612 = vmatprep.subr.bf16.mxu0 %v18218_v50  ;;  %v20170_v41 = vld [vmem:[#allocation8 + $0xc20] sm:$0xff]  ;;  %v20172_v50 = vld [vmem:[#allocation8 + $0xc08] sm:$0xff] }
 0x5c5   :  { %11784 = vmatprep.subr.bf16.mxu1 %v18220_v55  ;;  %v20174_v55 = vld [vmem:[#allocation8 + $0xc28] sm:$0xff]  ;;  %v18282_v48 = vcombine.high %v20168_v5, %v20170_v41 }
 0x5c6   :  { %v18284_v49 = vcombine.high %v20172_v50, %v20174_v55 }
 0x5c7   :  { %11613 = vmatpush1.bf16.msra.mxu0 %v18217_v0 }
 0x5c8   :  { %11785 = vmatpush1.bf16.msra.mxu1 %v18219_v54  ;;  %11614 = vmatprep.subr.bf16.mxu0 %v18226_v59 }
 0x5c9   :  { %11786 = vmatprep.subr.bf16.mxu1 %v18228_v36 }
 0x5cb   :  { %11615 = vmatpush1.bf16.msra.mxu0 %v18225_v33 }
 0x5cc   :  { %11787 = vmatpush1.bf16.msra.mxu1 %v18227_v32  ;;  %11616 = vmatprep.subr.bf16.mxu0 %v18234_v46 }
 0x5cd   :  { %11788 = vmatprep.subr.bf16.mxu1 %v18236_v2 }
 0x5cf   :  { %11617 = vmatpush1.bf16.msra.mxu0 %v18233_v29 }
 0x5d0   :  { %11789 = vmatpush1.bf16.msra.mxu1 %v18235_v51  ;;  %11618 = vmatprep.subr.bf16.mxu0 %v18242_v57 }
 0x5d1   :  { %11790 = vmatprep.subr.bf16.mxu1 %v18244_v31 }
 0x5d3   :  { %11619 = vmatpush1.bf16.msra.mxu0 %v18241_v10 }
 0x5d4   :  { %11791 = vmatpush1.bf16.msra.mxu1 %v18243_v62  ;;  %11620 = vmatprep.subr.bf16.mxu0 %v18250_v12 }
 0x5d5   :  { %11792 = vmatprep.subr.bf16.mxu1 %v18252_v17 }
 0x5d7   :  { %11621 = vmatpush1.bf16.msra.mxu0 %v18249_v14 }
 0x5d8   :  { %11793 = vmatpush1.bf16.msra.mxu1 %v18251_v60  ;;  %11622 = vmatprep.subr.bf16.mxu0 %v18258_v13 }
 0x5d9   :  { %11794 = vmatprep.subr.bf16.mxu1 %v18260_v21 }
 0x5db   :  { %11623 = vmatpush1.bf16.msra.mxu0 %v18257_v52 }
 0x5dc   :  { %11795 = vmatpush1.bf16.msra.mxu1 %v18259_v58  ;;  %11624 = vmatprep.subr.bf16.mxu0 %v18266_v40 }
 0x5dd   :  { %11796 = vmatprep.subr.bf16.mxu1 %v18268_v38 }
 0x5df   :  { %11625 = vmatpush1.bf16.msra.mxu0 %v18265_v27 }
 0x5e0   :  { %11797 = vmatpush1.bf16.msra.mxu1 %v18267_v43  ;;  %11626 = vmatprep.subr.bf16.mxu0 %v18274_v30 }
 0x5e1   :  { %11798 = vmatprep.subr.bf16.mxu1 %v18276_v44  ;;  %v8834_v44 = vld [vmem:[#allocation8 + $0xc60] sm:$0xff] }
 0x5e3   :  { %11627 = vmatpush1.bf16.msra.mxu0 %v18273_v15  ;;  %v8831_v15 = vld [vmem:[#allocation8 + $0xc48] sm:$0xff] }
 0x5e4   :  { %11799 = vmatpush1.bf16.msra.mxu1 %v18275_v37  ;;  %11639 = vmatprep.subr.bf16.mxu0 %v18282_v48  ;;  %v8835_v37 = vld [vmem:[#allocation8 + $0xc68] sm:$0xff] }
 0x5e5   :  { %11811 = vmatprep.subr.bf16.mxu1 %v18284_v49  ;;  %v18281_v49 = vcombine.low %v20168_v5, %v20170_v41  ;;  %v18289_v5 = vcombine.low %v8830_v20, %v8834_v44  ;;  %v18291_v41 = vcombine.low %v8831_v15, %v8835_v37 }
 0x5f9   :  { %v7997_v0 = vpop.f32.mrb[20].mxu0 }
 0x5fa   :  { %v8354_v54 = vmul.f32 0.5, %v7997_v0  ;;  %v8341_v59 = vpop.f32.mrb[20].mxu1  ;;  %v7999_v36 = vpop.f32.mrb[21].mxu0 }
 0x5fb   :  { %v8356_v63 = vmul.f32 0.5, %v8341_v59  ;;  %v8355_v42 = vmul.f32 0.5, %v7999_v36  ;;  %v8343_v23 = vpop.f32.mrb[21].mxu1  ;;  %v8001_v8 = vpop.f32.mrb[22].mxu0 }
 0x5fc   :  { %19441 = vtanh.f32 %v8354_v54  ;;  %v8357_v33 = vmul.f32 0.5, %v8343_v23  ;;  %v8362_v32 = vmul.f32 0.5, %v8001_v8  ;;  %v8345_v46 = vpop.f32.mrb[22].mxu1  ;;  %v8003_v2 = vpop.f32.mrb[23].mxu0 }
 0x5fd   :  { %19443 = vtanh.f32 %v8356_v63  ;;  %v8364_v47 = vmul.f32 0.5, %v8345_v46  ;;  %v8347_v4 = vpop.f32.mrb[23].mxu1  ;;  %v8363_v9 = vmul.f32 0.5, %v8003_v2  ;;  %v18292_v63 = vcombine.high %v8831_v15, %v8835_v37  ;;  %v8887_v15 = vld [vmem:[#allocation8 + $0xe08] sm:$0xff] }
 0x5fe   :  { %19445 = vtanh.f32 %v8355_v42  ;;  %v8365_v7 = vmul.f32 0.5, %v8347_v4  ;;  %v8842_v42 = vld [vmem:[#allocation8 + $0xca0] sm:$0xff]  ;;  %v8891_v37 = vld [vmem:[#allocation8 + $0xe28] sm:$0xff] }
 0x5ff   :  { %19447 = vtanh.f32 %v8357_v33  ;;  %v8846_v33 = vld [vmem:[#allocation8 + $0xcc0] sm:$0xff] }
 0x600   :  { %19449 = vtanh.f32 %v8362_v32  ;;  %v8850_v32 = vld [vmem:[#allocation8 + $0xce0] sm:$0xff] }
 0x601   :  { %19451 = vtanh.f32 %v8364_v47 }
 0x602   :  { %19453 = vtanh.f32 %v8363_v9  ;;  %v18306_v9 = vcombine.high %v8846_v33, %v8850_v32 }
 0x603   :  { %19455 = vtanh.f32 %v8365_v7 }
 0x606   :  { %v19442_v29 = vpop.eup %19441 }
 0x607   :  { %v19444_v51 = vpop.eup %19443  ;;  %v8386_v57 = vmul.f32 0.5, %v19442_v29  ;;  %v8854_v29 = vld [vmem:[#allocation8 + $0xd00] sm:$0xff] }
 0x608   :  { %v19446_v31 = vpop.eup %19445  ;;  %v8388_v53 = vmul.f32 0.5, %v19444_v51  ;;  %v8858_v51 = vld [vmem:[#allocation8 + $0xd20] sm:$0xff] }
 0x609   :  { %v19448_v1 = vpop.eup %19447  ;;  %v8387_v25 = vmul.f32 0.5, %v19446_v31  ;;  %v8402_v12 = vadd.f32 0.5, %v8386_v57  ;;  %v8855_v57 = vld [vmem:[#allocation8 + $0xd08] sm:$0xff] }
 0x60a   :  { %v19450_v6 = vpop.eup %19449  ;;  %v8389_v10 = vmul.f32 0.5, %v19448_v1  ;;  %v8404_v22 = vadd.f32 0.5, %v8388_v53  ;;  %v8859_v31 = vld [vmem:[#allocation8 + $0xd28] sm:$0xff]  ;;  %v18305_v53 = vcombine.low %v8846_v33, %v8850_v32  ;;  %v8902_v33 = vld [vmem:[#allocation8 + $0xe80] sm:$0xff] }
 0x60b   :  { %v19452_v62 = vpop.eup %19451  ;;  %v8394_v17 = vmul.f32 0.5, %v19450_v6  ;;  %v8403_v14 = vadd.f32 0.5, %v8387_v25  ;;  %v8418_v34 = vmul.f32 %v8402_v12, %v7997_v0  ;;  %v18283_v0 = vcombine.low %v20172_v50, %v20174_v55  ;;  %v8863_v12 = vld [vmem:[#allocation8 + $0xd48] sm:$0xff]  ;;  %v8906_v32 = vld [vmem:[#allocation8 + $0xea0] sm:$0xff] }
 0x60c   :  { %v19454_v19 = vpop.eup %19453  ;;  %v8396_v11 = vmul.f32 0.5, %v19452_v62  ;;  %v8405_v21 = vadd.f32 0.5, %v8389_v10  ;;  %v8420_v58 = vmul.f32 %v8404_v22, %v8341_v59  ;;  %v8838_v59 = vld [vmem:[#allocation8 + $0xc80] sm:$0xff]  ;;  %v18314_v25 = vcombine.high %v8854_v29, %v8858_v51 }
 0x60d   :  { %v19456_v24 = vpop.eup %19455  ;;  %v8410_v60 = vadd.f32 0.5, %v8394_v17  ;;  %v8395_v13 = vmul.f32 0.5, %v19454_v19  ;;  %v8419_v39 = vmul.f32 %v8403_v14, %v7999_v36  ;;  %v18290_v36 = vcombine.high %v8830_v20, %v8834_v44  ;;  %v8862_v10 = vld [vmem:[#allocation8 + $0xd40] sm:$0xff]  ;;  %v8867_v17 = vld [vmem:[#allocation8 + $0xd68] sm:$0xff] }
 0x60e   :  { %v8412_v26 = vadd.f32 0.5, %v8396_v11  ;;  %v8397_v28 = vmul.f32 0.5, %v19456_v24  ;;  %v8421_v27 = vmul.f32 %v8405_v21, %v8343_v23  ;;  %v8839_v23 = vld [vmem:[#allocation8 + $0xc88] sm:$0xff]  ;;  %v18298_v50 = vcombine.high %v8838_v59, %v8842_v42  ;;  %v8866_v62 = vld [vmem:[#allocation8 + $0xd60] sm:$0xff] }
 0x60f   :  { %v8426_v35 = vmul.f32 %v8410_v60, %v8001_v8  ;;  %v8411_v52 = vadd.f32 0.5, %v8395_v13  ;;  %v8843_v8 = vld [vmem:[#allocation8 + $0xca8] sm:$0xff]  ;;  %v18297_v47 = vcombine.low %v8838_v59, %v8842_v42  ;;  %v18316_v6 = vcombine.high %v8855_v57, %v8859_v31  ;;  %v8870_v14 = vld [vmem:[#allocation8 + $0xd80] sm:$0xff] }
 0x610   :  { %v8428_v40 = vmul.f32 %v8412_v26, %v8345_v46  ;;  %v8413_v38 = vadd.f32 0.5, %v8397_v28  ;;  %v18300_v55 = vcombine.high %v8839_v23, %v8843_v8  ;;  %v8847_v46 = vld [vmem:[#allocation8 + $0xcc8] sm:$0xff]  ;;  %v18313_v19 = vcombine.low %v8854_v29, %v8858_v51  ;;  %v8874_v60 = vld [vmem:[#allocation8 + $0xda0] sm:$0xff] }
 0x611   :  { %v20180_v56 = vpack.c.bf16 %v8426_v35, %v8418_v34  ;;  %v8427_v3 = vmul.f32 %v8411_v52, %v8003_v2  ;;  %v8851_v2 = vld [vmem:[#allocation8 + $0xce8] sm:$0xff]  ;;  %v18315_v22 = vcombine.low %v8855_v57, %v8859_v31  ;;  %v18322_v11 = vcombine.high %v8862_v10, %v8866_v62  ;;  %v8878_v52 = vld [vmem:[#allocation8 + $0xdc0] sm:$0xff] }
 0x612   :  { %v20182_v43 = vpack.c.bf16 %v8428_v40, %v8420_v58  ;;  %v8429_v30 = vmul.f32 %v8413_v38, %v8347_v4  ;;  %v18299_v4 = vcombine.low %v8839_v23, %v8843_v8  ;;  %v18308_v7 = vcombine.high %v8847_v46, %v8851_v2  ;;  %v8871_v13 = vld [vmem:[#allocation8 + $0xd88] sm:$0xff]  ;;  %v8882_v58 = vld [vmem:[#allocation8 + $0xde0] sm:$0xff] }
 0x613   :  { %v20184_v48 = vpack.c.bf16 %v8427_v3, %v8419_v39  ;;  %v18307_v1 = vcombine.low %v8847_v46, %v8851_v2  ;;  %v18324_v24 = vcombine.high %v8863_v12, %v8867_v17  ;;  %v8875_v21 = vld [vmem:[#allocation8 + $0xda8] sm:$0xff]  ;;  %v18321_v26 = vcombine.low %v8862_v10, %v8866_v62  ;;  %v8890_v44 = vld [vmem:[#allocation8 + $0xe20] sm:$0xff] }
 0x614   :  { %v20190_v54 = vpack.c.bf16 %v8429_v30, %v8421_v27  ;;  %v18323_v28 = vcombine.low %v8863_v12, %v8867_v17  ;;  %v18330_v34 = vcombine.high %v8870_v14, %v8874_v60  ;;  %v18332_v35 = vcombine.high %v8871_v13, %v8875_v21  ;;  %v8879_v40 = vld [vmem:[#allocation8 + $0xdc8] sm:$0xff]  ;;  %v8886_v30 = vld [vmem:[#allocation8 + $0xe00] sm:$0xff] }
 0x615   :  { %11628 = vmatprep.mubr.bf16.mxu0 %v20184_v48  ;;  %11800 = vmatprep.mubr.bf16.mxu1 %v20184_v48  ;;  %v8883_v38 = vld [vmem:[#allocation8 + $0xde8] sm:$0xff]  ;;  %v18329_v39 = vcombine.low %v8870_v14, %v8874_v60  ;;  %v18331_v3 = vcombine.low %v8871_v13, %v8875_v21  ;;  %v18338_v20 = vcombine.high %v8878_v52, %v8882_v58  ;;  %v8898_v42 = vld [vmem:[#allocation8 + $0xe60] sm:$0xff] }
 0x616   :  { %11629 = vmatmul.mubr.bf16.vlgmr.msra.gmra.mrb[24].mxu0 %v20180_v56  ;;  %11801 = vmatmul.mubr.bf16.vlgmr.msra.gmra.mrb[24].mxu1 %v20180_v56  ;;  %v18340_v27 = vcombine.high %v8879_v40, %v8883_v38  ;;  %v18346_v59 = vcombine.high %v8886_v30, %v8890_v44  ;;  %v8895_v23 = vld [vmem:[#allocation8 + $0xe48] sm:$0xff]  ;;  %v8910_v29 = vld [vmem:[#allocation8 + $0xec0] sm:$0xff] }
 0x617   :  { %11640 = vmatpush1.bf16.msra.mxu0 %v18281_v49  ;;  %11812 = vmatpush1.bf16.msra.mxu1 %v18283_v0  ;;  %v18337_v49 = vcombine.low %v8878_v52, %v8882_v58  ;;  %v18339_v0 = vcombine.low %v8879_v40, %v8883_v38  ;;  %v8899_v8 = vld [vmem:[#allocation8 + $0xe68] sm:$0xff]  ;;  %v8914_v51 = vld [vmem:[#allocation8 + $0xee0] sm:$0xff] }
 0x618   :  { %11671 = vmatprep.mubr.bf16.mxu0 %v20190_v54  ;;  %11843 = vmatprep.mubr.bf16.mxu1 %v20190_v54  ;;  %v8903_v46 = vld [vmem:[#allocation8 + $0xe88] sm:$0xff]  ;;  %v8918_v10 = vld [vmem:[#allocation8 + $0xf00] sm:$0xff] }
 0x619   :  { %11641 = vmatprep.subr.bf16.mxu0 %v18290_v36  ;;  %11813 = vmatprep.subr.bf16.mxu1 %v18292_v63  ;;  %v18348_v36 = vcombine.high %v8887_v15, %v8891_v37  ;;  %v8894_v63 = vld [vmem:[#allocation8 + $0xe40] sm:$0xff]  ;;  %v8907_v2 = vld [vmem:[#allocation8 + $0xea8] sm:$0xff] }
 0x61a   :  { %v8911_v57 = vld [vmem:[#allocation8 + $0xec8] sm:$0xff]  ;;  %v8922_v62 = vld [vmem:[#allocation8 + $0xf20] sm:$0xff] }
 0x61b   :  { %11642 = vmatpush1.bf16.msra.mxu0 %v18289_v5  ;;  %11814 = vmatpush1.bf16.msra.mxu1 %v18291_v41  ;;  %v18345_v5 = vcombine.low %v8886_v30, %v8890_v44  ;;  %v18347_v41 = vcombine.low %v8887_v15, %v8891_v37  ;;  %v8915_v31 = vld [vmem:[#allocation8 + $0xee8] sm:$0xff]  ;;  %v8926_v14 = vld [vmem:[#allocation8 + $0xf40] sm:$0xff] }
 0x61c   :  { %11643 = vmatprep.subr.bf16.mxu0 %v18298_v50  ;;  %11815 = vmatprep.subr.bf16.mxu1 %v18300_v55  ;;  %v18354_v50 = vcombine.high %v8894_v63, %v8898_v42  ;;  %v18356_v55 = vcombine.high %v8895_v23, %v8899_v8  ;;  %v8919_v12 = vld [vmem:[#allocation8 + $0xf08] sm:$0xff]  ;;  %v8930_v60 = vld [vmem:[#allocation8 + $0xf60] sm:$0xff] }
 0x61d   :  { %v8923_v17 = vld [vmem:[#allocation8 + $0xf28] sm:$0xff]  ;;  %v8934_v52 = vld [vmem:[#allocation8 + $0xf80] sm:$0xff] }
 0x61e   :  { %v8927_v13 = vld [vmem:[#allocation8 + $0xf48] sm:$0xff]  ;;  %v8938_v58 = vld [vmem:[#allocation8 + $0xfa0] sm:$0xff] }
 0x61f   :  { %11644 = vmatpush1.bf16.msra.mxu0 %v18297_v47  ;;  %11816 = vmatpush1.bf16.msra.mxu1 %v18299_v4  ;;  %v18353_v47 = vcombine.low %v8894_v63, %v8898_v42  ;;  %v18355_v4 = vcombine.low %v8895_v23, %v8899_v8  ;;  %v8931_v21 = vld [vmem:[#allocation8 + $0xf68] sm:$0xff]  ;;  %v8942_v30 = vld [vmem:[#allocation8 + $0xfc0] sm:$0xff]  ;;  %v8440_v63 = vld [vmem:[#allocation8 + $0x10] sm:$0xff] }
 0x620   :  { %11645 = vmatprep.subr.bf16.mxu0 %v18306_v9  ;;  %11817 = vmatprep.subr.bf16.mxu1 %v18308_v7  ;;  %v18362_v9 = vcombine.high %v8902_v33, %v8906_v32  ;;  %v18364_v7 = vcombine.high %v8903_v46, %v8907_v2  ;;  %v8935_v40 = vld [vmem:[#allocation8 + $0xf88] sm:$0xff]  ;;  %v8946_v44 = vld [vmem:[#allocation8 + $0xfe0] sm:$0xff]  ;;  %v8444_v42 = vld [vmem:[#allocation8 + $0x30] sm:$0xff] }
 0x621   :  { %v8939_v38 = vld [vmem:[#allocation8 + $0xfa8] sm:$0xff]  ;;  %v8441_v23 = vld [vmem:[#allocation8 + $0x18] sm:$0xff] }
 0x622   :  { %v8943_v15 = vld [vmem:[#allocation8 + $0xfc8] sm:$0xff]  ;;  %v8445_v8 = vld [vmem:[#allocation8 + $0x38] sm:$0xff] }
 0x623   :  { %11646 = vmatpush1.bf16.msra.mxu0 %v18305_v53  ;;  %11818 = vmatpush1.bf16.msra.mxu1 %v18307_v1  ;;  %v18361_v53 = vcombine.low %v8902_v33, %v8906_v32  ;;  %v18363_v1 = vcombine.low %v8903_v46, %v8907_v2  ;;  %v8947_v37 = vld [vmem:[#allocation8 + $0xfe8] sm:$0xff]  ;;  %v8448_v33 = vld [vmem:[#allocation8 + $0x50] sm:$0xff]  ;;  %v8449_v46 = vld [vmem:[#allocation8 + $0x58] sm:$0xff] }
 0x624   :  { %11647 = vmatprep.subr.bf16.mxu0 %v18314_v25  ;;  %11819 = vmatprep.subr.bf16.mxu1 %v18316_v6  ;;  %v18370_v25 = vcombine.high %v8910_v29, %v8914_v51  ;;  %v18372_v6 = vcombine.high %v8911_v57, %v8915_v31  ;;  %v8452_v32 = vld [vmem:[#allocation8 + $0x70] sm:$0xff]  ;;  %v8453_v2 = vld [vmem:[#allocation8 + $0x78] sm:$0xff] }
 0x627   :  { %11648 = vmatpush1.bf16.msra.mxu0 %v18313_v19  ;;  %11820 = vmatpush1.bf16.msra.mxu1 %v18315_v22  ;;  %v18369_v19 = vcombine.low %v8910_v29, %v8914_v51  ;;  %v18371_v22 = vcombine.low %v8911_v57, %v8915_v31  ;;  %v8456_v29 = vld [vmem:[#allocation8 + $0x90] sm:$0xff]  ;;  %v8457_v57 = vld [vmem:[#allocation8 + $0x98] sm:$0xff] }
 0x628   :  { %11649 = vmatprep.subr.bf16.mxu0 %v18322_v11  ;;  %11821 = vmatprep.subr.bf16.mxu1 %v18324_v24  ;;  %v18378_v11 = vcombine.high %v8918_v10, %v8922_v62  ;;  %v18380_v24 = vcombine.high %v8919_v12, %v8923_v17  ;;  %v8460_v51 = vld [vmem:[#allocation8 + $0xb0] sm:$0xff]  ;;  %v8461_v31 = vld [vmem:[#allocation8 + $0xb8] sm:$0xff] }
 0x62b   :  { %11650 = vmatpush1.bf16.msra.mxu0 %v18321_v26  ;;  %11822 = vmatpush1.bf16.msra.mxu1 %v18323_v28  ;;  %v18377_v26 = vcombine.low %v8918_v10, %v8922_v62  ;;  %v18379_v28 = vcombine.low %v8919_v12, %v8923_v17  ;;  %v8464_v10 = vld [vmem:[#allocation8 + $0xd0] sm:$0xff]  ;;  %v8465_v12 = vld [vmem:[#allocation8 + $0xd8] sm:$0xff] }
 0x62c   :  { %11651 = vmatprep.subr.bf16.mxu0 %v18330_v34  ;;  %11823 = vmatprep.subr.bf16.mxu1 %v18332_v35  ;;  %v18386_v34 = vcombine.high %v8926_v14, %v8930_v60  ;;  %v18388_v35 = vcombine.high %v8927_v13, %v8931_v21  ;;  %v8468_v62 = vld [vmem:[#allocation8 + $0xf0] sm:$0xff]  ;;  %v8469_v17 = vld [vmem:[#allocation8 + $0xf8] sm:$0xff] }
 0x62f   :  { %11652 = vmatpush1.bf16.msra.mxu0 %v18329_v39  ;;  %11824 = vmatpush1.bf16.msra.mxu1 %v18331_v3  ;;  %v18385_v39 = vcombine.low %v8926_v14, %v8930_v60  ;;  %v18387_v3 = vcombine.low %v8927_v13, %v8931_v21  ;;  %v8472_v14 = vld [vmem:[#allocation8 + $0x110] sm:$0xff]  ;;  %v8477_v13 = vld [vmem:[#allocation8 + $0x138] sm:$0xff]  ;;  %v17925_v21 = vcombine.low %v8464_v10, %v8468_v62 }
 0x630   :  { %11653 = vmatprep.subr.bf16.mxu0 %v18338_v20  ;;  %11825 = vmatprep.subr.bf16.mxu1 %v18340_v27  ;;  %v18394_v20 = vcombine.high %v8934_v52, %v8938_v58  ;;  %v18396_v27 = vcombine.high %v8935_v40, %v8939_v38  ;;  %v8476_v60 = vld [vmem:[#allocation8 + $0x130] sm:$0xff] }
 0x633   :  { %11654 = vmatpush1.bf16.msra.mxu0 %v18337_v49  ;;  %11826 = vmatpush1.bf16.msra.mxu1 %v18339_v0  ;;  %v18393_v49 = vcombine.low %v8934_v52, %v8938_v58  ;;  %v18395_v0 = vcombine.low %v8935_v40, %v8939_v38  ;;  %v8484_v52 = vld [vmem:[#allocation8 + $0x170] sm:$0xff]  ;;  %v8481_v58 = vld [vmem:[#allocation8 + $0x158] sm:$0xff]  ;;  %v17933_v38 = vcombine.low %v8472_v14, %v8476_v60 }
 0x634   :  { %11655 = vmatprep.subr.bf16.mxu0 %v18346_v59  ;;  %11827 = vmatprep.subr.bf16.mxu1 %v18348_v36  ;;  %v18402_v59 = vcombine.high %v8942_v30, %v8946_v44  ;;  %v18404_v36 = vcombine.high %v8943_v15, %v8947_v37  ;;  %v8485_v40 = vld [vmem:[#allocation8 + $0x178] sm:$0xff] }
 0x637   :  { %11656 = vmatpush1.bf16.msra.mxu0 %v18345_v5  ;;  %11828 = vmatpush1.bf16.msra.mxu1 %v18347_v41  ;;  %v18401_v5 = vcombine.low %v8942_v30, %v8946_v44  ;;  %v18403_v41 = vcombine.low %v8943_v15, %v8947_v37  ;;  %v8492_v30 = vld [vmem:[#allocation8 + $0x1b0] sm:$0xff]  ;;  %v8489_v44 = vld [vmem:[#allocation8 + $0x198] sm:$0xff] }
 0x638   :  { %11657 = vmatprep.subr.bf16.mxu0 %v18354_v50  ;;  %11829 = vmatprep.subr.bf16.mxu1 %v18356_v55  ;;  %v17902_v50 = vcombine.high %v8440_v63, %v8444_v42  ;;  %v17904_v55 = vcombine.high %v8441_v23, %v8445_v8  ;;  %v8493_v15 = vld [vmem:[#allocation8 + $0x1b8] sm:$0xff] }
 0x63b   :  { %11658 = vmatpush1.bf16.msra.mxu0 %v18353_v47  ;;  %11830 = vmatpush1.bf16.msra.mxu1 %v18355_v4  ;;  %v17901_v47 = vcombine.low %v8440_v63, %v8444_v42  ;;  %v17903_v4 = vcombine.low %v8441_v23, %v8445_v8  ;;  %v8500_v63 = vld [vmem:[#allocation8 + $0x1f0] sm:$0xff]  ;;  %v8497_v42 = vld [vmem:[#allocation8 + $0x1d8] sm:$0xff] }
 0x63c   :  { %11659 = vmatprep.subr.bf16.mxu0 %v18362_v9  ;;  %11831 = vmatprep.subr.bf16.mxu1 %v18364_v7  ;;  %v17910_v9 = vcombine.high %v8448_v33, %v8452_v32  ;;  %v17912_v7 = vcombine.high %v8449_v46, %v8453_v2  ;;  %v8501_v23 = vld [vmem:[#allocation8 + $0x1f8] sm:$0xff] }
 0x63f   :  { %11660 = vmatpush1.bf16.msra.mxu0 %v18361_v53  ;;  %11832 = vmatpush1.bf16.msra.mxu1 %v18363_v1  ;;  %v17909_v53 = vcombine.low %v8448_v33, %v8452_v32  ;;  %v17911_v1 = vcombine.low %v8449_v46, %v8453_v2  ;;  %v8508_v33 = vld [vmem:[#allocation8 + $0x230] sm:$0xff]  ;;  %v8505_v32 = vld [vmem:[#allocation8 + $0x218] sm:$0xff] }
 0x640   :  { %11661 = vmatprep.subr.bf16.mxu0 %v18370_v25  ;;  %11833 = vmatprep.subr.bf16.mxu1 %v18372_v6  ;;  %v17918_v25 = vcombine.high %v8456_v29, %v8460_v51  ;;  %v17920_v6 = vcombine.high %v8457_v57, %v8461_v31  ;;  %v8509_v46 = vld [vmem:[#allocation8 + $0x238] sm:$0xff] }
 0x643   :  { %11662 = vmatpush1.bf16.msra.mxu0 %v18369_v19  ;;  %11834 = vmatpush1.bf16.msra.mxu1 %v18371_v22  ;;  %v17917_v19 = vcombine.low %v8456_v29, %v8460_v51  ;;  %v17919_v22 = vcombine.low %v8457_v57, %v8461_v31  ;;  %v8516_v29 = vld [vmem:[#allocation8 + $0x270] sm:$0xff]  ;;  %v8513_v51 = vld [vmem:[#allocation8 + $0x258] sm:$0xff] }
 0x644   :  { %11663 = vmatprep.subr.bf16.mxu0 %v18378_v11  ;;  %11835 = vmatprep.subr.bf16.mxu1 %v18380_v24  ;;  %v17926_v11 = vcombine.high %v8464_v10, %v8468_v62  ;;  %v17928_v24 = vcombine.high %v8465_v12, %v8469_v17  ;;  %v8517_v57 = vld [vmem:[#allocation8 + $0x278] sm:$0xff]  ;;  %v8524_v10 = vld [vmem:[#allocation8 + $0x2b0] sm:$0xff] }
 0x645   :  { %v8521_v62 = vld [vmem:[#allocation8 + $0x298] sm:$0xff] }
 0x647   :  { %11664 = vmatpush1.bf16.msra.mxu0 %v18377_v26  ;;  %11836 = vmatpush1.bf16.msra.mxu1 %v18379_v28  ;;  %v17927_v26 = vcombine.low %v8465_v12, %v8469_v17  ;;  %v17934_v28 = vcombine.high %v8472_v14, %v8476_v60  ;;  %v8525_v12 = vld [vmem:[#allocation8 + $0x2b8] sm:$0xff]  ;;  %v8532_v14 = vld [vmem:[#allocation8 + $0x2f0] sm:$0xff] }
 0x648   :  { %11665 = vmatprep.subr.bf16.mxu0 %v18386_v34  ;;  %11837 = vmatprep.subr.bf16.mxu1 %v18388_v35  ;;  %v8480_v35 = vld [vmem:[#allocation8 + $0x150] sm:$0xff]  ;;  %v8529_v60 = vld [vmem:[#allocation8 + $0x2d8] sm:$0xff] }
 0x649   :  { %v17941_v37 = vcombine.low %v8480_v35, %v8484_v52 }
 0x64b   :  { %11666 = vmatpush1.bf16.msra.mxu0 %v18385_v39  ;;  %11838 = vmatpush1.bf16.msra.mxu1 %v18387_v3  ;;  %v17942_v3 = vcombine.high %v8480_v35, %v8484_v52  ;;  %v8540_v35 = vld [vmem:[#allocation8 + $0x330] sm:$0xff]  ;;  %v8537_v52 = vld [vmem:[#allocation8 + $0x318] sm:$0xff] }
 0x64c   :  { %11667 = vmatprep.subr.bf16.mxu0 %v18394_v20  ;;  %11839 = vmatprep.subr.bf16.mxu1 %v18396_v27  ;;  %v17944_v20 = vcombine.high %v8481_v58, %v8485_v40  ;;  %v8488_v27 = vld [vmem:[#allocation8 + $0x190] sm:$0xff] }
 0x64d   :  { %v17949_v8 = vcombine.low %v8488_v27, %v8492_v30 }
 0x64f   :  { %11668 = vmatpush1.bf16.msra.mxu0 %v18393_v49  ;;  %11840 = vmatpush1.bf16.msra.mxu1 %v18395_v0  ;;  %v17943_v49 = vcombine.low %v8481_v58, %v8485_v40  ;;  %v17950_v0 = vcombine.high %v8488_v27, %v8492_v30  ;;  %v8541_v58 = vld [vmem:[#allocation8 + $0x338] sm:$0xff]  ;;  %v8548_v27 = vld [vmem:[#allocation8 + $0x370] sm:$0xff] }
 0x650   :  { %11669 = vmatprep.subr.bf16.mxu0 %v18402_v59  ;;  %11841 = vmatprep.subr.bf16.mxu1 %v18404_v36  ;;  %v17952_v59 = vcombine.high %v8489_v44, %v8493_v15  ;;  %v8496_v36 = vld [vmem:[#allocation8 + $0x1d0] sm:$0xff]  ;;  %v8545_v30 = vld [vmem:[#allocation8 + $0x358] sm:$0xff] }
 0x651   :  { %v17957_v2 = vcombine.low %v8496_v36, %v8500_v63 }
 0x653   :  { %11670 = vmatpush1.bf16.msra.mxu0 %v18401_v5  ;;  %11842 = vmatpush1.bf16.msra.mxu1 %v18403_v41  ;;  %v17951_v5 = vcombine.low %v8489_v44, %v8493_v15  ;;  %v17958_v41 = vcombine.high %v8496_v36, %v8500_v63  ;;  %v8549_v44 = vld [vmem:[#allocation8 + $0x378] sm:$0xff]  ;;  %v8556_v36 = vld [vmem:[#allocation8 + $0x3b0] sm:$0xff] }
 0x654   :  { %11854 = vmatprep.subr.bf16.mxu0 %v17902_v50  ;;  %12026 = vmatprep.subr.bf16.mxu1 %v17904_v55  ;;  %v17960_v50 = vcombine.high %v8497_v42, %v8501_v23  ;;  %v8504_v55 = vld [vmem:[#allocation8 + $0x210] sm:$0xff]  ;;  %v8553_v63 = vld [vmem:[#allocation8 + $0x398] sm:$0xff] }
 0x655   :  { %v17965_v31 = vcombine.low %v8504_v55, %v8508_v33 }
 0x656   :  { %11672 = vmatmul.mubr.bf16.vlgmr.msra.gmra.mrb[24].mxu0 %v20182_v43  ;;  %11844 = vmatmul.mubr.bf16.vlgmr.msra.gmra.mrb[24].mxu1 %v20182_v43 }
 0x657   :  { %11855 = vmatpush1.bf16.msra.mxu0 %v17901_v47  ;;  %11886 = vmatprep.mubr.bf16.mxu0 %v20138_v61  ;;  %v17959_v47 = vcombine.low %v8497_v42, %v8501_v23  ;;  %v8557_v42 = vld [vmem:[#allocation8 + $0x3b8] sm:$0xff] }
 0x658   :  { %12027 = vmatpush1.bf16.msra.mxu1 %v17903_v4  ;;  %12058 = vmatprep.mubr.bf16.mxu1 %v20138_v61  ;;  %v8473_v61 = vld [vmem:[#allocation8 + $0x118] sm:$0xff]  ;;  %v17966_v4 = vcombine.high %v8504_v55, %v8508_v33  ;;  %v8564_v55 = vld [vmem:[#allocation8 + $0x3f0] sm:$0xff] }
 0x659   :  { %11856 = vmatprep.subr.bf16.mxu0 %v17910_v9  ;;  %12028 = vmatprep.subr.bf16.mxu1 %v17912_v7  ;;  %v17936_v34 = vcombine.high %v8473_v61, %v8477_v13  ;;  %v17935_v39 = vcombine.low %v8473_v61, %v8477_v13  ;;  %v17968_v9 = vcombine.high %v8505_v32, %v8509_v46  ;;  %v8512_v7 = vld [vmem:[#allocation8 + $0x250] sm:$0xff]  ;;  %v8533_v61 = vld [vmem:[#allocation8 + $0x2f8] sm:$0xff] }
 0x65a   :  { %v17973_v17 = vcombine.low %v8512_v7, %v8516_v29  ;;  %v8561_v33 = vld [vmem:[#allocation8 + $0x3d8] sm:$0xff] }
 0x65b   :  { %11857 = vmatpush1.bf16.msra.mxu0 %v17909_v53  ;;  %v17967_v53 = vcombine.low %v8505_v32, %v8509_v46  ;;  %v8565_v32 = vld [vmem:[#allocation8 + $0x3f8] sm:$0xff] }
 0x65c   :  { %12029 = vmatpush1.bf16.msra.mxu1 %v17911_v1  ;;  %11858 = vmatprep.subr.bf16.mxu0 %v17918_v25  ;;  %v17974_v1 = vcombine.high %v8512_v7, %v8516_v29  ;;  %v17976_v25 = vcombine.high %v8513_v51, %v8517_v57  ;;  %v8572_v7 = vld [vmem:[#allocation8 + $0x430] sm:$0xff]  ;;  %v8569_v29 = vld [vmem:[#allocation8 + $0x418] sm:$0xff] }
 0x65d   :  { %12030 = vmatprep.subr.bf16.mxu1 %v17920_v6  ;;  %v8520_v6 = vld [vmem:[#allocation8 + $0x290] sm:$0xff] }
 0x65e   :  { %v17981_v13 = vcombine.low %v8520_v6, %v8524_v10 }
 0x65f   :  { %11859 = vmatpush1.bf16.msra.mxu0 %v17917_v19  ;;  %v17975_v19 = vcombine.low %v8513_v51, %v8517_v57  ;;  %v8573_v51 = vld [vmem:[#allocation8 + $0x438] sm:$0xff] }
 0x660   :  { %12031 = vmatpush1.bf16.msra.mxu1 %v17919_v22  ;;  %11860 = vmatprep.subr.bf16.mxu0 %v17926_v11  ;;  %v17982_v22 = vcombine.high %v8520_v6, %v8524_v10  ;;  %v17984_v11 = vcombine.high %v8521_v62, %v8525_v12  ;;  %v8580_v6 = vld [vmem:[#allocation8 + $0x470] sm:$0xff] }
 0x661   :  { %12032 = vmatprep.subr.bf16.mxu1 %v17928_v24  ;;  %v8528_v24 = vld [vmem:[#allocation8 + $0x2d0] sm:$0xff] }
 0x662   :  { %v17989_v40 = vcombine.low %v8528_v24, %v8532_v14 }
 0x663   :  { %11861 = vmatpush1.bf16.msra.mxu0 %v17925_v21  ;;  %v17983_v21 = vcombine.low %v8521_v62, %v8525_v12  ;;  %v8577_v62 = vld [vmem:[#allocation8 + $0x458] sm:$0xff] }
 0x664   :  { %12033 = vmatpush1.bf16.msra.mxu1 %v17927_v26  ;;  %11862 = vmatprep.subr.bf16.mxu0 %v17934_v28  ;;  %v17990_v26 = vcombine.high %v8528_v24, %v8532_v14  ;;  %v17992_v28 = vcombine.high %v8529_v60, %v8533_v61  ;;  %v8581_v12 = vld [vmem:[#allocation8 + $0x478] sm:$0xff] }
 0x665   :  { %12034 = vmatprep.subr.bf16.mxu1 %v17936_v34  ;;  %v8536_v34 = vld [vmem:[#allocation8 + $0x310] sm:$0xff]  ;;  %v18040_v24 = vcombine.high %v8577_v62, %v8581_v12  ;;  %v8585_v14 = vld [vmem:[#allocation8 + $0x498] sm:$0xff] }
 0x666   :  { %v17997_v15 = vcombine.low %v8536_v34, %v8540_v35 }
 0x667   :  { %11863 = vmatpush1.bf16.msra.mxu0 %v17933_v38  ;;  %v17991_v38 = vcombine.low %v8529_v60, %v8533_v61  ;;  %v8589_v60 = vld [vmem:[#allocation8 + $0x4b8] sm:$0xff] }
 0x668   :  { %12035 = vmatpush1.bf16.msra.mxu1 %v17935_v39  ;;  %11864 = vmatprep.subr.bf16.mxu0 %v17942_v3  ;;  %v17998_v39 = vcombine.high %v8536_v34, %v8540_v35  ;;  %v18000_v3 = vcombine.high %v8537_v52, %v8541_v58  ;;  %v8596_v34 = vld [vmem:[#allocation8 + $0x4f0] sm:$0xff]  ;;  %v8593_v35 = vld [vmem:[#allocation8 + $0x4d8] sm:$0xff] }
 0x669   :  { %12036 = vmatprep.subr.bf16.mxu1 %v17944_v20  ;;  %v8544_v20 = vld [vmem:[#allocation8 + $0x350] sm:$0xff] }
 0x66a   :  { %v18005_v23 = vcombine.low %v8544_v20, %v8548_v27 }
 0x66b   :  { %11865 = vmatpush1.bf16.msra.mxu0 %v17941_v37  ;;  %v17999_v37 = vcombine.low %v8537_v52, %v8541_v58  ;;  %v8597_v52 = vld [vmem:[#allocation8 + $0x4f8] sm:$0xff] }
 0x66c   :  { %12037 = vmatpush1.bf16.msra.mxu1 %v17943_v49  ;;  %11866 = vmatprep.subr.bf16.mxu0 %v17950_v0  ;;  %v18006_v49 = vcombine.high %v8544_v20, %v8548_v27  ;;  %v18008_v0 = vcombine.high %v8545_v30, %v8549_v44  ;;  %v8601_v20 = vld [vmem:[#allocation8 + $0x518] sm:$0xff] }
 0x66d   :  { %12038 = vmatprep.subr.bf16.mxu1 %v17952_v59  ;;  %v8552_v59 = vld [vmem:[#allocation8 + $0x390] sm:$0xff]  ;;  %v8605_v27 = vld [vmem:[#allocation8 + $0x538] sm:$0xff] }
 0x66e   :  { %v18013_v46 = vcombine.low %v8552_v59, %v8556_v36 }
 0x66f   :  { %11867 = vmatpush1.bf16.msra.mxu0 %v17949_v8  ;;  %v18007_v8 = vcombine.low %v8545_v30, %v8549_v44  ;;  %v18055_v30 = vcombine.low %v8593_v35, %v8597_v52 }
 0x670   :  { %12039 = vmatpush1.bf16.msra.mxu1 %v17951_v5  ;;  %11868 = vmatprep.subr.bf16.mxu0 %v17958_v41  ;;  %v18014_v5 = vcombine.high %v8552_v59, %v8556_v36  ;;  %v18016_v41 = vcombine.high %v8553_v63, %v8557_v42  ;;  %v8613_v59 = vld [vmem:[#allocation8 + $0x578] sm:$0xff] }
 0x671   :  { %12040 = vmatprep.subr.bf16.mxu1 %v17960_v50  ;;  %v8560_v50 = vld [vmem:[#allocation8 + $0x3d0] sm:$0xff] }
 0x672   :  { %v18021_v57 = vcombine.low %v8560_v50, %v8564_v55 }
 0x673   :  { %11869 = vmatpush1.bf16.msra.mxu0 %v17957_v2  ;;  %v18015_v2 = vcombine.low %v8553_v63, %v8557_v42  ;;  %v18063_v63 = vcombine.low %v8601_v20, %v8605_v27 }
 0x674   :  { %12041 = vmatpush1.bf16.msra.mxu1 %v17959_v47  ;;  %11870 = vmatprep.subr.bf16.mxu0 %v17966_v4  ;;  %v18022_v47 = vcombine.high %v8560_v50, %v8564_v55  ;;  %v18024_v4 = vcombine.high %v8561_v33, %v8565_v32  ;;  %v8621_v50 = vld [vmem:[#allocation8 + $0x5b8] sm:$0xff] }
 0x675   :  { %12042 = vmatprep.subr.bf16.mxu1 %v17968_v9  ;;  %v8568_v9 = vld [vmem:[#allocation8 + $0x410] sm:$0xff] }
 0x676   :  { %v18029_v10 = vcombine.low %v8568_v9, %v8572_v7 }
 0x677   :  { %11871 = vmatpush1.bf16.msra.mxu0 %v17965_v31  ;;  %v18023_v31 = vcombine.low %v8561_v33, %v8565_v32 }
 0x678   :  { %12043 = vmatpush1.bf16.msra.mxu1 %v17967_v53  ;;  %11872 = vmatprep.subr.bf16.mxu0 %v17974_v1  ;;  %v18030_v53 = vcombine.high %v8568_v9, %v8572_v7  ;;  %v18032_v1 = vcombine.high %v8569_v29, %v8573_v51  ;;  %v8629_v9 = vld [vmem:[#allocation8 + $0x5f8] sm:$0xff] }
 0x679   :  { %12044 = vmatprep.subr.bf16.mxu1 %v17976_v25  ;;  %v8576_v25 = vld [vmem:[#allocation8 + $0x450] sm:$0xff] }
 0x67a   :  { %v18037_v61 = vcombine.low %v8576_v25, %v8580_v6 }
 0x67b   :  { %11873 = vmatpush1.bf16.msra.mxu0 %v17973_v17  ;;  %v18031_v17 = vcombine.low %v8569_v29, %v8573_v51 }
 0x67c   :  { %12045 = vmatpush1.bf16.msra.mxu1 %v17975_v19  ;;  %11874 = vmatprep.subr.bf16.mxu0 %v17982_v22  ;;  %v18038_v19 = vcombine.high %v8576_v25, %v8580_v6  ;;  %v8584_v22 = vld [vmem:[#allocation8 + $0x490] sm:$0xff]  ;;  %v8637_v25 = vld [vmem:[#allocation8 + $0x638] sm:$0xff] }
 0x67d   :  { %12046 = vmatprep.subr.bf16.mxu1 %v17984_v11  ;;  %v8588_v11 = vld [vmem:[#allocation8 + $0x4b0] sm:$0xff] }
 0x67e   :  { %v18045_v58 = vcombine.low %v8584_v22, %v8588_v11 }
 0x67f   :  { %11875 = vmatpush1.bf16.msra.mxu0 %v17981_v13  ;;  %v18039_v13 = vcombine.low %v8577_v62, %v8581_v12 }
 0x680   :  { %12047 = vmatpush1.bf16.msra.mxu1 %v17983_v21  ;;  %11876 = vmatprep.subr.bf16.mxu0 %v17990_v26  ;;  %v18046_v21 = vcombine.high %v8584_v22, %v8588_v11  ;;  %v18048_v26 = vcombine.high %v8585_v14, %v8589_v60  ;;  %v8641_v22 = vld [vmem:[#allocation8 + $0x658] sm:$0xff] }
 0x681   :  { %12048 = vmatprep.subr.bf16.mxu1 %v17992_v28  ;;  %v8592_v28 = vld [vmem:[#allocation8 + $0x4d0] sm:$0xff]  ;;  %v8645_v11 = vld [vmem:[#allocation8 + $0x678] sm:$0xff] }
 0x683   :  { %11877 = vmatpush1.bf16.msra.mxu0 %v17989_v40  ;;  %v18054_v40 = vcombine.high %v8592_v28, %v8596_v34 }
 0x684   :  { %12049 = vmatpush1.bf16.msra.mxu1 %v17991_v38  ;;  %11878 = vmatprep.subr.bf16.mxu0 %v17998_v39  ;;  %v18056_v38 = vcombine.high %v8593_v35, %v8597_v52  ;;  %v8600_v39 = vld [vmem:[#allocation8 + $0x510] sm:$0xff]  ;;  %v18103_v35 = vcombine.low %v8641_v22, %v8645_v11 }
 0x685   :  { %12050 = vmatprep.subr.bf16.mxu1 %v18000_v3  ;;  %v8604_v3 = vld [vmem:[#allocation8 + $0x530] sm:$0xff] }
 0x686   :  { %v18062_v44 = vcombine.high %v8600_v39, %v8604_v3  ;;  %v18061_v36 = vcombine.low %v8600_v39, %v8604_v3  ;;  %v8661_v39 = vld [vmem:[#allocation8 + $0x6f8] sm:$0xff] }
 0x687   :  { %11879 = vmatpush1.bf16.msra.mxu0 %v17997_v15  ;;  %v18064_v15 = vcombine.high %v8601_v20, %v8605_v27 }
 0x688   :  { %12051 = vmatpush1.bf16.msra.mxu1 %v17999_v37  ;;  %11880 = vmatprep.subr.bf16.mxu0 %v18006_v49  ;;  %v8608_v37 = vld [vmem:[#allocation8 + $0x550] sm:$0xff] }
 0x689   :  { %12052 = vmatprep.subr.bf16.mxu1 %v18008_v0  ;;  %v8612_v49 = vld [vmem:[#allocation8 + $0x570] sm:$0xff]  ;;  %v8609_v0 = vld [vmem:[#allocation8 + $0x558] sm:$0xff] }
 0x68a   :  { %v18070_v42 = vcombine.high %v8608_v37, %v8612_v49  ;;  %v18069_v55 = vcombine.low %v8608_v37, %v8612_v49  ;;  %v18071_v33 = vcombine.low %v8609_v0, %v8613_v59  ;;  %v8669_v37 = vld [vmem:[#allocation8 + $0x738] sm:$0xff] }
 0x68b   :  { %11881 = vmatpush1.bf16.msra.mxu0 %v18005_v23  ;;  %v18072_v23 = vcombine.high %v8609_v0, %v8613_v59 }
 0x68c   :  { %12053 = vmatpush1.bf16.msra.mxu1 %v18007_v8  ;;  %11882 = vmatprep.subr.bf16.mxu0 %v18014_v5  ;;  %v8616_v8 = vld [vmem:[#allocation8 + $0x590] sm:$0xff] }
 0x68d   :  { %12054 = vmatprep.subr.bf16.mxu1 %v18016_v41  ;;  %v8620_v5 = vld [vmem:[#allocation8 + $0x5b0] sm:$0xff]  ;;  %v8617_v41 = vld [vmem:[#allocation8 + $0x598] sm:$0xff] }
 0x68e   :  { %v18078_v32 = vcombine.high %v8616_v8, %v8620_v5  ;;  %v18077_v7 = vcombine.low %v8616_v8, %v8620_v5  ;;  %v18079_v29 = vcombine.low %v8617_v41, %v8621_v50  ;;  %v8677_v8 = vld [vmem:[#allocation8 + $0x778] sm:$0xff] }
 0x68f   :  { %11883 = vmatpush1.bf16.msra.mxu0 %v18013_v46  ;;  %v18080_v46 = vcombine.high %v8617_v41, %v8621_v50 }
 0x690   :  { %12055 = vmatpush1.bf16.msra.mxu1 %v18015_v2  ;;  %11884 = vmatprep.subr.bf16.mxu0 %v18022_v47  ;;  %v8624_v2 = vld [vmem:[#allocation8 + $0x5d0] sm:$0xff] }
 0x691   :  { %12056 = vmatprep.subr.bf16.mxu1 %v18024_v4  ;;  %v8628_v47 = vld [vmem:[#allocation8 + $0x5f0] sm:$0xff]  ;;  %v8625_v4 = vld [vmem:[#allocation8 + $0x5d8] sm:$0xff] }
 0x692   :  { %v18086_v51 = vcombine.high %v8624_v2, %v8628_v47  ;;  %v18085_v6 = vcombine.low %v8624_v2, %v8628_v47  ;;  %v8685_v2 = vld [vmem:[#allocation8 + $0x7b8] sm:$0xff] }
 0x693   :  { %11885 = vmatpush1.bf16.msra.mxu0 %v18021_v57  ;;  %v18088_v57 = vcombine.high %v8625_v4, %v8629_v9 }
 0x694   :  { %12057 = vmatpush1.bf16.msra.mxu1 %v18023_v31  ;;  %11897 = vmatprep.subr.bf16.mxu0 %v18030_v53  ;;  %v8632_v31 = vld [vmem:[#allocation8 + $0x610] sm:$0xff] }
 0x695   :  { %12069 = vmatprep.subr.bf16.mxu1 %v18032_v1  ;;  %v8636_v53 = vld [vmem:[#allocation8 + $0x630] sm:$0xff]  ;;  %v8633_v1 = vld [vmem:[#allocation8 + $0x618] sm:$0xff] }
 0x696   :  { %11887 = vmatmul.mubr.bf16.vlgmr.msra.gmra.mrb[28].mxu0 %v20131_v18  ;;  %v18094_v62 = vcombine.high %v8632_v31, %v8636_v53  ;;  %v18096_v12 = vcombine.high %v8633_v1, %v8637_v25 }
 0x697   :  { %12059 = vmatmul.mubr.bf16.vlgmr.msra.gmra.mrb[28].mxu1 %v20131_v18  ;;  %11898 = vmatpush1.bf16.msra.mxu0 %v18029_v10  ;;  %v18047_v18 = vcombine.low %v8585_v14, %v8589_v60  ;;  %v18087_v10 = vcombine.low %v8625_v4, %v8629_v9  ;;  %v18095_v14 = vcombine.low %v8633_v1, %v8637_v25 }
 0x698   :  { %11929 = vmatprep.mubr.bf16.mxu0 %v20140_v45  ;;  %12070 = vmatpush1.bf16.msra.mxu1 %v18031_v17  ;;  %v8640_v17 = vld [vmem:[#allocation8 + $0x650] sm:$0xff] }
 0x699   :  { %12101 = vmatprep.mubr.bf16.mxu1 %v20140_v45  ;;  %11899 = vmatprep.subr.bf16.mxu0 %v18038_v19  ;;  %v18053_v45 = vcombine.low %v8592_v28, %v8596_v34  ;;  %v8644_v19 = vld [vmem:[#allocation8 + $0x670] sm:$0xff]  ;;  %v8653_v28 = vld [vmem:[#allocation8 + $0x6b8] sm:$0xff] }
 0x69a   :  { %12071 = vmatprep.subr.bf16.mxu1 %v18040_v24  ;;  %v18093_v24 = vcombine.low %v8632_v31, %v8636_v53  ;;  %v18102_v60 = vcombine.high %v8640_v17, %v8644_v19  ;;  %v18101_v34 = vcombine.low %v8640_v17, %v8644_v19  ;;  %v8693_v31 = vld [vmem:[#allocation8 + $0x7f8] sm:$0xff] }
 0x69b   :  { %11900 = vmatpush1.bf16.msra.mxu0 %v18037_v61  ;;  %v18104_v61 = vcombine.high %v8641_v22, %v8645_v11  ;;  %v8701_v17 = vld [vmem:[#allocation8 + $0x838] sm:$0xff] }
 0x69c   :  { %12072 = vmatpush1.bf16.msra.mxu1 %v18039_v13  ;;  %11901 = vmatprep.subr.bf16.mxu0 %v18046_v21  ;;  %v8648_v13 = vld [vmem:[#allocation8 + $0x690] sm:$0xff] }
 0x69d   :  { %12073 = vmatprep.subr.bf16.mxu1 %v18048_v26  ;;  %v8652_v21 = vld [vmem:[#allocation8 + $0x6b0] sm:$0xff]  ;;  %v8649_v26 = vld [vmem:[#allocation8 + $0x698] sm:$0xff] }
 0x69e   :  { %v18110_v52 = vcombine.high %v8648_v13, %v8652_v21  ;;  %v18109_v3 = vcombine.low %v8648_v13, %v8652_v21  ;;  %v18111_v20 = vcombine.low %v8649_v26, %v8653_v28  ;;  %v8705_v13 = vld [vmem:[#allocation8 + $0x858] sm:$0xff] }
 0x69f   :  { %11902 = vmatpush1.bf16.msra.mxu0 %v18045_v58  ;;  %v18112_v58 = vcombine.high %v8649_v26, %v8653_v28  ;;  %v8709_v21 = vld [vmem:[#allocation8 + $0x878] sm:$0xff] }
 0x6a0   :  { %12074 = vmatpush1.bf16.msra.mxu1 %v18047_v18  ;;  %11903 = vmatprep.subr.bf16.mxu0 %v18054_v40  ;;  %v8656_v18 = vld [vmem:[#allocation8 + $0x6d0] sm:$0xff] }
 0x6a1   :  { %12075 = vmatprep.subr.bf16.mxu1 %v18056_v38  ;;  %v8660_v40 = vld [vmem:[#allocation8 + $0x6f0] sm:$0xff]  ;;  %v8657_v38 = vld [vmem:[#allocation8 + $0x6d8] sm:$0xff] }
 0x6a2   :  { %v18118_v27 = vcombine.high %v8656_v18, %v8660_v40  ;;  %v18117_v49 = vcombine.low %v8656_v18, %v8660_v40  ;;  %v18119_v0 = vcombine.low %v8657_v38, %v8661_v39  ;;  %v8717_v18 = vld [vmem:[#allocation8 + $0x8b8] sm:$0xff] }
 0x6a3   :  { %11904 = vmatpush1.bf16.msra.mxu0 %v18053_v45  ;;  %v18120_v45 = vcombine.high %v8657_v38, %v8661_v39  ;;  %v18167_v38 = vcombine.low %v8705_v13, %v8709_v21 }
 0x6a4   :  { %12076 = vmatpush1.bf16.msra.mxu1 %v18055_v30  ;;  %11905 = vmatprep.subr.bf16.mxu0 %v18062_v44  ;;  %v8664_v30 = vld [vmem:[#allocation8 + $0x710] sm:$0xff] }
 0x6a5   :  { %12077 = vmatprep.subr.bf16.mxu1 %v18064_v15  ;;  %v8668_v44 = vld [vmem:[#allocation8 + $0x730] sm:$0xff]  ;;  %v8665_v15 = vld [vmem:[#allocation8 + $0x718] sm:$0xff] }
 0x6a6   :  { %v18126_v59 = vcombine.high %v8664_v30, %v8668_v44  ;;  %v18125_v5 = vcombine.low %v8664_v30, %v8668_v44  ;;  %v18127_v41 = vcombine.low %v8665_v15, %v8669_v37  ;;  %v8725_v30 = vld [vmem:[#allocation8 + $0x8f8] sm:$0xff] }
 0x6a7   :  { %11906 = vmatpush1.bf16.msra.mxu0 %v18061_v36  ;;  %v18128_v36 = vcombine.high %v8665_v15, %v8669_v37 }
 0x6a8   :  { %12078 = vmatpush1.bf16.msra.mxu1 %v18063_v63  ;;  %11907 = vmatprep.subr.bf16.mxu0 %v18070_v42  ;;  %v8672_v63 = vld [vmem:[#allocation8 + $0x750] sm:$0xff] }
 0x6a9   :  { %12079 = vmatprep.subr.bf16.mxu1 %v18072_v23  ;;  %v8676_v42 = vld [vmem:[#allocation8 + $0x770] sm:$0xff]  ;;  %v8673_v23 = vld [vmem:[#allocation8 + $0x758] sm:$0xff] }
 0x6aa   :  { %v18134_v50 = vcombine.high %v8672_v63, %v8676_v42  ;;  %v18133_v47 = vcombine.low %v8672_v63, %v8676_v42  ;;  %v18135_v4 = vcombine.low %v8673_v23, %v8677_v8 }
 0x6ab   :  { %11908 = vmatpush1.bf16.msra.mxu0 %v18069_v55  ;;  %v18136_v55 = vcombine.high %v8673_v23, %v8677_v8  ;;  %v8736_v8 = vld [vmem:[#allocation8 + $0x950] sm:$0xff] }
 0x6ac   :  { %12080 = vmatpush1.bf16.msra.mxu1 %v18071_v33  ;;  %11909 = vmatprep.subr.bf16.mxu0 %v18078_v32  ;;  %v8680_v33 = vld [vmem:[#allocation8 + $0x790] sm:$0xff] }
 0x6ad   :  { %12081 = vmatprep.subr.bf16.mxu1 %v18080_v46  ;;  %v8684_v32 = vld [vmem:[#allocation8 + $0x7b0] sm:$0xff]  ;;  %v8681_v46 = vld [vmem:[#allocation8 + $0x798] sm:$0xff] }
 0x6ae   :  { %v18142_v9 = vcombine.high %v8680_v33, %v8684_v32  ;;  %v18141_v53 = vcombine.low %v8680_v33, %v8684_v32  ;;  %v18143_v1 = vcombine.low %v8681_v46, %v8685_v2 }
 0x6af   :  { %11910 = vmatpush1.bf16.msra.mxu0 %v18077_v7  ;;  %v18144_v7 = vcombine.high %v8681_v46, %v8685_v2  ;;  %v8744_v2 = vld [vmem:[#allocation8 + $0x990] sm:$0xff] }
 0x6b0   :  { %12082 = vmatpush1.bf16.msra.mxu1 %v18079_v29  ;;  %11911 = vmatprep.subr.bf16.mxu0 %v18086_v51  ;;  %v8688_v29 = vld [vmem:[#allocation8 + $0x7d0] sm:$0xff] }
 0x6b1   :  { %12083 = vmatprep.subr.bf16.mxu1 %v18088_v57  ;;  %v8692_v51 = vld [vmem:[#allocation8 + $0x7f0] sm:$0xff]  ;;  %v8689_v57 = vld [vmem:[#allocation8 + $0x7d8] sm:$0xff] }
 0x6b2   :  { %v18150_v25 = vcombine.high %v8688_v29, %v8692_v51  ;;  %v18149_v19 = vcombine.low %v8688_v29, %v8692_v51  ;;  %v18151_v22 = vcombine.low %v8689_v57, %v8693_v31 }
 0x6b3   :  { %11912 = vmatpush1.bf16.msra.mxu0 %v18085_v6  ;;  %v18152_v6 = vcombine.high %v8689_v57, %v8693_v31  ;;  %v8752_v31 = vld [vmem:[#allocation8 + $0x9d0] sm:$0xff] }
 0x6b4   :  { %12084 = vmatpush1.bf16.msra.mxu1 %v18087_v10  ;;  %11913 = vmatprep.subr.bf16.mxu0 %v18094_v62  ;;  %v8696_v10 = vld [vmem:[#allocation8 + $0x810] sm:$0xff] }
 0x6b5   :  { %12085 = vmatprep.subr.bf16.mxu1 %v18096_v12  ;;  %v8700_v62 = vld [vmem:[#allocation8 + $0x830] sm:$0xff]  ;;  %v8697_v12 = vld [vmem:[#allocation8 + $0x818] sm:$0xff] }
 0x6b6   :  { %v18158_v11 = vcombine.high %v8696_v10, %v8700_v62  ;;  %v18159_v26 = vcombine.low %v8697_v12, %v8701_v17 }
 0x6b7   :  { %11914 = vmatpush1.bf16.msra.mxu0 %v18093_v24  ;;  %v18160_v24 = vcombine.high %v8697_v12, %v8701_v17  ;;  %v8760_v17 = vld [vmem:[#allocation8 + $0xa10] sm:$0xff] }
 0x6b8   :  { %12086 = vmatpush1.bf16.msra.mxu1 %v18095_v14  ;;  %11915 = vmatprep.subr.bf16.mxu0 %v18102_v60  ;;  %v8704_v14 = vld [vmem:[#allocation8 + $0x850] sm:$0xff] }
 0x6b9   :  { %12087 = vmatprep.subr.bf16.mxu1 %v18104_v61  ;;  %v8708_v60 = vld [vmem:[#allocation8 + $0x870] sm:$0xff]  ;;  %v18157_v61 = vcombine.low %v8696_v10, %v8700_v62 }
 0x6ba   :  { %v18166_v28 = vcombine.high %v8704_v14, %v8708_v60  ;;  %v18165_v40 = vcombine.low %v8704_v14, %v8708_v60 }
 0x6bb   :  { %11916 = vmatpush1.bf16.msra.mxu0 %v18101_v34  ;;  %v8712_v34 = vld [vmem:[#allocation8 + $0x890] sm:$0xff] }
 0x6bc   :  { %12088 = vmatpush1.bf16.msra.mxu1 %v18103_v35  ;;  %11917 = vmatprep.subr.bf16.mxu0 %v18110_v52  ;;  %v8716_v35 = vld [vmem:[#allocation8 + $0x8b0] sm:$0xff]  ;;  %v18168_v52 = vcombine.high %v8705_v13, %v8709_v21 }
 0x6bd   :  { %12089 = vmatprep.subr.bf16.mxu1 %v18112_v58  ;;  %v8713_v58 = vld [vmem:[#allocation8 + $0x898] sm:$0xff]  ;;  %v18174_v39 = vcombine.high %v8712_v34, %v8716_v35  ;;  %v18173_v44 = vcombine.low %v8712_v34, %v8716_v35  ;;  %v8768_v13 = vld [vmem:[#allocation8 + $0xa50] sm:$0xff] }
 0x6be   :  { %v8772_v21 = vld [vmem:[#allocation8 + $0xa70] sm:$0xff] }
 0x6bf   :  { %11918 = vmatpush1.bf16.msra.mxu0 %v18109_v3  ;;  %v18176_v3 = vcombine.high %v8713_v58, %v8717_v18 }
 0x6c0   :  { %12090 = vmatpush1.bf16.msra.mxu1 %v18111_v20  ;;  %11919 = vmatprep.subr.bf16.mxu0 %v18118_v27  ;;  %v8720_v20 = vld [vmem:[#allocation8 + $0x8d0] sm:$0xff] }
 0x6c1   :  { %12091 = vmatprep.subr.bf16.mxu1 %v18120_v45  ;;  %v8724_v27 = vld [vmem:[#allocation8 + $0x8f0] sm:$0xff]  ;;  %v8721_v45 = vld [vmem:[#allocation8 + $0x8d8] sm:$0xff] }
 0x6c2   :  { %v18182_v15 = vcombine.high %v8720_v20, %v8724_v27  ;;  %v18184_v37 = vcombine.high %v8721_v45, %v8725_v30  ;;  %v18183_v63 = vcombine.low %v8721_v45, %v8725_v30  ;;  %v8784_v30 = vld [vmem:[#allocation8 + $0xad0] sm:$0xff] }
 0x6c3   :  { %11920 = vmatpush1.bf16.msra.mxu0 %v18117_v49  ;;  %v8728_v49 = vld [vmem:[#allocation8 + $0x910] sm:$0xff] }
 0x6c4   :  { %12092 = vmatpush1.bf16.msra.mxu1 %v18119_v0  ;;  %11921 = vmatprep.subr.bf16.mxu0 %v18126_v59  ;;  %v8732_v0 = vld [vmem:[#allocation8 + $0x930] sm:$0xff]  ;;  %v8729_v59 = vld [vmem:[#allocation8 + $0x918] sm:$0xff] }
 0x6c5   :  { %12093 = vmatprep.subr.bf16.mxu1 %v18128_v36  ;;  %v8733_v36 = vld [vmem:[#allocation8 + $0x938] sm:$0xff]  ;;  %v18190_v42 = vcombine.high %v8728_v49, %v8732_v0 }
 0x6c6   :  { %v18192_v23 = vcombine.high %v8729_v59, %v8733_v36  ;;  %v18191_v33 = vcombine.low %v8729_v59, %v8733_v36  ;;  %v8792_v36 = vld [vmem:[#allocation8 + $0xb10] sm:$0xff] }
 0x6c7   :  { %11922 = vmatpush1.bf16.msra.mxu0 %v18125_v5  ;;  %v8740_v5 = vld [vmem:[#allocation8 + $0x970] sm:$0xff] }
 0x6c8   :  { %12094 = vmatpush1.bf16.msra.mxu1 %v18127_v41  ;;  %11923 = vmatprep.subr.bf16.mxu0 %v18134_v50  ;;  %v8737_v41 = vld [vmem:[#allocation8 + $0x958] sm:$0xff]  ;;  %v18198_v32 = vcombine.high %v8736_v8, %v8740_v5 }
 0x6c9   :  { %12095 = vmatprep.subr.bf16.mxu1 %v18136_v55  ;;  %v8741_v50 = vld [vmem:[#allocation8 + $0x978] sm:$0xff]  ;;  %v18189_v55 = vcombine.low %v8728_v49, %v8732_v0 }
 0x6ca   :  { %v18200_v46 = vcombine.high %v8737_v41, %v8741_v50  ;;  %v18199_v29 = vcombine.low %v8737_v41, %v8741_v50  ;;  %v8800_v50 = vld [vmem:[#allocation8 + $0xb50] sm:$0xff] }
 0x6cb   :  { %11924 = vmatpush1.bf16.msra.mxu0 %v18133_v47  ;;  %v8748_v47 = vld [vmem:[#allocation8 + $0x9b0] sm:$0xff] }
 0x6cc   :  { %12096 = vmatpush1.bf16.msra.mxu1 %v18135_v4  ;;  %11925 = vmatprep.subr.bf16.mxu0 %v18142_v9  ;;  %v8745_v4 = vld [vmem:[#allocation8 + $0x998] sm:$0xff]  ;;  %v18206_v51 = vcombine.high %v8744_v2, %v8748_v47 }
 0x6cd   :  { %12097 = vmatprep.subr.bf16.mxu1 %v18144_v7  ;;  %v8749_v9 = vld [vmem:[#allocation8 + $0x9b8] sm:$0xff]  ;;  %v18197_v7 = vcombine.low %v8736_v8, %v8740_v5 }
 0x6ce   :  { %v18208_v57 = vcombine.high %v8745_v4, %v8749_v9  ;;  %v18207_v10 = vcombine.low %v8745_v4, %v8749_v9  ;;  %v8808_v9 = vld [vmem:[#allocation8 + $0xb90] sm:$0xff] }
 0x6cf   :  { %11926 = vmatpush1.bf16.msra.mxu0 %v18141_v53  ;;  %v8756_v53 = vld [vmem:[#allocation8 + $0x9f0] sm:$0xff] }
 0x6d0   :  { %12098 = vmatpush1.bf16.msra.mxu1 %v18143_v1  ;;  %11927 = vmatprep.subr.bf16.mxu0 %v18150_v25  ;;  %v8753_v1 = vld [vmem:[#allocation8 + $0x9d8] sm:$0xff]  ;;  %v18214_v62 = vcombine.high %v8752_v31, %v8756_v53 }
 0x6d1   :  { %12099 = vmatprep.subr.bf16.mxu1 %v18152_v6  ;;  %v8757_v25 = vld [vmem:[#allocation8 + $0x9f8] sm:$0xff]  ;;  %v18205_v6 = vcombine.low %v8744_v2, %v8748_v47 }
 0x6d2   :  { %v18216_v12 = vcombine.high %v8753_v1, %v8757_v25  ;;  %v18215_v14 = vcombine.low %v8753_v1, %v8757_v25  ;;  %v8816_v25 = vld [vmem:[#allocation8 + $0xbd0] sm:$0xff] }
 0x6d3   :  { %11928 = vmatpush1.bf16.msra.mxu0 %v18149_v19  ;;  %v8764_v19 = vld [vmem:[#allocation8 + $0xa30] sm:$0xff] }
 0x6d4   :  { %12100 = vmatpush1.bf16.msra.mxu1 %v18151_v22  ;;  %11940 = vmatprep.subr.bf16.mxu0 %v18158_v11  ;;  %v8761_v22 = vld [vmem:[#allocation8 + $0xa18] sm:$0xff]  ;;  %v18222_v60 = vcombine.high %v8760_v17, %v8764_v19  ;;  %v18221_v34 = vcombine.low %v8760_v17, %v8764_v19 }
 0x6d5   :  { %12112 = vmatprep.subr.bf16.mxu1 %v18160_v24  ;;  %v8765_v11 = vld [vmem:[#allocation8 + $0xa38] sm:$0xff]  ;;  %v18213_v24 = vcombine.low %v8752_v31, %v8756_v53 }
 0x6d6   :  { %11930 = vmatmul.mubr.bf16.vlgmr.msra.gmra.mrb[28].mxu0 %v20135_v16  ;;  %v18223_v35 = vcombine.low %v8761_v22, %v8765_v11 }
 0x6d7   :  { %12102 = vmatmul.mubr.bf16.vlgmr.msra.gmra.mrb[28].mxu1 %v20135_v16  ;;  %11941 = vmatpush1.bf16.msra.mxu0 %v18157_v61  ;;  %v18175_v16 = vcombine.low %v8713_v58, %v8717_v18  ;;  %v18224_v61 = vcombine.high %v8761_v22, %v8765_v11  ;;  %v8776_v18 = vld [vmem:[#allocation8 + $0xa90] sm:$0xff] }
 0x6d8   :  { %11972 = vmatprep.mubr.bf16.mxu0 %v20184_v48  ;;  %12113 = vmatpush1.bf16.msra.mxu1 %v18159_v26  ;;  %v8769_v26 = vld [vmem:[#allocation8 + $0xa58] sm:$0xff]  ;;  %v8824_v11 = vld [vmem:[#allocation8 + $0xc10] sm:$0xff] }
 0x6d9   :  { %12144 = vmatprep.mubr.bf16.mxu1 %v20184_v48  ;;  %11942 = vmatprep.subr.bf16.mxu0 %v18166_v28  ;;  %v18181_v48 = vcombine.low %v8720_v20, %v8724_v27  ;;  %v8773_v28 = vld [vmem:[#allocation8 + $0xa78] sm:$0xff] }
 0x6da   :  { %12114 = vmatprep.subr.bf16.mxu1 %v18168_v52  ;;  %v18230_v52 = vcombine.high %v8768_v13, %v8772_v21  ;;  %v18232_v58 = vcombine.high %v8769_v26, %v8773_v28  ;;  %v18231_v20 = vcombine.low %v8769_v26, %v8773_v28  ;;  %v8832_v28 = vld [vmem:[#allocation8 + $0xc50] sm:$0xff] }
 0x6db   :  { %11943 = vmatpush1.bf16.msra.mxu0 %v18165_v40  ;;  %v8780_v40 = vld [vmem:[#allocation8 + $0xab0] sm:$0xff] }
 0x6dc   :  { %12115 = vmatpush1.bf16.msra.mxu1 %v18167_v38  ;;  %11944 = vmatprep.subr.bf16.mxu0 %v18174_v39  ;;  %v8777_v38 = vld [vmem:[#allocation8 + $0xa98] sm:$0xff]  ;;  %v18238_v27 = vcombine.high %v8776_v18, %v8780_v40 }
 0x6dd   :  { %12116 = vmatprep.subr.bf16.mxu1 %v18176_v3  ;;  %v8781_v39 = vld [vmem:[#allocation8 + $0xab8] sm:$0xff]  ;;  %v18229_v3 = vcombine.low %v8768_v13, %v8772_v21 }
 0x6de   :  { %v18240_v45 = vcombine.high %v8777_v38, %v8781_v39  ;;  %v18239_v49 = vcombine.low %v8777_v38, %v8781_v39  ;;  %v8840_v38 = vld [vmem:[#allocation8 + $0xc90] sm:$0xff] }
 0x6df   :  { %11945 = vmatpush1.bf16.msra.mxu0 %v18173_v44  ;;  %v8788_v44 = vld [vmem:[#allocation8 + $0xaf0] sm:$0xff] }
 0x6e0   :  { %12117 = vmatpush1.bf16.msra.mxu1 %v18175_v16  ;;  %11946 = vmatprep.subr.bf16.mxu0 %v18182_v15  ;;  %v8785_v16 = vld [vmem:[#allocation8 + $0xad8] sm:$0xff]  ;;  %v18246_v0 = vcombine.high %v8784_v30, %v8788_v44  ;;  %v8844_v39 = vld [vmem:[#allocation8 + $0xcb0] sm:$0xff] }
 0x6e1   :  { %12118 = vmatprep.subr.bf16.mxu1 %v18184_v37  ;;  %v8789_v15 = vld [vmem:[#allocation8 + $0xaf8] sm:$0xff]  ;;  %v18237_v37 = vcombine.low %v8776_v18, %v8780_v40 }
 0x6e2   :  { %v18248_v59 = vcombine.high %v8785_v16, %v8789_v15  ;;  %v18247_v8 = vcombine.low %v8785_v16, %v8789_v15  ;;  %v8848_v15 = vld [vmem:[#allocation8 + $0xcd0] sm:$0xff] }
 0x6e3   :  { %11947 = vmatpush1.bf16.msra.mxu0 %v18181_v48  ;;  %v8796_v48 = vld [vmem:[#allocation8 + $0xb30] sm:$0xff] }
 0x6e4   :  { %12119 = vmatpush1.bf16.msra.mxu1 %v18183_v63  ;;  %11948 = vmatprep.subr.bf16.mxu0 %v18190_v42  ;;  %v8793_v63 = vld [vmem:[#allocation8 + $0xb18] sm:$0xff]  ;;  %v18254_v5 = vcombine.high %v8792_v36, %v8796_v48 }
 0x6e5   :  { %12120 = vmatprep.subr.bf16.mxu1 %v18192_v23  ;;  %v8797_v42 = vld [vmem:[#allocation8 + $0xb38] sm:$0xff]  ;;  %v18245_v23 = vcombine.low %v8784_v30, %v8788_v44  ;;  %v18302_v44 = vcombine.high %v8840_v38, %v8844_v39 }
 0x6e6   :  { %v18256_v41 = vcombine.high %v8793_v63, %v8797_v42  ;;  %v18255_v2 = vcombine.low %v8793_v63, %v8797_v42  ;;  %v8856_v63 = vld [vmem:[#allocation8 + $0xd10] sm:$0xff] }
 0x6e7   :  { %11949 = vmatpush1.bf16.msra.mxu0 %v18189_v55  ;;  %v8804_v55 = vld [vmem:[#allocation8 + $0xb70] sm:$0xff] }
 0x6e8   :  { %12121 = vmatpush1.bf16.msra.mxu1 %v18191_v33  ;;  %11950 = vmatprep.subr.bf16.mxu0 %v18198_v32  ;;  %v8801_v33 = vld [vmem:[#allocation8 + $0xb58] sm:$0xff]  ;;  %v18262_v47 = vcombine.high %v8800_v50, %v8804_v55  ;;  %v8860_v42 = vld [vmem:[#allocation8 + $0xd30] sm:$0xff] }
 0x6e9   :  { %12122 = vmatprep.subr.bf16.mxu1 %v18200_v46  ;;  %v8805_v32 = vld [vmem:[#allocation8 + $0xb78] sm:$0xff]  ;;  %v18253_v46 = vcombine.low %v8792_v36, %v8796_v48 }
 0x6ea   :  { %v18264_v4 = vcombine.high %v8801_v33, %v8805_v32  ;;  %v18263_v31 = vcombine.low %v8801_v33, %v8805_v32  ;;  %v8868_v33 = vld [vmem:[#allocation8 + $0xd70] sm:$0xff]  ;;  %v8865_v32 = vld [vmem:[#allocation8 + $0xd58] sm:$0xff] }
 0x6eb   :  { %11951 = vmatpush1.bf16.msra.mxu0 %v18197_v7  ;;  %v8812_v7 = vld [vmem:[#allocation8 + $0xbb0] sm:$0xff] }
 0x6ec   :  { %12123 = vmatpush1.bf16.msra.mxu1 %v18199_v29  ;;  %11952 = vmatprep.subr.bf16.mxu0 %v18206_v51  ;;  %v8809_v29 = vld [vmem:[#allocation8 + $0xb98] sm:$0xff]  ;;  %v18270_v53 = vcombine.high %v8808_v9, %v8812_v7 }
 0x6ed   :  { %12124 = vmatprep.subr.bf16.mxu1 %v18208_v57  ;;  %v8813_v51 = vld [vmem:[#allocation8 + $0xbb8] sm:$0xff]  ;;  %v18261_v57 = vcombine.low %v8800_v50, %v8804_v55  ;;  %v8864_v55 = vld [vmem:[#allocation8 + $0xd50] sm:$0xff] }
 0x6ee   :  { %v18272_v1 = vcombine.high %v8809_v29, %v8813_v51  ;;  %v18271_v17 = vcombine.low %v8809_v29, %v8813_v51  ;;  %v8876_v29 = vld [vmem:[#allocation8 + $0xdb0] sm:$0xff]  ;;  %v8873_v51 = vld [vmem:[#allocation8 + $0xd98] sm:$0xff] }
 0x6ef   :  { %11953 = vmatpush1.bf16.msra.mxu0 %v18205_v6  ;;  %v8820_v6 = vld [vmem:[#allocation8 + $0xbf0] sm:$0xff] }
 0x6f0   :  { %12125 = vmatpush1.bf16.msra.mxu1 %v18207_v10  ;;  %11954 = vmatprep.subr.bf16.mxu0 %v18214_v62  ;;  %v8817_v10 = vld [vmem:[#allocation8 + $0xbd8] sm:$0xff]  ;;  %v18278_v19 = vcombine.high %v8816_v25, %v8820_v6 }
 0x6f1   :  { %12126 = vmatprep.subr.bf16.mxu1 %v18216_v12  ;;  %v8821_v62 = vld [vmem:[#allocation8 + $0xbf8] sm:$0xff]  ;;  %v18269_v12 = vcombine.low %v8808_v9, %v8812_v7  ;;  %v8872_v7 = vld [vmem:[#allocation8 + $0xd90] sm:$0xff] }
 0x6f2   :  { %v18280_v22 = vcombine.high %v8817_v10, %v8821_v62  ;;  %v18279_v13 = vcombine.low %v8817_v10, %v8821_v62  ;;  %v8880_v62 = vld [vmem:[#allocation8 + $0xdd0] sm:$0xff] }
 0x6f3   :  { %11955 = vmatpush1.bf16.msra.mxu0 %v18213_v24  ;;  %v8828_v24 = vld [vmem:[#allocation8 + $0xc30] sm:$0xff] }
 0x6f4   :  { %12127 = vmatpush1.bf16.msra.mxu1 %v18215_v14  ;;  %11956 = vmatprep.subr.bf16.mxu0 %v18222_v60  ;;  %v8825_v14 = vld [vmem:[#allocation8 + $0xc18] sm:$0xff]  ;;  %v18286_v21 = vcombine.high %v8824_v11, %v8828_v24 }
 0x6f5   :  { %12128 = vmatprep.subr.bf16.mxu1 %v18224_v61  ;;  %v8829_v60 = vld [vmem:[#allocation8 + $0xc38] sm:$0xff]  ;;  %v18277_v61 = vcombine.low %v8816_v25, %v8820_v6 }
 0x6f6   :  { %v18288_v26 = vcombine.high %v8825_v14, %v8829_v60  ;;  %v18287_v18 = vcombine.low %v8825_v14, %v8829_v60  ;;  %v8885_v14 = vld [vmem:[#allocation8 + $0xdf8] sm:$0xff] }
 0x6f7   :  { %11957 = vmatpush1.bf16.msra.mxu0 %v18221_v34  ;;  %v8836_v34 = vld [vmem:[#allocation8 + $0xc70] sm:$0xff] }
 0x6f8   :  { %12129 = vmatpush1.bf16.msra.mxu1 %v18223_v35  ;;  %11958 = vmatprep.subr.bf16.mxu0 %v18230_v52  ;;  %v18285_v35 = vcombine.low %v8824_v11, %v8828_v24  ;;  %v8833_v52 = vld [vmem:[#allocation8 + $0xc58] sm:$0xff]  ;;  %v18294_v40 = vcombine.high %v8832_v28, %v8836_v34 }
 0x6f9   :  { %12130 = vmatprep.subr.bf16.mxu1 %v18232_v58  ;;  %v8837_v58 = vld [vmem:[#allocation8 + $0xc78] sm:$0xff] }
 0x6fa   :  { %v18295_v30 = vcombine.low %v8833_v52, %v8837_v58  ;;  %v8881_v24 = vld [vmem:[#allocation8 + $0xdd8] sm:$0xff] }
 0x6fb   :  { %11959 = vmatpush1.bf16.msra.mxu0 %v18229_v3  ;;  %v18296_v3 = vcombine.high %v8833_v52, %v8837_v58 }
 0x6fc   :  { %12131 = vmatpush1.bf16.msra.mxu1 %v18231_v20  ;;  %11960 = vmatprep.subr.bf16.mxu0 %v18238_v27  ;;  %v8841_v20 = vld [vmem:[#allocation8 + $0xc98] sm:$0xff] }
 0x6fd   :  { %12132 = vmatprep.subr.bf16.mxu1 %v18240_v45  ;;  %v8845_v27 = vld [vmem:[#allocation8 + $0xcb8] sm:$0xff]  ;;  %v18293_v45 = vcombine.low %v8832_v28, %v8836_v34 }
 0x6fe   :  { %v18304_v16 = vcombine.high %v8841_v20, %v8845_v27 }
 0x6ff   :  { %11961 = vmatpush1.bf16.msra.mxu0 %v18237_v37  ;;  %v8852_v37 = vld [vmem:[#allocation8 + $0xcf0] sm:$0xff] }
 0x700   :  { %12133 = vmatpush1.bf16.msra.mxu1 %v18239_v49  ;;  %11962 = vmatprep.subr.bf16.mxu0 %v18246_v0  ;;  %v8849_v49 = vld [vmem:[#allocation8 + $0xcd8] sm:$0xff]  ;;  %v18310_v36 = vcombine.high %v8848_v15, %v8852_v37 }
 0x701   :  { %12134 = vmatprep.subr.bf16.mxu1 %v18248_v59  ;;  %v8853_v0 = vld [vmem:[#allocation8 + $0xcf8] sm:$0xff]  ;;  %v18301_v59 = vcombine.low %v8840_v38, %v8844_v39  ;;  %v8888_v38 = vld [vmem:[#allocation8 + $0xe10] sm:$0xff] }
 0x702   :  { %v18312_v48 = vcombine.high %v8849_v49, %v8853_v0  ;;  %v8892_v39 = vld [vmem:[#allocation8 + $0xe30] sm:$0xff] }
 0x703   :  { %11963 = vmatpush1.bf16.msra.mxu0 %v18245_v23  ;;  %v8857_v23 = vld [vmem:[#allocation8 + $0xd18] sm:$0xff] }
 0x704   :  { %12135 = vmatpush1.bf16.msra.mxu1 %v18247_v8  ;;  %11964 = vmatprep.subr.bf16.mxu0 %v18254_v5  ;;  %v8861_v8 = vld [vmem:[#allocation8 + $0xd38] sm:$0xff]  ;;  %v18311_v5 = vcombine.low %v8849_v49, %v8853_v0  ;;  %v8900_v49 = vld [vmem:[#allocation8 + $0xe70] sm:$0xff] }
 0x705   :  { %12136 = vmatprep.subr.bf16.mxu1 %v18256_v41  ;;  %v18318_v41 = vcombine.high %v8856_v63, %v8860_v42  ;;  %v18320_v50 = vcombine.high %v8857_v23, %v8861_v8  ;;  %v8897_v0 = vld [vmem:[#allocation8 + $0xe58] sm:$0xff] }
 0x707   :  { %11965 = vmatpush1.bf16.msra.mxu0 %v18253_v46  ;;  %v8869_v46 = vld [vmem:[#allocation8 + $0xd78] sm:$0xff] }
 0x708   :  { %12137 = vmatpush1.bf16.msra.mxu1 %v18255_v2  ;;  %11966 = vmatprep.subr.bf16.mxu0 %v18262_v47  ;;  %v18317_v2 = vcombine.low %v8856_v63, %v8860_v42  ;;  %v18319_v47 = vcombine.low %v8857_v23, %v8861_v8  ;;  %v18328_v9 = vcombine.high %v8865_v32, %v8869_v46  ;;  %v8904_v42 = vld [vmem:[#allocation8 + $0xe90] sm:$0xff] }
 0x709   :  { %12138 = vmatprep.subr.bf16.mxu1 %v18264_v4  ;;  %v18326_v4 = vcombine.high %v8864_v55, %v8868_v33  ;;  %v8908_v23 = vld [vmem:[#allocation8 + $0xeb0] sm:$0xff] }
 0x70b   :  { %11967 = vmatpush1.bf16.msra.mxu0 %v18261_v57  ;;  %v8877_v57 = vld [vmem:[#allocation8 + $0xdb8] sm:$0xff] }
 0x70c   :  { %12139 = vmatpush1.bf16.msra.mxu1 %v18263_v31  ;;  %11968 = vmatprep.subr.bf16.mxu0 %v18270_v53  ;;  %v18325_v31 = vcombine.low %v8864_v55, %v8868_v33  ;;  %v18327_v53 = vcombine.low %v8865_v32, %v8869_v46  ;;  %v18336_v10 = vcombine.high %v8873_v51, %v8877_v57 }
 0x70d   :  { %12140 = vmatprep.subr.bf16.mxu1 %v18272_v1  ;;  %v18334_v1 = vcombine.high %v8872_v7, %v8876_v29  ;;  %v18335_v52 = vcombine.low %v8873_v51, %v8877_v57 }
 0x70f   :  { %11969 = vmatpush1.bf16.msra.mxu0 %v18269_v12  ;;  %v8884_v12 = vld [vmem:[#allocation8 + $0xdf0] sm:$0xff] }
 0x710   :  { %12141 = vmatpush1.bf16.msra.mxu1 %v18271_v17  ;;  %11970 = vmatprep.subr.bf16.mxu0 %v18278_v19  ;;  %v18342_v58 = vcombine.high %v8880_v62, %v8884_v12 }
 0x711   :  { %12142 = vmatprep.subr.bf16.mxu1 %v18280_v22 }
 0x713   :  { %11971 = vmatpush1.bf16.msra.mxu0 %v18277_v61 }
 0x714   :  { %12143 = vmatpush1.bf16.msra.mxu1 %v18279_v13  ;;  %11983 = vmatprep.subr.bf16.mxu0 %v18286_v21 }
 0x715   :  { %12155 = vmatprep.subr.bf16.mxu1 %v18288_v26  ;;  %v18333_v26 = vcombine.low %v8872_v7, %v8876_v29  ;;  %v8912_v7 = vld [vmem:[#allocation8 + $0xed0] sm:$0xff] }
 0x716   :  { %11973 = vmatmul.mubr.bf16.vlgmr.msra.gmra.mrb[28].mxu0 %v20180_v56  ;;  %v8916_v29 = vld [vmem:[#allocation8 + $0xef0] sm:$0xff] }
 0x717   :  { %12145 = vmatmul.mubr.bf16.vlgmr.msra.gmra.mrb[28].mxu1 %v20180_v56  ;;  %11984 = vmatpush1.bf16.msra.mxu0 %v18285_v35  ;;  %v18303_v56 = vcombine.low %v8841_v20, %v8845_v27  ;;  %v8889_v20 = vld [vmem:[#allocation8 + $0xe18] sm:$0xff] }
 0x718   :  { %12015 = vmatprep.mubr.bf16.mxu0 %v20190_v54  ;;  %12156 = vmatpush1.bf16.msra.mxu1 %v18287_v18  ;;  %v8893_v27 = vld [vmem:[#allocation8 + $0xe38] sm:$0xff] }
 0x719   :  { %12187 = vmatprep.mubr.bf16.mxu1 %v20190_v54  ;;  %11985 = vmatprep.subr.bf16.mxu0 %v18294_v40  ;;  %v18309_v54 = vcombine.low %v8848_v15, %v8852_v37  ;;  %v18344_v40 = vcombine.high %v8881_v24, %v8885_v14  ;;  %v18352_v15 = vcombine.high %v8889_v20, %v8893_v27  ;;  %v8896_v37 = vld [vmem:[#allocation8 + $0xe50] sm:$0xff] }
 0x71a   :  { %12157 = vmatprep.subr.bf16.mxu1 %v18296_v3  ;;  %v18357_v55 = vcombine.low %v8896_v37, %v8900_v49 }
 0x71b   :  { %11986 = vmatpush1.bf16.msra.mxu0 %v18293_v45 }
 0x71c   :  { %12158 = vmatpush1.bf16.msra.mxu1 %v18295_v30  ;;  %11987 = vmatprep.subr.bf16.mxu0 %v18302_v44  ;;  %v18341_v30 = vcombine.low %v8880_v62, %v8884_v12  ;;  %v18343_v44 = vcombine.low %v8881_v24, %v8885_v14  ;;  %v18365_v12 = vcombine.low %v8904_v42, %v8908_v23 }
 0x71d   :  { %12159 = vmatprep.subr.bf16.mxu1 %v18304_v16  ;;  %v18350_v16 = vcombine.high %v8888_v38, %v8892_v39 }
 0x71f   :  { %11988 = vmatpush1.bf16.msra.mxu0 %v18301_v59  ;;  %v8901_v59 = vld [vmem:[#allocation8 + $0xe78] sm:$0xff] }
 0x720   :  { %12160 = vmatpush1.bf16.msra.mxu1 %v18303_v56  ;;  %11989 = vmatprep.subr.bf16.mxu0 %v18310_v36  ;;  %v18349_v56 = vcombine.low %v8888_v38, %v8892_v39  ;;  %v18351_v36 = vcombine.low %v8889_v20, %v8893_v27  ;;  %v18360_v63 = vcombine.high %v8897_v0, %v8901_v59  ;;  %v8921_v27 = vld [vmem:[#allocation8 + $0xf18] sm:$0xff] }
 0x721   :  { %12161 = vmatprep.subr.bf16.mxu1 %v18312_v48  ;;  %v18358_v48 = vcombine.high %v8896_v37, %v8900_v49  ;;  %v18359_v46 = vcombine.low %v8897_v0, %v8901_v59  ;;  %v18373_v20 = vcombine.low %v8912_v7, %v8916_v29 }
 0x723   :  { %11990 = vmatpush1.bf16.msra.mxu0 %v18309_v54  ;;  %v8905_v54 = vld [vmem:[#allocation8 + $0xe98] sm:$0xff] }
 0x724   :  { %12162 = vmatpush1.bf16.msra.mxu1 %v18311_v5  ;;  %11991 = vmatprep.subr.bf16.mxu0 %v18318_v41  ;;  %v8909_v5 = vld [vmem:[#allocation8 + $0xeb8] sm:$0xff] }
 0x725   :  { %12163 = vmatprep.subr.bf16.mxu1 %v18320_v50  ;;  %v18367_v14 = vcombine.low %v8905_v54, %v8909_v5 }
 0x727   :  { %11992 = vmatpush1.bf16.msra.mxu0 %v18317_v2  ;;  %v18366_v2 = vcombine.high %v8904_v42, %v8908_v23 }
 0x728   :  { %12164 = vmatpush1.bf16.msra.mxu1 %v18319_v47  ;;  %11993 = vmatprep.subr.bf16.mxu0 %v18326_v4 }
 0x729   :  { %v20214_v25 = vpop.f32.mrb[24].mxu0  ;;  %v20216_v6 = vpop.f32.mrb[24].mxu1  ;;  %12165 = vmatprep.subr.bf16.mxu1 %v18328_v9  ;;  %v18368_v9 = vcombine.high %v8905_v54, %v8909_v5 }
 0x72a   :  { %v12198_v17 = vmul.f32 0.5, %v20214_v25  ;;  %v12200_v19 = vmul.f32 0.5, %v20216_v6  ;;  %v20220_v22 = vpop.f32.mrb[25].mxu0  ;;  %v20222_v11 = vpop.f32.mrb[25].mxu1 }
 0x72b   :  { %v12199_v60 = vmul.f32 0.5, %v20220_v22  ;;  %v12201_v61 = vmul.f32 0.5, %v20222_v11  ;;  %v20226_v13 = vpop.f32.mrb[26].mxu0  ;;  %v20228_v21 = vpop.f32.mrb[26].mxu1  ;;  %11994 = vmatpush1.bf16.msra.mxu0 %v18325_v31  ;;  %v8913_v31 = vld [vmem:[#allocation8 + $0xed8] sm:$0xff] }
 0x72c   :  { %19457 = vtanh.f32 %v12198_v17  ;;  %v12206_v28 = vmul.f32 0.5, %v20226_v13  ;;  %12166 = vmatpush1.bf16.msra.mxu1 %v18327_v53  ;;  %v20231_v34 = vpop.f32.mrb[27].mxu0  ;;  %v20233_v35 = vpop.f32.mrb[27].mxu1  ;;  %11995 = vmatprep.subr.bf16.mxu0 %v18334_v1  ;;  %v12208_v18 = vmul.f32 0.5, %v20228_v21  ;;  %v8917_v53 = vld [vmem:[#allocation8 + $0xef8] sm:$0xff] }
 0x72d   :  { %19459 = vtanh.f32 %v12200_v19  ;;  %12167 = vmatprep.subr.bf16.mxu1 %v18336_v10  ;;  %v12207_v3 = vmul.f32 0.5, %v20231_v34  ;;  %v12209_v45 = vmul.f32 0.5, %v20233_v35 }
 0x72e   :  { %19461 = vtanh.f32 %v12199_v60  ;;  %v18374_v60 = vcombine.high %v8912_v7, %v8916_v29  ;;  %v8945_v7 = vld [vmem:[#allocation8 + $0xfd8] sm:$0xff] }
 0x72f   :  { %19463 = vtanh.f32 %v12201_v61  ;;  %11996 = vmatpush1.bf16.msra.mxu0 %v18333_v26  ;;  %v8949_v29 = vld [vmem:[#allocation8 + $0xff8] sm:$0xff] }
 0x730   :  { %19465 = vtanh.f32 %v12206_v28  ;;  %12168 = vmatpush1.bf16.msra.mxu1 %v18335_v52  ;;  %11997 = vmatprep.subr.bf16.mxu0 %v18342_v58  ;;  %v18376_v58 = vcombine.high %v8913_v31, %v8917_v53 }
 0x731   :  { %19467 = vtanh.f32 %v12208_v18  ;;  %12169 = vmatprep.subr.bf16.mxu1 %v18344_v40  ;;  %v8920_v18 = vld [vmem:[#allocation8 + $0xf10] sm:$0xff] }
 0x732   :  { %19469 = vtanh.f32 %v12207_v3  ;;  %v8924_v40 = vld [vmem:[#allocation8 + $0xf30] sm:$0xff] }
 0x733   :  { %19471 = vtanh.f32 %v12209_v45  ;;  %11998 = vmatpush1.bf16.msra.mxu0 %v18341_v30  ;;  %v8925_v45 = vld [vmem:[#allocation8 + $0xf38] sm:$0xff]  ;;  %v18382_v59 = vcombine.high %v8920_v18, %v8924_v40 }
 0x734   :  { %12170 = vmatpush1.bf16.msra.mxu1 %v18343_v44  ;;  %11999 = vmatprep.subr.bf16.mxu0 %v18350_v16 }
 0x735   :  { %12171 = vmatprep.subr.bf16.mxu1 %v18352_v15  ;;  %v18375_v15 = vcombine.low %v8913_v31, %v8917_v53  ;;  %v18408_v53 = vcombine.high %v8945_v7, %v8949_v29 }
 0x736   :  { %v19458_v8 = vpop.eup %19457 }
 0x737   :  { %v19460_v41 = vpop.eup %19459  ;;  %v12230_v50 = vmul.f32 0.5, %v19458_v8  ;;  %12000 = vmatpush1.bf16.msra.mxu0 %v18349_v56  ;;  %v8933_v8 = vld [vmem:[#allocation8 + $0xf78] sm:$0xff] }
 0x738   :  { %v19462_v33 = vpop.eup %19461  ;;  %v12232_v32 = vmul.f32 0.5, %v19460_v41  ;;  %12172 = vmatpush1.bf16.msra.mxu1 %v18351_v36  ;;  %12001 = vmatprep.subr.bf16.mxu0 %v18358_v48 }
 0x739   :  { %v19464_v47 = vpop.eup %19463  ;;  %v12231_v4 = vmul.f32 0.5, %v19462_v33  ;;  %12173 = vmatprep.subr.bf16.mxu1 %v18360_v63  ;;  %v12246_v10 = vadd.f32 0.5, %v12230_v50  ;;  %v8932_v63 = vld [vmem:[#allocation8 + $0xf70] sm:$0xff]  ;;  %v8937_v33 = vld [vmem:[#allocation8 + $0xf98] sm:$0xff] }
 0x73a   :  { %v19466_v51 = vpop.eup %19465  ;;  %v12233_v57 = vmul.f32 0.5, %v19464_v47  ;;  %v12248_v19 = vadd.f32 0.5, %v12232_v32  ;;  %v8941_v32 = vld [vmem:[#allocation8 + $0xfb8] sm:$0xff] }
 0x73b   :  { %v19468_v1 = vpop.eup %19467  ;;  %v12238_v62 = vmul.f32 0.5, %v19466_v51  ;;  %12002 = vmatpush1.bf16.msra.mxu0 %v18357_v55  ;;  %v12247_v26 = vadd.f32 0.5, %v12231_v4  ;;  %v12262_v30 = vmul.f32 %v12246_v10, %v20214_v25  ;;  %v18384_v25 = vcombine.high %v8921_v27, %v8925_v45  ;;  %v8936_v55 = vld [vmem:[#allocation8 + $0xf90] sm:$0xff]  ;;  %v12290_v10 = vld [vmem:[#allocation10 + $0x20] sm:$0xff] }
 0x73c   :  { %v19470_v17 = vpop.eup %19469  ;;  %v12240_v24 = vmul.f32 0.5, %v19468_v1  ;;  %12174 = vmatpush1.bf16.msra.mxu1 %v18359_v46  ;;  %12003 = vmatprep.subr.bf16.mxu0 %v18366_v2  ;;  %v12249_v38 = vadd.f32 0.5, %v12233_v57  ;;  %v12264_v37 = vmul.f32 %v12248_v19, %v20216_v6  ;;  %v18400_v47 = vcombine.high %v8937_v33, %v8941_v32  ;;  %v8944_v4 = vld [vmem:[#allocation8 + $0xfd0] sm:$0xff]  ;;  %v12286_v1 = vld [vmem:[#allocation10] sm:$0xff] }
 0x73d   :  { %v19472_v61 = vpop.eup %19471  ;;  %v12254_v28 = vadd.f32 0.5, %v12238_v62  ;;  %v12239_v52 = vmul.f32 0.5, %v19470_v17  ;;  %12175 = vmatprep.subr.bf16.mxu1 %v18368_v9  ;;  %v12263_v56 = vmul.f32 %v12247_v26, %v20220_v22  ;;  %v18381_v22 = vcombine.low %v8920_v18, %v8924_v40  ;;  %v8948_v9 = vld [vmem:[#allocation8 + $0xff0] sm:$0xff]  ;;  %v12287_v62 = vld [vmem:[#allocation10 + $0x8] sm:$0xff]  ;;  %v12302_v40 = vld [vmem:[#allocation10 + $0x80] sm:$0xff] }
 0x73e   :  { %v12256_v39 = vadd.f32 0.5, %v12240_v24  ;;  %v12241_v3 = vmul.f32 0.5, %v19472_v61  ;;  %v12265_v42 = vmul.f32 %v12249_v38, %v20222_v11  ;;  %v8940_v11 = vld [vmem:[#allocation8 + $0xfb0] sm:$0xff]  ;;  %v18399_v57 = vcombine.low %v8937_v33, %v8941_v32  ;;  %v12298_v61 = vld [vmem:[#allocation10 + $0x60] sm:$0xff] }
 0x73f   :  { %v12270_v44 = vmul.f32 %v12254_v28, %v20226_v13  ;;  %v12255_v16 = vadd.f32 0.5, %v12239_v52  ;;  %12004 = vmatpush1.bf16.msra.mxu0 %v18365_v12  ;;  %v8928_v13 = vld [vmem:[#allocation8 + $0xf50] sm:$0xff]  ;;  %v18398_v2 = vcombine.high %v8936_v55, %v8940_v11  ;;  %v18397_v51 = vcombine.low %v8936_v55, %v8940_v11  ;;  %v12291_v12 = vld [vmem:[#allocation10 + $0x28] sm:$0xff]  ;;  %v12306_v38 = vld [vmem:[#allocation10 + $0xa0] sm:$0xff] }
 0x740   :  { %v12272_v49 = vmul.f32 %v12256_v39, %v20228_v21  ;;  %v12257_v0 = vadd.f32 0.5, %v12241_v3  ;;  %12176 = vmatpush1.bf16.msra.mxu1 %v18367_v14  ;;  %12005 = vmatprep.subr.bf16.mxu0 %v18374_v60  ;;  %v8929_v21 = vld [vmem:[#allocation8 + $0xf58] sm:$0xff]  ;;  %v18390_v41 = vcombine.high %v8928_v13, %v8932_v63  ;;  %v18406_v31 = vcombine.high %v8944_v4, %v8948_v9  ;;  %v12294_v60 = vld [vmem:[#allocation10 + $0x40] sm:$0xff]  ;;  %v12295_v28 = vld [vmem:[#allocation10 + $0x48] sm:$0xff] }
 0x741   :  { %v20243_v36 = vpack.c.bf16 %v12270_v44, %v12262_v30  ;;  %v12271_v48 = vmul.f32 %v12255_v16, %v20231_v34  ;;  %12177 = vmatprep.subr.bf16.mxu1 %v18376_v58  ;;  %v18383_v34 = vcombine.low %v8921_v27, %v8925_v45  ;;  %v18392_v50 = vcombine.high %v8929_v21, %v8933_v8  ;;  %v12299_v52 = vld [vmem:[#allocation10 + $0x68] sm:$0xff]  ;;  %v12310_v16 = vld [vmem:[#allocation10 + $0xc0] sm:$0xff] }
 0x742   :  { %v20247_v23 = vpack.c.bf16 %v12272_v49, %v12264_v37  ;;  %v12273_v6 = vmul.f32 %v12257_v0, %v20233_v35  ;;  %v18389_v35 = vcombine.low %v8928_v13, %v8932_v63  ;;  %v18391_v46 = vcombine.low %v8929_v21, %v8933_v8  ;;  %v12303_v3 = vld [vmem:[#allocation10 + $0x88] sm:$0xff] }
 0x743   :  { %v20250_v54 = vpack.c.bf16 %v12271_v48, %v12263_v56  ;;  %12006 = vmatpush1.bf16.msra.mxu0 %v18373_v20  ;;  %v18405_v17 = vcombine.low %v8944_v4, %v8948_v9  ;;  %v18407_v19 = vcombine.low %v8945_v7, %v8949_v29  ;;  %v18410_v24 = vcombine.high %v12286_v1, %v12290_v10  ;;  %v12307_v20 = vld [vmem:[#allocation10 + $0xa8] sm:$0xff]  ;;  %v12318_v48 = vld [vmem:[#allocation10 + $0x100] sm:$0xff] }
 0x744   :  { %v20252_v5 = vpack.c.bf16 %v12273_v6, %v12265_v42  ;;  %12178 = vmatpush1.bf16.msra.mxu1 %v18375_v15  ;;  %12007 = vmatprep.subr.bf16.mxu0 %v18382_v59  ;;  %v18412_v14 = vcombine.high %v12287_v62, %v12291_v12  ;;  %v18409_v26 = vcombine.low %v12286_v1, %v12290_v10  ;;  %v12314_v15 = vld [vmem:[#allocation10 + $0xe0] sm:$0xff]  ;;  %v12311_v37 = vld [vmem:[#allocation10 + $0xc8] sm:$0xff] }
 0x745   :  { %12179 = vmatprep.subr.bf16.mxu1 %v18384_v25  ;;  %v18411_v58 = vcombine.low %v12287_v62, %v12291_v12  ;;  %v18418_v18 = vcombine.high %v12294_v60, %v12298_v61  ;;  %v18420_v39 = vcombine.high %v12295_v28, %v12299_v52  ;;  %v18417_v27 = vcombine.low %v12294_v60, %v12298_v61  ;;  %v12315_v49 = vld [vmem:[#allocation10 + $0xe8] sm:$0xff]  ;;  %v12322_v25 = vld [vmem:[#allocation10 + $0x120] sm:$0xff] }
 0x746   :  { %v18419_v45 = vcombine.low %v12295_v28, %v12299_v52  ;;  %v18426_v30 = vcombine.high %v12302_v40, %v12306_v38  ;;  %v18428_v44 = vcombine.high %v12303_v3, %v12307_v20  ;;  %v18425_v0 = vcombine.low %v12302_v40, %v12306_v38  ;;  %v12319_v13 = vld [vmem:[#allocation10 + $0x108] sm:$0xff]  ;;  %v12358_v52 = vld [vmem:[#allocation10 + $0x240] sm:$0xff] }
 0x747   :  { %12008 = vmatpush1.bf16.msra.mxu0 %v18381_v22  ;;  %v18434_v59 = vcombine.high %v12310_v16, %v12314_v15  ;;  %v18436_v56 = vcombine.high %v12311_v37, %v12315_v49  ;;  %v12323_v63 = vld [vmem:[#allocation10 + $0x128] sm:$0xff]  ;;  %v18433_v42 = vcombine.low %v12310_v16, %v12314_v15  ;;  %v18435_v6 = vcombine.low %v12311_v37, %v12315_v49  ;;  %v12326_v22 = vld [vmem:[#allocation10 + $0x140] sm:$0xff] }
 0x748   :  { %12180 = vmatpush1.bf16.msra.mxu1 %v18383_v34  ;;  %12009 = vmatprep.subr.bf16.mxu0 %v18390_v41  ;;  %v18442_v21 = vcombine.high %v12318_v48, %v12322_v25  ;;  %v18444_v8 = vcombine.high %v12319_v13, %v12323_v63  ;;  %v12330_v34 = vld [vmem:[#allocation10 + $0x160] sm:$0xff]  ;;  %v12327_v41 = vld [vmem:[#allocation10 + $0x148] sm:$0xff]  ;;  %v18441_v55 = vcombine.low %v12318_v48, %v12322_v25 }
 0x749   :  { %12181 = vmatprep.subr.bf16.mxu1 %v18392_v50  ;;  %v12331_v50 = vld [vmem:[#allocation10 + $0x168] sm:$0xff]  ;;  %v18443_v11 = vcombine.low %v12319_v13, %v12323_v63  ;;  %v18450_v33 = vcombine.high %v12326_v22, %v12330_v34  ;;  %v18449_v4 = vcombine.low %v12326_v22, %v12330_v34 }
 0x74a   :  { %v18452_v32 = vcombine.high %v12327_v41, %v12331_v50  ;;  %v18451_v9 = vcombine.low %v12327_v41, %v12331_v50  ;;  %v12363_v40 = vld [vmem:[#allocation10 + $0x268] sm:$0xff] }
 0x74b   :  { %12010 = vmatpush1.bf16.msra.mxu0 %v18389_v35  ;;  %v12334_v35 = vld [vmem:[#allocation10 + $0x180] sm:$0xff] }
 0x74c   :  { %12182 = vmatpush1.bf16.msra.mxu1 %v18391_v46  ;;  %12011 = vmatprep.subr.bf16.mxu0 %v18398_v2  ;;  %v12338_v46 = vld [vmem:[#allocation10 + $0x1a0] sm:$0xff]  ;;  %v12335_v2 = vld [vmem:[#allocation10 + $0x188] sm:$0xff] }
 0x74d   :  { %12183 = vmatprep.subr.bf16.mxu1 %v18400_v47  ;;  %v12339_v47 = vld [vmem:[#allocation10 + $0x1a8] sm:$0xff]  ;;  %v18458_v7 = vcombine.high %v12334_v35, %v12338_v46  ;;  %v18457_v1 = vcombine.low %v12334_v35, %v12338_v46 }
 0x74e   :  { %v18460_v29 = vcombine.high %v12335_v2, %v12339_v47  ;;  %v18459_v10 = vcombine.low %v12335_v2, %v12339_v47 }
 0x74f   :  { %12012 = vmatpush1.bf16.msra.mxu0 %v18397_v51  ;;  %v12342_v51 = vld [vmem:[#allocation10 + $0x1c0] sm:$0xff] }
 0x750   :  { %12184 = vmatpush1.bf16.msra.mxu1 %v18399_v57  ;;  %12013 = vmatprep.subr.bf16.mxu0 %v18406_v31  ;;  %v12346_v57 = vld [vmem:[#allocation10 + $0x1e0] sm:$0xff]  ;;  %v12343_v31 = vld [vmem:[#allocation10 + $0x1c8] sm:$0xff] }
 0x751   :  { %12185 = vmatprep.subr.bf16.mxu1 %v18408_v53  ;;  %v12347_v53 = vld [vmem:[#allocation10 + $0x1e8] sm:$0xff]  ;;  %v18466_v62 = vcombine.high %v12342_v51, %v12346_v57  ;;  %v18465_v60 = vcombine.low %v12342_v51, %v12346_v57 }
 0x752   :  { %v18468_v12 = vcombine.high %v12343_v31, %v12347_v53  ;;  %v18467_v61 = vcombine.low %v12343_v31, %v12347_v53 }
 0x753   :  { %12014 = vmatpush1.bf16.msra.mxu0 %v18405_v17  ;;  %v12350_v17 = vld [vmem:[#allocation10 + $0x200] sm:$0xff] }
 0x754   :  { %12186 = vmatpush1.bf16.msra.mxu1 %v18407_v19  ;;  %15358 = vmatprep.subr.bf16.mxu0 %v18410_v24  ;;  %v12354_v19 = vld [vmem:[#allocation10 + $0x220] sm:$0xff]  ;;  %v12351_v24 = vld [vmem:[#allocation10 + $0x208] sm:$0xff] }
 0x755   :  { %15530 = vmatprep.subr.bf16.mxu1 %v18412_v14  ;;  %v12355_v14 = vld [vmem:[#allocation10 + $0x228] sm:$0xff]  ;;  %v18473_v38 = vcombine.low %v12350_v17, %v12354_v19 }
 0x756   :  { %12016 = vmatmul.mubr.bf16.vlgmr.msra.gmra.mrb[28].mxu0 %v20182_v43  ;;  %v18476_v28 = vcombine.high %v12351_v24, %v12355_v14 }
 0x757   :  { %12188 = vmatmul.mubr.bf16.vlgmr.msra.gmra.mrb[28].mxu1 %v20182_v43  ;;  %15359 = vmatpush1.bf16.msra.mxu0 %v18409_v26  ;;  %v18427_v43 = vcombine.low %v12303_v3, %v12307_v20  ;;  %v18474_v26 = vcombine.high %v12350_v17, %v12354_v19 }
 0x758   :  { %15390 = vmatprep.mubr.bf16.mxu0 %v20250_v54  ;;  %15531 = vmatpush1.bf16.msra.mxu1 %v18411_v58  ;;  %v12362_v58 = vld [vmem:[#allocation10 + $0x260] sm:$0xff] }
 0x759   :  { %15562 = vmatprep.mubr.bf16.mxu1 %v20250_v54  ;;  %15360 = vmatprep.subr.bf16.mxu0 %v18418_v18  ;;  %v12359_v18 = vld [vmem:[#allocation10 + $0x248] sm:$0xff]  ;;  %v18482_v3 = vcombine.high %v12358_v52, %v12362_v58  ;;  %v18481_v16 = vcombine.low %v12358_v52, %v12362_v58 }
 0x75a   :  { %15532 = vmatprep.subr.bf16.mxu1 %v18420_v39  ;;  %v18475_v39 = vcombine.low %v12351_v24, %v12355_v14  ;;  %v18484_v20 = vcombine.high %v12359_v18, %v12363_v40  ;;  %v18483_v15 = vcombine.low %v12359_v18, %v12363_v40 }
 0x75b   :  { %15361 = vmatpush1.bf16.msra.mxu0 %v18417_v27  ;;  %v12366_v27 = vld [vmem:[#allocation10 + $0x280] sm:$0xff] }
 0x75c   :  { %15533 = vmatpush1.bf16.msra.mxu1 %v18419_v45  ;;  %15362 = vmatprep.subr.bf16.mxu0 %v18426_v30  ;;  %v12370_v45 = vld [vmem:[#allocation10 + $0x2a0] sm:$0xff]  ;;  %v12367_v30 = vld [vmem:[#allocation10 + $0x288] sm:$0xff] }
 0x75d   :  { %15534 = vmatprep.subr.bf16.mxu1 %v18428_v44  ;;  %v12371_v44 = vld [vmem:[#allocation10 + $0x2a8] sm:$0xff]  ;;  %v18490_v37 = vcombine.high %v12366_v27, %v12370_v45  ;;  %v18489_v48 = vcombine.low %v12366_v27, %v12370_v45 }
 0x75e   :  { %v18492_v49 = vcombine.high %v12367_v30, %v12371_v44  ;;  %v18491_v25 = vcombine.low %v12367_v30, %v12371_v44  ;;  %v12427_v27 = vld [vmem:[#allocation10 + $0x468] sm:$0xff]  ;;  %v12430_v44 = vld [vmem:[#allocation10 + $0x480] sm:$0xff] }
 0x75f   :  { %15363 = vmatpush1.bf16.msra.mxu0 %v18425_v0  ;;  %v12374_v0 = vld [vmem:[#allocation10 + $0x2c0] sm:$0xff] }
 0x760   :  { %15535 = vmatpush1.bf16.msra.mxu1 %v18427_v43  ;;  %15364 = vmatprep.subr.bf16.mxu0 %v18434_v59  ;;  %v12378_v43 = vld [vmem:[#allocation10 + $0x2e0] sm:$0xff]  ;;  %v12375_v59 = vld [vmem:[#allocation10 + $0x2c8] sm:$0xff] }
 0x761   :  { %15536 = vmatprep.subr.bf16.mxu1 %v18436_v56  ;;  %v12379_v56 = vld [vmem:[#allocation10 + $0x2e8] sm:$0xff]  ;;  %v18498_v13 = vcombine.high %v12374_v0, %v12378_v43  ;;  %v18497_v22 = vcombine.low %v12374_v0, %v12378_v43 }
 0x762   :  { %v18500_v63 = vcombine.high %v12375_v59, %v12379_v56  ;;  %v18499_v34 = vcombine.low %v12375_v59, %v12379_v56 }
 0x763   :  { %15365 = vmatpush1.bf16.msra.mxu0 %v18433_v42  ;;  %v12382_v42 = vld [vmem:[#allocation10 + $0x300] sm:$0xff] }
 0x764   :  { %15537 = vmatpush1.bf16.msra.mxu1 %v18435_v6  ;;  %15366 = vmatprep.subr.bf16.mxu0 %v18442_v21  ;;  %v12386_v6 = vld [vmem:[#allocation10 + $0x320] sm:$0xff]  ;;  %v12383_v21 = vld [vmem:[#allocation10 + $0x308] sm:$0xff] }
 0x765   :  { %15538 = vmatprep.subr.bf16.mxu1 %v18444_v8  ;;  %v12387_v8 = vld [vmem:[#allocation10 + $0x328] sm:$0xff]  ;;  %v18506_v41 = vcombine.high %v12382_v42, %v12386_v6  ;;  %v18505_v35 = vcombine.low %v12382_v42, %v12386_v6 }
 0x766   :  { %v18508_v50 = vcombine.high %v12383_v21, %v12387_v8  ;;  %v18507_v46 = vcombine.low %v12383_v21, %v12387_v8 }
 0x767   :  { %15367 = vmatpush1.bf16.msra.mxu0 %v18441_v55  ;;  %v12390_v55 = vld [vmem:[#allocation10 + $0x340] sm:$0xff] }
 0x768   :  { %15539 = vmatpush1.bf16.msra.mxu1 %v18443_v11  ;;  %15368 = vmatprep.subr.bf16.mxu0 %v18450_v33  ;;  %v12394_v11 = vld [vmem:[#allocation10 + $0x360] sm:$0xff]  ;;  %v12391_v33 = vld [vmem:[#allocation10 + $0x348] sm:$0xff] }
 0x769   :  { %15540 = vmatprep.subr.bf16.mxu1 %v18452_v32  ;;  %v12395_v32 = vld [vmem:[#allocation10 + $0x368] sm:$0xff]  ;;  %v18514_v2 = vcombine.high %v12390_v55, %v12394_v11  ;;  %v18513_v51 = vcombine.low %v12390_v55, %v12394_v11 }
 0x76a   :  { %v18516_v47 = vcombine.high %v12391_v33, %v12395_v32  ;;  %v18515_v57 = vcombine.low %v12391_v33, %v12395_v32 }
 0x76b   :  { %15369 = vmatpush1.bf16.msra.mxu0 %v18449_v4  ;;  %v12398_v4 = vld [vmem:[#allocation10 + $0x380] sm:$0xff] }
 0x76c   :  { %15541 = vmatpush1.bf16.msra.mxu1 %v18451_v9  ;;  %15370 = vmatprep.subr.bf16.mxu0 %v18458_v7  ;;  %v12402_v9 = vld [vmem:[#allocation10 + $0x3a0] sm:$0xff]  ;;  %v12399_v7 = vld [vmem:[#allocation10 + $0x388] sm:$0xff] }
 0x76d   :  { %15542 = vmatprep.subr.bf16.mxu1 %v18460_v29  ;;  %v12403_v29 = vld [vmem:[#allocation10 + $0x3a8] sm:$0xff]  ;;  %v18522_v31 = vcombine.high %v12398_v4, %v12402_v9  ;;  %v18521_v17 = vcombine.low %v12398_v4, %v12402_v9 }
 0x76e   :  { %v18524_v53 = vcombine.high %v12399_v7, %v12403_v29  ;;  %v18523_v19 = vcombine.low %v12399_v7, %v12403_v29 }
 0x76f   :  { %15371 = vmatpush1.bf16.msra.mxu0 %v18457_v1  ;;  %v12406_v1 = vld [vmem:[#allocation10 + $0x3c0] sm:$0xff] }
 0x770   :  { %15543 = vmatpush1.bf16.msra.mxu1 %v18459_v10  ;;  %15372 = vmatprep.subr.bf16.mxu0 %v18466_v62  ;;  %v12410_v10 = vld [vmem:[#allocation10 + $0x3e0] sm:$0xff]  ;;  %v12407_v62 = vld [vmem:[#allocation10 + $0x3c8] sm:$0xff] }
 0x771   :  { %15544 = vmatprep.subr.bf16.mxu1 %v18468_v12  ;;  %v12411_v12 = vld [vmem:[#allocation10 + $0x3e8] sm:$0xff]  ;;  %v18530_v24 = vcombine.high %v12406_v1, %v12410_v10  ;;  %v18529_v52 = vcombine.low %v12406_v1, %v12410_v10 }
 0x772   :  { %v18532_v14 = vcombine.high %v12407_v62, %v12411_v12  ;;  %v18531_v58 = vcombine.low %v12407_v62, %v12411_v12 }
 0x773   :  { %15373 = vmatpush1.bf16.msra.mxu0 %v18465_v60  ;;  %v12414_v60 = vld [vmem:[#allocation10 + $0x400] sm:$0xff] }
 0x774   :  { %15545 = vmatpush1.bf16.msra.mxu1 %v18467_v61  ;;  %15374 = vmatprep.subr.bf16.mxu0 %v18474_v26  ;;  %v12418_v61 = vld [vmem:[#allocation10 + $0x420] sm:$0xff]  ;;  %v12415_v26 = vld [vmem:[#allocation10 + $0x408] sm:$0xff] }
 0x775   :  { %15546 = vmatprep.subr.bf16.mxu1 %v18476_v28  ;;  %v12419_v28 = vld [vmem:[#allocation10 + $0x428] sm:$0xff]  ;;  %v18538_v18 = vcombine.high %v12414_v60, %v12418_v61 }
 0x776   :  { %v18540_v40 = vcombine.high %v12415_v26, %v12419_v28  ;;  %v18539_v45 = vcombine.low %v12415_v26, %v12419_v28 }
 0x777   :  { %15375 = vmatpush1.bf16.msra.mxu0 %v18473_v38  ;;  %v12422_v38 = vld [vmem:[#allocation10 + $0x440] sm:$0xff] }
 0x778   :  { %15547 = vmatpush1.bf16.msra.mxu1 %v18475_v39  ;;  %15376 = vmatprep.subr.bf16.mxu0 %v18482_v3  ;;  %v12426_v39 = vld [vmem:[#allocation10 + $0x460] sm:$0xff]  ;;  %v18537_v3 = vcombine.low %v12414_v60, %v12418_v61 }
 0x779   :  { %15548 = vmatprep.subr.bf16.mxu1 %v18484_v20  ;;  %v12423_v20 = vld [vmem:[#allocation10 + $0x448] sm:$0xff]  ;;  %v18546_v30 = vcombine.high %v12422_v38, %v12426_v39  ;;  %v18545_v0 = vcombine.low %v12422_v38, %v12426_v39 }
 0x77a   :  { %v18547_v43 = vcombine.low %v12423_v20, %v12427_v27 }
 0x77b   :  { %15377 = vmatpush1.bf16.msra.mxu0 %v18481_v16  ;;  %v12434_v16 = vld [vmem:[#allocation10 + $0x4a0] sm:$0xff] }
 0x77c   :  { %15549 = vmatpush1.bf16.msra.mxu1 %v18483_v15  ;;  %15378 = vmatprep.subr.bf16.mxu0 %v18490_v37  ;;  %v18548_v15 = vcombine.high %v12423_v20, %v12427_v27  ;;  %v12431_v37 = vld [vmem:[#allocation10 + $0x488] sm:$0xff]  ;;  %v18554_v59 = vcombine.high %v12430_v44, %v12434_v16  ;;  %v18553_v42 = vcombine.low %v12430_v44, %v12434_v16  ;;  %v12486_v27 = vld [vmem:[#allocation10 + $0x640] sm:$0xff] }
 0x77d   :  { %15550 = vmatprep.subr.bf16.mxu1 %v18492_v49  ;;  %v12435_v49 = vld [vmem:[#allocation10 + $0x4a8] sm:$0xff] }
 0x77e   :  { %v18556_v56 = vcombine.high %v12431_v37, %v12435_v49  ;;  %v18555_v6 = vcombine.low %v12431_v37, %v12435_v49  ;;  %v12491_v44 = vld [vmem:[#allocation10 + $0x668] sm:$0xff] }
 0x77f   :  { %15379 = vmatpush1.bf16.msra.mxu0 %v18489_v48  ;;  %v12438_v48 = vld [vmem:[#allocation10 + $0x4c0] sm:$0xff] }
 0x780   :  { %15551 = vmatpush1.bf16.msra.mxu1 %v18491_v25  ;;  %15380 = vmatprep.subr.bf16.mxu0 %v18498_v13  ;;  %v12442_v25 = vld [vmem:[#allocation10 + $0x4e0] sm:$0xff]  ;;  %v12439_v13 = vld [vmem:[#allocation10 + $0x4c8] sm:$0xff] }
 0x781   :  { %15552 = vmatprep.subr.bf16.mxu1 %v18500_v63  ;;  %v12443_v63 = vld [vmem:[#allocation10 + $0x4e8] sm:$0xff]  ;;  %v18562_v21 = vcombine.high %v12438_v48, %v12442_v25  ;;  %v18561_v55 = vcombine.low %v12438_v48, %v12442_v25 }
 0x782   :  { %v18564_v8 = vcombine.high %v12439_v13, %v12443_v63  ;;  %v18563_v11 = vcombine.low %v12439_v13, %v12443_v63 }
 0x783   :  { %15381 = vmatpush1.bf16.msra.mxu0 %v18497_v22  ;;  %v12446_v22 = vld [vmem:[#allocation10 + $0x500] sm:$0xff] }
 0x784   :  { %15553 = vmatpush1.bf16.msra.mxu1 %v18499_v34  ;;  %15382 = vmatprep.subr.bf16.mxu0 %v18506_v41  ;;  %v12450_v34 = vld [vmem:[#allocation10 + $0x520] sm:$0xff]  ;;  %v12447_v41 = vld [vmem:[#allocation10 + $0x508] sm:$0xff] }
 0x785   :  { %15554 = vmatprep.subr.bf16.mxu1 %v18508_v50  ;;  %v12451_v50 = vld [vmem:[#allocation10 + $0x528] sm:$0xff]  ;;  %v18570_v33 = vcombine.high %v12446_v22, %v12450_v34  ;;  %v18569_v4 = vcombine.low %v12446_v22, %v12450_v34 }
 0x786   :  { %v18572_v32 = vcombine.high %v12447_v41, %v12451_v50  ;;  %v18571_v9 = vcombine.low %v12447_v41, %v12451_v50 }
 0x787   :  { %15383 = vmatpush1.bf16.msra.mxu0 %v18505_v35  ;;  %v12454_v35 = vld [vmem:[#allocation10 + $0x540] sm:$0xff] }
 0x788   :  { %15555 = vmatpush1.bf16.msra.mxu1 %v18507_v46  ;;  %15384 = vmatprep.subr.bf16.mxu0 %v18514_v2  ;;  %v12458_v46 = vld [vmem:[#allocation10 + $0x560] sm:$0xff]  ;;  %v12455_v2 = vld [vmem:[#allocation10 + $0x548] sm:$0xff] }
 0x789   :  { %15556 = vmatprep.subr.bf16.mxu1 %v18516_v47  ;;  %v12459_v47 = vld [vmem:[#allocation10 + $0x568] sm:$0xff]  ;;  %v18578_v7 = vcombine.high %v12454_v35, %v12458_v46  ;;  %v18577_v1 = vcombine.low %v12454_v35, %v12458_v46 }
 0x78a   :  { %v18580_v29 = vcombine.high %v12455_v2, %v12459_v47  ;;  %v18579_v10 = vcombine.low %v12455_v2, %v12459_v47 }
 0x78b   :  { %15385 = vmatpush1.bf16.msra.mxu0 %v18513_v51  ;;  %v12462_v51 = vld [vmem:[#allocation10 + $0x580] sm:$0xff] }
 0x78c   :  { %15557 = vmatpush1.bf16.msra.mxu1 %v18515_v57  ;;  %15386 = vmatprep.subr.bf16.mxu0 %v18522_v31  ;;  %v12466_v57 = vld [vmem:[#allocation10 + $0x5a0] sm:$0xff]  ;;  %v12463_v31 = vld [vmem:[#allocation10 + $0x588] sm:$0xff] }
 0x78d   :  { %15558 = vmatprep.subr.bf16.mxu1 %v18524_v53  ;;  %v12467_v53 = vld [vmem:[#allocation10 + $0x5a8] sm:$0xff]  ;;  %v18586_v62 = vcombine.high %v12462_v51, %v12466_v57  ;;  %v18585_v60 = vcombine.low %v12462_v51, %v12466_v57 }
 0x78e   :  { %v18588_v12 = vcombine.high %v12463_v31, %v12467_v53  ;;  %v18587_v61 = vcombine.low %v12463_v31, %v12467_v53 }
 0x78f   :  { %15387 = vmatpush1.bf16.msra.mxu0 %v18521_v17  ;;  %v12470_v17 = vld [vmem:[#allocation10 + $0x5c0] sm:$0xff] }
 0x790   :  { %15559 = vmatpush1.bf16.msra.mxu1 %v18523_v19  ;;  %15388 = vmatprep.subr.bf16.mxu0 %v18530_v24  ;;  %v12474_v19 = vld [vmem:[#allocation10 + $0x5e0] sm:$0xff]  ;;  %v12471_v24 = vld [vmem:[#allocation10 + $0x5c8] sm:$0xff] }
 0x791   :  { %15560 = vmatprep.subr.bf16.mxu1 %v18532_v14  ;;  %v12475_v14 = vld [vmem:[#allocation10 + $0x5e8] sm:$0xff]  ;;  %v18594_v26 = vcombine.high %v12470_v17, %v12474_v19  ;;  %v18593_v38 = vcombine.low %v12470_v17, %v12474_v19 }
 0x792   :  { %v18596_v28 = vcombine.high %v12471_v24, %v12475_v14  ;;  %v18595_v39 = vcombine.low %v12471_v24, %v12475_v14 }
 0x793   :  { %15389 = vmatpush1.bf16.msra.mxu0 %v18529_v52  ;;  %v12478_v52 = vld [vmem:[#allocation10 + $0x600] sm:$0xff] }
 0x794   :  { %15561 = vmatpush1.bf16.msra.mxu1 %v18531_v58  ;;  %15401 = vmatprep.subr.bf16.mxu0 %v18538_v18  ;;  %v12482_v58 = vld [vmem:[#allocation10 + $0x620] sm:$0xff]  ;;  %v12479_v18 = vld [vmem:[#allocation10 + $0x608] sm:$0xff] }
 0x795   :  { %15573 = vmatprep.subr.bf16.mxu1 %v18540_v40  ;;  %v12483_v40 = vld [vmem:[#allocation10 + $0x628] sm:$0xff]  ;;  %v18601_v16 = vcombine.low %v12478_v52, %v12482_v58 }
 0x796   :  { %15391 = vmatmul.mubr.bf16.vlgmr.msra.gmra.mrb[32].mxu0 %v20243_v36  ;;  %v18604_v20 = vcombine.high %v12479_v18, %v12483_v40 }
 0x797   :  { %15563 = vmatmul.mubr.bf16.vlgmr.msra.gmra.mrb[32].mxu1 %v20243_v36  ;;  %15402 = vmatpush1.bf16.msra.mxu0 %v18537_v3  ;;  %v18602_v3 = vcombine.high %v12478_v52, %v12482_v58 }
 0x798   :  { %15433 = vmatprep.mubr.bf16.mxu0 %v20252_v5  ;;  %15574 = vmatpush1.bf16.msra.mxu1 %v18539_v45  ;;  %v12490_v45 = vld [vmem:[#allocation10 + $0x660] sm:$0xff] }
 0x799   :  { %15605 = vmatprep.mubr.bf16.mxu1 %v20252_v5  ;;  %15403 = vmatprep.subr.bf16.mxu0 %v18546_v30  ;;  %v12487_v30 = vld [vmem:[#allocation10 + $0x648] sm:$0xff]  ;;  %v18610_v37 = vcombine.high %v12486_v27, %v12490_v45  ;;  %v18609_v48 = vcombine.low %v12486_v27, %v12490_v45 }
 0x79a   :  { %15575 = vmatprep.subr.bf16.mxu1 %v18548_v15  ;;  %v18603_v15 = vcombine.low %v12479_v18, %v12483_v40  ;;  %v18612_v49 = vcombine.high %v12487_v30, %v12491_v44  ;;  %v18611_v25 = vcombine.low %v12487_v30, %v12491_v44 }
 0x79b   :  { %15404 = vmatpush1.bf16.msra.mxu0 %v18545_v0  ;;  %v12494_v0 = vld [vmem:[#allocation10 + $0x680] sm:$0xff] }
 0x79c   :  { %15576 = vmatpush1.bf16.msra.mxu1 %v18547_v43  ;;  %15405 = vmatprep.subr.bf16.mxu0 %v18554_v59  ;;  %v12498_v43 = vld [vmem:[#allocation10 + $0x6a0] sm:$0xff]  ;;  %v12495_v59 = vld [vmem:[#allocation10 + $0x688] sm:$0xff] }
 0x79d   :  { %15577 = vmatprep.subr.bf16.mxu1 %v18556_v56  ;;  %v12499_v56 = vld [vmem:[#allocation10 + $0x6a8] sm:$0xff]  ;;  %v18618_v13 = vcombine.high %v12494_v0, %v12498_v43  ;;  %v18617_v22 = vcombine.low %v12494_v0, %v12498_v43 }
 0x79e   :  { %v18620_v63 = vcombine.high %v12495_v59, %v12499_v56  ;;  %v18619_v34 = vcombine.low %v12495_v59, %v12499_v56 }
 0x79f   :  { %15406 = vmatpush1.bf16.msra.mxu0 %v18553_v42  ;;  %v12502_v42 = vld [vmem:[#allocation10 + $0x6c0] sm:$0xff] }
 0x7a0   :  { %15578 = vmatpush1.bf16.msra.mxu1 %v18555_v6  ;;  %15407 = vmatprep.subr.bf16.mxu0 %v18562_v21  ;;  %v12506_v6 = vld [vmem:[#allocation10 + $0x6e0] sm:$0xff]  ;;  %v12503_v21 = vld [vmem:[#allocation10 + $0x6c8] sm:$0xff] }
 0x7a1   :  { %15579 = vmatprep.subr.bf16.mxu1 %v18564_v8  ;;  %v12507_v8 = vld [vmem:[#allocation10 + $0x6e8] sm:$0xff]  ;;  %v18626_v41 = vcombine.high %v12502_v42, %v12506_v6  ;;  %v18625_v35 = vcombine.low %v12502_v42, %v12506_v6 }
 0x7a2   :  { %v18628_v50 = vcombine.high %v12503_v21, %v12507_v8  ;;  %v18627_v46 = vcombine.low %v12503_v21, %v12507_v8 }
 0x7a3   :  { %15408 = vmatpush1.bf16.msra.mxu0 %v18561_v55  ;;  %v12510_v55 = vld [vmem:[#allocation10 + $0x700] sm:$0xff] }
 0x7a4   :  { %15580 = vmatpush1.bf16.msra.mxu1 %v18563_v11  ;;  %15409 = vmatprep.subr.bf16.mxu0 %v18570_v33  ;;  %v12514_v11 = vld [vmem:[#allocation10 + $0x720] sm:$0xff]  ;;  %v12511_v33 = vld [vmem:[#allocation10 + $0x708] sm:$0xff] }
 0x7a5   :  { %15581 = vmatprep.subr.bf16.mxu1 %v18572_v32  ;;  %v12515_v32 = vld [vmem:[#allocation10 + $0x728] sm:$0xff]  ;;  %v18634_v2 = vcombine.high %v12510_v55, %v12514_v11  ;;  %v18633_v51 = vcombine.low %v12510_v55, %v12514_v11 }
 0x7a6   :  { %v18636_v47 = vcombine.high %v12511_v33, %v12515_v32  ;;  %v18635_v57 = vcombine.low %v12511_v33, %v12515_v32 }
 0x7a7   :  { %15410 = vmatpush1.bf16.msra.mxu0 %v18569_v4  ;;  %v12518_v4 = vld [vmem:[#allocation10 + $0x740] sm:$0xff] }
 0x7a8   :  { %15582 = vmatpush1.bf16.msra.mxu1 %v18571_v9  ;;  %15411 = vmatprep.subr.bf16.mxu0 %v18578_v7  ;;  %v12522_v9 = vld [vmem:[#allocation10 + $0x760] sm:$0xff]  ;;  %v12519_v7 = vld [vmem:[#allocation10 + $0x748] sm:$0xff] }
 0x7a9   :  { %15583 = vmatprep.subr.bf16.mxu1 %v18580_v29  ;;  %v12523_v29 = vld [vmem:[#allocation10 + $0x768] sm:$0xff]  ;;  %v18642_v31 = vcombine.high %v12518_v4, %v12522_v9  ;;  %v18641_v17 = vcombine.low %v12518_v4, %v12522_v9 }
 0x7aa   :  { %v18644_v53 = vcombine.high %v12519_v7, %v12523_v29  ;;  %v18643_v19 = vcombine.low %v12519_v7, %v12523_v29 }
 0x7ab   :  { %15412 = vmatpush1.bf16.msra.mxu0 %v18577_v1  ;;  %v12526_v1 = vld [vmem:[#allocation10 + $0x780] sm:$0xff] }
 0x7ac   :  { %15584 = vmatpush1.bf16.msra.mxu1 %v18579_v10  ;;  %15413 = vmatprep.subr.bf16.mxu0 %v18586_v62  ;;  %v12530_v10 = vld [vmem:[#allocation10 + $0x7a0] sm:$0xff]  ;;  %v12527_v62 = vld [vmem:[#allocation10 + $0x788] sm:$0xff] }
 0x7ad   :  { %15585 = vmatprep.subr.bf16.mxu1 %v18588_v12  ;;  %v12531_v12 = vld [vmem:[#allocation10 + $0x7a8] sm:$0xff]  ;;  %v18650_v24 = vcombine.high %v12526_v1, %v12530_v10  ;;  %v18649_v52 = vcombine.low %v12526_v1, %v12530_v10 }
 0x7ae   :  { %v18652_v14 = vcombine.high %v12527_v62, %v12531_v12  ;;  %v18651_v58 = vcombine.low %v12527_v62, %v12531_v12 }
 0x7af   :  { %15414 = vmatpush1.bf16.msra.mxu0 %v18585_v60  ;;  %v12534_v60 = vld [vmem:[#allocation10 + $0x7c0] sm:$0xff] }
 0x7b0   :  { %15586 = vmatpush1.bf16.msra.mxu1 %v18587_v61  ;;  %15415 = vmatprep.subr.bf16.mxu0 %v18594_v26  ;;  %v12538_v61 = vld [vmem:[#allocation10 + $0x7e0] sm:$0xff]  ;;  %v12535_v26 = vld [vmem:[#allocation10 + $0x7c8] sm:$0xff] }
 0x7b1   :  { %15587 = vmatprep.subr.bf16.mxu1 %v18596_v28  ;;  %v12539_v28 = vld [vmem:[#allocation10 + $0x7e8] sm:$0xff]  ;;  %v18658_v18 = vcombine.high %v12534_v60, %v12538_v61  ;;  %v18657_v27 = vcombine.low %v12534_v60, %v12538_v61 }
 0x7b2   :  { %v18660_v40 = vcombine.high %v12535_v26, %v12539_v28  ;;  %v18659_v45 = vcombine.low %v12535_v26, %v12539_v28 }
 0x7b3   :  { %15416 = vmatpush1.bf16.msra.mxu0 %v18593_v38  ;;  %v12542_v38 = vld [vmem:[#allocation10 + $0x800] sm:$0xff] }
 0x7b4   :  { %15588 = vmatpush1.bf16.msra.mxu1 %v18595_v39  ;;  %15417 = vmatprep.subr.bf16.mxu0 %v18602_v3  ;;  %v12546_v39 = vld [vmem:[#allocation10 + $0x820] sm:$0xff]  ;;  %v12543_v3 = vld [vmem:[#allocation10 + $0x808] sm:$0xff] }
 0x7b5   :  { %15589 = vmatprep.subr.bf16.mxu1 %v18604_v20  ;;  %v12547_v20 = vld [vmem:[#allocation10 + $0x828] sm:$0xff]  ;;  %v18666_v30 = vcombine.high %v12542_v38, %v12546_v39  ;;  %v18665_v0 = vcombine.low %v12542_v38, %v12546_v39 }
 0x7b6   :  { %v18668_v44 = vcombine.high %v12543_v3, %v12547_v20  ;;  %v18667_v43 = vcombine.low %v12543_v3, %v12547_v20 }
 0x7b7   :  { %15418 = vmatpush1.bf16.msra.mxu0 %v18601_v16  ;;  %v12550_v16 = vld [vmem:[#allocation10 + $0x840] sm:$0xff] }
 0x7b8   :  { %15590 = vmatpush1.bf16.msra.mxu1 %v18603_v15  ;;  %15419 = vmatprep.subr.bf16.mxu0 %v18610_v37  ;;  %v12554_v15 = vld [vmem:[#allocation10 + $0x860] sm:$0xff]  ;;  %v12551_v37 = vld [vmem:[#allocation10 + $0x848] sm:$0xff] }
 0x7b9   :  { %15591 = vmatprep.subr.bf16.mxu1 %v18612_v49  ;;  %v12555_v49 = vld [vmem:[#allocation10 + $0x868] sm:$0xff]  ;;  %v18674_v59 = vcombine.high %v12550_v16, %v12554_v15  ;;  %v18673_v42 = vcombine.low %v12550_v16, %v12554_v15 }
 0x7ba   :  { %v18676_v56 = vcombine.high %v12551_v37, %v12555_v49  ;;  %v18675_v6 = vcombine.low %v12551_v37, %v12555_v49 }
 0x7bb   :  { %15420 = vmatpush1.bf16.msra.mxu0 %v18609_v48  ;;  %v12558_v48 = vld [vmem:[#allocation10 + $0x880] sm:$0xff] }
 0x7bc   :  { %15592 = vmatpush1.bf16.msra.mxu1 %v18611_v25  ;;  %15421 = vmatprep.subr.bf16.mxu0 %v18618_v13  ;;  %v12562_v25 = vld [vmem:[#allocation10 + $0x8a0] sm:$0xff]  ;;  %v12559_v13 = vld [vmem:[#allocation10 + $0x888] sm:$0xff] }
 0x7bd   :  { %15593 = vmatprep.subr.bf16.mxu1 %v18620_v63  ;;  %v12563_v63 = vld [vmem:[#allocation10 + $0x8a8] sm:$0xff]  ;;  %v18682_v21 = vcombine.high %v12558_v48, %v12562_v25  ;;  %v18681_v55 = vcombine.low %v12558_v48, %v12562_v25 }
 0x7be   :  { %v18684_v8 = vcombine.high %v12559_v13, %v12563_v63  ;;  %v18683_v11 = vcombine.low %v12559_v13, %v12563_v63 }
 0x7bf   :  { %15422 = vmatpush1.bf16.msra.mxu0 %v18617_v22  ;;  %v12566_v22 = vld [vmem:[#allocation10 + $0x8c0] sm:$0xff] }
 0x7c0   :  { %15594 = vmatpush1.bf16.msra.mxu1 %v18619_v34  ;;  %15423 = vmatprep.subr.bf16.mxu0 %v18626_v41  ;;  %v12570_v34 = vld [vmem:[#allocation10 + $0x8e0] sm:$0xff]  ;;  %v12567_v41 = vld [vmem:[#allocation10 + $0x8c8] sm:$0xff] }
 0x7c1   :  { %15595 = vmatprep.subr.bf16.mxu1 %v18628_v50  ;;  %v12571_v50 = vld [vmem:[#allocation10 + $0x8e8] sm:$0xff]  ;;  %v18690_v33 = vcombine.high %v12566_v22, %v12570_v34  ;;  %v18689_v4 = vcombine.low %v12566_v22, %v12570_v34 }
 0x7c2   :  { %v18692_v32 = vcombine.high %v12567_v41, %v12571_v50  ;;  %v18691_v9 = vcombine.low %v12567_v41, %v12571_v50 }
 0x7c3   :  { %15424 = vmatpush1.bf16.msra.mxu0 %v18625_v35  ;;  %v12574_v35 = vld [vmem:[#allocation10 + $0x900] sm:$0xff] }
 0x7c4   :  { %15596 = vmatpush1.bf16.msra.mxu1 %v18627_v46  ;;  %15425 = vmatprep.subr.bf16.mxu0 %v18634_v2  ;;  %v12578_v46 = vld [vmem:[#allocation10 + $0x920] sm:$0xff]  ;;  %v12575_v2 = vld [vmem:[#allocation10 + $0x908] sm:$0xff] }
 0x7c5   :  { %15597 = vmatprep.subr.bf16.mxu1 %v18636_v47  ;;  %v12579_v47 = vld [vmem:[#allocation10 + $0x928] sm:$0xff]  ;;  %v18698_v7 = vcombine.high %v12574_v35, %v12578_v46  ;;  %v18697_v1 = vcombine.low %v12574_v35, %v12578_v46 }
 0x7c6   :  { %v18700_v29 = vcombine.high %v12575_v2, %v12579_v47  ;;  %v18699_v10 = vcombine.low %v12575_v2, %v12579_v47 }
 0x7c7   :  { %15426 = vmatpush1.bf16.msra.mxu0 %v18633_v51  ;;  %v12582_v51 = vld [vmem:[#allocation10 + $0x940] sm:$0xff] }
 0x7c8   :  { %15598 = vmatpush1.bf16.msra.mxu1 %v18635_v57  ;;  %15427 = vmatprep.subr.bf16.mxu0 %v18642_v31  ;;  %v12586_v57 = vld [vmem:[#allocation10 + $0x960] sm:$0xff]  ;;  %v12583_v31 = vld [vmem:[#allocation10 + $0x948] sm:$0xff] }
 0x7c9   :  { %15599 = vmatprep.subr.bf16.mxu1 %v18644_v53  ;;  %v12587_v53 = vld [vmem:[#allocation10 + $0x968] sm:$0xff]  ;;  %v18706_v62 = vcombine.high %v12582_v51, %v12586_v57  ;;  %v18705_v60 = vcombine.low %v12582_v51, %v12586_v57 }
 0x7ca   :  { %v18708_v12 = vcombine.high %v12583_v31, %v12587_v53  ;;  %v18707_v61 = vcombine.low %v12583_v31, %v12587_v53 }
 0x7cb   :  { %15428 = vmatpush1.bf16.msra.mxu0 %v18641_v17  ;;  %v12590_v17 = vld [vmem:[#allocation10 + $0x980] sm:$0xff] }
 0x7cc   :  { %15600 = vmatpush1.bf16.msra.mxu1 %v18643_v19  ;;  %15429 = vmatprep.subr.bf16.mxu0 %v18650_v24  ;;  %v12594_v19 = vld [vmem:[#allocation10 + $0x9a0] sm:$0xff]  ;;  %v12591_v24 = vld [vmem:[#allocation10 + $0x988] sm:$0xff] }
 0x7cd   :  { %15601 = vmatprep.subr.bf16.mxu1 %v18652_v14  ;;  %v12595_v14 = vld [vmem:[#allocation10 + $0x9a8] sm:$0xff]  ;;  %v18714_v26 = vcombine.high %v12590_v17, %v12594_v19  ;;  %v18713_v38 = vcombine.low %v12590_v17, %v12594_v19 }
 0x7ce   :  { %v18716_v28 = vcombine.high %v12591_v24, %v12595_v14  ;;  %v18715_v39 = vcombine.low %v12591_v24, %v12595_v14 }
 0x7cf   :  { %15430 = vmatpush1.bf16.msra.mxu0 %v18649_v52  ;;  %v12598_v52 = vld [vmem:[#allocation10 + $0x9c0] sm:$0xff] }
 0x7d0   :  { %15602 = vmatpush1.bf16.msra.mxu1 %v18651_v58  ;;  %15431 = vmatprep.subr.bf16.mxu0 %v18658_v18  ;;  %v12602_v58 = vld [vmem:[#allocation10 + $0x9e0] sm:$0xff]  ;;  %v12599_v18 = vld [vmem:[#allocation10 + $0x9c8] sm:$0xff] }
 0x7d1   :  { %15603 = vmatprep.subr.bf16.mxu1 %v18660_v40  ;;  %v12603_v40 = vld [vmem:[#allocation10 + $0x9e8] sm:$0xff]  ;;  %v18722_v3 = vcombine.high %v12598_v52, %v12602_v58  ;;  %v18721_v16 = vcombine.low %v12598_v52, %v12602_v58 }
 0x7d2   :  { %v18724_v20 = vcombine.high %v12599_v18, %v12603_v40  ;;  %v18723_v15 = vcombine.low %v12599_v18, %v12603_v40 }
 0x7d3   :  { %15432 = vmatpush1.bf16.msra.mxu0 %v18657_v27  ;;  %v12606_v27 = vld [vmem:[#allocation10 + $0xa00] sm:$0xff] }
 0x7d4   :  { %15604 = vmatpush1.bf16.msra.mxu1 %v18659_v45  ;;  %15444 = vmatprep.subr.bf16.mxu0 %v18666_v30  ;;  %v12610_v45 = vld [vmem:[#allocation10 + $0xa20] sm:$0xff]  ;;  %v12607_v30 = vld [vmem:[#allocation10 + $0xa08] sm:$0xff] }
 0x7d5   :  { %15616 = vmatprep.subr.bf16.mxu1 %v18668_v44  ;;  %v12611_v44 = vld [vmem:[#allocation10 + $0xa28] sm:$0xff]  ;;  %v18730_v37 = vcombine.high %v12606_v27, %v12610_v45  ;;  %v18729_v48 = vcombine.low %v12606_v27, %v12610_v45 }
 0x7d6   :  { %15434 = vmatmul.mubr.bf16.vlgmr.msra.gmra.mrb[32].mxu0 %v20247_v23  ;;  %v18732_v49 = vcombine.high %v12607_v30, %v12611_v44  ;;  %v18731_v25 = vcombine.low %v12607_v30, %v12611_v44 }
 0x7d7   :  { %15606 = vmatmul.mubr.bf16.vlgmr.msra.gmra.mrb[32].mxu1 %v20247_v23  ;;  %15445 = vmatpush1.bf16.msra.mxu0 %v18665_v0  ;;  %v12614_v0 = vld [vmem:[#allocation10 + $0xa40] sm:$0xff] }
 0x7d8   :  { %15617 = vmatpush1.bf16.msra.mxu1 %v18667_v43  ;;  %15446 = vmatprep.subr.bf16.mxu0 %v18674_v59  ;;  %v12618_v43 = vld [vmem:[#allocation10 + $0xa60] sm:$0xff]  ;;  %v12615_v59 = vld [vmem:[#allocation10 + $0xa48] sm:$0xff] }
 0x7d9   :  { %15618 = vmatprep.subr.bf16.mxu1 %v18676_v56  ;;  %v12619_v56 = vld [vmem:[#allocation10 + $0xa68] sm:$0xff]  ;;  %v18738_v13 = vcombine.high %v12614_v0, %v12618_v43  ;;  %v18737_v22 = vcombine.low %v12614_v0, %v12618_v43 }
 0x7da   :  { %v18740_v63 = vcombine.high %v12615_v59, %v12619_v56  ;;  %v18739_v34 = vcombine.low %v12615_v59, %v12619_v56 }
 0x7db   :  { %15447 = vmatpush1.bf16.msra.mxu0 %v18673_v42  ;;  %v12622_v42 = vld [vmem:[#allocation10 + $0xa80] sm:$0xff] }
 0x7dc   :  { %15619 = vmatpush1.bf16.msra.mxu1 %v18675_v6  ;;  %15448 = vmatprep.subr.bf16.mxu0 %v18682_v21  ;;  %v12626_v6 = vld [vmem:[#allocation10 + $0xaa0] sm:$0xff]  ;;  %v12623_v21 = vld [vmem:[#allocation10 + $0xa88] sm:$0xff] }
 0x7dd   :  { %15620 = vmatprep.subr.bf16.mxu1 %v18684_v8  ;;  %v12627_v8 = vld [vmem:[#allocation10 + $0xaa8] sm:$0xff]  ;;  %v18746_v41 = vcombine.high %v12622_v42, %v12626_v6  ;;  %v18745_v35 = vcombine.low %v12622_v42, %v12626_v6 }
 0x7de   :  { %v18748_v50 = vcombine.high %v12623_v21, %v12627_v8  ;;  %v18747_v46 = vcombine.low %v12623_v21, %v12627_v8 }
 0x7df   :  { %15449 = vmatpush1.bf16.msra.mxu0 %v18681_v55  ;;  %v12630_v55 = vld [vmem:[#allocation10 + $0xac0] sm:$0xff] }
 0x7e0   :  { %15621 = vmatpush1.bf16.msra.mxu1 %v18683_v11  ;;  %15450 = vmatprep.subr.bf16.mxu0 %v18690_v33  ;;  %v12634_v11 = vld [vmem:[#allocation10 + $0xae0] sm:$0xff]  ;;  %v12631_v33 = vld [vmem:[#allocation10 + $0xac8] sm:$0xff] }
 0x7e1   :  { %15622 = vmatprep.subr.bf16.mxu1 %v18692_v32  ;;  %v12635_v32 = vld [vmem:[#allocation10 + $0xae8] sm:$0xff]  ;;  %v18754_v2 = vcombine.high %v12630_v55, %v12634_v11  ;;  %v18753_v51 = vcombine.low %v12630_v55, %v12634_v11 }
 0x7e2   :  { %v18756_v47 = vcombine.high %v12631_v33, %v12635_v32  ;;  %v18755_v57 = vcombine.low %v12631_v33, %v12635_v32 }
 0x7e3   :  { %15451 = vmatpush1.bf16.msra.mxu0 %v18689_v4  ;;  %v12638_v4 = vld [vmem:[#allocation10 + $0xb00] sm:$0xff] }
 0x7e4   :  { %15623 = vmatpush1.bf16.msra.mxu1 %v18691_v9  ;;  %15452 = vmatprep.subr.bf16.mxu0 %v18698_v7  ;;  %v12642_v9 = vld [vmem:[#allocation10 + $0xb20] sm:$0xff]  ;;  %v12639_v7 = vld [vmem:[#allocation10 + $0xb08] sm:$0xff] }
 0x7e5   :  { %15624 = vmatprep.subr.bf16.mxu1 %v18700_v29  ;;  %v12643_v29 = vld [vmem:[#allocation10 + $0xb28] sm:$0xff]  ;;  %v18762_v31 = vcombine.high %v12638_v4, %v12642_v9  ;;  %v18761_v17 = vcombine.low %v12638_v4, %v12642_v9 }
 0x7e6   :  { %v18764_v53 = vcombine.high %v12639_v7, %v12643_v29  ;;  %v18763_v19 = vcombine.low %v12639_v7, %v12643_v29 }
 0x7e7   :  { %15453 = vmatpush1.bf16.msra.mxu0 %v18697_v1  ;;  %v12646_v1 = vld [vmem:[#allocation10 + $0xb40] sm:$0xff] }
 0x7e8   :  { %15625 = vmatpush1.bf16.msra.mxu1 %v18699_v10  ;;  %15454 = vmatprep.subr.bf16.mxu0 %v18706_v62  ;;  %v12650_v10 = vld [vmem:[#allocation10 + $0xb60] sm:$0xff]  ;;  %v12647_v62 = vld [vmem:[#allocation10 + $0xb48] sm:$0xff] }
 0x7e9   :  { %15626 = vmatprep.subr.bf16.mxu1 %v18708_v12  ;;  %v12651_v12 = vld [vmem:[#allocation10 + $0xb68] sm:$0xff]  ;;  %v18770_v24 = vcombine.high %v12646_v1, %v12650_v10  ;;  %v18769_v52 = vcombine.low %v12646_v1, %v12650_v10 }
 0x7ea   :  { %v18772_v14 = vcombine.high %v12647_v62, %v12651_v12  ;;  %v18771_v58 = vcombine.low %v12647_v62, %v12651_v12 }
 0x7eb   :  { %15455 = vmatpush1.bf16.msra.mxu0 %v18705_v60  ;;  %v12654_v60 = vld [vmem:[#allocation10 + $0xb80] sm:$0xff] }
 0x7ec   :  { %15627 = vmatpush1.bf16.msra.mxu1 %v18707_v61  ;;  %15456 = vmatprep.subr.bf16.mxu0 %v18714_v26  ;;  %v12658_v61 = vld [vmem:[#allocation10 + $0xba0] sm:$0xff]  ;;  %v12655_v26 = vld [vmem:[#allocation10 + $0xb88] sm:$0xff] }
 0x7ed   :  { %15628 = vmatprep.subr.bf16.mxu1 %v18716_v28  ;;  %v12659_v28 = vld [vmem:[#allocation10 + $0xba8] sm:$0xff]  ;;  %v18778_v18 = vcombine.high %v12654_v60, %v12658_v61  ;;  %v18777_v27 = vcombine.low %v12654_v60, %v12658_v61 }
 0x7ee   :  { %v18780_v40 = vcombine.high %v12655_v26, %v12659_v28  ;;  %v18779_v45 = vcombine.low %v12655_v26, %v12659_v28 }
 0x7ef   :  { %15457 = vmatpush1.bf16.msra.mxu0 %v18713_v38  ;;  %v12662_v38 = vld [vmem:[#allocation10 + $0xbc0] sm:$0xff] }
 0x7f0   :  { %15629 = vmatpush1.bf16.msra.mxu1 %v18715_v39  ;;  %15458 = vmatprep.subr.bf16.mxu0 %v18722_v3  ;;  %v12666_v39 = vld [vmem:[#allocation10 + $0xbe0] sm:$0xff]  ;;  %v12663_v3 = vld [vmem:[#allocation10 + $0xbc8] sm:$0xff] }
 0x7f1   :  { %15630 = vmatprep.subr.bf16.mxu1 %v18724_v20  ;;  %v12667_v20 = vld [vmem:[#allocation10 + $0xbe8] sm:$0xff]  ;;  %v18786_v30 = vcombine.high %v12662_v38, %v12666_v39  ;;  %v18785_v0 = vcombine.low %v12662_v38, %v12666_v39 }
 0x7f2   :  { %v18788_v44 = vcombine.high %v12663_v3, %v12667_v20  ;;  %v18787_v43 = vcombine.low %v12663_v3, %v12667_v20  ;;  %v12678_v20 = vld [vmem:[#allocation10 + $0xc40] sm:$0xff] }
 0x7f3   :  { %15459 = vmatpush1.bf16.msra.mxu0 %v18721_v16  ;;  %v20264_v16 = vld [vmem:[#allocation10 + $0xc00] sm:$0xff] }
 0x7f4   :  { %15631 = vmatpush1.bf16.msra.mxu1 %v18723_v15  ;;  %15460 = vmatprep.subr.bf16.mxu0 %v18730_v37  ;;  %v20266_v15 = vld [vmem:[#allocation10 + $0xc20] sm:$0xff]  ;;  %v20268_v37 = vld [vmem:[#allocation10 + $0xc08] sm:$0xff] }
 0x7f5   :  { %15632 = vmatprep.subr.bf16.mxu1 %v18732_v49  ;;  %v20270_v49 = vld [vmem:[#allocation10 + $0xc28] sm:$0xff]  ;;  %v18794_v59 = vcombine.high %v20264_v16, %v20266_v15 }
 0x7f6   :  { %v18796_v56 = vcombine.high %v20268_v37, %v20270_v49 }
 0x7f7   :  { %15461 = vmatpush1.bf16.msra.mxu0 %v18729_v48 }
 0x7f8   :  { %15633 = vmatpush1.bf16.msra.mxu1 %v18731_v25  ;;  %15462 = vmatprep.subr.bf16.mxu0 %v18738_v13 }
 0x7f9   :  { %15634 = vmatprep.subr.bf16.mxu1 %v18740_v63 }
 0x7fb   :  { %15463 = vmatpush1.bf16.msra.mxu0 %v18737_v22 }
 0x7fc   :  { %15635 = vmatpush1.bf16.msra.mxu1 %v18739_v34  ;;  %15464 = vmatprep.subr.bf16.mxu0 %v18746_v41 }
 0x7fd   :  { %15636 = vmatprep.subr.bf16.mxu1 %v18748_v50 }
 0x7ff   :  { %15465 = vmatpush1.bf16.msra.mxu0 %v18745_v35 }
 0x800   :  { %15637 = vmatpush1.bf16.msra.mxu1 %v18747_v46  ;;  %15466 = vmatprep.subr.bf16.mxu0 %v18754_v2 }
 0x801   :  { %15638 = vmatprep.subr.bf16.mxu1 %v18756_v47 }
 0x803   :  { %15467 = vmatpush1.bf16.msra.mxu0 %v18753_v51 }
 0x804   :  { %15639 = vmatpush1.bf16.msra.mxu1 %v18755_v57  ;;  %15468 = vmatprep.subr.bf16.mxu0 %v18762_v31 }
 0x805   :  { %15640 = vmatprep.subr.bf16.mxu1 %v18764_v53 }
 0x807   :  { %15469 = vmatpush1.bf16.msra.mxu0 %v18761_v17 }
 0x808   :  { %15641 = vmatpush1.bf16.msra.mxu1 %v18763_v19  ;;  %15470 = vmatprep.subr.bf16.mxu0 %v18770_v24 }
 0x809   :  { %15642 = vmatprep.subr.bf16.mxu1 %v18772_v14 }
 0x80b   :  { %15471 = vmatpush1.bf16.msra.mxu0 %v18769_v52 }
 0x80c   :  { %15643 = vmatpush1.bf16.msra.mxu1 %v18771_v58  ;;  %15472 = vmatprep.subr.bf16.mxu0 %v18778_v18 }
 0x80d   :  { %15644 = vmatprep.subr.bf16.mxu1 %v18780_v40 }
 0x80f   :  { %15473 = vmatpush1.bf16.msra.mxu0 %v18777_v27 }
 0x810   :  { %15645 = vmatpush1.bf16.msra.mxu1 %v18779_v45  ;;  %15474 = vmatprep.subr.bf16.mxu0 %v18786_v30 }
 0x811   :  { %15646 = vmatprep.subr.bf16.mxu1 %v18788_v44  ;;  %v12682_v44 = vld [vmem:[#allocation10 + $0xc60] sm:$0xff] }
 0x813   :  { %15475 = vmatpush1.bf16.msra.mxu0 %v18785_v0  ;;  %v12679_v0 = vld [vmem:[#allocation10 + $0xc48] sm:$0xff] }
 0x814   :  { %15647 = vmatpush1.bf16.msra.mxu1 %v18787_v43  ;;  %15487 = vmatprep.subr.bf16.mxu0 %v18794_v59  ;;  %v12683_v43 = vld [vmem:[#allocation10 + $0xc68] sm:$0xff] }
 0x815   :  { %15659 = vmatprep.subr.bf16.mxu1 %v18796_v56  ;;  %v18793_v56 = vcombine.low %v20264_v16, %v20266_v15  ;;  %v18801_v16 = vcombine.low %v12678_v20, %v12682_v44  ;;  %v18803_v15 = vcombine.low %v12679_v0, %v12683_v43 }
 0x829   :  { %v12017_v48 = vpop.f32.mrb[28].mxu0 }
 0x82a   :  { %v12202_v25 = vmul.f32 0.5, %v12017_v48  ;;  %v12189_v13 = vpop.f32.mrb[28].mxu1  ;;  %v12019_v63 = vpop.f32.mrb[29].mxu0 }
 0x82b   :  { %v12204_v42 = vmul.f32 0.5, %v12189_v13  ;;  %v12203_v6 = vmul.f32 0.5, %v12019_v63  ;;  %v12191_v21 = vpop.f32.mrb[29].mxu1  ;;  %v12021_v8 = vpop.f32.mrb[30].mxu0 }
 0x82c   :  { %19473 = vtanh.f32 %v12202_v25  ;;  %v12205_v22 = vmul.f32 0.5, %v12191_v21  ;;  %v12210_v34 = vmul.f32 0.5, %v12021_v8  ;;  %v12193_v41 = vpop.f32.mrb[30].mxu1  ;;  %v12023_v50 = vpop.f32.mrb[31].mxu0 }
 0x82d   :  { %19475 = vtanh.f32 %v12204_v42  ;;  %v12212_v55 = vmul.f32 0.5, %v12193_v41  ;;  %v12195_v11 = vpop.f32.mrb[31].mxu1  ;;  %v12211_v33 = vmul.f32 0.5, %v12023_v50  ;;  %v18804_v42 = vcombine.high %v12679_v0, %v12683_v43  ;;  %v12735_v0 = vld [vmem:[#allocation10 + $0xe08] sm:$0xff] }
 0x82e   :  { %19477 = vtanh.f32 %v12203_v6  ;;  %v12213_v32 = vmul.f32 0.5, %v12195_v11  ;;  %v12690_v6 = vld [vmem:[#allocation10 + $0xca0] sm:$0xff]  ;;  %v12739_v43 = vld [vmem:[#allocation10 + $0xe28] sm:$0xff] }
 0x82f   :  { %19479 = vtanh.f32 %v12205_v22  ;;  %v12694_v22 = vld [vmem:[#allocation10 + $0xcc0] sm:$0xff] }
 0x830   :  { %19481 = vtanh.f32 %v12210_v34  ;;  %v12698_v34 = vld [vmem:[#allocation10 + $0xce0] sm:$0xff] }
 0x831   :  { %19483 = vtanh.f32 %v12212_v55 }
 0x832   :  { %19485 = vtanh.f32 %v12211_v33  ;;  %v18818_v33 = vcombine.high %v12694_v22, %v12698_v34 }
 0x833   :  { %19487 = vtanh.f32 %v12213_v32 }
 0x836   :  { %v19474_v35 = vpop.eup %19473 }
 0x837   :  { %v19476_v46 = vpop.eup %19475  ;;  %v12234_v2 = vmul.f32 0.5, %v19474_v35  ;;  %v12702_v35 = vld [vmem:[#allocation10 + $0xd00] sm:$0xff] }
 0x838   :  { %v19478_v47 = vpop.eup %19477  ;;  %v12236_v4 = vmul.f32 0.5, %v19476_v46  ;;  %v12706_v46 = vld [vmem:[#allocation10 + $0xd20] sm:$0xff] }
 0x839   :  { %v19480_v9 = vpop.eup %19479  ;;  %v12235_v7 = vmul.f32 0.5, %v19478_v47  ;;  %v12250_v31 = vadd.f32 0.5, %v12234_v2  ;;  %v12703_v2 = vld [vmem:[#allocation10 + $0xd08] sm:$0xff] }
 0x83a   :  { %v19482_v29 = vpop.eup %19481  ;;  %v12237_v51 = vmul.f32 0.5, %v19480_v9  ;;  %v12252_v10 = vadd.f32 0.5, %v12236_v4  ;;  %v12707_v47 = vld [vmem:[#allocation10 + $0xd28] sm:$0xff]  ;;  %v18817_v4 = vcombine.low %v12694_v22, %v12698_v34  ;;  %v12750_v22 = vld [vmem:[#allocation10 + $0xe80] sm:$0xff] }
 0x83b   :  { %v19484_v57 = vpop.eup %19483  ;;  %v12242_v53 = vmul.f32 0.5, %v19482_v29  ;;  %v12251_v17 = vadd.f32 0.5, %v12235_v7  ;;  %v12266_v26 = vmul.f32 %v12250_v31, %v12017_v48  ;;  %v18795_v48 = vcombine.low %v20268_v37, %v20270_v49  ;;  %v12711_v31 = vld [vmem:[#allocation10 + $0xd48] sm:$0xff]  ;;  %v12754_v34 = vld [vmem:[#allocation10 + $0xea0] sm:$0xff] }
 0x83c   :  { %v19486_v1 = vpop.eup %19485  ;;  %v12244_v62 = vmul.f32 0.5, %v19484_v57  ;;  %v12253_v14 = vadd.f32 0.5, %v12237_v51  ;;  %v12268_v58 = vmul.f32 %v12252_v10, %v12189_v13  ;;  %v12686_v13 = vld [vmem:[#allocation10 + $0xc80] sm:$0xff]  ;;  %v18826_v7 = vcombine.high %v12702_v35, %v12706_v46 }
 0x83d   :  { %v19488_v12 = vpop.eup %19487  ;;  %v12258_v19 = vadd.f32 0.5, %v12242_v53  ;;  %v12243_v24 = vmul.f32 0.5, %v19486_v1  ;;  %v12267_v38 = vmul.f32 %v12251_v17, %v12019_v63  ;;  %v18802_v63 = vcombine.high %v12678_v20, %v12682_v44  ;;  %v12710_v51 = vld [vmem:[#allocation10 + $0xd40] sm:$0xff]  ;;  %v12715_v53 = vld [vmem:[#allocation10 + $0xd68] sm:$0xff] }
 0x83e   :  { %v12260_v60 = vadd.f32 0.5, %v12244_v62  ;;  %v12245_v61 = vmul.f32 0.5, %v19488_v12  ;;  %v12269_v27 = vmul.f32 %v12253_v14, %v12191_v21  ;;  %v12687_v21 = vld [vmem:[#allocation10 + $0xc88] sm:$0xff]  ;;  %v18810_v37 = vcombine.high %v12686_v13, %v12690_v6  ;;  %v12714_v57 = vld [vmem:[#allocation10 + $0xd60] sm:$0xff] }
 0x83f   :  { %v12274_v28 = vmul.f32 %v12258_v19, %v12021_v8  ;;  %v12259_v52 = vadd.f32 0.5, %v12243_v24  ;;  %v12691_v8 = vld [vmem:[#allocation10 + $0xca8] sm:$0xff]  ;;  %v18809_v55 = vcombine.low %v12686_v13, %v12690_v6  ;;  %v18828_v29 = vcombine.high %v12703_v2, %v12707_v47  ;;  %v12718_v17 = vld [vmem:[#allocation10 + $0xd80] sm:$0xff] }
 0x840   :  { %v12276_v18 = vmul.f32 %v12260_v60, %v12193_v41  ;;  %v12261_v40 = vadd.f32 0.5, %v12245_v61  ;;  %v18812_v49 = vcombine.high %v12687_v21, %v12691_v8  ;;  %v12695_v41 = vld [vmem:[#allocation10 + $0xcc8] sm:$0xff]  ;;  %v18825_v1 = vcombine.low %v12702_v35, %v12706_v46  ;;  %v12722_v19 = vld [vmem:[#allocation10 + $0xda0] sm:$0xff] }
 0x841   :  { %v20276_v39 = vpack.c.bf16 %v12274_v28, %v12266_v26  ;;  %v12275_v3 = vmul.f32 %v12259_v52, %v12023_v50  ;;  %v12699_v50 = vld [vmem:[#allocation10 + $0xce8] sm:$0xff]  ;;  %v18827_v10 = vcombine.low %v12703_v2, %v12707_v47  ;;  %v18834_v62 = vcombine.high %v12710_v51, %v12714_v57  ;;  %v12726_v52 = vld [vmem:[#allocation10 + $0xdc0] sm:$0xff] }
 0x842   :  { %v20278_v45 = vpack.c.bf16 %v12276_v18, %v12268_v58  ;;  %v12277_v30 = vmul.f32 %v12261_v40, %v12195_v11  ;;  %v18811_v11 = vcombine.low %v12687_v21, %v12691_v8  ;;  %v18820_v32 = vcombine.high %v12695_v41, %v12699_v50  ;;  %v12719_v24 = vld [vmem:[#allocation10 + $0xd88] sm:$0xff]  ;;  %v12730_v58 = vld [vmem:[#allocation10 + $0xde0] sm:$0xff] }
 0x843   :  { %v20280_v59 = vpack.c.bf16 %v12275_v3, %v12267_v38  ;;  %v18819_v9 = vcombine.low %v12695_v41, %v12699_v50  ;;  %v18836_v12 = vcombine.high %v12711_v31, %v12715_v53  ;;  %v12723_v14 = vld [vmem:[#allocation10 + $0xda8] sm:$0xff]  ;;  %v18833_v60 = vcombine.low %v12710_v51, %v12714_v57  ;;  %v12738_v44 = vld [vmem:[#allocation10 + $0xe20] sm:$0xff] }
 0x844   :  { %v20286_v25 = vpack.c.bf16 %v12277_v30, %v12269_v27  ;;  %v18835_v61 = vcombine.low %v12711_v31, %v12715_v53  ;;  %v18842_v26 = vcombine.high %v12718_v17, %v12722_v19  ;;  %v18844_v28 = vcombine.high %v12719_v24, %v12723_v14  ;;  %v12727_v18 = vld [vmem:[#allocation10 + $0xdc8] sm:$0xff]  ;;  %v12734_v30 = vld [vmem:[#allocation10 + $0xe00] sm:$0xff] }
 0x845   :  { %15476 = vmatprep.mubr.bf16.mxu0 %v20280_v59  ;;  %15648 = vmatprep.mubr.bf16.mxu1 %v20280_v59  ;;  %v12731_v40 = vld [vmem:[#allocation10 + $0xde8] sm:$0xff]  ;;  %v18841_v38 = vcombine.low %v12718_v17, %v12722_v19  ;;  %v18843_v3 = vcombine.low %v12719_v24, %v12723_v14  ;;  %v18850_v20 = vcombine.high %v12726_v52, %v12730_v58  ;;  %v12746_v6 = vld [vmem:[#allocation10 + $0xe60] sm:$0xff] }
 0x846   :  { %15477 = vmatmul.mubr.bf16.vlgmr.msra.gmra.mrb[32].mxu0 %v20276_v39  ;;  %15649 = vmatmul.mubr.bf16.vlgmr.msra.gmra.mrb[32].mxu1 %v20276_v39  ;;  %v18852_v27 = vcombine.high %v12727_v18, %v12731_v40  ;;  %v18858_v13 = vcombine.high %v12734_v30, %v12738_v44  ;;  %v12743_v21 = vld [vmem:[#allocation10 + $0xe48] sm:$0xff]  ;;  %v12758_v35 = vld [vmem:[#allocation10 + $0xec0] sm:$0xff] }
 0x847   :  { %15488 = vmatpush1.bf16.msra.mxu0 %v18793_v56  ;;  %15660 = vmatpush1.bf16.msra.mxu1 %v18795_v48  ;;  %v18849_v56 = vcombine.low %v12726_v52, %v12730_v58  ;;  %v18851_v48 = vcombine.low %v12727_v18, %v12731_v40  ;;  %v12747_v8 = vld [vmem:[#allocation10 + $0xe68] sm:$0xff]  ;;  %v12762_v46 = vld [vmem:[#allocation10 + $0xee0] sm:$0xff] }
 0x848   :  { %15519 = vmatprep.mubr.bf16.mxu0 %v20286_v25  ;;  %15691 = vmatprep.mubr.bf16.mxu1 %v20286_v25  ;;  %v12751_v41 = vld [vmem:[#allocation10 + $0xe88] sm:$0xff]  ;;  %v12766_v51 = vld [vmem:[#allocation10 + $0xf00] sm:$0xff] }
 0x849   :  { %15489 = vmatprep.subr.bf16.mxu0 %v18802_v63  ;;  %15661 = vmatprep.subr.bf16.mxu1 %v18804_v42  ;;  %v18860_v63 = vcombine.high %v12735_v0, %v12739_v43  ;;  %v12742_v42 = vld [vmem:[#allocation10 + $0xe40] sm:$0xff]  ;;  %v12755_v50 = vld [vmem:[#allocation10 + $0xea8] sm:$0xff] }
 0x84a   :  { %v12759_v2 = vld [vmem:[#allocation10 + $0xec8] sm:$0xff]  ;;  %v12770_v57 = vld [vmem:[#allocation10 + $0xf20] sm:$0xff] }
 0x84b   :  { %15490 = vmatpush1.bf16.msra.mxu0 %v18801_v16  ;;  %15662 = vmatpush1.bf16.msra.mxu1 %v18803_v15  ;;  %v18857_v16 = vcombine.low %v12734_v30, %v12738_v44  ;;  %v18859_v15 = vcombine.low %v12735_v0, %v12739_v43  ;;  %v12763_v47 = vld [vmem:[#allocation10 + $0xee8] sm:$0xff]  ;;  %v12774_v17 = vld [vmem:[#allocation10 + $0xf40] sm:$0xff] }
 0x84c   :  { %15491 = vmatprep.subr.bf16.mxu0 %v18810_v37  ;;  %15663 = vmatprep.subr.bf16.mxu1 %v18812_v49  ;;  %v18866_v37 = vcombine.high %v12742_v42, %v12746_v6  ;;  %v18868_v49 = vcombine.high %v12743_v21, %v12747_v8  ;;  %v12767_v31 = vld [vmem:[#allocation10 + $0xf08] sm:$0xff]  ;;  %v12778_v19 = vld [vmem:[#allocation10 + $0xf60] sm:$0xff] }
 0x84d   :  { %v12771_v53 = vld [vmem:[#allocation10 + $0xf28] sm:$0xff]  ;;  %v12782_v52 = vld [vmem:[#allocation10 + $0xf80] sm:$0xff] }
 0x84e   :  { %v12775_v24 = vld [vmem:[#allocation10 + $0xf48] sm:$0xff]  ;;  %v12786_v58 = vld [vmem:[#allocation10 + $0xfa0] sm:$0xff] }
 0x84f   :  { %15492 = vmatpush1.bf16.msra.mxu0 %v18809_v55  ;;  %15664 = vmatpush1.bf16.msra.mxu1 %v18811_v11  ;;  %v18865_v55 = vcombine.low %v12742_v42, %v12746_v6  ;;  %v18867_v11 = vcombine.low %v12743_v21, %v12747_v8  ;;  %v12779_v14 = vld [vmem:[#allocation10 + $0xf68] sm:$0xff]  ;;  %v12790_v30 = vld [vmem:[#allocation10 + $0xfc0] sm:$0xff]  ;;  %v12288_v42 = vld [vmem:[#allocation10 + $0x10] sm:$0xff] }
 0x850   :  { %15493 = vmatprep.subr.bf16.mxu0 %v18818_v33  ;;  %15665 = vmatprep.subr.bf16.mxu1 %v18820_v32  ;;  %v18874_v33 = vcombine.high %v12750_v22, %v12754_v34  ;;  %v18876_v32 = vcombine.high %v12751_v41, %v12755_v50  ;;  %v12783_v18 = vld [vmem:[#allocation10 + $0xf88] sm:$0xff]  ;;  %v12794_v44 = vld [vmem:[#allocation10 + $0xfe0] sm:$0xff]  ;;  %v12292_v6 = vld [vmem:[#allocation10 + $0x30] sm:$0xff] }
 0x851   :  { %v12787_v40 = vld [vmem:[#allocation10 + $0xfa8] sm:$0xff]  ;;  %v12289_v21 = vld [vmem:[#allocation10 + $0x18] sm:$0xff] }
 0x852   :  { %v12791_v0 = vld [vmem:[#allocation10 + $0xfc8] sm:$0xff]  ;;  %v12293_v8 = vld [vmem:[#allocation10 + $0x38] sm:$0xff] }
 0x853   :  { %15494 = vmatpush1.bf16.msra.mxu0 %v18817_v4  ;;  %15666 = vmatpush1.bf16.msra.mxu1 %v18819_v9  ;;  %v18873_v4 = vcombine.low %v12750_v22, %v12754_v34  ;;  %v18875_v9 = vcombine.low %v12751_v41, %v12755_v50  ;;  %v12795_v43 = vld [vmem:[#allocation10 + $0xfe8] sm:$0xff]  ;;  %v12296_v22 = vld [vmem:[#allocation10 + $0x50] sm:$0xff]  ;;  %v12297_v41 = vld [vmem:[#allocation10 + $0x58] sm:$0xff] }
 0x854   :  { %15495 = vmatprep.subr.bf16.mxu0 %v18826_v7  ;;  %15667 = vmatprep.subr.bf16.mxu1 %v18828_v29  ;;  %v18882_v7 = vcombine.high %v12758_v35, %v12762_v46  ;;  %v18884_v29 = vcombine.high %v12759_v2, %v12763_v47  ;;  %v12300_v34 = vld [vmem:[#allocation10 + $0x70] sm:$0xff]  ;;  %v12301_v50 = vld [vmem:[#allocation10 + $0x78] sm:$0xff] }
 0x857   :  { %15496 = vmatpush1.bf16.msra.mxu0 %v18825_v1  ;;  %15668 = vmatpush1.bf16.msra.mxu1 %v18827_v10  ;;  %v18881_v1 = vcombine.low %v12758_v35, %v12762_v46  ;;  %v18883_v10 = vcombine.low %v12759_v2, %v12763_v47  ;;  %v12304_v35 = vld [vmem:[#allocation10 + $0x90] sm:$0xff]  ;;  %v12305_v2 = vld [vmem:[#allocation10 + $0x98] sm:$0xff] }
 0x858   :  { %15497 = vmatprep.subr.bf16.mxu0 %v18834_v62  ;;  %15669 = vmatprep.subr.bf16.mxu1 %v18836_v12  ;;  %v18890_v62 = vcombine.high %v12766_v51, %v12770_v57  ;;  %v18892_v12 = vcombine.high %v12767_v31, %v12771_v53  ;;  %v12308_v46 = vld [vmem:[#allocation10 + $0xb0] sm:$0xff]  ;;  %v12309_v47 = vld [vmem:[#allocation10 + $0xb8] sm:$0xff] }
 0x85b   :  { %15498 = vmatpush1.bf16.msra.mxu0 %v18833_v60  ;;  %15670 = vmatpush1.bf16.msra.mxu1 %v18835_v61  ;;  %v18889_v60 = vcombine.low %v12766_v51, %v12770_v57  ;;  %v18891_v61 = vcombine.low %v12767_v31, %v12771_v53  ;;  %v12312_v51 = vld [vmem:[#allocation10 + $0xd0] sm:$0xff]  ;;  %v12313_v31 = vld [vmem:[#allocation10 + $0xd8] sm:$0xff] }
 0x85c   :  { %15499 = vmatprep.subr.bf16.mxu0 %v18842_v26  ;;  %15671 = vmatprep.subr.bf16.mxu1 %v18844_v28  ;;  %v18898_v26 = vcombine.high %v12774_v17, %v12778_v19  ;;  %v18900_v28 = vcombine.high %v12775_v24, %v12779_v14  ;;  %v12316_v57 = vld [vmem:[#allocation10 + $0xf0] sm:$0xff]  ;;  %v12317_v53 = vld [vmem:[#allocation10 + $0xf8] sm:$0xff] }
 0x85f   :  { %15500 = vmatpush1.bf16.msra.mxu0 %v18841_v38  ;;  %15672 = vmatpush1.bf16.msra.mxu1 %v18843_v3  ;;  %v18897_v38 = vcombine.low %v12774_v17, %v12778_v19  ;;  %v18899_v3 = vcombine.low %v12775_v24, %v12779_v14  ;;  %v12320_v17 = vld [vmem:[#allocation10 + $0x110] sm:$0xff]  ;;  %v12325_v24 = vld [vmem:[#allocation10 + $0x138] sm:$0xff]  ;;  %v18437_v14 = vcombine.low %v12312_v51, %v12316_v57 }
 0x860   :  { %15501 = vmatprep.subr.bf16.mxu0 %v18850_v20  ;;  %15673 = vmatprep.subr.bf16.mxu1 %v18852_v27  ;;  %v18906_v20 = vcombine.high %v12782_v52, %v12786_v58  ;;  %v18908_v27 = vcombine.high %v12783_v18, %v12787_v40  ;;  %v12324_v19 = vld [vmem:[#allocation10 + $0x130] sm:$0xff] }
 0x863   :  { %15502 = vmatpush1.bf16.msra.mxu0 %v18849_v56  ;;  %15674 = vmatpush1.bf16.msra.mxu1 %v18851_v48  ;;  %v18905_v56 = vcombine.low %v12782_v52, %v12786_v58  ;;  %v18907_v48 = vcombine.low %v12783_v18, %v12787_v40  ;;  %v12332_v52 = vld [vmem:[#allocation10 + $0x170] sm:$0xff]  ;;  %v12329_v58 = vld [vmem:[#allocation10 + $0x158] sm:$0xff]  ;;  %v18445_v40 = vcombine.low %v12320_v17, %v12324_v19 }
 0x864   :  { %15503 = vmatprep.subr.bf16.mxu0 %v18858_v13  ;;  %15675 = vmatprep.subr.bf16.mxu1 %v18860_v63  ;;  %v18914_v13 = vcombine.high %v12790_v30, %v12794_v44  ;;  %v18916_v63 = vcombine.high %v12791_v0, %v12795_v43  ;;  %v12333_v18 = vld [vmem:[#allocation10 + $0x178] sm:$0xff] }
 0x867   :  { %15504 = vmatpush1.bf16.msra.mxu0 %v18857_v16  ;;  %15676 = vmatpush1.bf16.msra.mxu1 %v18859_v15  ;;  %v18913_v16 = vcombine.low %v12790_v30, %v12794_v44  ;;  %v18915_v15 = vcombine.low %v12791_v0, %v12795_v43  ;;  %v12340_v30 = vld [vmem:[#allocation10 + $0x1b0] sm:$0xff]  ;;  %v12337_v44 = vld [vmem:[#allocation10 + $0x198] sm:$0xff] }
 0x868   :  { %15505 = vmatprep.subr.bf16.mxu0 %v18866_v37  ;;  %15677 = vmatprep.subr.bf16.mxu1 %v18868_v49  ;;  %v18414_v37 = vcombine.high %v12288_v42, %v12292_v6  ;;  %v18416_v49 = vcombine.high %v12289_v21, %v12293_v8  ;;  %v12341_v0 = vld [vmem:[#allocation10 + $0x1b8] sm:$0xff] }
 0x86b   :  { %15506 = vmatpush1.bf16.msra.mxu0 %v18865_v55  ;;  %15678 = vmatpush1.bf16.msra.mxu1 %v18867_v11  ;;  %v18413_v55 = vcombine.low %v12288_v42, %v12292_v6  ;;  %v18415_v11 = vcombine.low %v12289_v21, %v12293_v8  ;;  %v12348_v42 = vld [vmem:[#allocation10 + $0x1f0] sm:$0xff]  ;;  %v12345_v6 = vld [vmem:[#allocation10 + $0x1d8] sm:$0xff] }
 0x86c   :  { %15507 = vmatprep.subr.bf16.mxu0 %v18874_v33  ;;  %15679 = vmatprep.subr.bf16.mxu1 %v18876_v32  ;;  %v18422_v33 = vcombine.high %v12296_v22, %v12300_v34  ;;  %v18424_v32 = vcombine.high %v12297_v41, %v12301_v50  ;;  %v12349_v21 = vld [vmem:[#allocation10 + $0x1f8] sm:$0xff] }
 0x86f   :  { %15508 = vmatpush1.bf16.msra.mxu0 %v18873_v4  ;;  %15680 = vmatpush1.bf16.msra.mxu1 %v18875_v9  ;;  %v18421_v4 = vcombine.low %v12296_v22, %v12300_v34  ;;  %v18423_v9 = vcombine.low %v12297_v41, %v12301_v50  ;;  %v12356_v22 = vld [vmem:[#allocation10 + $0x230] sm:$0xff]  ;;  %v12353_v34 = vld [vmem:[#allocation10 + $0x218] sm:$0xff] }
 0x870   :  { %15509 = vmatprep.subr.bf16.mxu0 %v18882_v7  ;;  %15681 = vmatprep.subr.bf16.mxu1 %v18884_v29  ;;  %v18430_v7 = vcombine.high %v12304_v35, %v12308_v46  ;;  %v18432_v29 = vcombine.high %v12305_v2, %v12309_v47  ;;  %v12357_v41 = vld [vmem:[#allocation10 + $0x238] sm:$0xff] }
 0x873   :  { %15510 = vmatpush1.bf16.msra.mxu0 %v18881_v1  ;;  %15682 = vmatpush1.bf16.msra.mxu1 %v18883_v10  ;;  %v18429_v1 = vcombine.low %v12304_v35, %v12308_v46  ;;  %v18431_v10 = vcombine.low %v12305_v2, %v12309_v47  ;;  %v12364_v35 = vld [vmem:[#allocation10 + $0x270] sm:$0xff]  ;;  %v12361_v46 = vld [vmem:[#allocation10 + $0x258] sm:$0xff] }
 0x874   :  { %15511 = vmatprep.subr.bf16.mxu0 %v18890_v62  ;;  %15683 = vmatprep.subr.bf16.mxu1 %v18892_v12  ;;  %v18438_v62 = vcombine.high %v12312_v51, %v12316_v57  ;;  %v18440_v12 = vcombine.high %v12313_v31, %v12317_v53  ;;  %v12365_v2 = vld [vmem:[#allocation10 + $0x278] sm:$0xff]  ;;  %v12372_v51 = vld [vmem:[#allocation10 + $0x2b0] sm:$0xff] }
 0x875   :  { %v12369_v57 = vld [vmem:[#allocation10 + $0x298] sm:$0xff] }
 0x877   :  { %15512 = vmatpush1.bf16.msra.mxu0 %v18889_v60  ;;  %15684 = vmatpush1.bf16.msra.mxu1 %v18891_v61  ;;  %v18439_v60 = vcombine.low %v12313_v31, %v12317_v53  ;;  %v18446_v61 = vcombine.high %v12320_v17, %v12324_v19  ;;  %v12373_v31 = vld [vmem:[#allocation10 + $0x2b8] sm:$0xff]  ;;  %v12380_v17 = vld [vmem:[#allocation10 + $0x2f0] sm:$0xff] }
 0x878   :  { %15513 = vmatprep.subr.bf16.mxu0 %v18898_v26  ;;  %15685 = vmatprep.subr.bf16.mxu1 %v18900_v28  ;;  %v12328_v28 = vld [vmem:[#allocation10 + $0x150] sm:$0xff]  ;;  %v12377_v19 = vld [vmem:[#allocation10 + $0x2d8] sm:$0xff] }
 0x879   :  { %v18453_v43 = vcombine.low %v12328_v28, %v12332_v52 }
 0x87b   :  { %15514 = vmatpush1.bf16.msra.mxu0 %v18897_v38  ;;  %15686 = vmatpush1.bf16.msra.mxu1 %v18899_v3  ;;  %v18454_v3 = vcombine.high %v12328_v28, %v12332_v52  ;;  %v12388_v28 = vld [vmem:[#allocation10 + $0x330] sm:$0xff]  ;;  %v12385_v52 = vld [vmem:[#allocation10 + $0x318] sm:$0xff] }
 0x87c   :  { %15515 = vmatprep.subr.bf16.mxu0 %v18906_v20  ;;  %15687 = vmatprep.subr.bf16.mxu1 %v18908_v27  ;;  %v18456_v20 = vcombine.high %v12329_v58, %v12333_v18  ;;  %v12336_v27 = vld [vmem:[#allocation10 + $0x190] sm:$0xff] }
 0x87d   :  { %v18461_v8 = vcombine.low %v12336_v27, %v12340_v30 }
 0x87f   :  { %15516 = vmatpush1.bf16.msra.mxu0 %v18905_v56  ;;  %15688 = vmatpush1.bf16.msra.mxu1 %v18907_v48  ;;  %v18455_v56 = vcombine.low %v12329_v58, %v12333_v18  ;;  %v18462_v48 = vcombine.high %v12336_v27, %v12340_v30  ;;  %v12389_v58 = vld [vmem:[#allocation10 + $0x338] sm:$0xff]  ;;  %v12396_v27 = vld [vmem:[#allocation10 + $0x370] sm:$0xff] }
 0x880   :  { %15517 = vmatprep.subr.bf16.mxu0 %v18914_v13  ;;  %15689 = vmatprep.subr.bf16.mxu1 %v18916_v63  ;;  %v18464_v13 = vcombine.high %v12337_v44, %v12341_v0  ;;  %v12344_v63 = vld [vmem:[#allocation10 + $0x1d0] sm:$0xff]  ;;  %v12393_v30 = vld [vmem:[#allocation10 + $0x358] sm:$0xff] }
 0x881   :  { %v18469_v50 = vcombine.low %v12344_v63, %v12348_v42 }
 0x883   :  { %15518 = vmatpush1.bf16.msra.mxu0 %v18913_v16  ;;  %15690 = vmatpush1.bf16.msra.mxu1 %v18915_v15  ;;  %v18463_v16 = vcombine.low %v12337_v44, %v12341_v0  ;;  %v18470_v15 = vcombine.high %v12344_v63, %v12348_v42  ;;  %v12397_v44 = vld [vmem:[#allocation10 + $0x378] sm:$0xff]  ;;  %v12404_v63 = vld [vmem:[#allocation10 + $0x3b0] sm:$0xff] }
 0x884   :  { %15702 = vmatprep.subr.bf16.mxu0 %v18414_v37  ;;  %15874 = vmatprep.subr.bf16.mxu1 %v18416_v49  ;;  %v18472_v37 = vcombine.high %v12345_v6, %v12349_v21  ;;  %v12352_v49 = vld [vmem:[#allocation10 + $0x210] sm:$0xff]  ;;  %v12401_v42 = vld [vmem:[#allocation10 + $0x398] sm:$0xff] }
 0x885   :  { %v18477_v47 = vcombine.low %v12352_v49, %v12356_v22 }
 0x886   :  { %15520 = vmatmul.mubr.bf16.vlgmr.msra.gmra.mrb[32].mxu0 %v20278_v45  ;;  %15692 = vmatmul.mubr.bf16.vlgmr.msra.gmra.mrb[32].mxu1 %v20278_v45 }
 0x887   :  { %15703 = vmatpush1.bf16.msra.mxu0 %v18413_v55  ;;  %15734 = vmatprep.mubr.bf16.mxu0 %v20250_v54  ;;  %v18471_v55 = vcombine.low %v12345_v6, %v12349_v21  ;;  %v12405_v6 = vld [vmem:[#allocation10 + $0x3b8] sm:$0xff] }
 0x888   :  { %15875 = vmatpush1.bf16.msra.mxu1 %v18415_v11  ;;  %15906 = vmatprep.mubr.bf16.mxu1 %v20250_v54  ;;  %v12321_v54 = vld [vmem:[#allocation10 + $0x118] sm:$0xff]  ;;  %v18478_v11 = vcombine.high %v12352_v49, %v12356_v22  ;;  %v12412_v49 = vld [vmem:[#allocation10 + $0x3f0] sm:$0xff] }
 0x889   :  { %15704 = vmatprep.subr.bf16.mxu0 %v18422_v33  ;;  %15876 = vmatprep.subr.bf16.mxu1 %v18424_v32  ;;  %v18448_v26 = vcombine.high %v12321_v54, %v12325_v24  ;;  %v18447_v38 = vcombine.low %v12321_v54, %v12325_v24  ;;  %v18480_v33 = vcombine.high %v12353_v34, %v12357_v41  ;;  %v12360_v32 = vld [vmem:[#allocation10 + $0x250] sm:$0xff]  ;;  %v12381_v54 = vld [vmem:[#allocation10 + $0x2f8] sm:$0xff] }
 0x88a   :  { %v18485_v53 = vcombine.low %v12360_v32, %v12364_v35  ;;  %v12409_v22 = vld [vmem:[#allocation10 + $0x3d8] sm:$0xff] }
 0x88b   :  { %15705 = vmatpush1.bf16.msra.mxu0 %v18421_v4  ;;  %v18479_v4 = vcombine.low %v12353_v34, %v12357_v41  ;;  %v12413_v34 = vld [vmem:[#allocation10 + $0x3f8] sm:$0xff] }
 0x88c   :  { %15877 = vmatpush1.bf16.msra.mxu1 %v18423_v9  ;;  %15706 = vmatprep.subr.bf16.mxu0 %v18430_v7  ;;  %v18486_v9 = vcombine.high %v12360_v32, %v12364_v35  ;;  %v18488_v7 = vcombine.high %v12361_v46, %v12365_v2  ;;  %v12420_v32 = vld [vmem:[#allocation10 + $0x430] sm:$0xff]  ;;  %v12417_v35 = vld [vmem:[#allocation10 + $0x418] sm:$0xff] }
 0x88d   :  { %15878 = vmatprep.subr.bf16.mxu1 %v18432_v29  ;;  %v12368_v29 = vld [vmem:[#allocation10 + $0x290] sm:$0xff] }
 0x88e   :  { %v18493_v24 = vcombine.low %v12368_v29, %v12372_v51 }
 0x88f   :  { %15707 = vmatpush1.bf16.msra.mxu0 %v18429_v1  ;;  %v18487_v1 = vcombine.low %v12361_v46, %v12365_v2  ;;  %v12421_v46 = vld [vmem:[#allocation10 + $0x438] sm:$0xff] }
 0x890   :  { %15879 = vmatpush1.bf16.msra.mxu1 %v18431_v10  ;;  %15708 = vmatprep.subr.bf16.mxu0 %v18438_v62  ;;  %v18494_v10 = vcombine.high %v12368_v29, %v12372_v51  ;;  %v18496_v62 = vcombine.high %v12369_v57, %v12373_v31  ;;  %v12428_v29 = vld [vmem:[#allocation10 + $0x470] sm:$0xff] }
 0x891   :  { %15880 = vmatprep.subr.bf16.mxu1 %v18440_v12  ;;  %v12376_v12 = vld [vmem:[#allocation10 + $0x2d0] sm:$0xff] }
 0x892   :  { %v18501_v18 = vcombine.low %v12376_v12, %v12380_v17 }
 0x893   :  { %15709 = vmatpush1.bf16.msra.mxu0 %v18437_v14  ;;  %v18495_v14 = vcombine.low %v12369_v57, %v12373_v31  ;;  %v12425_v57 = vld [vmem:[#allocation10 + $0x458] sm:$0xff] }
 0x894   :  { %15881 = vmatpush1.bf16.msra.mxu1 %v18439_v60  ;;  %15710 = vmatprep.subr.bf16.mxu0 %v18446_v61  ;;  %v18502_v60 = vcombine.high %v12376_v12, %v12380_v17  ;;  %v18504_v61 = vcombine.high %v12377_v19, %v12381_v54  ;;  %v12429_v31 = vld [vmem:[#allocation10 + $0x478] sm:$0xff] }
 0x895   :  { %15882 = vmatprep.subr.bf16.mxu1 %v18448_v26  ;;  %v12384_v26 = vld [vmem:[#allocation10 + $0x310] sm:$0xff]  ;;  %v18552_v12 = vcombine.high %v12425_v57, %v12429_v31  ;;  %v12433_v17 = vld [vmem:[#allocation10 + $0x498] sm:$0xff] }
 0x896   :  { %v18509_v0 = vcombine.low %v12384_v26, %v12388_v28 }
 0x897   :  { %15711 = vmatpush1.bf16.msra.mxu0 %v18445_v40  ;;  %v18503_v40 = vcombine.low %v12377_v19, %v12381_v54  ;;  %v12437_v19 = vld [vmem:[#allocation10 + $0x4b8] sm:$0xff] }
 0x898   :  { %15883 = vmatpush1.bf16.msra.mxu1 %v18447_v38  ;;  %15712 = vmatprep.subr.bf16.mxu0 %v18454_v3  ;;  %v18510_v38 = vcombine.high %v12384_v26, %v12388_v28  ;;  %v18512_v3 = vcombine.high %v12385_v52, %v12389_v58  ;;  %v12444_v26 = vld [vmem:[#allocation10 + $0x4f0] sm:$0xff]  ;;  %v12441_v28 = vld [vmem:[#allocation10 + $0x4d8] sm:$0xff] }
 0x899   :  { %15884 = vmatprep.subr.bf16.mxu1 %v18456_v20  ;;  %v12392_v20 = vld [vmem:[#allocation10 + $0x350] sm:$0xff] }
 0x89a   :  { %v18517_v21 = vcombine.low %v12392_v20, %v12396_v27 }
 0x89b   :  { %15713 = vmatpush1.bf16.msra.mxu0 %v18453_v43  ;;  %v18511_v43 = vcombine.low %v12385_v52, %v12389_v58  ;;  %v12445_v52 = vld [vmem:[#allocation10 + $0x4f8] sm:$0xff] }
 0x89c   :  { %15885 = vmatpush1.bf16.msra.mxu1 %v18455_v56  ;;  %15714 = vmatprep.subr.bf16.mxu0 %v18462_v48  ;;  %v18518_v56 = vcombine.high %v12392_v20, %v12396_v27  ;;  %v18520_v48 = vcombine.high %v12393_v30, %v12397_v44  ;;  %v12449_v20 = vld [vmem:[#allocation10 + $0x518] sm:$0xff] }
 0x89d   :  { %15886 = vmatprep.subr.bf16.mxu1 %v18464_v13  ;;  %v12400_v13 = vld [vmem:[#allocation10 + $0x390] sm:$0xff]  ;;  %v12453_v27 = vld [vmem:[#allocation10 + $0x538] sm:$0xff] }
 0x89e   :  { %v18525_v41 = vcombine.low %v12400_v13, %v12404_v63 }
 0x89f   :  { %15715 = vmatpush1.bf16.msra.mxu0 %v18461_v8  ;;  %v18519_v8 = vcombine.low %v12393_v30, %v12397_v44  ;;  %v18567_v30 = vcombine.low %v12441_v28, %v12445_v52 }
 0x8a0   :  { %15887 = vmatpush1.bf16.msra.mxu1 %v18463_v16  ;;  %15716 = vmatprep.subr.bf16.mxu0 %v18470_v15  ;;  %v18526_v16 = vcombine.high %v12400_v13, %v12404_v63  ;;  %v18528_v15 = vcombine.high %v12401_v42, %v12405_v6  ;;  %v12461_v13 = vld [vmem:[#allocation10 + $0x578] sm:$0xff] }
 0x8a1   :  { %15888 = vmatprep.subr.bf16.mxu1 %v18472_v37  ;;  %v12408_v37 = vld [vmem:[#allocation10 + $0x3d0] sm:$0xff] }
 0x8a2   :  { %v18533_v2 = vcombine.low %v12408_v37, %v12412_v49 }
 0x8a3   :  { %15717 = vmatpush1.bf16.msra.mxu0 %v18469_v50  ;;  %v18527_v50 = vcombine.low %v12401_v42, %v12405_v6  ;;  %v18575_v42 = vcombine.low %v12449_v20, %v12453_v27 }
 0x8a4   :  { %15889 = vmatpush1.bf16.msra.mxu1 %v18471_v55  ;;  %15718 = vmatprep.subr.bf16.mxu0 %v18478_v11  ;;  %v18534_v55 = vcombine.high %v12408_v37, %v12412_v49  ;;  %v18536_v11 = vcombine.high %v12409_v22, %v12413_v34  ;;  %v12469_v37 = vld [vmem:[#allocation10 + $0x5b8] sm:$0xff] }
 0x8a5   :  { %15890 = vmatprep.subr.bf16.mxu1 %v18480_v33  ;;  %v12416_v33 = vld [vmem:[#allocation10 + $0x410] sm:$0xff] }
 0x8a6   :  { %v18541_v51 = vcombine.low %v12416_v33, %v12420_v32 }
 0x8a7   :  { %15719 = vmatpush1.bf16.msra.mxu0 %v18477_v47  ;;  %v18535_v47 = vcombine.low %v12409_v22, %v12413_v34 }
 0x8a8   :  { %15891 = vmatpush1.bf16.msra.mxu1 %v18479_v4  ;;  %15720 = vmatprep.subr.bf16.mxu0 %v18486_v9  ;;  %v18542_v4 = vcombine.high %v12416_v33, %v12420_v32  ;;  %v18544_v9 = vcombine.high %v12417_v35, %v12421_v46  ;;  %v12477_v33 = vld [vmem:[#allocation10 + $0x5f8] sm:$0xff] }
 0x8a9   :  { %15892 = vmatprep.subr.bf16.mxu1 %v18488_v7  ;;  %v12424_v7 = vld [vmem:[#allocation10 + $0x450] sm:$0xff] }
 0x8aa   :  { %v18549_v54 = vcombine.low %v12424_v7, %v12428_v29 }
 0x8ab   :  { %15721 = vmatpush1.bf16.msra.mxu0 %v18485_v53  ;;  %v18543_v53 = vcombine.low %v12417_v35, %v12421_v46 }
 0x8ac   :  { %15893 = vmatpush1.bf16.msra.mxu1 %v18487_v1  ;;  %15722 = vmatprep.subr.bf16.mxu0 %v18494_v10  ;;  %v18550_v1 = vcombine.high %v12424_v7, %v12428_v29  ;;  %v12432_v10 = vld [vmem:[#allocation10 + $0x490] sm:$0xff]  ;;  %v12485_v7 = vld [vmem:[#allocation10 + $0x638] sm:$0xff] }
 0x8ad   :  { %15894 = vmatprep.subr.bf16.mxu1 %v18496_v62  ;;  %v12436_v62 = vld [vmem:[#allocation10 + $0x4b0] sm:$0xff] }
 0x8ae   :  { %v18557_v58 = vcombine.low %v12432_v10, %v12436_v62 }
 0x8af   :  { %15723 = vmatpush1.bf16.msra.mxu0 %v18493_v24  ;;  %v18551_v24 = vcombine.low %v12425_v57, %v12429_v31 }
 0x8b0   :  { %15895 = vmatpush1.bf16.msra.mxu1 %v18495_v14  ;;  %15724 = vmatprep.subr.bf16.mxu0 %v18502_v60  ;;  %v18558_v14 = vcombine.high %v12432_v10, %v12436_v62  ;;  %v18560_v60 = vcombine.high %v12433_v17, %v12437_v19  ;;  %v12489_v10 = vld [vmem:[#allocation10 + $0x658] sm:$0xff] }
 0x8b1   :  { %15896 = vmatprep.subr.bf16.mxu1 %v18504_v61  ;;  %v12440_v61 = vld [vmem:[#allocation10 + $0x4d0] sm:$0xff]  ;;  %v12493_v62 = vld [vmem:[#allocation10 + $0x678] sm:$0xff] }
 0x8b3   :  { %15725 = vmatpush1.bf16.msra.mxu0 %v18501_v18  ;;  %v18566_v18 = vcombine.high %v12440_v61, %v12444_v26 }
 0x8b4   :  { %15897 = vmatpush1.bf16.msra.mxu1 %v18503_v40  ;;  %15726 = vmatprep.subr.bf16.mxu0 %v18510_v38  ;;  %v18568_v40 = vcombine.high %v12441_v28, %v12445_v52  ;;  %v12448_v38 = vld [vmem:[#allocation10 + $0x510] sm:$0xff]  ;;  %v18615_v28 = vcombine.low %v12489_v10, %v12493_v62 }
 0x8b5   :  { %15898 = vmatprep.subr.bf16.mxu1 %v18512_v3  ;;  %v12452_v3 = vld [vmem:[#allocation10 + $0x530] sm:$0xff] }
 0x8b6   :  { %v18574_v44 = vcombine.high %v12448_v38, %v12452_v3  ;;  %v18573_v63 = vcombine.low %v12448_v38, %v12452_v3  ;;  %v12509_v38 = vld [vmem:[#allocation10 + $0x6f8] sm:$0xff] }
 0x8b7   :  { %15727 = vmatpush1.bf16.msra.mxu0 %v18509_v0  ;;  %v18576_v0 = vcombine.high %v12449_v20, %v12453_v27 }
 0x8b8   :  { %15899 = vmatpush1.bf16.msra.mxu1 %v18511_v43  ;;  %15728 = vmatprep.subr.bf16.mxu0 %v18518_v56  ;;  %v12456_v43 = vld [vmem:[#allocation10 + $0x550] sm:$0xff] }
 0x8b9   :  { %15900 = vmatprep.subr.bf16.mxu1 %v18520_v48  ;;  %v12460_v56 = vld [vmem:[#allocation10 + $0x570] sm:$0xff]  ;;  %v12457_v48 = vld [vmem:[#allocation10 + $0x558] sm:$0xff] }
 0x8ba   :  { %v18582_v6 = vcombine.high %v12456_v43, %v12460_v56  ;;  %v18581_v49 = vcombine.low %v12456_v43, %v12460_v56  ;;  %v18583_v22 = vcombine.low %v12457_v48, %v12461_v13  ;;  %v12517_v43 = vld [vmem:[#allocation10 + $0x738] sm:$0xff] }
 0x8bb   :  { %15729 = vmatpush1.bf16.msra.mxu0 %v18517_v21  ;;  %v18584_v21 = vcombine.high %v12457_v48, %v12461_v13 }
 0x8bc   :  { %15901 = vmatpush1.bf16.msra.mxu1 %v18519_v8  ;;  %15730 = vmatprep.subr.bf16.mxu0 %v18526_v16  ;;  %v12464_v8 = vld [vmem:[#allocation10 + $0x590] sm:$0xff] }
 0x8bd   :  { %15902 = vmatprep.subr.bf16.mxu1 %v18528_v15  ;;  %v12468_v16 = vld [vmem:[#allocation10 + $0x5b0] sm:$0xff]  ;;  %v12465_v15 = vld [vmem:[#allocation10 + $0x598] sm:$0xff] }
 0x8be   :  { %v18590_v34 = vcombine.high %v12464_v8, %v12468_v16  ;;  %v18589_v32 = vcombine.low %v12464_v8, %v12468_v16  ;;  %v18591_v35 = vcombine.low %v12465_v15, %v12469_v37  ;;  %v12525_v8 = vld [vmem:[#allocation10 + $0x778] sm:$0xff] }
 0x8bf   :  { %15731 = vmatpush1.bf16.msra.mxu0 %v18525_v41  ;;  %v18592_v41 = vcombine.high %v12465_v15, %v12469_v37 }
 0x8c0   :  { %15903 = vmatpush1.bf16.msra.mxu1 %v18527_v50  ;;  %15732 = vmatprep.subr.bf16.mxu0 %v18534_v55  ;;  %v12472_v50 = vld [vmem:[#allocation10 + $0x5d0] sm:$0xff] }
 0x8c1   :  { %15904 = vmatprep.subr.bf16.mxu1 %v18536_v11  ;;  %v12476_v55 = vld [vmem:[#allocation10 + $0x5f0] sm:$0xff]  ;;  %v12473_v11 = vld [vmem:[#allocation10 + $0x5d8] sm:$0xff] }
 0x8c2   :  { %v18598_v46 = vcombine.high %v12472_v50, %v12476_v55  ;;  %v18597_v29 = vcombine.low %v12472_v50, %v12476_v55  ;;  %v12533_v50 = vld [vmem:[#allocation10 + $0x7b8] sm:$0xff] }
 0x8c3   :  { %15733 = vmatpush1.bf16.msra.mxu0 %v18533_v2  ;;  %v18600_v2 = vcombine.high %v12473_v11, %v12477_v33 }
 0x8c4   :  { %15905 = vmatpush1.bf16.msra.mxu1 %v18535_v47  ;;  %15745 = vmatprep.subr.bf16.mxu0 %v18542_v4  ;;  %v12480_v47 = vld [vmem:[#allocation10 + $0x610] sm:$0xff] }
 0x8c5   :  { %15917 = vmatprep.subr.bf16.mxu1 %v18544_v9  ;;  %v12484_v4 = vld [vmem:[#allocation10 + $0x630] sm:$0xff]  ;;  %v12481_v9 = vld [vmem:[#allocation10 + $0x618] sm:$0xff] }
 0x8c6   :  { %15735 = vmatmul.mubr.bf16.vlgmr.msra.gmra.mrb[36].mxu0 %v20243_v36  ;;  %v18606_v57 = vcombine.high %v12480_v47, %v12484_v4  ;;  %v18608_v31 = vcombine.high %v12481_v9, %v12485_v7 }
 0x8c7   :  { %15907 = vmatmul.mubr.bf16.vlgmr.msra.gmra.mrb[36].mxu1 %v20243_v36  ;;  %15746 = vmatpush1.bf16.msra.mxu0 %v18541_v51  ;;  %v18559_v36 = vcombine.low %v12433_v17, %v12437_v19  ;;  %v18599_v51 = vcombine.low %v12473_v11, %v12477_v33  ;;  %v18607_v17 = vcombine.low %v12481_v9, %v12485_v7 }
 0x8c8   :  { %15777 = vmatprep.mubr.bf16.mxu0 %v20252_v5  ;;  %15918 = vmatpush1.bf16.msra.mxu1 %v18543_v53  ;;  %v12488_v53 = vld [vmem:[#allocation10 + $0x650] sm:$0xff] }
 0x8c9   :  { %15949 = vmatprep.mubr.bf16.mxu1 %v20252_v5  ;;  %15747 = vmatprep.subr.bf16.mxu0 %v18550_v1  ;;  %v18565_v5 = vcombine.low %v12440_v61, %v12444_v26  ;;  %v12492_v1 = vld [vmem:[#allocation10 + $0x670] sm:$0xff]  ;;  %v12501_v61 = vld [vmem:[#allocation10 + $0x6b8] sm:$0xff] }
 0x8ca   :  { %15919 = vmatprep.subr.bf16.mxu1 %v18552_v12  ;;  %v18605_v12 = vcombine.low %v12480_v47, %v12484_v4  ;;  %v18614_v19 = vcombine.high %v12488_v53, %v12492_v1  ;;  %v18613_v26 = vcombine.low %v12488_v53, %v12492_v1  ;;  %v12541_v47 = vld [vmem:[#allocation10 + $0x7f8] sm:$0xff] }
 0x8cb   :  { %15748 = vmatpush1.bf16.msra.mxu0 %v18549_v54  ;;  %v18616_v54 = vcombine.high %v12489_v10, %v12493_v62  ;;  %v12549_v53 = vld [vmem:[#allocation10 + $0x838] sm:$0xff] }
 0x8cc   :  { %15920 = vmatpush1.bf16.msra.mxu1 %v18551_v24  ;;  %15749 = vmatprep.subr.bf16.mxu0 %v18558_v14  ;;  %v12496_v24 = vld [vmem:[#allocation10 + $0x690] sm:$0xff] }
 0x8cd   :  { %15921 = vmatprep.subr.bf16.mxu1 %v18560_v60  ;;  %v12500_v14 = vld [vmem:[#allocation10 + $0x6b0] sm:$0xff]  ;;  %v12497_v60 = vld [vmem:[#allocation10 + $0x698] sm:$0xff] }
 0x8ce   :  { %v18622_v52 = vcombine.high %v12496_v24, %v12500_v14  ;;  %v18621_v3 = vcombine.low %v12496_v24, %v12500_v14  ;;  %v18623_v20 = vcombine.low %v12497_v60, %v12501_v61  ;;  %v12553_v24 = vld [vmem:[#allocation10 + $0x858] sm:$0xff] }
 0x8cf   :  { %15750 = vmatpush1.bf16.msra.mxu0 %v18557_v58  ;;  %v18624_v58 = vcombine.high %v12497_v60, %v12501_v61  ;;  %v12557_v14 = vld [vmem:[#allocation10 + $0x878] sm:$0xff] }
 0x8d0   :  { %15922 = vmatpush1.bf16.msra.mxu1 %v18559_v36  ;;  %15751 = vmatprep.subr.bf16.mxu0 %v18566_v18  ;;  %v12504_v36 = vld [vmem:[#allocation10 + $0x6d0] sm:$0xff] }
 0x8d1   :  { %15923 = vmatprep.subr.bf16.mxu1 %v18568_v40  ;;  %v12508_v18 = vld [vmem:[#allocation10 + $0x6f0] sm:$0xff]  ;;  %v12505_v40 = vld [vmem:[#allocation10 + $0x6d8] sm:$0xff] }
 0x8d2   :  { %v18630_v27 = vcombine.high %v12504_v36, %v12508_v18  ;;  %v18629_v56 = vcombine.low %v12504_v36, %v12508_v18  ;;  %v18631_v48 = vcombine.low %v12505_v40, %v12509_v38  ;;  %v12565_v36 = vld [vmem:[#allocation10 + $0x8b8] sm:$0xff] }
 0x8d3   :  { %15752 = vmatpush1.bf16.msra.mxu0 %v18565_v5  ;;  %v18632_v5 = vcombine.high %v12505_v40, %v12509_v38  ;;  %v18679_v40 = vcombine.low %v12553_v24, %v12557_v14 }
 0x8d4   :  { %15924 = vmatpush1.bf16.msra.mxu1 %v18567_v30  ;;  %15753 = vmatprep.subr.bf16.mxu0 %v18574_v44  ;;  %v12512_v30 = vld [vmem:[#allocation10 + $0x710] sm:$0xff] }
 0x8d5   :  { %15925 = vmatprep.subr.bf16.mxu1 %v18576_v0  ;;  %v12516_v44 = vld [vmem:[#allocation10 + $0x730] sm:$0xff]  ;;  %v12513_v0 = vld [vmem:[#allocation10 + $0x718] sm:$0xff] }
 0x8d6   :  { %v18638_v13 = vcombine.high %v12512_v30, %v12516_v44  ;;  %v18637_v16 = vcombine.low %v12512_v30, %v12516_v44  ;;  %v18639_v15 = vcombine.low %v12513_v0, %v12517_v43  ;;  %v12573_v30 = vld [vmem:[#allocation10 + $0x8f8] sm:$0xff] }
 0x8d7   :  { %15754 = vmatpush1.bf16.msra.mxu0 %v18573_v63  ;;  %v18640_v63 = vcombine.high %v12513_v0, %v12517_v43 }
 0x8d8   :  { %15926 = vmatpush1.bf16.msra.mxu1 %v18575_v42  ;;  %15755 = vmatprep.subr.bf16.mxu0 %v18582_v6  ;;  %v12520_v42 = vld [vmem:[#allocation10 + $0x750] sm:$0xff] }
 0x8d9   :  { %15927 = vmatprep.subr.bf16.mxu1 %v18584_v21  ;;  %v12524_v6 = vld [vmem:[#allocation10 + $0x770] sm:$0xff]  ;;  %v12521_v21 = vld [vmem:[#allocation10 + $0x758] sm:$0xff] }
 0x8da   :  { %v18646_v37 = vcombine.high %v12520_v42, %v12524_v6  ;;  %v18645_v55 = vcombine.low %v12520_v42, %v12524_v6  ;;  %v18647_v11 = vcombine.low %v12521_v21, %v12525_v8 }
 0x8db   :  { %15756 = vmatpush1.bf16.msra.mxu0 %v18581_v49  ;;  %v18648_v49 = vcombine.high %v12521_v21, %v12525_v8  ;;  %v12584_v8 = vld [vmem:[#allocation10 + $0x950] sm:$0xff] }
 0x8dc   :  { %15928 = vmatpush1.bf16.msra.mxu1 %v18583_v22  ;;  %15757 = vmatprep.subr.bf16.mxu0 %v18590_v34  ;;  %v12528_v22 = vld [vmem:[#allocation10 + $0x790] sm:$0xff] }
 0x8dd   :  { %15929 = vmatprep.subr.bf16.mxu1 %v18592_v41  ;;  %v12532_v34 = vld [vmem:[#allocation10 + $0x7b0] sm:$0xff]  ;;  %v12529_v41 = vld [vmem:[#allocation10 + $0x798] sm:$0xff] }
 0x8de   :  { %v18654_v33 = vcombine.high %v12528_v22, %v12532_v34  ;;  %v18653_v4 = vcombine.low %v12528_v22, %v12532_v34  ;;  %v18655_v9 = vcombine.low %v12529_v41, %v12533_v50 }
 0x8df   :  { %15758 = vmatpush1.bf16.msra.mxu0 %v18589_v32  ;;  %v18656_v32 = vcombine.high %v12529_v41, %v12533_v50  ;;  %v12592_v50 = vld [vmem:[#allocation10 + $0x990] sm:$0xff] }
 0x8e0   :  { %15930 = vmatpush1.bf16.msra.mxu1 %v18591_v35  ;;  %15759 = vmatprep.subr.bf16.mxu0 %v18598_v46  ;;  %v12536_v35 = vld [vmem:[#allocation10 + $0x7d0] sm:$0xff] }
 0x8e1   :  { %15931 = vmatprep.subr.bf16.mxu1 %v18600_v2  ;;  %v12540_v46 = vld [vmem:[#allocation10 + $0x7f0] sm:$0xff]  ;;  %v12537_v2 = vld [vmem:[#allocation10 + $0x7d8] sm:$0xff] }
 0x8e2   :  { %v18662_v7 = vcombine.high %v12536_v35, %v12540_v46  ;;  %v18661_v1 = vcombine.low %v12536_v35, %v12540_v46  ;;  %v18663_v10 = vcombine.low %v12537_v2, %v12541_v47 }
 0x8e3   :  { %15760 = vmatpush1.bf16.msra.mxu0 %v18597_v29  ;;  %v18664_v29 = vcombine.high %v12537_v2, %v12541_v47  ;;  %v12600_v47 = vld [vmem:[#allocation10 + $0x9d0] sm:$0xff] }
 0x8e4   :  { %15932 = vmatpush1.bf16.msra.mxu1 %v18599_v51  ;;  %15761 = vmatprep.subr.bf16.mxu0 %v18606_v57  ;;  %v12544_v51 = vld [vmem:[#allocation10 + $0x810] sm:$0xff] }
 0x8e5   :  { %15933 = vmatprep.subr.bf16.mxu1 %v18608_v31  ;;  %v12548_v57 = vld [vmem:[#allocation10 + $0x830] sm:$0xff]  ;;  %v12545_v31 = vld [vmem:[#allocation10 + $0x818] sm:$0xff] }
 0x8e6   :  { %v18670_v62 = vcombine.high %v12544_v51, %v12548_v57  ;;  %v18671_v60 = vcombine.low %v12545_v31, %v12549_v53 }
 0x8e7   :  { %15762 = vmatpush1.bf16.msra.mxu0 %v18605_v12  ;;  %v18672_v12 = vcombine.high %v12545_v31, %v12549_v53  ;;  %v12608_v53 = vld [vmem:[#allocation10 + $0xa10] sm:$0xff] }
 0x8e8   :  { %15934 = vmatpush1.bf16.msra.mxu1 %v18607_v17  ;;  %15763 = vmatprep.subr.bf16.mxu0 %v18614_v19  ;;  %v12552_v17 = vld [vmem:[#allocation10 + $0x850] sm:$0xff] }
 0x8e9   :  { %15935 = vmatprep.subr.bf16.mxu1 %v18616_v54  ;;  %v12556_v19 = vld [vmem:[#allocation10 + $0x870] sm:$0xff]  ;;  %v18669_v54 = vcombine.low %v12544_v51, %v12548_v57 }
 0x8ea   :  { %v18678_v61 = vcombine.high %v12552_v17, %v12556_v19  ;;  %v18677_v18 = vcombine.low %v12552_v17, %v12556_v19 }
 0x8eb   :  { %15764 = vmatpush1.bf16.msra.mxu0 %v18613_v26  ;;  %v12560_v26 = vld [vmem:[#allocation10 + $0x890] sm:$0xff] }
 0x8ec   :  { %15936 = vmatpush1.bf16.msra.mxu1 %v18615_v28  ;;  %15765 = vmatprep.subr.bf16.mxu0 %v18622_v52  ;;  %v12564_v28 = vld [vmem:[#allocation10 + $0x8b0] sm:$0xff]  ;;  %v18680_v52 = vcombine.high %v12553_v24, %v12557_v14 }
 0x8ed   :  { %15937 = vmatprep.subr.bf16.mxu1 %v18624_v58  ;;  %v12561_v58 = vld [vmem:[#allocation10 + $0x898] sm:$0xff]  ;;  %v18686_v38 = vcombine.high %v12560_v26, %v12564_v28  ;;  %v18685_v44 = vcombine.low %v12560_v26, %v12564_v28  ;;  %v12616_v24 = vld [vmem:[#allocation10 + $0xa50] sm:$0xff] }
 0x8ee   :  { %v12620_v14 = vld [vmem:[#allocation10 + $0xa70] sm:$0xff] }
 0x8ef   :  { %15766 = vmatpush1.bf16.msra.mxu0 %v18621_v3  ;;  %v18688_v3 = vcombine.high %v12561_v58, %v12565_v36 }
 0x8f0   :  { %15938 = vmatpush1.bf16.msra.mxu1 %v18623_v20  ;;  %15767 = vmatprep.subr.bf16.mxu0 %v18630_v27  ;;  %v12568_v20 = vld [vmem:[#allocation10 + $0x8d0] sm:$0xff] }
 0x8f1   :  { %15939 = vmatprep.subr.bf16.mxu1 %v18632_v5  ;;  %v12572_v27 = vld [vmem:[#allocation10 + $0x8f0] sm:$0xff]  ;;  %v12569_v5 = vld [vmem:[#allocation10 + $0x8d8] sm:$0xff] }
 0x8f2   :  { %v18694_v0 = vcombine.high %v12568_v20, %v12572_v27  ;;  %v18696_v43 = vcombine.high %v12569_v5, %v12573_v30  ;;  %v18695_v42 = vcombine.low %v12569_v5, %v12573_v30  ;;  %v12632_v30 = vld [vmem:[#allocation10 + $0xad0] sm:$0xff] }
 0x8f3   :  { %15768 = vmatpush1.bf16.msra.mxu0 %v18629_v56  ;;  %v12576_v56 = vld [vmem:[#allocation10 + $0x910] sm:$0xff] }
 0x8f4   :  { %15940 = vmatpush1.bf16.msra.mxu1 %v18631_v48  ;;  %15769 = vmatprep.subr.bf16.mxu0 %v18638_v13  ;;  %v12580_v48 = vld [vmem:[#allocation10 + $0x930] sm:$0xff]  ;;  %v12577_v13 = vld [vmem:[#allocation10 + $0x918] sm:$0xff] }
 0x8f5   :  { %15941 = vmatprep.subr.bf16.mxu1 %v18640_v63  ;;  %v12581_v63 = vld [vmem:[#allocation10 + $0x938] sm:$0xff]  ;;  %v18702_v6 = vcombine.high %v12576_v56, %v12580_v48 }
 0x8f6   :  { %v18704_v21 = vcombine.high %v12577_v13, %v12581_v63  ;;  %v18703_v22 = vcombine.low %v12577_v13, %v12581_v63  ;;  %v12640_v63 = vld [vmem:[#allocation10 + $0xb10] sm:$0xff] }
 0x8f7   :  { %15770 = vmatpush1.bf16.msra.mxu0 %v18637_v16  ;;  %v12588_v16 = vld [vmem:[#allocation10 + $0x970] sm:$0xff] }
 0x8f8   :  { %15942 = vmatpush1.bf16.msra.mxu1 %v18639_v15  ;;  %15771 = vmatprep.subr.bf16.mxu0 %v18646_v37  ;;  %v12585_v15 = vld [vmem:[#allocation10 + $0x958] sm:$0xff]  ;;  %v18710_v34 = vcombine.high %v12584_v8, %v12588_v16 }
 0x8f9   :  { %15943 = vmatprep.subr.bf16.mxu1 %v18648_v49  ;;  %v12589_v37 = vld [vmem:[#allocation10 + $0x978] sm:$0xff]  ;;  %v18701_v49 = vcombine.low %v12576_v56, %v12580_v48 }
 0x8fa   :  { %v18712_v41 = vcombine.high %v12585_v15, %v12589_v37  ;;  %v18711_v35 = vcombine.low %v12585_v15, %v12589_v37  ;;  %v12648_v37 = vld [vmem:[#allocation10 + $0xb50] sm:$0xff] }
 0x8fb   :  { %15772 = vmatpush1.bf16.msra.mxu0 %v18645_v55  ;;  %v12596_v55 = vld [vmem:[#allocation10 + $0x9b0] sm:$0xff] }
 0x8fc   :  { %15944 = vmatpush1.bf16.msra.mxu1 %v18647_v11  ;;  %15773 = vmatprep.subr.bf16.mxu0 %v18654_v33  ;;  %v12593_v11 = vld [vmem:[#allocation10 + $0x998] sm:$0xff]  ;;  %v18718_v46 = vcombine.high %v12592_v50, %v12596_v55 }
 0x8fd   :  { %15945 = vmatprep.subr.bf16.mxu1 %v18656_v32  ;;  %v12597_v33 = vld [vmem:[#allocation10 + $0x9b8] sm:$0xff]  ;;  %v18709_v32 = vcombine.low %v12584_v8, %v12588_v16 }
 0x8fe   :  { %v18720_v2 = vcombine.high %v12593_v11, %v12597_v33  ;;  %v18719_v51 = vcombine.low %v12593_v11, %v12597_v33  ;;  %v12656_v33 = vld [vmem:[#allocation10 + $0xb90] sm:$0xff] }
 0x8ff   :  { %15774 = vmatpush1.bf16.msra.mxu0 %v18653_v4  ;;  %v12604_v4 = vld [vmem:[#allocation10 + $0x9f0] sm:$0xff] }
 0x900   :  { %15946 = vmatpush1.bf16.msra.mxu1 %v18655_v9  ;;  %15775 = vmatprep.subr.bf16.mxu0 %v18662_v7  ;;  %v12601_v9 = vld [vmem:[#allocation10 + $0x9d8] sm:$0xff]  ;;  %v18726_v57 = vcombine.high %v12600_v47, %v12604_v4 }
 0x901   :  { %15947 = vmatprep.subr.bf16.mxu1 %v18664_v29  ;;  %v12605_v7 = vld [vmem:[#allocation10 + $0x9f8] sm:$0xff]  ;;  %v18717_v29 = vcombine.low %v12592_v50, %v12596_v55 }
 0x902   :  { %v18728_v31 = vcombine.high %v12601_v9, %v12605_v7  ;;  %v18727_v17 = vcombine.low %v12601_v9, %v12605_v7  ;;  %v12664_v7 = vld [vmem:[#allocation10 + $0xbd0] sm:$0xff] }
 0x903   :  { %15776 = vmatpush1.bf16.msra.mxu0 %v18661_v1  ;;  %v12612_v1 = vld [vmem:[#allocation10 + $0xa30] sm:$0xff] }
 0x904   :  { %15948 = vmatpush1.bf16.msra.mxu1 %v18663_v10  ;;  %15788 = vmatprep.subr.bf16.mxu0 %v18670_v62  ;;  %v12609_v10 = vld [vmem:[#allocation10 + $0xa18] sm:$0xff]  ;;  %v18734_v19 = vcombine.high %v12608_v53, %v12612_v1  ;;  %v18733_v26 = vcombine.low %v12608_v53, %v12612_v1 }
 0x905   :  { %15960 = vmatprep.subr.bf16.mxu1 %v18672_v12  ;;  %v12613_v62 = vld [vmem:[#allocation10 + $0xa38] sm:$0xff]  ;;  %v18725_v12 = vcombine.low %v12600_v47, %v12604_v4 }
 0x906   :  { %15778 = vmatmul.mubr.bf16.vlgmr.msra.gmra.mrb[36].mxu0 %v20247_v23  ;;  %v18735_v28 = vcombine.low %v12609_v10, %v12613_v62 }
 0x907   :  { %15950 = vmatmul.mubr.bf16.vlgmr.msra.gmra.mrb[36].mxu1 %v20247_v23  ;;  %15789 = vmatpush1.bf16.msra.mxu0 %v18669_v54  ;;  %v18687_v23 = vcombine.low %v12561_v58, %v12565_v36  ;;  %v18736_v54 = vcombine.high %v12609_v10, %v12613_v62  ;;  %v12624_v36 = vld [vmem:[#allocation10 + $0xa90] sm:$0xff] }
 0x908   :  { %15820 = vmatprep.mubr.bf16.mxu0 %v20280_v59  ;;  %15961 = vmatpush1.bf16.msra.mxu1 %v18671_v60  ;;  %v12617_v60 = vld [vmem:[#allocation10 + $0xa58] sm:$0xff]  ;;  %v12672_v62 = vld [vmem:[#allocation10 + $0xc10] sm:$0xff] }
 0x909   :  { %15992 = vmatprep.mubr.bf16.mxu1 %v20280_v59  ;;  %15790 = vmatprep.subr.bf16.mxu0 %v18678_v61  ;;  %v18693_v59 = vcombine.low %v12568_v20, %v12572_v27  ;;  %v12621_v61 = vld [vmem:[#allocation10 + $0xa78] sm:$0xff] }
 0x90a   :  { %15962 = vmatprep.subr.bf16.mxu1 %v18680_v52  ;;  %v18742_v52 = vcombine.high %v12616_v24, %v12620_v14  ;;  %v18744_v58 = vcombine.high %v12617_v60, %v12621_v61  ;;  %v18743_v20 = vcombine.low %v12617_v60, %v12621_v61  ;;  %v12680_v61 = vld [vmem:[#allocation10 + $0xc50] sm:$0xff] }
 0x90b   :  { %15791 = vmatpush1.bf16.msra.mxu0 %v18677_v18  ;;  %v12628_v18 = vld [vmem:[#allocation10 + $0xab0] sm:$0xff] }
 0x90c   :  { %15963 = vmatpush1.bf16.msra.mxu1 %v18679_v40  ;;  %15792 = vmatprep.subr.bf16.mxu0 %v18686_v38  ;;  %v12625_v40 = vld [vmem:[#allocation10 + $0xa98] sm:$0xff]  ;;  %v18750_v27 = vcombine.high %v12624_v36, %v12628_v18 }
 0x90d   :  { %15964 = vmatprep.subr.bf16.mxu1 %v18688_v3  ;;  %v12629_v38 = vld [vmem:[#allocation10 + $0xab8] sm:$0xff]  ;;  %v18741_v3 = vcombine.low %v12616_v24, %v12620_v14 }
 0x90e   :  { %v18752_v5 = vcombine.high %v12625_v40, %v12629_v38  ;;  %v18751_v56 = vcombine.low %v12625_v40, %v12629_v38  ;;  %v12688_v40 = vld [vmem:[#allocation10 + $0xc90] sm:$0xff] }
 0x90f   :  { %15793 = vmatpush1.bf16.msra.mxu0 %v18685_v44  ;;  %v12636_v44 = vld [vmem:[#allocation10 + $0xaf0] sm:$0xff] }
 0x910   :  { %15965 = vmatpush1.bf16.msra.mxu1 %v18687_v23  ;;  %15794 = vmatprep.subr.bf16.mxu0 %v18694_v0  ;;  %v12633_v23 = vld [vmem:[#allocation10 + $0xad8] sm:$0xff]  ;;  %v18758_v48 = vcombine.high %v12632_v30, %v12636_v44  ;;  %v12692_v38 = vld [vmem:[#allocation10 + $0xcb0] sm:$0xff] }
 0x911   :  { %15966 = vmatprep.subr.bf16.mxu1 %v18696_v43  ;;  %v12637_v0 = vld [vmem:[#allocation10 + $0xaf8] sm:$0xff]  ;;  %v18749_v43 = vcombine.low %v12624_v36, %v12628_v18 }
 0x912   :  { %v18760_v13 = vcombine.high %v12633_v23, %v12637_v0  ;;  %v18759_v8 = vcombine.low %v12633_v23, %v12637_v0  ;;  %v12696_v0 = vld [vmem:[#allocation10 + $0xcd0] sm:$0xff] }
 0x913   :  { %15795 = vmatpush1.bf16.msra.mxu0 %v18693_v59  ;;  %v12644_v59 = vld [vmem:[#allocation10 + $0xb30] sm:$0xff] }
 0x914   :  { %15967 = vmatpush1.bf16.msra.mxu1 %v18695_v42  ;;  %15796 = vmatprep.subr.bf16.mxu0 %v18702_v6  ;;  %v12641_v42 = vld [vmem:[#allocation10 + $0xb18] sm:$0xff]  ;;  %v18766_v16 = vcombine.high %v12640_v63, %v12644_v59 }
 0x915   :  { %15968 = vmatprep.subr.bf16.mxu1 %v18704_v21  ;;  %v12645_v6 = vld [vmem:[#allocation10 + $0xb38] sm:$0xff]  ;;  %v18757_v21 = vcombine.low %v12632_v30, %v12636_v44  ;;  %v18814_v44 = vcombine.high %v12688_v40, %v12692_v38 }
 0x916   :  { %v18768_v15 = vcombine.high %v12641_v42, %v12645_v6  ;;  %v18767_v50 = vcombine.low %v12641_v42, %v12645_v6  ;;  %v12704_v42 = vld [vmem:[#allocation10 + $0xd10] sm:$0xff] }
 0x917   :  { %15797 = vmatpush1.bf16.msra.mxu0 %v18701_v49  ;;  %v12652_v49 = vld [vmem:[#allocation10 + $0xb70] sm:$0xff] }
 0x918   :  { %15969 = vmatpush1.bf16.msra.mxu1 %v18703_v22  ;;  %15798 = vmatprep.subr.bf16.mxu0 %v18710_v34  ;;  %v12649_v22 = vld [vmem:[#allocation10 + $0xb58] sm:$0xff]  ;;  %v18774_v55 = vcombine.high %v12648_v37, %v12652_v49  ;;  %v12708_v6 = vld [vmem:[#allocation10 + $0xd30] sm:$0xff] }
 0x919   :  { %15970 = vmatprep.subr.bf16.mxu1 %v18712_v41  ;;  %v12653_v34 = vld [vmem:[#allocation10 + $0xb78] sm:$0xff]  ;;  %v18765_v41 = vcombine.low %v12640_v63, %v12644_v59 }
 0x91a   :  { %v18776_v11 = vcombine.high %v12649_v22, %v12653_v34  ;;  %v18775_v47 = vcombine.low %v12649_v22, %v12653_v34  ;;  %v12716_v22 = vld [vmem:[#allocation10 + $0xd70] sm:$0xff]  ;;  %v12713_v34 = vld [vmem:[#allocation10 + $0xd58] sm:$0xff] }
 0x91b   :  { %15799 = vmatpush1.bf16.msra.mxu0 %v18709_v32  ;;  %v12660_v32 = vld [vmem:[#allocation10 + $0xbb0] sm:$0xff] }
 0x91c   :  { %15971 = vmatpush1.bf16.msra.mxu1 %v18711_v35  ;;  %15800 = vmatprep.subr.bf16.mxu0 %v18718_v46  ;;  %v12657_v35 = vld [vmem:[#allocation10 + $0xb98] sm:$0xff]  ;;  %v18782_v4 = vcombine.high %v12656_v33, %v12660_v32 }
 0x91d   :  { %15972 = vmatprep.subr.bf16.mxu1 %v18720_v2  ;;  %v12661_v46 = vld [vmem:[#allocation10 + $0xbb8] sm:$0xff]  ;;  %v18773_v2 = vcombine.low %v12648_v37, %v12652_v49  ;;  %v12712_v49 = vld [vmem:[#allocation10 + $0xd50] sm:$0xff] }
 0x91e   :  { %v18784_v9 = vcombine.high %v12657_v35, %v12661_v46  ;;  %v18783_v53 = vcombine.low %v12657_v35, %v12661_v46  ;;  %v12724_v35 = vld [vmem:[#allocation10 + $0xdb0] sm:$0xff]  ;;  %v12721_v46 = vld [vmem:[#allocation10 + $0xd98] sm:$0xff] }
 0x91f   :  { %15801 = vmatpush1.bf16.msra.mxu0 %v18717_v29  ;;  %v12668_v29 = vld [vmem:[#allocation10 + $0xbf0] sm:$0xff] }
 0x920   :  { %15973 = vmatpush1.bf16.msra.mxu1 %v18719_v51  ;;  %15802 = vmatprep.subr.bf16.mxu0 %v18726_v57  ;;  %v12665_v51 = vld [vmem:[#allocation10 + $0xbd8] sm:$0xff]  ;;  %v18790_v1 = vcombine.high %v12664_v7, %v12668_v29 }
 0x921   :  { %15974 = vmatprep.subr.bf16.mxu1 %v18728_v31  ;;  %v12669_v57 = vld [vmem:[#allocation10 + $0xbf8] sm:$0xff]  ;;  %v18781_v31 = vcombine.low %v12656_v33, %v12660_v32  ;;  %v12720_v32 = vld [vmem:[#allocation10 + $0xd90] sm:$0xff] }
 0x922   :  { %v18792_v10 = vcombine.high %v12665_v51, %v12669_v57  ;;  %v18791_v24 = vcombine.low %v12665_v51, %v12669_v57  ;;  %v12728_v57 = vld [vmem:[#allocation10 + $0xdd0] sm:$0xff] }
 0x923   :  { %15803 = vmatpush1.bf16.msra.mxu0 %v18725_v12  ;;  %v12676_v12 = vld [vmem:[#allocation10 + $0xc30] sm:$0xff] }
 0x924   :  { %15975 = vmatpush1.bf16.msra.mxu1 %v18727_v17  ;;  %15804 = vmatprep.subr.bf16.mxu0 %v18734_v19  ;;  %v12673_v17 = vld [vmem:[#allocation10 + $0xc18] sm:$0xff]  ;;  %v18798_v14 = vcombine.high %v12672_v62, %v12676_v12 }
 0x925   :  { %15976 = vmatprep.subr.bf16.mxu1 %v18736_v54  ;;  %v12677_v19 = vld [vmem:[#allocation10 + $0xc38] sm:$0xff]  ;;  %v18789_v54 = vcombine.low %v12664_v7, %v12668_v29 }
 0x926   :  { %v18800_v60 = vcombine.high %v12673_v17, %v12677_v19  ;;  %v18799_v36 = vcombine.low %v12673_v17, %v12677_v19  ;;  %v12733_v17 = vld [vmem:[#allocation10 + $0xdf8] sm:$0xff] }
 0x927   :  { %15805 = vmatpush1.bf16.msra.mxu0 %v18733_v26  ;;  %v12684_v26 = vld [vmem:[#allocation10 + $0xc70] sm:$0xff] }
 0x928   :  { %15977 = vmatpush1.bf16.msra.mxu1 %v18735_v28  ;;  %15806 = vmatprep.subr.bf16.mxu0 %v18742_v52  ;;  %v18797_v28 = vcombine.low %v12672_v62, %v12676_v12  ;;  %v12681_v52 = vld [vmem:[#allocation10 + $0xc58] sm:$0xff]  ;;  %v18806_v18 = vcombine.high %v12680_v61, %v12684_v26 }
 0x929   :  { %15978 = vmatprep.subr.bf16.mxu1 %v18744_v58  ;;  %v12685_v58 = vld [vmem:[#allocation10 + $0xc78] sm:$0xff] }
 0x92a   :  { %v18807_v30 = vcombine.low %v12681_v52, %v12685_v58  ;;  %v12729_v12 = vld [vmem:[#allocation10 + $0xdd8] sm:$0xff] }
 0x92b   :  { %15807 = vmatpush1.bf16.msra.mxu0 %v18741_v3  ;;  %v18808_v3 = vcombine.high %v12681_v52, %v12685_v58 }
 0x92c   :  { %15979 = vmatpush1.bf16.msra.mxu1 %v18743_v20  ;;  %15808 = vmatprep.subr.bf16.mxu0 %v18750_v27  ;;  %v12689_v20 = vld [vmem:[#allocation10 + $0xc98] sm:$0xff] }
 0x92d   :  { %15980 = vmatprep.subr.bf16.mxu1 %v18752_v5  ;;  %v12693_v27 = vld [vmem:[#allocation10 + $0xcb8] sm:$0xff]  ;;  %v18805_v5 = vcombine.low %v12680_v61, %v12684_v26 }
 0x92e   :  { %v18816_v23 = vcombine.high %v12689_v20, %v12693_v27 }
 0x92f   :  { %15809 = vmatpush1.bf16.msra.mxu0 %v18749_v43  ;;  %v12700_v43 = vld [vmem:[#allocation10 + $0xcf0] sm:$0xff] }
 0x930   :  { %15981 = vmatpush1.bf16.msra.mxu1 %v18751_v56  ;;  %15810 = vmatprep.subr.bf16.mxu0 %v18758_v48  ;;  %v12697_v56 = vld [vmem:[#allocation10 + $0xcd8] sm:$0xff]  ;;  %v18822_v63 = vcombine.high %v12696_v0, %v12700_v43 }
 0x931   :  { %15982 = vmatprep.subr.bf16.mxu1 %v18760_v13  ;;  %v12701_v48 = vld [vmem:[#allocation10 + $0xcf8] sm:$0xff]  ;;  %v18813_v13 = vcombine.low %v12688_v40, %v12692_v38  ;;  %v12736_v40 = vld [vmem:[#allocation10 + $0xe10] sm:$0xff] }
 0x932   :  { %v18824_v59 = vcombine.high %v12697_v56, %v12701_v48  ;;  %v12740_v38 = vld [vmem:[#allocation10 + $0xe30] sm:$0xff] }
 0x933   :  { %15811 = vmatpush1.bf16.msra.mxu0 %v18757_v21  ;;  %v12705_v21 = vld [vmem:[#allocation10 + $0xd18] sm:$0xff] }
 0x934   :  { %15983 = vmatpush1.bf16.msra.mxu1 %v18759_v8  ;;  %15812 = vmatprep.subr.bf16.mxu0 %v18766_v16  ;;  %v12709_v8 = vld [vmem:[#allocation10 + $0xd38] sm:$0xff]  ;;  %v18823_v16 = vcombine.low %v12697_v56, %v12701_v48  ;;  %v12748_v56 = vld [vmem:[#allocation10 + $0xe70] sm:$0xff] }
 0x935   :  { %15984 = vmatprep.subr.bf16.mxu1 %v18768_v15  ;;  %v18830_v15 = vcombine.high %v12704_v42, %v12708_v6  ;;  %v18832_v37 = vcombine.high %v12705_v21, %v12709_v8  ;;  %v12745_v48 = vld [vmem:[#allocation10 + $0xe58] sm:$0xff] }
 0x937   :  { %15813 = vmatpush1.bf16.msra.mxu0 %v18765_v41  ;;  %v12717_v41 = vld [vmem:[#allocation10 + $0xd78] sm:$0xff] }
 0x938   :  { %15985 = vmatpush1.bf16.msra.mxu1 %v18767_v50  ;;  %15814 = vmatprep.subr.bf16.mxu0 %v18774_v55  ;;  %v18829_v50 = vcombine.low %v12704_v42, %v12708_v6  ;;  %v18831_v55 = vcombine.low %v12705_v21, %v12709_v8  ;;  %v18840_v33 = vcombine.high %v12713_v34, %v12717_v41  ;;  %v12752_v6 = vld [vmem:[#allocation10 + $0xe90] sm:$0xff] }
 0x939   :  { %15986 = vmatprep.subr.bf16.mxu1 %v18776_v11  ;;  %v18838_v11 = vcombine.high %v12712_v49, %v12716_v22  ;;  %v12756_v21 = vld [vmem:[#allocation10 + $0xeb0] sm:$0xff] }
 0x93b   :  { %15815 = vmatpush1.bf16.msra.mxu0 %v18773_v2  ;;  %v12725_v2 = vld [vmem:[#allocation10 + $0xdb8] sm:$0xff] }
 0x93c   :  { %15987 = vmatpush1.bf16.msra.mxu1 %v18775_v47  ;;  %15816 = vmatprep.subr.bf16.mxu0 %v18782_v4  ;;  %v18837_v47 = vcombine.low %v12712_v49, %v12716_v22  ;;  %v18839_v4 = vcombine.low %v12713_v34, %v12717_v41  ;;  %v18848_v51 = vcombine.high %v12721_v46, %v12725_v2 }
 0x93d   :  { %15988 = vmatprep.subr.bf16.mxu1 %v18784_v9  ;;  %v18846_v9 = vcombine.high %v12720_v32, %v12724_v35  ;;  %v18847_v52 = vcombine.low %v12721_v46, %v12725_v2 }
 0x93f   :  { %15817 = vmatpush1.bf16.msra.mxu0 %v18781_v31  ;;  %v12732_v31 = vld [vmem:[#allocation10 + $0xdf0] sm:$0xff] }
 0x940   :  { %15989 = vmatpush1.bf16.msra.mxu1 %v18783_v53  ;;  %15818 = vmatprep.subr.bf16.mxu0 %v18790_v1  ;;  %v18854_v58 = vcombine.high %v12728_v57, %v12732_v31 }
 0x941   :  { %15990 = vmatprep.subr.bf16.mxu1 %v18792_v10 }
 0x943   :  { %15819 = vmatpush1.bf16.msra.mxu0 %v18789_v54 }
 0x944   :  { %15991 = vmatpush1.bf16.msra.mxu1 %v18791_v24  ;;  %15831 = vmatprep.subr.bf16.mxu0 %v18798_v14 }
 0x945   :  { %16003 = vmatprep.subr.bf16.mxu1 %v18800_v60  ;;  %v18845_v60 = vcombine.low %v12720_v32, %v12724_v35  ;;  %v12760_v32 = vld [vmem:[#allocation10 + $0xed0] sm:$0xff] }
 0x946   :  { %15821 = vmatmul.mubr.bf16.vlgmr.msra.gmra.mrb[36].mxu0 %v20276_v39  ;;  %v12764_v35 = vld [vmem:[#allocation10 + $0xef0] sm:$0xff] }
 0x947   :  { %15993 = vmatmul.mubr.bf16.vlgmr.msra.gmra.mrb[36].mxu1 %v20276_v39  ;;  %15832 = vmatpush1.bf16.msra.mxu0 %v18797_v28  ;;  %v18815_v39 = vcombine.low %v12689_v20, %v12693_v27  ;;  %v12737_v20 = vld [vmem:[#allocation10 + $0xe18] sm:$0xff] }
 0x948   :  { %15863 = vmatprep.mubr.bf16.mxu0 %v20286_v25  ;;  %16004 = vmatpush1.bf16.msra.mxu1 %v18799_v36  ;;  %v12741_v27 = vld [vmem:[#allocation10 + $0xe38] sm:$0xff] }
 0x949   :  { %16035 = vmatprep.mubr.bf16.mxu1 %v20286_v25  ;;  %15833 = vmatprep.subr.bf16.mxu0 %v18806_v18  ;;  %v18821_v25 = vcombine.low %v12696_v0, %v12700_v43  ;;  %v18856_v18 = vcombine.high %v12729_v12, %v12733_v17  ;;  %v18864_v0 = vcombine.high %v12737_v20, %v12741_v27  ;;  %v12744_v43 = vld [vmem:[#allocation10 + $0xe50] sm:$0xff] }
 0x94a   :  { %16005 = vmatprep.subr.bf16.mxu1 %v18808_v3  ;;  %v18869_v49 = vcombine.low %v12744_v43, %v12748_v56 }
 0x94b   :  { %15834 = vmatpush1.bf16.msra.mxu0 %v18805_v5 }
 0x94c   :  { %16006 = vmatpush1.bf16.msra.mxu1 %v18807_v30  ;;  %15835 = vmatprep.subr.bf16.mxu0 %v18814_v44  ;;  %v18853_v30 = vcombine.low %v12728_v57, %v12732_v31  ;;  %v18855_v44 = vcombine.low %v12729_v12, %v12733_v17  ;;  %v18877_v31 = vcombine.low %v12752_v6, %v12756_v21 }
 0x94d   :  { %16007 = vmatprep.subr.bf16.mxu1 %v18816_v23  ;;  %v18862_v23 = vcombine.high %v12736_v40, %v12740_v38 }
 0x94f   :  { %15836 = vmatpush1.bf16.msra.mxu0 %v18813_v13  ;;  %v12749_v13 = vld [vmem:[#allocation10 + $0xe78] sm:$0xff] }
 0x950   :  { %16008 = vmatpush1.bf16.msra.mxu1 %v18815_v39  ;;  %15837 = vmatprep.subr.bf16.mxu0 %v18822_v63  ;;  %v18861_v39 = vcombine.low %v12736_v40, %v12740_v38  ;;  %v18863_v63 = vcombine.low %v12737_v20, %v12741_v27  ;;  %v18872_v42 = vcombine.high %v12745_v48, %v12749_v13  ;;  %v12769_v27 = vld [vmem:[#allocation10 + $0xf18] sm:$0xff] }
 0x951   :  { %16009 = vmatprep.subr.bf16.mxu1 %v18824_v59  ;;  %v18870_v59 = vcombine.high %v12744_v43, %v12748_v56  ;;  %v18871_v41 = vcombine.low %v12745_v48, %v12749_v13  ;;  %v18885_v20 = vcombine.low %v12760_v32, %v12764_v35 }
 0x953   :  { %15838 = vmatpush1.bf16.msra.mxu0 %v18821_v25  ;;  %v12753_v25 = vld [vmem:[#allocation10 + $0xe98] sm:$0xff] }
 0x954   :  { %16010 = vmatpush1.bf16.msra.mxu1 %v18823_v16  ;;  %15839 = vmatprep.subr.bf16.mxu0 %v18830_v15  ;;  %v12757_v16 = vld [vmem:[#allocation10 + $0xeb8] sm:$0xff] }
 0x955   :  { %16011 = vmatprep.subr.bf16.mxu1 %v18832_v37  ;;  %v18879_v17 = vcombine.low %v12753_v25, %v12757_v16 }
 0x957   :  { %15840 = vmatpush1.bf16.msra.mxu0 %v18829_v50  ;;  %v18878_v50 = vcombine.high %v12752_v6, %v12756_v21  ;;  %v12781_v21 = vld [vmem:[#allocation10 + $0xf78] sm:$0xff] }
 0x958   :  { %16012 = vmatpush1.bf16.msra.mxu1 %v18831_v55  ;;  %15841 = vmatprep.subr.bf16.mxu0 %v18838_v11 }
 0x959   :  { %v20310_v7 = vpop.f32.mrb[32].mxu0  ;;  %v20312_v29 = vpop.f32.mrb[32].mxu1  ;;  %16013 = vmatprep.subr.bf16.mxu1 %v18840_v33  ;;  %v18880_v33 = vcombine.high %v12753_v25, %v12757_v16 }
 0x95a   :  { %v16046_v53 = vmul.f32 0.5, %v20310_v7  ;;  %v16048_v1 = vmul.f32 0.5, %v20312_v29  ;;  %v20316_v10 = vpop.f32.mrb[33].mxu0  ;;  %v20318_v62 = vpop.f32.mrb[33].mxu1 }
 0x95b   :  { %v16047_v19 = vmul.f32 0.5, %v20316_v10  ;;  %v16049_v54 = vmul.f32 0.5, %v20318_v62  ;;  %v20322_v24 = vpop.f32.mrb[34].mxu0  ;;  %v20324_v14 = vpop.f32.mrb[34].mxu1  ;;  %15842 = vmatpush1.bf16.msra.mxu0 %v18837_v47  ;;  %v12761_v47 = vld [vmem:[#allocation10 + $0xed8] sm:$0xff] }
 0x95c   :  { %19489 = vtanh.f32 %v16046_v53  ;;  %v16054_v61 = vmul.f32 0.5, %v20322_v24  ;;  %16014 = vmatpush1.bf16.msra.mxu1 %v18839_v4  ;;  %v20327_v26 = vpop.f32.mrb[35].mxu0  ;;  %v20329_v28 = vpop.f32.mrb[35].mxu1  ;;  %15843 = vmatprep.subr.bf16.mxu0 %v18846_v9  ;;  %v16056_v36 = vmul.f32 0.5, %v20324_v14  ;;  %v12765_v4 = vld [vmem:[#allocation10 + $0xef8] sm:$0xff] }
 0x95d   :  { %19491 = vtanh.f32 %v16048_v1  ;;  %16015 = vmatprep.subr.bf16.mxu1 %v18848_v51  ;;  %v16055_v3 = vmul.f32 0.5, %v20327_v26  ;;  %v16057_v5 = vmul.f32 0.5, %v20329_v28 }
 0x95e   :  { %19493 = vtanh.f32 %v16047_v19  ;;  %v18886_v19 = vcombine.high %v12760_v32, %v12764_v35  ;;  %v12793_v32 = vld [vmem:[#allocation10 + $0xfd8] sm:$0xff] }
 0x95f   :  { %19495 = vtanh.f32 %v16049_v54  ;;  %15844 = vmatpush1.bf16.msra.mxu0 %v18845_v60  ;;  %v12797_v35 = vld [vmem:[#allocation10 + $0xff8] sm:$0xff] }
 0x960   :  { %19497 = vtanh.f32 %v16054_v61  ;;  %16016 = vmatpush1.bf16.msra.mxu1 %v18847_v52  ;;  %15845 = vmatprep.subr.bf16.mxu0 %v18854_v58  ;;  %v18888_v58 = vcombine.high %v12761_v47, %v12765_v4 }
 0x961   :  { %19499 = vtanh.f32 %v16056_v36  ;;  %16017 = vmatprep.subr.bf16.mxu1 %v18856_v18  ;;  %v12768_v36 = vld [vmem:[#allocation10 + $0xf10] sm:$0xff] }
 0x962   :  { %19501 = vtanh.f32 %v16055_v3  ;;  %v12772_v18 = vld [vmem:[#allocation10 + $0xf30] sm:$0xff] }
 0x963   :  { %19503 = vtanh.f32 %v16057_v5  ;;  %15846 = vmatpush1.bf16.msra.mxu0 %v18853_v30  ;;  %v12773_v5 = vld [vmem:[#allocation10 + $0xf38] sm:$0xff]  ;;  %v18894_v13 = vcombine.high %v12768_v36, %v12772_v18 }
 0x964   :  { %16018 = vmatpush1.bf16.msra.mxu1 %v18855_v44  ;;  %15847 = vmatprep.subr.bf16.mxu0 %v18862_v23  ;;  %v18895_v16 = vcombine.low %v12769_v27, %v12773_v5 }
 0x965   :  { %16019 = vmatprep.subr.bf16.mxu1 %v18864_v0  ;;  %v18887_v0 = vcombine.low %v12761_v47, %v12765_v4  ;;  %v18920_v4 = vcombine.high %v12793_v32, %v12797_v35 }
 0x966   :  { %v19490_v8 = vpop.eup %19489 }
 0x967   :  { %v19492_v15 = vpop.eup %19491  ;;  %v16078_v37 = vmul.f32 0.5, %v19490_v8  ;;  %15848 = vmatpush1.bf16.msra.mxu0 %v18861_v39 }
 0x968   :  { %v19494_v22 = vpop.eup %19493  ;;  %v16080_v34 = vmul.f32 0.5, %v19492_v15  ;;  %16020 = vmatpush1.bf16.msra.mxu1 %v18863_v63  ;;  %15849 = vmatprep.subr.bf16.mxu0 %v18870_v59  ;;  %v18896_v63 = vcombine.high %v12769_v27, %v12773_v5  ;;  %v12780_v59 = vld [vmem:[#allocation10 + $0xf70] sm:$0xff]  ;;  %v19316_v27 = vld [vmem:[#allocation11 + $0xa0] sm:$0xff]   ;;  %v19317_v5 = vld [vmem:[#allocation11 + $0x68] sm:$0xff]  }
 0x969   :  { %v19496_v55 = vpop.eup %19495  ;;  %v16079_v11 = vmul.f32 0.5, %v19494_v22  ;;  %16021 = vmatprep.subr.bf16.mxu1 %v18872_v42  ;;  %v16094_v51 = vadd.f32 0.5, %v16078_v37  ;;  %v12784_v37 = vld [vmem:[#allocation10 + $0xf90] sm:$0xff]  ;;  %v12785_v22 = vld [vmem:[#allocation10 + $0xf98] sm:$0xff] }
 0x96a   :  { %v19498_v46 = vpop.eup %19497  ;;  %v16081_v2 = vmul.f32 0.5, %v19496_v55  ;;  %v16096_v1 = vadd.f32 0.5, %v16080_v34  ;;  %v12789_v34 = vld [vmem:[#allocation10 + $0xfb8] sm:$0xff] }
 0x96b   :  { %v19500_v9 = vpop.eup %19499  ;;  %v16086_v57 = vmul.f32 0.5, %v19498_v46  ;;  %15850 = vmatpush1.bf16.msra.mxu0 %v18869_v49  ;;  %v16095_v60 = vadd.f32 0.5, %v16079_v11  ;;  %v20335_v30 = vmul.f32 %v16094_v51, %v20310_v7  ;;  %v12788_v49 = vld [vmem:[#allocation10 + $0xfb0] sm:$0xff]  ;;  %v18912_v55 = vcombine.high %v12785_v22, %v12789_v34 }
 0x96c   :  { %v19502_v53 = vpop.eup %19501  ;;  %v16088_v12 = vmul.f32 0.5, %v19500_v9  ;;  %16022 = vmatpush1.bf16.msra.mxu1 %v18871_v41  ;;  %15851 = vmatprep.subr.bf16.mxu0 %v18878_v50  ;;  %v16097_v40 = vadd.f32 0.5, %v16081_v2  ;;  %v20341_v43 = vmul.f32 %v16096_v1, %v20312_v29  ;;  %v12776_v29 = vld [vmem:[#allocation10 + $0xf50] sm:$0xff]  ;;  %v18910_v50 = vcombine.high %v12784_v37, %v12788_v49  ;;  %v19300_v1 = vld [vmem:[#allocation11 + $0x80] sm:$0xff]  }
 0x96d   :  { %v19504_v54 = vpop.eup %19503  ;;  %v16102_v61 = vadd.f32 0.5, %v16086_v57  ;;  %v16087_v52 = vmul.f32 0.5, %v19502_v53  ;;  %16023 = vmatprep.subr.bf16.mxu1 %v18880_v33  ;;  %v20347_v39 = vmul.f32 %v16095_v60, %v20316_v10  ;;  %v12777_v10 = vld [vmem:[#allocation10 + $0xf58] sm:$0xff]  ;;  %v18902_v15 = vcombine.high %v12776_v29, %v12780_v59  ;;  %v12792_v11 = vld [vmem:[#allocation10 + $0xfd0] sm:$0xff]  ;;  %v19297_v57 = vld [vmem:[#allocation11 + $0x40] sm:$0xff]  }
 0x96e   :  { %v16104_v38 = vadd.f32 0.5, %v16088_v12  ;;  %v16089_v3 = vmul.f32 0.5, %v19504_v54  ;;  %v18903_v41 = vcombine.low %v12777_v10, %v12781_v21  ;;  %v12796_v33 = vld [vmem:[#allocation10 + $0xff0] sm:$0xff]  ;;  %v18909_v46 = vcombine.low %v12784_v37, %v12788_v49  ;;  %v19299_v53 = vld [vmem:[#allocation11] sm:$0xff]   ;;  %v19301_v12 = vld [vmem:[#allocation11 + $0x48] sm:$0xff]  }
 0x96f   :  { %v20338_v44 = vmul.f32 %v16102_v61, %v20322_v24  ;;  %v16103_v23 = vadd.f32 0.5, %v16087_v52  ;;  %15852 = vmatpush1.bf16.msra.mxu0 %v18877_v31  ;;  %v18911_v2 = vcombine.low %v12785_v22, %v12789_v34  ;;  %v18918_v47 = vcombine.high %v12792_v11, %v12796_v33  ;;  %v19298_v31 = vld [vmem:[#allocation11 + $0xc0] sm:$0xff]   ;;  %v19304_v54 = vld [vmem:[#allocation11 + $0x88] sm:$0xff]   ;;  %v19305_v60 = vld [vmem:[#allocation11 + $0x50] sm:$0xff]  }
 0x970   :  { %v20344_v56 = vmul.f32 %v16104_v38, %v20324_v14  ;;  %v16105_v48 = vadd.f32 0.5, %v16089_v3  ;;  %16024 = vmatpush1.bf16.msra.mxu1 %v18879_v17  ;;  %15853 = vmatprep.subr.bf16.mxu0 %v18886_v19  ;;  %v20355_v14 = vmul.f32 %v16097_v40, %v20318_v62  ;;  %v18904_v62 = vcombine.high %v12777_v10, %v12781_v21  ;;  %v19302_v17 = vld [vmem:[#allocation11 + $0xc8] sm:$0xff]   ;;  %v19306_v61 = vld [vmem:[#allocation11 + $0xd0] sm:$0xff]   ;;  %v19312_v40 = vld [vmem:[#allocation11 + $0x98] sm:$0xff]  }
 0x971   :  { %v16126_v7 = vpack.c.bf16 %v20338_v44, %v20335_v30  ;;  %v20352_v24 = vmul.f32 %v16103_v23, %v20327_v26  ;;  %16025 = vmatprep.subr.bf16.mxu1 %v18888_v58  ;;  %v18893_v26 = vcombine.low %v12768_v36, %v12772_v18  ;;  %v18917_v9 = vcombine.low %v12792_v11, %v12796_v33  ;;  %v19303_v19 = vld [vmem:[#allocation11 + $0x8] sm:$0xff]   ;;  %v19307_v52 = vld [vmem:[#allocation11 + $0x10] sm:$0xff]   ;;  %v19309_v36 = vld [vmem:[#allocation11 + $0x58] sm:$0xff]  }
 0x972   :  { %v16128_v42 = vpack.c.bf16 %v20344_v56, %v20341_v43  ;;  %v16121_v6 = vmul.f32 %v16105_v48, %v20329_v28  ;;  %v18901_v28 = vcombine.low %v12776_v29, %v12780_v59  ;;  %v18919_v51 = vcombine.low %v12793_v32, %v12797_v35  ;;  %v19308_v58 = vld [vmem:[#allocation11 + $0x90] sm:$0xff]   ;;  %v19310_v18 = vld [vmem:[#allocation11 + $0xd8] sm:$0xff]   ;;  %v19313_v38 = vld [vmem:[#allocation11 + $0x60] sm:$0xff]  }
 0x973   :  { %v16127_v8 = vpack.c.bf16 %v20352_v24, %v20347_v39  ;;  %15854 = vmatpush1.bf16.msra.mxu0 %v18885_v20  ;;  %v19314_v3 = vld [vmem:[#allocation11 + $0xe0] sm:$0xff]   ;;  %v19318_v23 = vld [vmem:[#allocation11 + $0xe8] sm:$0xff]   ;;  %v19322_v39 = vld [vmem:[#allocation11 + $0xf0] sm:$0xff]  }
 0x974   :  { %v16129_v25 = vpack.c.bf16 %v16121_v6, %v20355_v14  ;;  %16026 = vmatpush1.bf16.msra.mxu1 %v18887_v0  ;;  %15855 = vmatprep.subr.bf16.mxu0 %v18894_v13  ;;  %v19315_v20 = vld [vmem:[#allocation11 + $0x20] sm:$0xff]   ;;  %v19319_v0 = vld [vmem:[#allocation11 + $0x28] sm:$0xff]   ;;  %v19321_v13 = vld [vmem:[#allocation11 + $0x70] sm:$0xff]  }
 0x975   :  { %16027 = vmatprep.subr.bf16.mxu1 %v18896_v63  ;;  %v19320_v48 = vld [vmem:[#allocation11 + $0xa8] sm:$0xff]   ;;  %v19323_v24 = vld [vmem:[#allocation11 + $0x30] sm:$0xff]   ;;  %v19325_v29 = vld [vmem:[#allocation11 + $0x78] sm:$0xff]  }
 0x976   :  { %v19324_v63 = vld [vmem:[#allocation11 + $0xb0] sm:$0xff]   ;;  %v19326_v59 = vld [vmem:[#allocation11 + $0xf8] sm:$0xff]   ;;  %v19329_v10 = vld [vmem:[#allocation11 + $0x140] sm:$0xff]  }
 0x977   :  { %15856 = vmatpush1.bf16.msra.mxu0 %v18893_v26  ;;  %v19327_v14 = vld [vmem:[#allocation11 + $0x38] sm:$0xff]   ;;  %v19330_v21 = vld [vmem:[#allocation11 + $0x1c0] sm:$0xff]   ;;  %v19337_v37 = vld [vmem:[#allocation11 + $0x150] sm:$0xff]  }
 0x978   :  { %16028 = vmatpush1.bf16.msra.mxu1 %v18895_v16  ;;  %15857 = vmatprep.subr.bf16.mxu0 %v18902_v15  ;;  %v19328_v6 = vld [vmem:[#allocation11 + $0xb8] sm:$0xff]   ;;  %v19332_v26 = vld [vmem:[#allocation11 + $0x180] sm:$0xff]   ;;  %v19334_v16 = vld [vmem:[#allocation11 + $0x1c8] sm:$0xff]  }
 0x979   :  { %16029 = vmatprep.subr.bf16.mxu1 %v18904_v62  ;;  %v19335_v15 = vld [vmem:[#allocation11 + $0x108] sm:$0xff]   ;;  %v19338_v49 = vld [vmem:[#allocation11 + $0x1d0] sm:$0xff]   ;;  %v19341_v30 = vld [vmem:[#allocation11 + $0x158] sm:$0xff]  }
 0x97a   :  { %v19336_v62 = vld [vmem:[#allocation11 + $0x188] sm:$0xff]   ;;  %v19339_v22 = vld [vmem:[#allocation11 + $0x110] sm:$0xff]   ;;  %v19342_v44 = vld [vmem:[#allocation11 + $0x1d8] sm:$0xff]  }
 0x97b   :  { %15858 = vmatpush1.bf16.msra.mxu0 %v18901_v28  ;;  %v19340_v34 = vld [vmem:[#allocation11 + $0x190] sm:$0xff]   ;;  %v19343_v43 = vld [vmem:[#allocation11 + $0x118] sm:$0xff]   ;;  %v19347_v28 = vld [vmem:[#allocation11 + $0x120] sm:$0xff]  }
 0x97c   :  { %16030 = vmatpush1.bf16.msra.mxu1 %v18903_v41  ;;  %15859 = vmatprep.subr.bf16.mxu0 %v18910_v50  ;;  %v19344_v56 = vld [vmem:[#allocation11 + $0x198] sm:$0xff]   ;;  %v19348_v41 = vld [vmem:[#allocation11 + $0x1a0] sm:$0xff]   ;;  %v19349_v50 = vld [vmem:[#allocation11 + $0x168] sm:$0xff]  }
 0x97d   :  { %16031 = vmatprep.subr.bf16.mxu1 %v18912_v55  ;;  %v19350_v55 = vld [vmem:[#allocation11 + $0x1e8] sm:$0xff]   ;;  %v19353_v32 = vld [vmem:[#allocation11 + $0x170] sm:$0xff]  }
 0x97e   :  { %v19351_v11 = vld [vmem:[#allocation11 + $0x128] sm:$0xff]   ;;  %v19354_v35 = vld [vmem:[#allocation11 + $0x1f0] sm:$0xff]  }
 0x97f   :  { %15860 = vmatpush1.bf16.msra.mxu0 %v18909_v46  ;;  %v19352_v33 = vld [vmem:[#allocation11 + $0x1a8] sm:$0xff]   ;;  %v19355_v46 = vld [vmem:[#allocation11 + $0x130] sm:$0xff]  }
 0x980   :  { %16032 = vmatpush1.bf16.msra.mxu1 %v18911_v2  ;;  %15861 = vmatprep.subr.bf16.mxu0 %v18918_v47  ;;  %v19356_v2 = vld [vmem:[#allocation11 + $0x1b0] sm:$0xff]   ;;  %v19357_v47 = vld [vmem:[#allocation11 + $0x178] sm:$0xff]  }
 0x981   :  { %16033 = vmatprep.subr.bf16.mxu1 %v18920_v4  ;;  %v19358_v4 = vld [vmem:[#allocation11 + $0x1f8] sm:$0xff]  }
 0x983   :  { %15862 = vmatpush1.bf16.msra.mxu0 %v18917_v9  ;;  %v19359_v9 = vld [vmem:[#allocation11 + $0x138] sm:$0xff]  }
 0x984   :  { %16034 = vmatpush1.bf16.msra.mxu1 %v18919_v51  ;;  %18985 = vmatprep.subr.bf16.mxu0 %v19297_v57  ;;  %v19360_v51 = vld [vmem:[#allocation11 + $0x1b8] sm:$0xff]  }
 0x985   :  { %19007 = vmatprep.subr.bf16.mxu1 %v19298_v31 }
 0x986   :  { %15864 = vmatmul.mubr.bf16.vlgmr.msra.gmra.mrb[36].mxu0 %v20278_v45 }
 0x987   :  { %16036 = vmatmul.mubr.bf16.vlgmr.msra.gmra.mrb[36].mxu1 %v20278_v45  ;;  %18986 = vmatpush3.bf16.msra.mxu0 %v19299_v53  ;;  %v19311_v45 = vld [vmem:[#allocation11 + $0x18] sm:$0xff]  }
 0x988   :  { %16678 = vmatprep.mubr.bf16.mxu0 %v16127_v8  ;;  %19008 = vmatpush3.bf16.msra.mxu1 %v19300_v1  ;;  %v19331_v8 = vld [vmem:[#allocation11 + $0x100] sm:$0xff]  }
 0x989   :  { %16719 = vmatprep.mubr.bf16.mxu1 %v16129_v25  ;;  %18987 = vmatprep.subr.bf16.mxu0 %v19301_v12  ;;  %v19333_v25 = vld [vmem:[#allocation11 + $0x148] sm:$0xff]  }
 0x98a   :  { %19009 = vmatprep.subr.bf16.mxu1 %v19302_v17 }
 0x98b   :  { %18988 = vmatpush3.bf16.msra.mxu0 %v19303_v19 }
 0x98c   :  { %19010 = vmatpush3.bf16.msra.mxu1 %v19304_v54  ;;  %18989 = vmatprep.subr.bf16.mxu0 %v19305_v60 }
 0x98d   :  { %19011 = vmatprep.subr.bf16.mxu1 %v19306_v61 }
 0x98f   :  { %18990 = vmatpush3.bf16.msra.mxu0 %v19307_v52 }
 0x990   :  { %19012 = vmatpush3.bf16.msra.mxu1 %v19308_v58  ;;  %18991 = vmatprep.subr.bf16.mxu0 %v19309_v36 }
 0x991   :  { %19013 = vmatprep.subr.bf16.mxu1 %v19310_v18 }
 0x993   :  { %18992 = vmatpush3.bf16.msra.mxu0 %v19311_v45 }
 0x994   :  { %19014 = vmatpush3.bf16.msra.mxu1 %v19312_v40  ;;  %18993 = vmatprep.subr.bf16.mxu0 %v19313_v38 }
 0x995   :  { %19015 = vmatprep.subr.bf16.mxu1 %v19314_v3 }
 0x997   :  { %18994 = vmatpush3.bf16.msra.mxu0 %v19315_v20 }
 0x998   :  { %19016 = vmatpush3.bf16.msra.mxu1 %v19316_v27  ;;  %18995 = vmatprep.subr.bf16.mxu0 %v19317_v5 }
 0x999   :  { %19017 = vmatprep.subr.bf16.mxu1 %v19318_v23 }
 0x99b   :  { %18996 = vmatpush3.bf16.msra.mxu0 %v19319_v0 }
 0x99c   :  { %19018 = vmatpush3.bf16.msra.mxu1 %v19320_v48  ;;  %18997 = vmatprep.subr.bf16.mxu0 %v19321_v13 }
 0x99d   :  { %19019 = vmatprep.subr.bf16.mxu1 %v19322_v39 }
 0x99f   :  { %18998 = vmatpush3.bf16.msra.mxu0 %v19323_v24 }
 0x9a0   :  { %19020 = vmatpush3.bf16.msra.mxu1 %v19324_v63  ;;  %18999 = vmatprep.subr.bf16.mxu0 %v19325_v29 }
 0x9a1   :  { %19021 = vmatprep.subr.bf16.mxu1 %v19326_v59 }
 0x9a3   :  { %19000 = vmatpush3.bf16.msra.mxu0 %v19327_v14 }
 0x9a4   :  { %19022 = vmatpush3.bf16.msra.mxu1 %v19328_v6  ;;  %19029 = vmatprep.subr.bf16.mxu0 %v19329_v10 }
 0x9a5   :  { %19051 = vmatprep.subr.bf16.mxu1 %v19330_v21 }
 0x9a6   :  { %16679 = vmatmul.mubr.bf16.vlgmr.msra.gmra.mrb[40].mxu0 %v16126_v7  ;;  %v19345_v7 = vld [vmem:[#allocation11 + $0x160] sm:$0xff]  }
 0x9a7   :  { %16720 = vmatmul.mubr.bf16.vlgmr.msra.gmra.mrb[40].mxu1 %v16128_v42  ;;  %19030 = vmatpush3.bf16.msra.mxu0 %v19331_v8  ;;  %v19346_v42 = vld [vmem:[#allocation11 + $0x1e0] sm:$0xff]  }
 0x9a8   :  { %19052 = vmatpush3.bf16.msra.mxu1 %v19332_v26  ;;  %19031 = vmatprep.subr.bf16.mxu0 %v19333_v25 }
 0x9a9   :  { %19053 = vmatprep.subr.bf16.mxu1 %v19334_v16 }
 0x9ab   :  { %19032 = vmatpush3.bf16.msra.mxu0 %v19335_v15 }
 0x9ac   :  { %19054 = vmatpush3.bf16.msra.mxu1 %v19336_v62  ;;  %19033 = vmatprep.subr.bf16.mxu0 %v19337_v37 }
 0x9ad   :  { %19055 = vmatprep.subr.bf16.mxu1 %v19338_v49 }
 0x9af   :  { %19034 = vmatpush3.bf16.msra.mxu0 %v19339_v22 }
 0x9b0   :  { %19056 = vmatpush3.bf16.msra.mxu1 %v19340_v34  ;;  %19035 = vmatprep.subr.bf16.mxu0 %v19341_v30 }
 0x9b1   :  { %19057 = vmatprep.subr.bf16.mxu1 %v19342_v44 }
 0x9b3   :  { %19036 = vmatpush3.bf16.msra.mxu0 %v19343_v43 }
 0x9b4   :  { %19058 = vmatpush3.bf16.msra.mxu1 %v19344_v56  ;;  %19037 = vmatprep.subr.bf16.mxu0 %v19345_v7 }
 0x9b5   :  { %19059 = vmatprep.subr.bf16.mxu1 %v19346_v42 }
 0x9b7   :  { %19038 = vmatpush3.bf16.msra.mxu0 %v19347_v28 }
 0x9b8   :  { %19060 = vmatpush3.bf16.msra.mxu1 %v19348_v41  ;;  %19039 = vmatprep.subr.bf16.mxu0 %v19349_v50 }
 0x9b9   :  { %19061 = vmatprep.subr.bf16.mxu1 %v19350_v55 }
 0x9bb   :  { %19040 = vmatpush3.bf16.msra.mxu0 %v19351_v11 }
 0x9bc   :  { %19062 = vmatpush3.bf16.msra.mxu1 %v19352_v33  ;;  %19041 = vmatprep.subr.bf16.mxu0 %v19353_v32 }
 0x9bd   :  { %19063 = vmatprep.subr.bf16.mxu1 %v19354_v35 }
 0x9bf   :  { %19042 = vmatpush3.bf16.msra.mxu0 %v19355_v46 }
 0x9c0   :  { %19064 = vmatpush3.bf16.msra.mxu1 %v19356_v2  ;;  %19043 = vmatprep.subr.bf16.mxu0 %v19357_v47 }
 0x9c1   :  { %19065 = vmatprep.subr.bf16.mxu1 %v19358_v4 }
 0x9c3   :  { %19044 = vmatpush3.bf16.msra.mxu0 %v19359_v9 }
 0x9c4   :  { %19066 = vmatpush3.bf16.msra.mxu1 %v19360_v51 }
 0xa59   :  { %v15865_v57 = vpop.f32.mrb[36].mxu0 }
 0xa5a   :  { %v16050_v31 = vmul.f32 0.5, %v15865_v57  ;;  %v16037_v53 = vpop.f32.mrb[36].mxu1  ;;  %v15867_v1 = vpop.f32.mrb[37].mxu0 }
 0xa5b   :  { %v16052_v12 = vmul.f32 0.5, %v16037_v53  ;;  %v16051_v17 = vmul.f32 0.5, %v15867_v1  ;;  %v16039_v19 = vpop.f32.mrb[37].mxu1  ;;  %v15869_v54 = vpop.f32.mrb[38].mxu0 }
 0xa5c   :  { %19505 = vtanh.f32 %v16050_v31  ;;  %v16053_v60 = vmul.f32 0.5, %v16039_v19  ;;  %v16058_v61 = vmul.f32 0.5, %v15869_v54  ;;  %v16041_v52 = vpop.f32.mrb[38].mxu1  ;;  %v15871_v58 = vpop.f32.mrb[39].mxu0 }
 0xa5d   :  { %19507 = vtanh.f32 %v16052_v12  ;;  %v16060_v36 = vmul.f32 0.5, %v16041_v52  ;;  %v16043_v18 = vpop.f32.mrb[39].mxu1  ;;  %v16059_v45 = vmul.f32 0.5, %v15871_v58 }
 0xa5e   :  { %19509 = vtanh.f32 %v16051_v17  ;;  %v16061_v40 = vmul.f32 0.5, %v16043_v18 }
 0xa5f   :  { %19511 = vtanh.f32 %v16053_v60 }
 0xa60   :  { %19513 = vtanh.f32 %v16058_v61 }
 0xa61   :  { %19515 = vtanh.f32 %v16060_v36 }
 0xa62   :  { %19517 = vtanh.f32 %v16059_v45 }
 0xa63   :  { %19519 = vtanh.f32 %v16061_v40 }
 0xa66   :  { %v19506_v38 = vpop.eup %19505 }
 0xa67   :  { %v19508_v3 = vpop.eup %19507  ;;  %v16082_v20 = vmul.f32 0.5, %v19506_v38 }
 0xa68   :  { %v19510_v27 = vpop.eup %19509  ;;  %v16084_v5 = vmul.f32 0.5, %v19508_v3 }
 0xa69   :  { %v19512_v23 = vpop.eup %19511  ;;  %v16083_v0 = vmul.f32 0.5, %v19510_v27  ;;  %v16098_v24 = vadd.f32 0.5, %v16082_v20 }
 0xa6a   :  { %v19514_v48 = vpop.eup %19513  ;;  %v16085_v13 = vmul.f32 0.5, %v19512_v23  ;;  %v16100_v59 = vadd.f32 0.5, %v16084_v5 }
 0xa6b   :  { %v19516_v39 = vpop.eup %19515  ;;  %v16090_v63 = vmul.f32 0.5, %v19514_v48  ;;  %v16099_v10 = vadd.f32 0.5, %v16083_v0  ;;  %v16114_v15 = vmul.f32 %v16098_v24, %v15865_v57 }
 0xa6c   :  { %v19518_v29 = vpop.eup %19517  ;;  %v16092_v14 = vmul.f32 0.5, %v19516_v39  ;;  %v16101_v26 = vadd.f32 0.5, %v16085_v13  ;;  %v16116_v49 = vmul.f32 %v16100_v59, %v16037_v53 }
 0xa6d   :  { %v19520_v6 = vpop.eup %19519  ;;  %v16106_v21 = vadd.f32 0.5, %v16090_v63  ;;  %v16091_v8 = vmul.f32 0.5, %v19518_v29  ;;  %v16115_v30 = vmul.f32 %v16099_v10, %v15867_v1 }
 0xa6e   :  { %v16108_v25 = vadd.f32 0.5, %v16092_v14  ;;  %v16093_v16 = vmul.f32 0.5, %v19520_v6  ;;  %v16117_v56 = vmul.f32 %v16101_v26, %v16039_v19 }
 0xa6f   :  { %v16122_v62 = vmul.f32 %v16106_v21, %v15869_v54  ;;  %v16107_v37 = vadd.f32 0.5, %v16091_v8 }
 0xa70   :  { %v16124_v22 = vmul.f32 %v16108_v25, %v16041_v52  ;;  %v16109_v34 = vadd.f32 0.5, %v16093_v16 }
 0xa71   :  { %v16130_v44 = vpack.c.bf16 %v16122_v62, %v16114_v15  ;;  %v16123_v43 = vmul.f32 %v16107_v37, %v15871_v58 }
 0xa72   :  { %v16132_v7 = vpack.c.bf16 %v16124_v22, %v16116_v49  ;;  %v16125_v42 = vmul.f32 %v16109_v34, %v16043_v18 }
 0xa73   :  { %v16131_v28 = vpack.c.bf16 %v16123_v43, %v16115_v30 }
 0xa74   :  { %v16133_v41 = vpack.c.bf16 %v16125_v42, %v16117_v56 }
 0xa75   :  { %16760 = vmatprep.mubr.bf16.mxu0 %v16131_v28 }
 0xa76   :  { %16801 = vmatprep.mubr.bf16.mxu1 %v16133_v41  ;;  %16761 = vmatmul.mubr.bf16.vlgmr.msra.gmra.mrb[44].mxu0 %v16130_v44 }
 0xa77   :  { %16802 = vmatmul.mubr.bf16.vlgmr.msra.gmra.mrb[44].mxu1 %v16132_v7 }
 0xa79   :  { %v19001_v50 = vpop.f32.mrb[40].mxu0 }
 0xa7a   :  { %v19023_v55 = vpop.f32.mrb[40].mxu1  ;;  %v19002_v11 = vpop.f32.mrb[41].mxu0 }
 0xa7b   :  { %v19003_v33 = vadd.f32 %v19002_v11, %v19001_v50  ;;  %v19024_v32 = vpop.f32.mrb[41].mxu1  ;;  %v19004_v35 = vpop.f32.mrb[42].mxu0 }
 0xa7c   :  { %v19025_v46 = vadd.f32 %v19024_v32, %v19023_v55  ;;  %v19026_v2 = vpop.f32.mrb[42].mxu1  ;;  %v19005_v47 = vpop.f32.mrb[43].mxu0 }
 0xa7d   :  { %v19006_v4 = vadd.f32 %v19005_v47, %v19004_v35  ;;  %v19027_v9 = vpop.f32.mrb[43].mxu1 }
 0xa7e   :  { %v16722_v51 = vadd.f32 %v19025_v46, %v19003_v33  ;;  %v19028_v57 = vadd.f32 %v19027_v9, %v19026_v2 }
 0xa80   :  { %v16725_v31 = vadd.f32 %v19028_v57, %v19006_v4 }
 0xb49   :  { %v19045_v53 = vpop.f32.mrb[44].mxu0 }
 0xb4a   :  { %v19067_v1 = vpop.f32.mrb[44].mxu1  ;;  %v19046_v12 = vpop.f32.mrb[45].mxu0 }
 0xb4b   :  { %v19047_v17 = vadd.f32 %v19046_v12, %v19045_v53  ;;  %v19068_v19 = vpop.f32.mrb[45].mxu1  ;;  %v19048_v54 = vpop.f32.mrb[46].mxu0 }
 0xb4c   :  { %v19069_v60 = vadd.f32 %v19068_v19, %v19067_v1  ;;  %v19070_v61 = vpop.f32.mrb[46].mxu1  ;;  %v19049_v52 = vpop.f32.mrb[47].mxu0 }
 0xb4d   :  { %v16763_v58 = vadd.f32 %v19047_v17, %v16722_v51  ;;  %v19050_v36 = vadd.f32 %v19049_v52, %v19048_v54  ;;  %v19071_v18 = vpop.f32.mrb[47].mxu1 }
 0xb4e   :  { %v19072_v45 = vadd.f32 %v19071_v18, %v19070_v61 }
 0xb4f   :  { %v16804_v40 = vadd.f32 %v19069_v60, %v16763_v58  ;;  %v16766_v38 = vadd.f32 %v19050_v36, %v16725_v31 }
 0xb51   :  { %16810 = vst [vmem:[#allocation13] sm:$0xff] %v16804_v40  ;;  %v16807_v3 = vadd.f32 %v19072_v45, %v16766_v38 }
 0xb53   :  { %16811 = vst [vmem:[#allocation13 + $0x8] sm:$0xff] %v16807_v3 }
 0xb54   :  { %19664 = shalt.err (!%p19661_p10)
}
 0xb55   :  { %s19665_s0 = scalar_lea.hbm %s20389_s6, 256 }
 0xb56   :  { %p19666_p11 = scmp.ne.s32.totalorder %s20389_s6, %s19665_s0  ;;  %p19669_p12 = scmp.lt.u32.totalorder %s19665_s0, %s20389_s6 }
 0xb58   :  { %p19671_p13 = pnand %p19669_p12, %p19666_p11 }
 0xb5a   :  { %19674 = shalt.err (!%p19671_p13)
}
 0xb5b   :  { %s19698_s29 = smov 128   ;;  %s19699_s30 = smov 8  }
 0xb5c   :  { %16823 = dma.vmem_to_hbm [thread:$0]  %s16818_s8, 256, %s20389_s6, [#allocation4], %s19698_s29, %s19698_s29, %s19699_s30  }
 0xb5d   :  { %19683 = dma.done.wait [#allocation4], 256  }
 0xb5e   :  { %19684 = vsyncadd [#allocation4], 4294967040 }
 0xb5f   :  { %16827 = vsyncpa [#allocation3], 1 }
 0xb60   :  { %16828 = vsyncpa [#allocation6], 1 }
 0xb61   :  { %16829 = vsyncpa [#allocation9], 1 }
 0xb62   :  { %16830 = vsyncpa [#allocation12], 1 }
 0xb63   :  { %16831 = vsyncpa [#allocation4], 1 }

</bundles_post_ra>
